<compile_context>
chip_gen: v5e
topology: v5e:2x2
jax: 0.10.0
libtpu: 0.0.40
codegen_flags: <defaults>
</compile_context>

<pallas_src>
import jax
import jax.numpy as jnp
from jax.experimental import pallas as pl
from jax.experimental.pallas import tpu as pltpu

K_IN = 28 * 28          # 784 (multiple of 16 -> bf16 sublane packing OK, no K pad)
H1, H2, H3 = 512, 512, 256
N_OUT = 10
N_PAD = 128             # lane-dense logits store; sliced to 10 in the wrapper
TB_MAX = 512            # batch-tile cap (VMEM-safe everywhere with 32 MiB limit)


def _mlp_kernel(x_ref,
                w1_ref, b1_ref,
                w2_ref, b2_ref,
                w3_ref, b3_ref,
                w4_ref, b4_ref,
                out_ref):
    # x_ref: (TB, 784) f32 straight from HBM; bf16 cast happens here (VPU filler).
    x = x_ref[...].astype(jnp.bfloat16)

    h = jnp.dot(x, w1_ref[...],
                preferred_element_type=jnp.float32) + b1_ref[...]
    h = jnp.maximum(h, 0.0).astype(jnp.bfloat16)

    h = jnp.dot(h, w2_ref[...],
                preferred_element_type=jnp.float32) + b2_ref[...]
    h = jnp.maximum(h, 0.0).astype(jnp.bfloat16)

    h = jnp.dot(h, w3_ref[...],
                preferred_element_type=jnp.float32) + b3_ref[...]
    h = jnp.maximum(h, 0.0).astype(jnp.bfloat16)

    out_ref[...] = (jnp.dot(h, w4_ref[...],
                            preferred_element_type=jnp.float32)
                    + b4_ref[...]).astype(out_ref.dtype)


def prepare_params(params):
    """One-time conversion of PyTorch-layout params (w: (out,in), b: (out,))
    into kernel layout: bf16 (in,out) weights + f32 (1,out) biases.  Only the
    logits dim is padded (10 -> 128).  Do NOT call per forward pass."""
    (w1, b1), (w2, b2), (w3, b3), (w4, b4) = params

    def to_kernel_w(w, pad_out=0):
        wt = jnp.asarray(w, jnp.float32).T                      # (in, out)
        if pad_out:
            wt = jnp.pad(wt, ((0, 0), (0, pad_out)))
        return wt.astype(jnp.bfloat16)

    w1k = to_kernel_w(w1)                                       # (784, 512)
    w2k = to_kernel_w(w2)                                       # (512, 512)
    w3k = to_kernel_w(w3)                                       # (512, 256)
    w4k = to_kernel_w(w4, pad_out=N_PAD - N_OUT)                # (256, 128)

    b1k = jnp.asarray(b1, jnp.float32).reshape(1, H1)
    b2k = jnp.asarray(b2, jnp.float32).reshape(1, H2)
    b3k = jnp.asarray(b3, jnp.float32).reshape(1, H3)
    b4k = jnp.pad(jnp.asarray(b4, jnp.float32),
                  (0, N_PAD - N_OUT)).reshape(1, N_PAD)

    return (w1k, b1k, w2k, b2k, w3k, b3k, w4k, b4k)


def _choose_tb(batch):
    """Batch tile: 128-granular (MXU M), >=2 grid steps when B > 128 so both
    v7x TensorCores get fed, capped at TB_MAX to amortize grid-step overhead."""
    if batch <= 128:
        return 128
    tb = -(-batch // 2)                       # cdiv(batch, 2): aim for >= 2 tiles
    tb = ((tb + 127) // 128) * 128            # round up to 128
    return min(TB_MAX, tb)


@jax.jit
def mlp_forward(x, kernel_params):
    """x: (B, 1, 28, 28) or (B, 784) float32. Returns logits (B, 10) f32."""
    w1k, b1k, w2k, b2k, w3k, b3k, w4k, b4k = kernel_params

    x2d = x.reshape(-1, K_IN).astype(jnp.float32)               # x.view(-1, 784)
    B = x2d.shape[0]
    tb = _choose_tb(B)
    n_tiles = pl.cdiv(B, tb)
    b_pad = n_tiles * tb
    if b_pad != B:
        # Batch-rows-only zero pad (no K pad, no dtype pre-cast). Skipped
        # entirely when B is already a tile multiple.
        x2d = jnp.pad(x2d, ((0, b_pad - B), (0, 0)))

    # Resident-operand spec: block index constant across the batch grid, so
    # weights/biases are DMA'd once and stay in VMEM for every grid step.
    def resident(shape):
        return pl.BlockSpec(shape, lambda i: (0, 0))

    flops = 2 * b_pad * (K_IN * H1 + H1 * H2 + H2 * H3 + H3 * N_PAD)
    bytes_accessed = (
        b_pad * K_IN * 4 + b_pad * N_PAD * 4 +                  # f32 x tiles + out
        (K_IN * H1 + H1 * H2 + H2 * H3 + H3 * N_PAD) * 2 +      # bf16 weights
        (H1 + H2 + H3 + N_PAD) * 4                              # f32 biases
    )

    out_pad = pl.pallas_call(
        _mlp_kernel,
        out_shape=jax.ShapeDtypeStruct((b_pad, N_PAD), jnp.float32),
        grid=(n_tiles,),
        in_specs=[
            pl.BlockSpec((tb, K_IN), lambda i: (i, 0)),         # x tile (f32)
            resident((K_IN, H1)), resident((1, H1)),            # fc1
            resident((H1, H2)), resident((1, H2)),              # fc2
            resident((H2, H3)), resident((1, H3)),              # fc3
            resident((H3, N_PAD)), resident((1, N_PAD)),        # fc4
        ],
        out_specs=pl.BlockSpec((tb, N_PAD), lambda i: (i, 0)),
        compiler_params=pltpu.CompilerParams(
            dimension_semantics=("parallel",),
            vmem_limit_bytes=32 * 1024 * 1024),
        cost_estimate=pl.CostEstimate(
            flops=flops, transcendentals=0, bytes_accessed=bytes_accessed),
    )(x2d, w1k, b1k, w2k, b2k, w3k, b3k, w4k, b4k)

    return out_pad[:B, :N_OUT]


def init_params(key):
    """Deterministic init mirroring nn.Linear shapes (weight: (out, in), bias: (out,))."""
    dims = [(H1, K_IN), (H2, H1), (H3, H2), (N_OUT, H3)]
    params = []
    for i, (out_d, in_d) in enumerate(dims):
        kw, kb = jax.random.split(jax.random.fold_in(key, i))
        bound = 1.0 / jnp.sqrt(in_d)
        w = jax.random.uniform(kw, (out_d, in_d), jnp.float32, -bound, bound)
        b = jax.random.uniform(kb, (out_d,), jnp.float32, -bound, bound)
        params.append((w, b))
    return params


def _reference(x, params):
    (w1, b1), (w2, b2), (w3, b3), (w4, b4) = params
    h = x.reshape(-1, K_IN)
    h = jnp.maximum(h @ w1.T + b1, 0.0)
    h = jnp.maximum(h @ w2.T + b2, 0.0)
    h = jnp.maximum(h @ w3.T + b3, 0.0)
    return h @ w4.T + b4


if __name__ == "__main__":
    key = jax.random.PRNGKey(0)
    kx, kp = jax.random.split(key)

    B = 8
    x = jax.random.normal(kx, (B, 1, 28, 28), jnp.float32)  # NCHW like PyTorch MNIST
    params = init_params(kp)

    kernel_params = prepare_params(params)   # one-time layout/cast/pad
    out = jax.block_until_ready(mlp_forward(x, kernel_params))

    ref = _reference(x, params)
    assert out.shape == (B, N_OUT)
    # bf16 MXU inputs with f32 accumulation -> relaxed tolerance vs f32 reference.
    assert jnp.allclose(out, ref, atol=3e-2, rtol=3e-2), (
        float(jnp.max(jnp.abs(out - ref))))

    print("KERNEL_OK")
</pallas_src>

<mosaic_0001>
module attributes {stable_mosaic.version = 11 : i64} {
  func.func @_mlp_kernel(%arg0: i32, %arg1: memref<128x784xf32, #tpu.memory_space<vmem>>, %arg2: memref<784x512xbf16, #tpu.memory_space<vmem>>, %arg3: memref<1x512xf32, #tpu.memory_space<vmem>>, %arg4: memref<512x512xbf16, #tpu.memory_space<vmem>>, %arg5: memref<1x512xf32, #tpu.memory_space<vmem>>, %arg6: memref<512x256xbf16, #tpu.memory_space<vmem>>, %arg7: memref<1x256xf32, #tpu.memory_space<vmem>>, %arg8: memref<256x128xbf16, #tpu.memory_space<vmem>>, %arg9: memref<1x128xf32, #tpu.memory_space<vmem>>, %arg10: memref<128x128xf32, #tpu.memory_space<vmem>>) attributes {dimension_semantics = [#tpu.dimension_semantics<parallel>], iteration_bounds = array<i64: 1>, scalar_prefetch = 0 : i64, scratch_operands = 0 : i64, tpu.core_type = #tpu.core_type<tc>, window_params = [{transform_indices = @transform_0, window_bounds = array<i64: 128, 784>}, {pipeline_mode = #tpu.pipeline_mode<synchronous>, transform_indices = @transform_1, window_bounds = array<i64: 784, 512>}, {pipeline_mode = #tpu.pipeline_mode<synchronous>, transform_indices = @transform_2, window_bounds = array<i64: 1, 512>}, {pipeline_mode = #tpu.pipeline_mode<synchronous>, transform_indices = @transform_3, window_bounds = array<i64: 512, 512>}, {pipeline_mode = #tpu.pipeline_mode<synchronous>, transform_indices = @transform_4, window_bounds = array<i64: 1, 512>}, {pipeline_mode = #tpu.pipeline_mode<synchronous>, transform_indices = @transform_5, window_bounds = array<i64: 512, 256>}, {pipeline_mode = #tpu.pipeline_mode<synchronous>, transform_indices = @transform_6, window_bounds = array<i64: 1, 256>}, {pipeline_mode = #tpu.pipeline_mode<synchronous>, transform_indices = @transform_7, window_bounds = array<i64: 256, 128>}, {pipeline_mode = #tpu.pipeline_mode<synchronous>, transform_indices = @transform_8, window_bounds = array<i64: 1, 128>}, {transform_indices = @transform_9, window_bounds = array<i64: 128, 128>}]} {
    %c0 = arith.constant 0 : index
    %c0_0 = arith.constant 0 : index
    %0 = vector.load %arg1[%c0, %c0_0] : memref<128x784xf32, #tpu.memory_space<vmem>>, vector<128x784xf32>
    %1 = arith.truncf %0 : vector<128x784xf32> to vector<128x784xbf16>
    %c0_1 = arith.constant 0 : index
    %c0_2 = arith.constant 0 : index
    %2 = vector.load %arg2[%c0_1, %c0_2] : memref<784x512xbf16, #tpu.memory_space<vmem>>, vector<784x512xbf16>
    %cst = arith.constant dense<0.000000e+00> : vector<128x512xf32>
    %3 = tpu.matmul %1, %2, %cst {dimension_numbers = #tpu.dot_dimension_numbers<[1], [0], [0], [1], [0, 0, 1, 1], [], []>} : vector<128x784xbf16>, vector<784x512xbf16>, vector<128x512xf32> -> vector<128x512xf32>
    %c0_3 = arith.constant 0 : index
    %c0_4 = arith.constant 0 : index
    %4 = vector.load %arg3[%c0_3, %c0_4] : memref<1x512xf32, #tpu.memory_space<vmem>>, vector<1x512xf32>
    %5 = vector.broadcast %4 : vector<1x512xf32> to vector<128x512xf32>
    %6 = arith.addf %3, %5 : vector<128x512xf32>
    %cst_5 = arith.constant 0.000000e+00 : f32
    %7 = vector.broadcast %cst_5 : f32 to vector<128x512xf32>
    %8 = arith.maximumf %6, %7 : vector<128x512xf32>
    %9 = arith.truncf %8 : vector<128x512xf32> to vector<128x512xbf16>
    %c0_6 = arith.constant 0 : index
    %c0_7 = arith.constant 0 : index
    %10 = vector.load %arg4[%c0_6, %c0_7] : memref<512x512xbf16, #tpu.memory_space<vmem>>, vector<512x512xbf16>
    %cst_8 = arith.constant dense<0.000000e+00> : vector<128x512xf32>
    %11 = tpu.matmul %9, %10, %cst_8 {dimension_numbers = #tpu.dot_dimension_numbers<[1], [0], [0], [1], [0, 0, 1, 1], [], []>} : vector<128x512xbf16>, vector<512x512xbf16>, vector<128x512xf32> -> vector<128x512xf32>
    %c0_9 = arith.constant 0 : index
    %c0_10 = arith.constant 0 : index
    %12 = vector.load %arg5[%c0_9, %c0_10] : memref<1x512xf32, #tpu.memory_space<vmem>>, vector<1x512xf32>
    %13 = vector.broadcast %12 : vector<1x512xf32> to vector<128x512xf32>
    %14 = arith.addf %11, %13 : vector<128x512xf32>
    %cst_11 = arith.constant 0.000000e+00 : f32
    %15 = vector.broadcast %cst_11 : f32 to vector<128x512xf32>
    %16 = arith.maximumf %14, %15 : vector<128x512xf32>
    %17 = arith.truncf %16 : vector<128x512xf32> to vector<128x512xbf16>
    %c0_12 = arith.constant 0 : index
    %c0_13 = arith.constant 0 : index
    %18 = vector.load %arg6[%c0_12, %c0_13] : memref<512x256xbf16, #tpu.memory_space<vmem>>, vector<512x256xbf16>
    %cst_14 = arith.constant dense<0.000000e+00> : vector<128x256xf32>
    %19 = tpu.matmul %17, %18, %cst_14 {dimension_numbers = #tpu.dot_dimension_numbers<[1], [0], [0], [1], [0, 0, 1, 1], [], []>} : vector<128x512xbf16>, vector<512x256xbf16>, vector<128x256xf32> -> vector<128x256xf32>
    %c0_15 = arith.constant 0 : index
    %c0_16 = arith.constant 0 : index
    %20 = vector.load %arg7[%c0_15, %c0_16] : memref<1x256xf32, #tpu.memory_space<vmem>>, vector<1x256xf32>
    %21 = vector.broadcast %20 : vector<1x256xf32> to vector<128x256xf32>
    %22 = arith.addf %19, %21 : vector<128x256xf32>
    %cst_17 = arith.constant 0.000000e+00 : f32
    %23 = vector.broadcast %cst_17 : f32 to vector<128x256xf32>
    %24 = arith.maximumf %22, %23 : vector<128x256xf32>
    %25 = arith.truncf %24 : vector<128x256xf32> to vector<128x256xbf16>
    %c0_18 = arith.constant 0 : index
    %c0_19 = arith.constant 0 : index
    %26 = vector.load %arg8[%c0_18, %c0_19] : memref<256x128xbf16, #tpu.memory_space<vmem>>, vector<256x128xbf16>
    %cst_20 = arith.constant dense<0.000000e+00> : vector<128x128xf32>
    %27 = tpu.matmul %25, %26, %cst_20 {dimension_numbers = #tpu.dot_dimension_numbers<[1], [0], [0], [1], [0, 0, 1, 1], [], []>} : vector<128x256xbf16>, vector<256x128xbf16>, vector<128x128xf32> -> vector<128x128xf32>
    %c0_21 = arith.constant 0 : index
    %c0_22 = arith.constant 0 : index
    %28 = vector.load %arg9[%c0_21, %c0_22] : memref<1x128xf32, #tpu.memory_space<vmem>>, vector<1x128xf32>
    %29 = vector.broadcast %28 : vector<1x128xf32> to vector<128x128xf32>
    %30 = arith.addf %27, %29 : vector<128x128xf32>
    %c0_23 = arith.constant 0 : index
    %c0_24 = arith.constant 0 : index
    %31 = vector.load %arg10[%c0_23, %c0_24] : memref<128x128xf32, #tpu.memory_space<vmem>>, vector<128x128xf32>
    tpu.vector_store %arg10[%c0_23, %c0_24], %30 {strides = array<i32>} : memref<128x128xf32, #tpu.memory_space<vmem>>, vector<128x128xf32>,
    return
  }
  func.func @transform_0(%arg0: i32) -> (i32, i32) {
    %c0_i32 = arith.constant 0 : i32
    %c0_i32_0 = arith.constant 0 : i32
    return %arg0, %c0_i32 : i32, i32
  }
  func.func @transform_1(%arg0: i32) -> (i32, i32) {
    %c0_i32 = arith.constant 0 : i32
    %c0_i32_0 = arith.constant 0 : i32
    %c0_i32_1 = arith.constant 0 : i32
    return %c0_i32, %c0_i32_0 : i32, i32
  }
  func.func @transform_2(%arg0: i32) -> (i32, i32) {
    %c0_i32 = arith.constant 0 : i32
    %c0_i32_0 = arith.constant 0 : i32
    %c0_i32_1 = arith.constant 0 : i32
    return %c0_i32, %c0_i32_0 : i32, i32
  }
  func.func @transform_3(%arg0: i32) -> (i32, i32) {
    %c0_i32 = arith.constant 0 : i32
    %c0_i32_0 = arith.constant 0 : i32
    %c0_i32_1 = arith.constant 0 : i32
    return %c0_i32, %c0_i32_0 : i32, i32
  }
  func.func @transform_4(%arg0: i32) -> (i32, i32) {
    %c0_i32 = arith.constant 0 : i32
    %c0_i32_0 = arith.constant 0 : i32
    %c0_i32_1 = arith.constant 0 : i32
    return %c0_i32, %c0_i32_0 : i32, i32
  }
  func.func @transform_5(%arg0: i32) -> (i32, i32) {
    %c0_i32 = arith.constant 0 : i32
    %c0_i32_0 = arith.constant 0 : i32
    %c0_i32_1 = arith.constant 0 : i32
    return %c0_i32, %c0_i32_0 : i32, i32
  }
  func.func @transform_6(%arg0: i32) -> (i32, i32) {
    %c0_i32 = arith.constant 0 : i32
    %c0_i32_0 = arith.constant 0 : i32
    %c0_i32_1 = arith.constant 0 : i32
    return %c0_i32, %c0_i32_0 : i32, i32
  }
  func.func @transform_7(%arg0: i32) -> (i32, i32) {
    %c0_i32 = arith.constant 0 : i32
    %c0_i32_0 = arith.constant 0 : i32
    %c0_i32_1 = arith.constant 0 : i32
    return %c0_i32, %c0_i32_0 : i32, i32
  }
  func.func @transform_8(%arg0: i32) -> (i32, i32) {
    %c0_i32 = arith.constant 0 : i32
    %c0_i32_0 = arith.constant 0 : i32
    %c0_i32_1 = arith.constant 0 : i32
    return %c0_i32, %c0_i32_0 : i32, i32
  }
  func.func @transform_9(%arg0: i32) -> (i32, i32) {
    %c0_i32 = arith.constant 0 : i32
    %c0_i32_0 = arith.constant 0 : i32
    return %arg0, %c0_i32 : i32, i32
  }
}

</mosaic_0001>

<bundles_post_ra>
// kernel: mlp_forward.1
= control target key start
LH: loop header
LB: loop body
LE: loop exit
PB: predicated region body
PF: predicated region fallthrough
CT: control target
= control target key end

     0   :  { %14 = vsyncpa [#allocation3], 0  ;;  %s10975_s0 = inlined_call_operand.vmem [shape: f32[128,784], index: 0, kind: input, shape index: {}]   ;;  %s10976_s1 = inlined_call_operand.vmem [shape: bf16[784,512], index: 1, kind: input, shape index: {}]   ;;  %s10977_s2 = inlined_call_operand.vmem [shape: f32[1,512], index: 2, kind: input, shape index: {}]   ;;  %s10978_s3 = inlined_call_operand.hbm [shape: bf16[512,512], index: 3, kind: input, shape index: {}]   ;;  %s10979_s4 = inlined_call_operand.vmem [shape: f32[1,512], index: 4, kind: input, shape index: {}]   ;;  %s10980_s5 = inlined_call_operand.hbm [shape: bf16[512,256], index: 5, kind: input, shape index: {}]   ;;  %s10981_s6 = inlined_call_operand.vmem [shape: f32[1,256], index: 6, kind: input, shape index: {}]   ;;  %s10982_s7 = inlined_call_operand.vmem [shape: bf16[256,128], index: 7, kind: input, shape index: {}]   ;;  %s10983_s8 = inlined_call_operand.vmem [shape: f32[1,128], index: 8, kind: input, shape index: {}]   ;;  %s10984_s9 = inlined_call_operand.vmem [shape: f32[128,128], index: 9, kind: output, shape index: {}]  }
   0x1   :  { %s26_s11 = sshll.u32 %s10978_s3, 4  ;;  %s27_s11 = int_to_ptr.hbm [resolvable:$true] %s26_s11 }
   0x2   :  { %15 = vsyncpa [#allocation5], 0  ;;  %s7782_s12 = smov [#allocation2]   ;;  %s41_s16 = sshll.u32 %s10980_s5, 4  ;;  %s42_s16 = int_to_ptr.hbm [resolvable:$true] %s41_s16 }
   0x3   :  { %s28_s13 = sshll.u32 %s7782_s12, 4  ;;  %s7783_s17 = smov 256   ;;  %s29_s13 = int_to_ptr.vmem [resolvable:$true] %s28_s13 }
   0x4   :  { %s7784_s18 = smov 16   ;;  %s7785_s19 = smov [#allocation4]  }
   0x5   :  { %34 = dma.hbm_to_vmem [thread:$0]  %s27_s11, 16384, %s29_s13, [#allocation3], %s7783_s17, %s7783_s17, %s7784_s18  }
   0x6   :  { %s43_s20 = sshll.u32 %s7785_s19, 4  ;;  %s7786_s21 = smov 128   ;;  %s44_s20 = int_to_ptr.vmem [resolvable:$true] %s43_s20 }
   0x7   :  { %s7787_s22 = smov 8  }
   0x8   :  { %49 = dma.hbm_to_vmem [thread:$0]  %s42_s16, 8192, %s44_s20, [#allocation5], %s7786_s21, %s7786_s21, %s7787_s22  }
   0x9   :  { %7778 = dma.done.wait [#allocation3], 16384  }
   0xa   :  { %7779 = vsyncadd [#allocation3], 4294950912 }
   0xb   :  { %7780 = dma.done.wait [#allocation5], 8192  }
   0xc   :  { %7781 = vsyncadd [#allocation5], 4294959104  ;;  %v5766_v0 = vld [vmem:[%s10976_s1 + $0xe0] sm:$0xf]  ;;  %v7330_v1 = vld [vmem:[%s10976_s1 + $0xec] sm:$0xf0] }
   0xd   :  { %v5894_v2 = vld [vmem:[%s10976_s1 + $0x1e0] sm:$0xf]  ;;  %v5767_v3 = vor.u32 %v7330_v1, %v5766_v0  ;;  %v7362_v4 = vld [vmem:[%s10976_s1 + $0x1ec] sm:$0xf0]  ;;  %v72_v47 = vld [vmem:[%s10975_s0 + $0x38] sm:$0xff]  ;;  %vm1419_vm0 = vcmask 130048  }
   0xe   :  { %v5750_v5 = vld [vmem:[%s10976_s1 + $0xc0] sm:$0xf]  ;;  %v7326_v6 = vld [vmem:[%s10976_s1 + $0xcc] sm:$0xf0]  ;;  %v5895_v7 = vor.u32 %v7362_v4, %v5894_v2  ;;  %v128_v54 = vld [vmem:[%s10975_s0 + $0x1f8] sm:$0xff] }
   0xf   :  { %v5878_v8 = vld [vmem:[%s10976_s1 + $0x1c0] sm:$0xf]  ;;  %v7358_v9 = vld [vmem:[%s10976_s1 + $0x1cc] sm:$0xf0]  ;;  %1444 = vmatpush.bf16.msra.mxu0 %v5767_v3  ;;  %7704 = vmatpush.bf16.msra.mxu2 %v5767_v3  ;;  %v5751_v10 = vor.u32 %v7326_v6, %v5750_v5  ;;  %v66_v55 = vld [vmem:[%s10975_s0 + $0x8] sm:$0xff] }
  0x10   :  { %1493 = vmatpush.bf16.msra.mxu1 %v5895_v7  ;;  %7712 = vmatpush.bf16.msra.mxu3 %v5895_v7  ;;  %v5879_v11 = vor.u32 %v7358_v9, %v5878_v8  ;;  %v5734_v12 = vld [vmem:[%s10976_s1 + $0xa0] sm:$0xf]  ;;  %v7322_v13 = vld [vmem:[%s10976_s1 + $0xac] sm:$0xf0]  ;;  %v122_v58 = vld [vmem:[%s10975_s0 + $0x1c8] sm:$0xff] }
  0x11   :  { %v5862_v14 = vld [vmem:[%s10976_s1 + $0x1a0] sm:$0xf]  ;;  %v7354_v15 = vld [vmem:[%s10976_s1 + $0x1ac] sm:$0xf0]  ;;  %v5735_v16 = vor.u32 %v7322_v13, %v5734_v12 }
  0x12   :  { %v5863_v17 = vor.u32 %v7354_v15, %v5862_v14  ;;  %v5718_v18 = vld [vmem:[%s10976_s1 + $0x80] sm:$0xf]  ;;  %v7318_v19 = vld [vmem:[%s10976_s1 + $0x8c] sm:$0xf0] }
  0x13   :  { %1445 = vmatpush.bf16.msra.mxu0 %v5751_v10  ;;  %7705 = vmatpush.bf16.msra.mxu2 %v5751_v10  ;;  %v5846_v20 = vld [vmem:[%s10976_s1 + $0x180] sm:$0xf]  ;;  %v7350_v21 = vld [vmem:[%s10976_s1 + $0x18c] sm:$0xf0]  ;;  %v5719_v22 = vor.u32 %v7318_v19, %v5718_v18 }
  0x14   :  { %1494 = vmatpush.bf16.msra.mxu1 %v5879_v11  ;;  %7713 = vmatpush.bf16.msra.mxu3 %v5879_v11  ;;  %v5847_v23 = vor.u32 %v7350_v21, %v5846_v20  ;;  %v5702_v24 = vld [vmem:[%s10976_s1 + $0x60] sm:$0xf]  ;;  %v7314_v25 = vld [vmem:[%s10976_s1 + $0x6c] sm:$0xf0] }
  0x15   :  { %v5830_v26 = vld [vmem:[%s10976_s1 + $0x160] sm:$0xf]  ;;  %v7346_v27 = vld [vmem:[%s10976_s1 + $0x16c] sm:$0xf0]  ;;  %v5703_v28 = vor.u32 %v7314_v25, %v5702_v24 }
  0x16   :  { %v5831_v29 = vor.u32 %v7346_v27, %v5830_v26  ;;  %v5686_v30 = vld [vmem:[%s10976_s1 + $0x40] sm:$0xf]  ;;  %v7310_v31 = vld [vmem:[%s10976_s1 + $0x4c] sm:$0xf0] }
  0x17   :  { %1446 = vmatpush.bf16.msra.mxu0 %v5735_v16  ;;  %7706 = vmatpush.bf16.msra.mxu2 %v5735_v16  ;;  %v5814_v32 = vld [vmem:[%s10976_s1 + $0x140] sm:$0xf]  ;;  %v7342_v33 = vld [vmem:[%s10976_s1 + $0x14c] sm:$0xf0]  ;;  %v5687_v34 = vor.u32 %v7310_v31, %v5686_v30 }
  0x18   :  { %1495 = vmatpush.bf16.msra.mxu1 %v5863_v17  ;;  %7714 = vmatpush.bf16.msra.mxu3 %v5863_v17  ;;  %v5815_v35 = vor.u32 %v7342_v33, %v5814_v32  ;;  %v5670_v36 = vld [vmem:[%s10976_s1 + $0x20] sm:$0xf]  ;;  %v7306_v37 = vld [vmem:[%s10976_s1 + $0x2c] sm:$0xf0] }
  0x19   :  { %v5798_v38 = vld [vmem:[%s10976_s1 + $0x120] sm:$0xf]  ;;  %v7338_v39 = vld [vmem:[%s10976_s1 + $0x12c] sm:$0xf0]  ;;  %v5671_v40 = vor.u32 %v7306_v37, %v5670_v36  ;;  %v142_v37 = vld [vmem:[%s10975_s0 + $0x268] sm:$0xff] }
  0x1a   :  { %v5654_v41 = vld [vmem:[%s10976_s1] sm:$0xf]  ;;  %v5799_v42 = vor.u32 %v7338_v39, %v5798_v38  ;;  %v7302_v43 = vld [vmem:[%s10976_s1 + $0xc] sm:$0xf0] }
  0x1b   :  { %1447 = vmatpush.bf16.msra.mxu0 %v5719_v22  ;;  %7707 = vmatpush.bf16.msra.mxu2 %v5719_v22  ;;  %v5782_v44 = vld [vmem:[%s10976_s1 + $0x100] sm:$0xf]  ;;  %v7334_v45 = vld [vmem:[%s10976_s1 + $0x10c] sm:$0xf0]  ;;  %v5655_v52 = vor.u32 %v7302_v43, %v5654_v41 }
  0x1c   :  { %1496 = vmatpush.bf16.msra.mxu1 %v5847_v23  ;;  %7715 = vmatpush.bf16.msra.mxu3 %v5847_v23  ;;  %v65_v46 = vld [vmem:[%s10975_s0] sm:$0xff]  ;;  %v7394_v49 = vld [vmem:[%s10976_s1 + $0x2ec] sm:$0xf0]  ;;  %v5783_v56 = vor.u32 %v7334_v45, %v5782_v44 }
  0x1d   :  { %v6022_v48 = vld [vmem:[%s10976_s1 + $0x2e0] sm:$0xf]  ;;  %v7426_v51 = vld [vmem:[%s10976_s1 + $0x3ec] sm:$0xf0]  ;;  %v7979_v63 = vpack.c.bf16 %v72_v47, %v65_v46  ;;  %v80_v46 = vld [vmem:[%s10975_s0 + $0x78] sm:$0xff] }
  0x1e   :  { %v6150_v50 = vld [vmem:[%s10976_s1 + $0x3e0] sm:$0xf]  ;;  %v6023_v60 = vor.u32 %v7394_v49, %v6022_v48  ;;  %v7390_v1 = vld [vmem:[%s10976_s1 + $0x2cc] sm:$0xf0]  ;;  %v136_v48 = vld [vmem:[%s10975_s0 + $0x238] sm:$0xff] }
  0x1f   :  { %1448 = vmatpush.bf16.msra.mxu0 %v5703_v28  ;;  %7708 = vmatpush.bf16.msra.mxu2 %v5703_v28  ;;  %v121_v53 = vld [vmem:[%s10975_s0 + $0x1c0] sm:$0xff]  ;;  %v6151_v61 = vor.u32 %v7426_v51, %v6150_v50  ;;  %11099 = vst [vmem:[#allocation8_spill] sm:$0xff] %v7979_v63  ;;  %v7422_v3 = vld [vmem:[%s10976_s1 + $0x3cc] sm:$0xf0] }
  0x20   :  { %1497 = vmatpush.bf16.msra.mxu1 %v5831_v29  ;;  %7716 = vmatpush.bf16.msra.mxu3 %v5831_v29  ;;  %v73_v57 = vld [vmem:[%s10975_s0 + $0x40] sm:$0xff]  ;;  %v7981_v0 = vpack.c.bf16 %v128_v54, %v121_v53  ;;  %v7386_v9 = vld [vmem:[%s10976_s1 + $0x2ac] sm:$0xf0] }
  0x21   :  { %v129_v59 = vld [vmem:[%s10975_s0 + $0x200] sm:$0xff]  ;;  %v7992_v4 = vpack.c.bf16 %v73_v57, %v66_v55  ;;  %v7418_v11 = vld [vmem:[%s10976_s1 + $0x3ac] sm:$0xf0] }
  0x22   :  { %v6006_v62 = vld [vmem:[%s10976_s1 + $0x2c0] sm:$0xf]  ;;  %v7994_v5 = vpack.c.bf16 %v129_v59, %v122_v58  ;;  %v7458_v13 = vld [vmem:[%s10976_s1 + $0x4ec] sm:$0xf0] }
  0x23   :  { %1449 = vmatpush.bf16.msra.mxu0 %v5687_v34  ;;  %7709 = vmatpush.bf16.msra.mxu2 %v5687_v34  ;;  %v6134_v2 = vld [vmem:[%s10976_s1 + $0x3c0] sm:$0xf]  ;;  %11100 = vst [vmem:[#allocation9_spill] sm:$0xff] %v7992_v4  ;;  %v6007_v7 = vor.u32 %v7390_v1, %v6006_v62  ;;  %v7490_v16 = vld [vmem:[%s10976_s1 + $0x5ec] sm:$0xf0] }
  0x24   :  { %1498 = vmatpush.bf16.msra.mxu1 %v5815_v35  ;;  %7717 = vmatpush.bf16.msra.mxu3 %v5815_v35  ;;  %11101 = vst [vmem:[#allocation10_spill] sm:$0xff] %v7994_v5  ;;  %v5990_v6 = vld [vmem:[%s10976_s1 + $0x2a0] sm:$0xf]  ;;  %v6135_v8 = vor.u32 %v7422_v3, %v6134_v2  ;;  %v7382_v18 = vld [vmem:[%s10976_s1 + $0x28c] sm:$0xf0]  ;;  %v86_v35 = vld [vmem:[%s10975_s0 + $0xa8] sm:$0xff] }
  0x25   :  { %v6118_v10 = vld [vmem:[%s10976_s1 + $0x3a0] sm:$0xf]  ;;  %v5991_v21 = vor.u32 %v7386_v9, %v5990_v6  ;;  %v7454_v23 = vld [vmem:[%s10976_s1 + $0x4cc] sm:$0xf0] }
  0x26   :  { %v6278_v12 = vld [vmem:[%s10976_s1 + $0x4e0] sm:$0xf]  ;;  %v6119_v22 = vor.u32 %v7418_v11, %v6118_v10  ;;  %v7486_v25 = vld [vmem:[%s10976_s1 + $0x5cc] sm:$0xf0] }
  0x27   :  { %1450 = vmatpush.bf16.msra.mxu0 %v5671_v40  ;;  %7710 = vmatpush.bf16.msra.mxu2 %v5671_v40  ;;  %v6406_v14 = vld [vmem:[%s10976_s1 + $0x5e0] sm:$0xf]  ;;  %v6279_v15 = vor.u32 %v7458_v13, %v6278_v12  ;;  %v7414_v27 = vld [vmem:[%s10976_s1 + $0x38c] sm:$0xf0] }
  0x28   :  { %1499 = vmatpush.bf16.msra.mxu1 %v5799_v42  ;;  %7718 = vmatpush.bf16.msra.mxu3 %v5799_v42  ;;  %v5974_v17 = vld [vmem:[%s10976_s1 + $0x280] sm:$0xf]  ;;  %v6407_v19 = vor.u32 %v7490_v16, %v6406_v14  ;;  %v7450_v31 = vld [vmem:[%s10976_s1 + $0x4ac] sm:$0xf0] }
  0x29   :  { %v6262_v20 = vld [vmem:[%s10976_s1 + $0x4c0] sm:$0xf]  ;;  %v7482_v33 = vld [vmem:[%s10976_s1 + $0x5ac] sm:$0xf0]  ;;  %v5975_v38 = vor.u32 %v7382_v18, %v5974_v17 }
  0x2a   :  { %v6390_v24 = vld [vmem:[%s10976_s1 + $0x5c0] sm:$0xf]  ;;  %v6263_v28 = vor.u32 %v7454_v23, %v6262_v20  ;;  %v79_v34 = vld [vmem:[%s10975_s0 + $0x70] sm:$0xff] }
  0x2b   :  { %1451 = vmatpush.bf16.msra.mxu0 %v5655_v52  ;;  %7711 = vmatpush.bf16.msra.mxu2 %v5655_v52  ;;  %v6102_v26 = vld [vmem:[%s10976_s1 + $0x380] sm:$0xf]  ;;  %v6391_v29 = vor.u32 %v7486_v25, %v6390_v24  ;;  %v135_v36 = vld [vmem:[%s10975_s0 + $0x230] sm:$0xff]  ;;  %v8111_v57 = vpack.c.bf16 %v86_v35, %v79_v34 }
  0x2c   :  { %1500 = vmatpush.bf16.msra.mxu1 %v5783_v56  ;;  %7719 = vmatpush.bf16.msra.mxu3 %v5783_v56  ;;  %v6246_v30 = vld [vmem:[%s10976_s1 + $0x4a0] sm:$0xf]  ;;  %v6103_v39 = vor.u32 %v7414_v27, %v6102_v26  ;;  %v7378_v41 = vld [vmem:[%s10976_s1 + $0x26c] sm:$0xf0]  ;;  %v8113_v58 = vpack.c.bf16 %v142_v37, %v135_v36  ;;  %v100_v37 = vld [vmem:[%s10975_s0 + $0x118] sm:$0xff] }
  0x2d   :  { %v6374_v32 = vld [vmem:[%s10976_s1 + $0x5a0] sm:$0xf]  ;;  %v7410_v43 = vld [vmem:[%s10976_s1 + $0x36c] sm:$0xf0]  ;;  %v6247_v44 = vor.u32 %v7450_v31, %v6246_v30 }
  0x2e   :  { %1452 = vmatmul.bf16.vlgmr.msra.gmra.mxu0 %v7979_v63  ;;  %1472 = vmatmul.bf16.vlgmr.msra.gmra.mxu2 %v7981_v0  ;;  %v5958_v40 = vld [vmem:[%s10976_s1 + $0x260] sm:$0xf]  ;;  %v6375_v45 = vor.u32 %v7482_v33, %v6374_v32  ;;  %v87_v47 = vld [vmem:[%s10975_s0 + $0xb0] sm:$0xff] }
  0x2f   :  { %1542 = vmatpush.bf16.msrb.mxu2 %v6023_v60  ;;  %1501 = vmatmul.bf16.vlgmr.msra.gmra.mxu1 %v7992_v4  ;;  %v6086_v42 = vld [vmem:[%s10976_s1 + $0x360] sm:$0xf]  ;;  %v143_v49 = vld [vmem:[%s10975_s0 + $0x270] sm:$0xff]  ;;  %v5959_v52 = vor.u32 %v7378_v41, %v5958_v40  ;;  %v8124_v62 = vpack.c.bf16 %v87_v47, %v80_v46  ;;  %v94_v40 = vld [vmem:[%s10975_s0 + $0xe8] sm:$0xff] }
  0x30   :  { %1591 = vmatpush.bf16.msrb.mxu3 %v6151_v61  ;;  %1640 = vmatpush.bf16.msrb.mxu0 %v6279_v15  ;;  %v5942_v50 = vld [vmem:[%s10976_s1 + $0x240] sm:$0xf]  ;;  %v6087_v53 = vor.u32 %v7410_v43, %v6086_v42  ;;  %v7446_v54 = vld [vmem:[%s10976_s1 + $0x48c] sm:$0xf0]  ;;  %v8126_v1 = vpack.c.bf16 %v143_v49, %v136_v48  ;;  %v150_v42 = vld [vmem:[%s10975_s0 + $0x2a8] sm:$0xff] }
  0x31   :  { %1521 = vmatmul.bf16.vlgmr.msra.gmra.mxu3 %v7994_v5  ;;  %1689 = vmatpush.bf16.msrb.mxu1 %v6407_v19  ;;  %v6230_v51 = vld [vmem:[%s10976_s1 + $0x480] sm:$0xf]  ;;  %v7478_v56 = vld [vmem:[%s10976_s1 + $0x58c] sm:$0xf0]  ;;  %11102 = vst [vmem:[#allocation11_spill] sm:$0xff] %v8124_v62 }
  0x32   :  { %v6358_v55 = vld [vmem:[%s10976_s1 + $0x580] sm:$0xf]  ;;  %v7374_v59 = vld [vmem:[%s10976_s1 + $0x24c] sm:$0xf0]  ;;  %11103 = vst [vmem:[#allocation12_spill] sm:$0xff] %v8126_v1  ;;  %v6231_v2 = vor.u32 %v7446_v54, %v6230_v51 }
  0x33   :  { %1543 = vmatpush.bf16.msrb.mxu2 %v6007_v7  ;;  %v6070_v60 = vld [vmem:[%s10976_s1 + $0x340] sm:$0xf]  ;;  %v7406_v61 = vld [vmem:[%s10976_s1 + $0x34c] sm:$0xf0]  ;;  %v6359_v3 = vor.u32 %v7478_v56, %v6358_v55  ;;  %v5943_v6 = vor.u32 %v7374_v59, %v5942_v50 }
  0x34   :  { %1592 = vmatpush.bf16.msrb.mxu3 %v6135_v8  ;;  %1641 = vmatpush.bf16.msrb.mxu0 %v6263_v28  ;;  %v6071_v7 = vor.u32 %v7406_v61, %v6070_v60  ;;  %v6214_v8 = vld [vmem:[%s10976_s1 + $0x460] sm:$0xf]  ;;  %v7442_v9 = vld [vmem:[%s10976_s1 + $0x46c] sm:$0xf0]  ;;  %v7328_v60 = vld [vmem:[%s10976_s1 + $0xe4] sm:$0xf] }
  0x35   :  { %1690 = vmatpush.bf16.msrb.mxu1 %v6391_v29  ;;  %v6342_v10 = vld [vmem:[%s10976_s1 + $0x560] sm:$0xf]  ;;  %v7370_v12 = vld [vmem:[%s10976_s1 + $0x22c] sm:$0xf0]  ;;  %v6215_v14 = vor.u32 %v7442_v9, %v6214_v8  ;;  %v170_v9 = vld [vmem:[%s10975_s0 + $0x348] sm:$0xff] }
  0x36   :  { %v5926_v11 = vld [vmem:[%s10976_s1 + $0x220] sm:$0xf]  ;;  %v7474_v13 = vld [vmem:[%s10976_s1 + $0x56c] sm:$0xf0] }
  0x37   :  { %1544 = vmatpush.bf16.msrb.mxu2 %v5991_v21  ;;  %v6343_v15 = vor.u32 %v7474_v13, %v6342_v10  ;;  %v6054_v16 = vld [vmem:[%s10976_s1 + $0x320] sm:$0xf]  ;;  %v7402_v17 = vld [vmem:[%s10976_s1 + $0x32c] sm:$0xf0]  ;;  %v5927_v19 = vor.u32 %v7370_v12, %v5926_v11  ;;  %v108_v10 = vld [vmem:[%s10975_s0 + $0x158] sm:$0xff] }
  0x38   :  { %1593 = vmatpush.bf16.msrb.mxu3 %v6119_v22  ;;  %1642 = vmatpush.bf16.msrb.mxu0 %v6247_v44  ;;  %v6198_v18 = vld [vmem:[%s10976_s1 + $0x440] sm:$0xf]  ;;  %v6055_v20 = vor.u32 %v7402_v17, %v6054_v16  ;;  %v7438_v21 = vld [vmem:[%s10976_s1 + $0x44c] sm:$0xf0]  ;;  %v164_v12 = vld [vmem:[%s10975_s0 + $0x318] sm:$0xff] }
  0x39   :  { %1691 = vmatpush.bf16.msrb.mxu1 %v6375_v45  ;;  %v6326_v22 = vld [vmem:[%s10976_s1 + $0x540] sm:$0xf]  ;;  %v7470_v23 = vld [vmem:[%s10976_s1 + $0x54c] sm:$0xf0]  ;;  %v6199_v26 = vor.u32 %v7438_v21, %v6198_v18  ;;  %v7324_v18 = vld [vmem:[%s10976_s1 + $0xc4] sm:$0xf] }
  0x3a   :  { %v5910_v24 = vld [vmem:[%s10976_s1 + $0x200] sm:$0xf]  ;;  %v7366_v25 = vld [vmem:[%s10976_s1 + $0x20c] sm:$0xf0]  ;;  %v6327_v27 = vor.u32 %v7470_v23, %v6326_v22  ;;  %v74_v22 = vld [vmem:[%s10975_s0 + $0x48] sm:$0xff] }
  0x3b   :  { %1545 = vmatpush.bf16.msrb.mxu2 %v5975_v38  ;;  %v6182_v28 = vld [vmem:[%s10976_s1 + $0x420] sm:$0xf]  ;;  %v7398_v30 = vld [vmem:[%s10976_s1 + $0x30c] sm:$0xf0]  ;;  %v5911_v31 = vor.u32 %v7366_v25, %v5910_v24  ;;  %v68_v23 = vld [vmem:[%s10975_s0 + $0x18] sm:$0xff] }
  0x3c   :  { %1594 = vmatpush.bf16.msrb.mxu3 %v6103_v39  ;;  %1643 = vmatpush.bf16.msrb.mxu0 %v6231_v2  ;;  %v6038_v29 = vld [vmem:[%s10976_s1 + $0x300] sm:$0xf]  ;;  %v7434_v32 = vld [vmem:[%s10976_s1 + $0x42c] sm:$0xf0]  ;;  %v156_v39 = vld [vmem:[%s10975_s0 + $0x2d8] sm:$0xff] }
  0x3d   :  { %1692 = vmatpush.bf16.msrb.mxu1 %v6359_v3  ;;  %v6310_v33 = vld [vmem:[%s10976_s1 + $0x520] sm:$0xf]  ;;  %v7466_v34 = vld [vmem:[%s10976_s1 + $0x52c] sm:$0xf0]  ;;  %v6039_v35 = vor.u32 %v7398_v30, %v6038_v29  ;;  %v6183_v44 = vor.u32 %v7434_v32, %v6182_v28  ;;  %v5768_v2 = vld [vmem:[%s10976_s1 + $0xf0] sm:$0xf0] }
  0x3e   :  { %1457 = vmatmul.bf16.gmra.mxu0 %v8111_v57  ;;  %1477 = vmatmul.bf16.gmra.mxu2 %v8113_v58  ;;  %v93_v36 = vld [vmem:[%s10975_s0 + $0xe0] sm:$0xff]  ;;  %v6311_v45 = vor.u32 %v7466_v34, %v6310_v33  ;;  %v7430_v47 = vld [vmem:[%s10976_s1 + $0x40c] sm:$0xf0]  ;;  %v5771_v3 = vor.u32 %v7328_v60, %v5768_v2  ;;  %v76_v25 = vld [vmem:[%s10975_s0 + $0x58] sm:$0xff] }
  0x3f   :  { %1546 = vmatpush.bf16.msrb.mxu2 %v5959_v52  ;;  %1506 = vmatmul.bf16.gmra.mxu1 %v8124_v62  ;;  %v149_v38 = vld [vmem:[%s10975_s0 + $0x2a0] sm:$0xff]  ;;  %v7462_v49 = vld [vmem:[%s10976_s1 + $0x50c] sm:$0xf0]  ;;  %v8228_v50 = vpack.c.bf16 %v100_v37, %v93_v36  ;;  %v5736_v34 = vld [vmem:[%s10976_s1 + $0xb0] sm:$0xf0] }
  0x40   :  { %1595 = vmatpush.bf16.msrb.mxu3 %v6087_v53  ;;  %1644 = vmatpush.bf16.msrb.mxu0 %v6215_v14  ;;  %v101_v41 = vld [vmem:[%s10975_s0 + $0x120] sm:$0xff]  ;;  %v8230_v51 = vpack.c.bf16 %v156_v39, %v149_v38  ;;  %v7494_v59 = vld [vmem:[%s10976_s1 + $0x60c] sm:$0xf0]  ;;  %v88_v37 = vld [vmem:[%s10975_s0 + $0xb8] sm:$0xff] }
  0x41   :  { %1526 = vmatmul.bf16.gmra.mxu3 %v8126_v1  ;;  %1693 = vmatpush.bf16.msrb.mxu1 %v6343_v15  ;;  %v157_v43 = vld [vmem:[%s10975_s0 + $0x2e0] sm:$0xff]  ;;  %v8232_v52 = vpack.c.bf16 %v101_v41, %v94_v40  ;;  %v163_v8 = vld [vmem:[%s10975_s0 + $0x310] sm:$0xff]  ;;  %v82_v38 = vld [vmem:[%s10975_s0 + $0x88] sm:$0xff] }
  0x42   :  { %v6166_v46 = vld [vmem:[%s10976_s1 + $0x400] sm:$0xf]  ;;  %v8234_v53 = vpack.c.bf16 %v157_v43, %v150_v42  ;;  %v115_v11 = vld [vmem:[%s10975_s0 + $0x190] sm:$0xff]  ;;  %v8278_v15 = vpack.c.bf16 %v170_v9, %v163_v8  ;;  %v7320_v33 = vld [vmem:[%s10976_s1 + $0xa4] sm:$0xf] }
  0x43   :  { %1547 = vmatpush.bf16.msrb.mxu2 %v5943_v6  ;;  %v6294_v48 = vld [vmem:[%s10976_s1 + $0x500] sm:$0xf]  ;;  %11104 = vst [vmem:[#allocation13_spill] sm:$0xff] %v8232_v52  ;;  %v6167_v54 = vor.u32 %v7430_v47, %v6166_v46  ;;  %v107_v6 = vld [vmem:[%s10975_s0 + $0x150] sm:$0xff]  ;;  %v8280_v16 = vpack.c.bf16 %v115_v11, %v108_v10  ;;  %v90_v40 = vld [vmem:[%s10975_s0 + $0xc8] sm:$0xff] }
  0x44   :  { %1596 = vmatpush.bf16.msrb.mxu3 %v6071_v7  ;;  %1645 = vmatpush.bf16.msrb.mxu0 %v6199_v26  ;;  %11105 = vst [vmem:[#allocation14_spill] sm:$0xff] %v8234_v53  ;;  %v6295_v55 = vor.u32 %v7462_v49, %v6294_v48  ;;  %v6422_v56 = vld [vmem:[%s10976_s1 + $0x600] sm:$0xf]  ;;  %v114_v7 = vld [vmem:[%s10975_s0 + $0x188] sm:$0xff]  ;;  %v171_v13 = vld [vmem:[%s10975_s0 + $0x350] sm:$0xff] }
  0x45   :  { %1694 = vmatpush.bf16.msrb.mxu1 %v6327_v27  ;;  %v6423_v61 = vor.u32 %v7494_v59, %v6422_v56  ;;  %v8276_v14 = vpack.c.bf16 %v114_v7, %v107_v6  ;;  %11106 = vst [vmem:[#allocation15_spill] sm:$0xff] %v8278_v15  ;;  %v8282_v17 = vpack.c.bf16 %v171_v13, %v164_v12  ;;  %v67_v21 = vld [vmem:[%s10975_s0 + $0x10] sm:$0xff]  ;;  %v69_v24 = vld [vmem:[%s10975_s0 + $0x20] sm:$0xff]  ;;  %v70_v27 = vld [vmem:[%s10975_s0 + $0x28] sm:$0xff] }
  0x46   :  { %11107 = vst [vmem:[#allocation16_spill] sm:$0xff] %v8280_v16  ;;  %v75_v26 = vld [vmem:[%s10975_s0 + $0x50] sm:$0xff]  ;;  %v77_v28 = vld [vmem:[%s10975_s0 + $0x60] sm:$0xff]  ;;  %v8318_v29 = vpack.c.bf16 %v74_v22, %v67_v21  ;;  %v8320_v30 = vpack.c.bf16 %v76_v25, %v69_v24  ;;  %v84_v42 = vld [vmem:[%s10975_s0 + $0x98] sm:$0xff] }
  0x47   :  { %1548 = vmatpush.bf16.msrb.mxu2 %v5927_v19  ;;  %11108 = vst [vmem:[#allocation17_spill] sm:$0xff] %v8282_v17  ;;  %v5752_v19 = vld [vmem:[%s10976_s1 + $0xd0] sm:$0xf0]  ;;  %v8324_v32 = vpack.c.bf16 %v77_v28, %v70_v27  ;;  %v81_v36 = vld [vmem:[%s10975_s0 + $0x80] sm:$0xff]  ;;  %v102_v56 = vld [vmem:[%s10975_s0 + $0x128] sm:$0xff] }
  0x48   :  { %1597 = vmatpush.bf16.msrb.mxu3 %v6055_v20  ;;  %1646 = vmatpush.bf16.msrb.mxu0 %v6183_v44  ;;  %v5755_v20 = vor.u32 %v7324_v18, %v5752_v19  ;;  %11109 = vst [vmem:[#allocation18_spill] sm:$0xff] %v8318_v29  ;;  %v83_v39 = vld [vmem:[%s10975_s0 + $0x90] sm:$0xff]  ;;  %v89_v41 = vld [vmem:[%s10975_s0 + $0xc0] sm:$0xff]  ;;  %v8360_v44 = vpack.c.bf16 %v88_v37, %v81_v36  ;;  %v96_v59 = vld [vmem:[%s10975_s0 + $0xf8] sm:$0xff] }
  0x49   :  { %1695 = vmatpush.bf16.msrb.mxu1 %v6311_v45  ;;  %11111 = vst [vmem:[#allocation20_spill] sm:$0xff] %v8324_v32  ;;  %v91_v43 = vld [vmem:[%s10975_s0 + $0xd0] sm:$0xff]  ;;  %v8362_v45 = vpack.c.bf16 %v90_v40, %v83_v39  ;;  %v8364_v46 = vpack.c.bf16 %v89_v41, %v82_v38  ;;  %v7316_v48 = vld [vmem:[%s10976_s1 + $0x84] sm:$0xf]  ;;  %v116_v19 = vld [vmem:[%s10975_s0 + $0x198] sm:$0xff] }
  0x4a   :  { %11112 = vst [vmem:[#allocation21_spill] sm:$0xff] %v8360_v44  ;;  %v8366_v47 = vpack.c.bf16 %v91_v43, %v84_v42  ;;  %v5720_v49 = vld [vmem:[%s10976_s1 + $0x90] sm:$0xf0]  ;;  %v97_v60 = vld [vmem:[%s10975_s0 + $0x100] sm:$0xff]  ;;  %v118_v22 = vld [vmem:[%s10975_s0 + $0x1a8] sm:$0xff] }
  0x4b   :  { %1549 = vmatpush.bf16.msrb.mxu2 %v5911_v31  ;;  %v8322_v31 = vpack.c.bf16 %v75_v26, %v68_v23  ;;  %v103_v2 = vld [vmem:[%s10975_s0 + $0x130] sm:$0xff]  ;;  %v105_v6 = vld [vmem:[%s10975_s0 + $0x140] sm:$0xff]  ;;  %v112_v24 = vld [vmem:[%s10975_s0 + $0x178] sm:$0xff] }
  0x4c   :  { %1598 = vmatpush.bf16.msrb.mxu3 %v6039_v35  ;;  %1647 = vmatpush.bf16.msrb.mxu0 %v6167_v54  ;;  %v5739_v35 = vor.u32 %v7320_v33, %v5736_v34  ;;  %11113 = vst [vmem:[#allocation22_spill] sm:$0xff] %v8366_v47  ;;  %v5723_v54 = vor.u32 %v7316_v48, %v5720_v49  ;;  %v7312_v11 = vld [vmem:[%s10976_s1 + $0x64] sm:$0xf]  ;;  %v5704_v12 = vld [vmem:[%s10976_s1 + $0x70] sm:$0xf0]  ;;  %v130_v39 = vld [vmem:[%s10975_s0 + $0x208] sm:$0xff] }
  0x4d   :  { %1696 = vmatpush.bf16.msrb.mxu1 %v6295_v55  ;;  %11110 = vst [vmem:[#allocation19_spill] sm:$0xff] %v8322_v31  ;;  %v95_v55 = vld [vmem:[%s10975_s0 + $0xf0] sm:$0xff]  ;;  %v8406_v9 = vpack.c.bf16 %v103_v2, %v96_v59  ;;  %v5707_v13 = vor.u32 %v7312_v11, %v5704_v12  ;;  %v109_v18 = vld [vmem:[%s10975_s0 + $0x160] sm:$0xff]  ;;  %v124_v40 = vld [vmem:[%s10975_s0 + $0x1d8] sm:$0xff] }
  0x4e   :  { %1462 = vmatmul.bf16.gmra.mxu0 %v8228_v50  ;;  %1482 = vmatmul.bf16.gmra.mxu2 %v8230_v51  ;;  %v8402_v7 = vpack.c.bf16 %v102_v56, %v95_v55  ;;  %v111_v21 = vld [vmem:[%s10975_s0 + $0x170] sm:$0xff]  ;;  %v117_v23 = vld [vmem:[%s10975_s0 + $0x1a0] sm:$0xff]  ;;  %v8444_v26 = vpack.c.bf16 %v116_v19, %v109_v18  ;;  %v132_v42 = vld [vmem:[%s10975_s0 + $0x218] sm:$0xff] }
  0x4f   :  { %1511 = vmatmul.bf16.gmra.mxu1 %v8232_v52  ;;  %1745 = vmatpush.bf16.msra.mxu2 %v6423_v61  ;;  %v104_v61 = vld [vmem:[%s10975_s0 + $0x138] sm:$0xff]  ;;  %v119_v25 = vld [vmem:[%s10975_s0 + $0x1b0] sm:$0xff]  ;;  %v8446_v27 = vpack.c.bf16 %v118_v22, %v111_v21  ;;  %v7308_v34 = vld [vmem:[%s10976_s1 + $0x44] sm:$0xf] }
  0x50   :  { %1787 = vmatpush.bf16.msra.mxu3 %v5771_v3  ;;  %v98_v3 = vld [vmem:[%s10975_s0 + $0x108] sm:$0xff]  ;;  %v8404_v8 = vpack.c.bf16 %v104_v61, %v97_v60  ;;  %v8450_v33 = vpack.c.bf16 %v119_v25, %v112_v24  ;;  %v8465_v37 = vld [vmem:[%s10977_s2] sm:$0xf]  ;;  %v123_v38 = vld [vmem:[%s10975_s0 + $0x1d0] sm:$0xff] }
  0x51   :  { %1531 = vmatmul.bf16.gmra.mxu3 %v8234_v53  ;;  %v8408_v10 = vpack.c.bf16 %v105_v6, %v98_v3  ;;  %11116 = vst [vmem:[#allocation25_spill] sm:$0xff] %v8446_v27  ;;  %v125_v41 = vld [vmem:[%s10975_s0 + $0x1e0] sm:$0xff]  ;;  %v131_v43 = vld [vmem:[%s10975_s0 + $0x210] sm:$0xff]  ;;  %v126_v48 = vld [vmem:[%s10975_s0 + $0x1e8] sm:$0xff]  ;;  %v8494_v55 = vpack.c.bf16 %v130_v39, %v123_v38 }
  0x52   :  { %11114 = vst [vmem:[#allocation23_spill] sm:$0xff] %v8404_v8  ;;  %v133_v49 = vld [vmem:[%s10975_s0 + $0x220] sm:$0xff]  ;;  %v8496_v56 = vpack.c.bf16 %v132_v42, %v125_v41  ;;  %v8498_v60 = vpack.c.bf16 %v131_v43, %v124_v40  ;;  %v5896_v12 = vld [vmem:[%s10976_s1 + $0x1f0] sm:$0xf0] }
  0x53   :  { %11115 = vst [vmem:[#allocation24_spill] sm:$0xff] %v8408_v10  ;;  %v8500_v61 = vpack.c.bf16 %v133_v49, %v126_v48  ;;  %v7360_v11 = vld [vmem:[%s10976_s1 + $0x1e4] sm:$0xf]  ;;  %v6024_v18 = vld [vmem:[%s10976_s1 + $0x2f0] sm:$0xf0] }
  0x54   :  { %1788 = vmatpush.bf16.msra.mxu3 %v5755_v20  ;;  %v110_v20 = vld [vmem:[%s10975_s0 + $0x168] sm:$0xff]  ;;  %11118 = vst [vmem:[#allocation27_spill] sm:$0xff] %v8450_v33  ;;  %v5899_v19 = vor.u32 %v7360_v11, %v5896_v12  ;;  %v7304_v21 = vld [vmem:[%s10976_s1 + $0x24] sm:$0xf]  ;;  %v5672_v22 = vld [vmem:[%s10976_s1 + $0x30] sm:$0xf0] }
  0x55   :  { %v8448_v28 = vpack.c.bf16 %v117_v23, %v110_v20  ;;  %11119 = vst [vmem:[#allocation28_spill] sm:$0xff] %v8496_v56  ;;  %v5675_v24 = vor.u32 %v7304_v21, %v5672_v22  ;;  %v7356_v25 = vld [vmem:[%s10976_s1 + $0x1c4] sm:$0xf]  ;;  %v6008_v40 = vld [vmem:[%s10976_s1 + $0x2d0] sm:$0xf0]  ;;  %v146_v22 = vld [vmem:[%s10975_s0 + $0x288] sm:$0xff] }
  0x56   :  { %11120 = vst [vmem:[#allocation29_spill] sm:$0xff] %v8498_v60  ;;  %1836 = vmatpush.bf16.msra.mxu0 %v5899_v19  ;;  %v137_v12 = vld [vmem:[%s10975_s0 + $0x240] sm:$0xff]  ;;  %v5992_v19 = vld [vmem:[%s10976_s1 + $0x2b0] sm:$0xf0] }
  0x57   :  { %11117 = vst [vmem:[#allocation26_spill] sm:$0xff] %v8448_v28  ;;  %v139_v21 = vld [vmem:[%s10975_s0 + $0x250] sm:$0xff] }
  0x58   :  { %1789 = vmatpush.bf16.msra.mxu3 %v5739_v35  ;;  %v5688_v35 = vld [vmem:[%s10976_s1 + $0x50] sm:$0xf0]  ;;  %11121 = vst [vmem:[#allocation30_spill] sm:$0xff] %v8500_v61 }
  0x59   :  { %v5691_v36 = vor.u32 %v7308_v34, %v5688_v35  ;;  %v5880_v34 = vld [vmem:[%s10976_s1 + $0x1d0] sm:$0xf0]  ;;  %v7388_v35 = vld [vmem:[%s10976_s1 + $0x2c4] sm:$0xf] }
  0x5a   :  { %v5883_v39 = vor.u32 %v7356_v25, %v5880_v34  ;;  %v6011_v42 = vor.u32 %v7388_v35, %v6008_v40  ;;  %v140_v25 = vld [vmem:[%s10975_s0 + $0x258] sm:$0xff]  ;;  %v147_v34 = vld [vmem:[%s10975_s0 + $0x290] sm:$0xff] }
  0x5c   :  { %1790 = vmatpush.bf16.msra.mxu3 %v5723_v54  ;;  %v8492_v54 = vperm.slane %v8465_v37, 0  ;;  %1837 = vmatpush.bf16.msra.mxu0 %v5883_v39  ;;  %v7380_v39 = vld [vmem:[%s10976_s1 + $0x284] sm:$0xf] }
  0x5e   :  { %1467 = vmatmul.bf16.gmra.mxu0 %v8276_v14  ;;  %1487 = vmatmul.bf16.gmra.mxu2 %v8278_v15 }
  0x5f   :  { %1516 = vmatmul.bf16.gmra.mxu1 %v8280_v16 }
  0x60   :  { %1791 = vmatpush.bf16.msra.mxu3 %v5707_v13  ;;  %v7392_v13 = vld [vmem:[%s10976_s1 + $0x2e4] sm:$0xf] }
  0x61   :  { %1536 = vmatmul.bf16.gmra.mxu3 %v8282_v17  ;;  %v6027_v20 = vor.u32 %v7392_v13, %v6024_v18  ;;  %v144_v13 = vld [vmem:[%s10975_s0 + $0x278] sm:$0xff] }
  0x63   :  { %1885 = vmatpush.bf16.msra.mxu1 %v6027_v20  ;;  %v138_v20 = vld [vmem:[%s10975_s0 + $0x248] sm:$0xff] }
  0x64   :  { %1792 = vmatpush.bf16.msra.mxu3 %v5691_v36 }
  0x67   :  { %1886 = vmatpush.bf16.msra.mxu1 %v6011_v42  ;;  %v8591_v42 = vpack.c.bf16 %v144_v13, %v137_v12 }
  0x68   :  { %1793 = vmatpush.bf16.msra.mxu3 %v5675_v24  ;;  %v145_v24 = vld [vmem:[%s10975_s0 + $0x280] sm:$0xff] }
  0x69   :  { %11122 = vst [vmem:[#allocation31_spill] sm:$0xff] %v8591_v42 }
  0x6e   :  { %1550 = vmatmul.bf16.vlgmr.msrb.gmra.mxu2 %v8318_v29  ;;  %1648 = vmatmul.bf16.vlgmr.msrb.gmra.mxu0 %v8320_v30 }
  0x6f   :  { %1697 = vmatmul.bf16.vlgmr.msrb.gmra.mxu1 %v8324_v32 }
  0x71   :  { %1599 = vmatmul.bf16.vlgmr.msrb.gmra.mxu3 %v8322_v31 }
  0x7e   :  { %1555 = vmatmul.bf16.gmra.mxu2 %v8360_v44  ;;  %1653 = vmatmul.bf16.gmra.mxu0 %v8362_v45 }
  0x7f   :  { %1702 = vmatmul.bf16.gmra.mxu1 %v8366_v47 }
  0x81   :  { %1604 = vmatmul.bf16.gmra.mxu3 %v8364_v46 }
  0x8e   :  { %1560 = vmatmul.bf16.gmra.mxu2 %v8402_v7  ;;  %1658 = vmatmul.bf16.gmra.mxu0 %v8404_v8 }
  0x8f   :  { %1707 = vmatmul.bf16.gmra.mxu1 %v8408_v10 }
  0x91   :  { %1609 = vmatmul.bf16.gmra.mxu3 %v8406_v9 }
  0x9e   :  { %1565 = vmatmul.bf16.gmra.mxu2 %v8444_v26  ;;  %1663 = vmatmul.bf16.gmra.mxu0 %v8446_v27 }
  0x9f   :  { %1712 = vmatmul.bf16.gmra.mxu1 %v8450_v33 }
  0xa1   :  { %1614 = vmatmul.bf16.gmra.mxu3 %v8448_v28 }
  0xab   :  { %v1453_v59 = vpop.f32.mrf.mxu0 }
  0xac   :  { %v1454_v2 = vadd.f32 %v1453_v59, %v8492_v54  ;;  %v1502_v3 = vpop.f32.mrf.mxu1  ;;  %v7352_v59 = vld [vmem:[%s10976_s1 + $0x1a4] sm:$0xf] }
  0xae   :  { %v8503_v6 = vadd.f32 %v1502_v3, %v1454_v2  ;;  %1570 = vmatmul.bf16.gmra.mxu2 %v8494_v55  ;;  %1668 = vmatmul.bf16.gmra.mxu0 %v8496_v56  ;;  %v5864_v2 = vld [vmem:[%s10976_s1 + $0x1b0] sm:$0xf0]  ;;  %v7384_v3 = vld [vmem:[%s10976_s1 + $0x2a4] sm:$0xf] }
  0xaf   :  { %1717 = vmatmul.bf16.gmra.mxu1 %v8500_v61  ;;  %v5867_v18 = vor.u32 %v7352_v59, %v5864_v2  ;;  %v8598_v2 = vpack.c.bf16 %v145_v24, %v138_v20  ;;  %v5832_v20 = vld [vmem:[%s10976_s1 + $0x170] sm:$0xf0]  ;;  %v7364_v61 = vld [vmem:[%s10976_s1 + $0x204] sm:$0xf] }
  0xb1   :  { %1619 = vmatmul.bf16.gmra.mxu3 %v8498_v60  ;;  %v1473_v23 = vpop.f32.mrf.mxu2  ;;  %1838 = vmatpush.bf16.msra.mxu0 %v5867_v18  ;;  %11124 = vst [vmem:[#allocation33_spill] sm:$0xff] %v8598_v2  ;;  %v7344_v18 = vld [vmem:[%s10976_s1 + $0x164] sm:$0xf] }
  0xb2   :  { %v1474_v36 = vadd.f32 %v1473_v23, %v8492_v54  ;;  %v5995_v23 = vor.u32 %v7384_v3, %v5992_v19  ;;  %v8600_v3 = vpack.c.bf16 %v147_v34, %v140_v25  ;;  %v7300_v25 = vld [vmem:[%s10976_s1 + $0x4] sm:$0xf]  ;;  %v5656_v34 = vld [vmem:[%s10976_s1 + $0x10] sm:$0xf0] }
  0xb3   :  { %v1455_v41 = vpop.f32.mrf.mxu0 }
  0xb4   :  { %v1522_v38 = vpop.f32.mrf.mxu3  ;;  %v1456_v48 = vadd.f32 %v1455_v41, %v8492_v54  ;;  %v1504_v49 = vpop.f32.mrf.mxu1  ;;  %1887 = vmatpush.bf16.msra.mxu1 %v5995_v23  ;;  %11125 = vst [vmem:[#allocation34_spill] sm:$0xff] %v8600_v3  ;;  %v5835_v23 = vor.u32 %v7344_v18, %v5832_v20 }
  0xb5   :  { %v8540_v43 = vadd.f32 %v1522_v38, %v1474_v36  ;;  %v7348_v36 = vld [vmem:[%s10976_s1 + $0x184] sm:$0xf]  ;;  %v5848_v38 = vld [vmem:[%s10976_s1 + $0x190] sm:$0xf0] }
  0xb6   :  { %v8552_v11 = vadd.f32 %v1504_v49, %v1456_v48  ;;  %v8593_v48 = vpack.c.bf16 %v146_v22, %v139_v21  ;;  %v5976_v49 = vld [vmem:[%s10976_s1 + $0x290] sm:$0xf0]  ;;  %v5851_v12 = vor.u32 %v7348_v36, %v5848_v38  ;;  %v5659_v38 = vor.u32 %v7300_v25, %v5656_v34  ;;  %v7336_v25 = vld [vmem:[%s10976_s1 + $0x124] sm:$0xf] }
  0xb7   :  { %v5979_v13 = vor.u32 %v7380_v39, %v5976_v49  ;;  %v5960_v22 = vld [vmem:[%s10976_s1 + $0x270] sm:$0xf0]  ;;  %v7340_v39 = vld [vmem:[%s10976_s1 + $0x144] sm:$0xf] }
  0xb8   :  { %11123 = vst [vmem:[#allocation32_spill] sm:$0xff] %v8593_v48  ;;  %1839 = vmatpush.bf16.msra.mxu0 %v5851_v12  ;;  %1794 = vmatpush.bf16.msra.mxu3 %v5659_v38  ;;  %v5800_v34 = vld [vmem:[%s10976_s1 + $0x130] sm:$0xf0] }
  0xb9   :  { %v1475_v35 = vpop.f32.mrf.mxu2  ;;  %1888 = vmatpush.bf16.msra.mxu1 %v5979_v13 }
  0xba   :  { %v1476_v40 = vadd.f32 %v1475_v35, %v8492_v54 }
  0xbb   :  { %v1458_v59 = vpop.f32.mrf.mxu0 }
  0xbc   :  { %v1524_v41 = vpop.f32.mrf.mxu3  ;;  %v1459_v35 = vadd.f32 %v1458_v59, %v8492_v54  ;;  %v1507_v56 = vpop.f32.mrf.mxu1  ;;  %1840 = vmatpush.bf16.msra.mxu0 %v5835_v23  ;;  %v151_v23 = vld [vmem:[%s10975_s0 + $0x2b0] sm:$0xff] }
  0xbd   :  { %v8602_v19 = vadd.f32 %v1524_v41, %v1476_v40  ;;  %v5816_v40 = vld [vmem:[%s10976_s1 + $0x150] sm:$0xf0]  ;;  %v7372_v41 = vld [vmem:[%s10976_s1 + $0x244] sm:$0xf] }
  0xbe   :  { %v8605_v21 = vadd.f32 %v1507_v56, %v1459_v35  ;;  %1575 = vmatmul.bf16.gmra.mxu2 %v8591_v42  ;;  %1673 = vmatmul.bf16.gmra.mxu0 %v8593_v48  ;;  %v7376_v56 = vld [vmem:[%s10976_s1 + $0x264] sm:$0xf]  ;;  %v5944_v35 = vld [vmem:[%s10976_s1 + $0x250] sm:$0xf0]  ;;  %v5819_v13 = vor.u32 %v7340_v39, %v5816_v40  ;;  %v152_v40 = vld [vmem:[%s10975_s0 + $0x2b8] sm:$0xff] }
  0xbf   :  { %1722 = vmatmul.bf16.gmra.mxu1 %v8600_v3  ;;  %v5963_v24 = vor.u32 %v7376_v56, %v5960_v22  ;;  %v5947_v22 = vor.u32 %v7372_v41, %v5944_v35  ;;  %v5928_v39 = vld [vmem:[%s10976_s1 + $0x230] sm:$0xf0]  ;;  %v153_v41 = vld [vmem:[%s10975_s0 + $0x2c0] sm:$0xff]  ;;  %v154_v35 = vld [vmem:[%s10975_s0 + $0x2c8] sm:$0xff] }
  0xc0   :  { %1841 = vmatpush.bf16.msra.mxu0 %v5819_v13  ;;  %v7332_v3 = vld [vmem:[%s10976_s1 + $0x104] sm:$0xf] }
  0xc1   :  { %1624 = vmatmul.bf16.gmra.mxu3 %v8598_v2  ;;  %v1478_v36 = vpop.f32.mrf.mxu2  ;;  %1889 = vmatpush.bf16.msra.mxu1 %v5963_v24  ;;  %v158_v24 = vld [vmem:[%s10975_s0 + $0x2e8] sm:$0xff]  ;;  %v5784_v2 = vld [vmem:[%s10976_s1 + $0x110] sm:$0xf0] }
  0xc2   :  { %v1479_v49 = vadd.f32 %v1478_v36, %v8492_v54  ;;  %v7368_v36 = vld [vmem:[%s10976_s1 + $0x224] sm:$0xf]  ;;  %v8693_v13 = vpack.c.bf16 %v158_v24, %v151_v23  ;;  %v5787_v33 = vor.u32 %v7332_v3, %v5784_v2  ;;  %v6280_v2 = vld [vmem:[%s10976_s1 + $0x4f0] sm:$0xf0] }
  0xc3   :  { %v1460_v12 = vpop.f32.mrf.mxu0 }
  0xc4   :  { %v1527_v59 = vpop.f32.mrf.mxu3  ;;  %v1461_v20 = vadd.f32 %v1460_v12, %v8492_v54  ;;  %v1509_v56 = vpop.f32.mrf.mxu1  ;;  %v161_v12 = vld [vmem:[%s10975_s0 + $0x300] sm:$0xff]  ;;  %11126 = vst [vmem:[#allocation35_spill] sm:$0xff] %v8693_v13 }
  0xc5   :  { %v8642_v18 = vadd.f32 %v1527_v59, %v1479_v49  ;;  %v160_v49 = vld [vmem:[%s10975_s0 + $0x2f8] sm:$0xff]  ;;  %v159_v59 = vld [vmem:[%s10975_s0 + $0x2f0] sm:$0xff]  ;;  %1890 = vmatpush.bf16.msra.mxu1 %v5947_v22 }
  0xc6   :  { %v8654_v38 = vadd.f32 %v1509_v56, %v1461_v20  ;;  %v5803_v20 = vor.u32 %v7336_v25, %v5800_v34  ;;  %v5931_v56 = vor.u32 %v7368_v36, %v5928_v39  ;;  %v8695_v22 = vpack.c.bf16 %v160_v49, %v153_v41  ;;  %v5912_v25 = vld [vmem:[%s10976_s1 + $0x210] sm:$0xf0] }
  0xc7   :  { %v8700_v36 = vpack.c.bf16 %v159_v59, %v152_v40  ;;  %v8702_v39 = vpack.c.bf16 %v161_v12, %v154_v35  ;;  %v5915_v23 = vor.u32 %v7364_v61, %v5912_v25  ;;  %v172_v25 = vld [vmem:[%s10975_s0 + $0x358] sm:$0xff] }
  0xc8   :  { %11127 = vst [vmem:[#allocation36_spill] sm:$0xff] %v8695_v22  ;;  %1842 = vmatpush.bf16.msra.mxu0 %v5803_v20 }
  0xc9   :  { %v1480_v48 = vpop.f32.mrf.mxu2  ;;  %11128 = vst [vmem:[#allocation37_spill] sm:$0xff] %v8700_v36  ;;  %1891 = vmatpush.bf16.msra.mxu1 %v5931_v56  ;;  %v165_v56 = vld [vmem:[%s10975_s0 + $0x320] sm:$0xff] }
  0xca   :  { %v1481_v60 = vadd.f32 %v1480_v48, %v8492_v54  ;;  %11129 = vst [vmem:[#allocation38_spill] sm:$0xff] %v8702_v39 }
  0xcb   :  { %v1463_v34 = vpop.f32.mrf.mxu0 }
  0xcc   :  { %v1529_v27 = vpop.f32.mrf.mxu3  ;;  %v1464_v8 = vadd.f32 %v1463_v34, %v8492_v54  ;;  %v1512_v48 = vpop.f32.mrf.mxu1  ;;  %1843 = vmatpush.bf16.msra.mxu0 %v5787_v33  ;;  %v166_v34 = vld [vmem:[%s10975_s0 + $0x328] sm:$0xff] }
  0xcd   :  { %v8704_v28 = vadd.f32 %v1529_v27, %v1481_v60  ;;  %v7424_v27 = vld [vmem:[%s10976_s1 + $0x3e4] sm:$0xf]  ;;  %v6152_v60 = vld [vmem:[%s10976_s1 + $0x3f0] sm:$0xf0]  ;;  %1892 = vmatpush.bf16.msra.mxu1 %v5915_v23  ;;  %v174_v23 = vld [vmem:[%s10975_s0 + $0x368] sm:$0xff] }
  0xce   :  { %v8707_v24 = vadd.f32 %v1512_v48, %v1464_v8  ;;  %1580 = vmatmul.bf16.gmra.mxu2 %v8693_v13  ;;  %1678 = vmatmul.bf16.gmra.mxu0 %v8695_v22  ;;  %v7456_v8 = vld [vmem:[%s10976_s1 + $0x4e4] sm:$0xf]  ;;  %v6155_v61 = vor.u32 %v7424_v27, %v6152_v60  ;;  %v167_v48 = vld [vmem:[%s10975_s0 + $0x330] sm:$0xff]  ;;  %v168_v60 = vld [vmem:[%s10975_s0 + $0x338] sm:$0xff] }
  0xcf   :  { %1727 = vmatmul.bf16.gmra.mxu1 %v8702_v39  ;;  %v6283_v40 = vor.u32 %v7456_v8, %v6280_v2  ;;  %v173_v27 = vld [vmem:[%s10975_s0 + $0x360] sm:$0xff]  ;;  %v175_v8 = vld [vmem:[%s10975_s0 + $0x370] sm:$0xff] }
  0xd0   :  { %1934 = vmatpush.bf16.msrb.mxu2 %v6155_v61 }
  0xd1   :  { %1629 = vmatmul.bf16.gmra.mxu3 %v8700_v36  ;;  %v1483_v3 = vpop.f32.mrf.mxu2 }
  0xd2   :  { %v1484_v41 = vadd.f32 %v1483_v3, %v8492_v54  ;;  %1983 = vmatpush.bf16.msrb.mxu3 %v6283_v40  ;;  %v8756_v40 = vpack.c.bf16 %v172_v25, %v165_v56  ;;  %v7420_v56 = vld [vmem:[%s10976_s1 + $0x3c4] sm:$0xf]  ;;  %v6136_v25 = vld [vmem:[%s10976_s1 + $0x3d0] sm:$0xf0] }
  0xd3   :  { %v1465_v59 = vpop.f32.mrf.mxu0 }
  0xd4   :  { %v1532_v49 = vpop.f32.mrf.mxu3  ;;  %v1466_v12 = vadd.f32 %v1465_v59, %v8492_v54  ;;  %v1514_v20 = vpop.f32.mrf.mxu1  ;;  %11130 = vst [vmem:[#allocation39_spill] sm:$0xff] %v8756_v40  ;;  %v8760_v59 = vpack.c.bf16 %v173_v27, %v166_v34  ;;  %v6264_v34 = vld [vmem:[%s10976_s1 + $0x4d0] sm:$0xf0] }
  0xd5   :  { %v8726_v35 = vadd.f32 %v1532_v49, %v1484_v41  ;;  %v8758_v41 = vpack.c.bf16 %v174_v23, %v167_v48 }
  0xd6   :  { %v8729_v33 = vadd.f32 %v1514_v20, %v1466_v12  ;;  %v8762_v12 = vpack.c.bf16 %v175_v8, %v168_v60 }
  0xd7   :  { %11131 = vst [vmem:[#allocation40_spill] sm:$0xff] %v8758_v41 }
  0xd8   :  { %11132 = vst [vmem:[#allocation41_spill] sm:$0xff] %v8762_v12 }
  0xd9   :  { %v1485_v61 = vpop.f32.mrf.mxu2 }
  0xda   :  { %v1486_v2 = vadd.f32 %v1485_v61, %v8492_v54 }
  0xdb   :  { %v1468_v49 = vpop.f32.mrf.mxu0 }
  0xdc   :  { %v1534_v3 = vpop.f32.mrf.mxu3  ;;  %v1469_v22 = vadd.f32 %v1468_v49, %v8492_v54  ;;  %v1517_v39 = vpop.f32.mrf.mxu1 }
  0xdd   :  { %v8764_v20 = vadd.f32 %v1534_v3, %v1486_v2 }
  0xde   :  { %v8767_v36 = vadd.f32 %v1517_v39, %v1469_v22  ;;  %1585 = vmatmul.bf16.gmra.mxu2 %v8756_v40  ;;  %1683 = vmatmul.bf16.gmra.mxu0 %v8758_v41  ;;  %v7452_v22 = vld [vmem:[%s10976_s1 + $0x4c4] sm:$0xf]  ;;  %v6139_v39 = vor.u32 %v7420_v56, %v6136_v25  ;;  %v71_v56 = vld [vmem:[%s10975_s0 + $0x30] sm:$0xff]  ;;  %v78_v25 = vld [vmem:[%s10975_s0 + $0x68] sm:$0xff] }
  0xdf   :  { %1732 = vmatmul.bf16.gmra.mxu1 %v8762_v12  ;;  %v6267_v23 = vor.u32 %v7452_v22, %v6264_v34  ;;  %v85_v12 = vld [vmem:[%s10975_s0 + $0xa0] sm:$0xff] }
  0xe0   :  { %1935 = vmatpush.bf16.msrb.mxu2 %v6139_v39 }
  0xe1   :  { %1634 = vmatmul.bf16.gmra.mxu3 %v8760_v59  ;;  %v1488_v48 = vpop.f32.mrf.mxu2 }
  0xe2   :  { %v1489_v27 = vadd.f32 %v1488_v48, %v8492_v54  ;;  %1984 = vmatpush.bf16.msrb.mxu3 %v6267_v23  ;;  %v8798_v48 = vpack.c.bf16 %v78_v25, %v71_v56  ;;  %v6248_v56 = vld [vmem:[%s10976_s1 + $0x4b0] sm:$0xf0] }
  0xe3   :  { %v1470_v8 = vpop.f32.mrf.mxu0 }
  0xe4   :  { %v1537_v60 = vpop.f32.mrf.mxu3  ;;  %v1471_v2 = vadd.f32 %v1470_v8, %v8492_v54  ;;  %v1519_v3 = vpop.f32.mrf.mxu1  ;;  %11133 = vst [vmem:[#allocation42_spill] sm:$0xff] %v8798_v48  ;;  %v6120_v8 = vld [vmem:[%s10976_s1 + $0x3b0] sm:$0xf0] }
  0xe5   :  { %v8786_v61 = vadd.f32 %v1537_v60, %v1489_v27 }
  0xe6   :  { %v8789_v49 = vadd.f32 %v1519_v3, %v1471_v2  ;;  %v7448_v2 = vld [vmem:[%s10976_s1 + $0x4a4] sm:$0xf] }
  0xe9   :  { %v1490_v22 = vpop.f32.mrf.mxu2 }
  0xea   :  { %v1491_v39 = vadd.f32 %v1490_v22, %v8492_v54  ;;  %v7416_v54 = vld [vmem:[%s10976_s1 + $0x3a4] sm:$0xf]  ;;  %v6251_v22 = vor.u32 %v7448_v2, %v6248_v56 }
  0xeb   :  { %v1649_v23 = vpop.f32.mrf.mxu0  ;;  %v6123_v3 = vor.u32 %v7416_v54, %v6120_v8  ;;  %v92_v54 = vld [vmem:[%s10975_s0 + $0xd8] sm:$0xff] }
  0xec   :  { %v1539_v34 = vpop.f32.mrf.mxu3  ;;  %v1698_v60 = vpop.f32.mrf.mxu1  ;;  %1985 = vmatpush.bf16.msrb.mxu3 %v6251_v22 }
  0xed   :  { %v8800_v27 = vadd.f32 %v1539_v34, %v1491_v39  ;;  %1936 = vmatpush.bf16.msrb.mxu2 %v6123_v3  ;;  %v8829_v3 = vpack.c.bf16 %v92_v54, %v85_v12 }
  0xee   :  { %6436 = vmatmul.msk.bf16.vlgmr.msra.gmra.mxu2 %vm1419_vm0, %v8798_v48  ;;  %1844 = vmatmul.bf16.vlgmr.msra.gmra.mxu0 %v7992_v4 }
  0xef   :  { %1893 = vmatmul.bf16.vlgmr.msra.gmra.mxu1 %v8318_v29  ;;  %11134 = vst [vmem:[#allocation43_spill] sm:$0xff] %v8829_v3 }
  0xf1   :  { %1795 = vmatmul.bf16.vlgmr.msra.gmra.mxu3 %v7979_v63  ;;  %v1551_v25 = vpop.f32.mrf.mxu2 }
  0xf2   :  { %v1552_v39 = vadd.f32 %v1551_v25, %v8503_v6 }
  0xf3   :  { %v1651_v4 = vpop.f32.mrf.mxu0 }
  0xf4   :  { %v1600_v34 = vpop.f32.mrf.mxu3  ;;  %v1700_v63 = vpop.f32.mrf.mxu1 }
  0xf5   :  { %v1601_v29 = vadd.f32 %v1600_v34, %v1552_v39 }
  0xf7   :  { %v1650_v41 = vadd.f32 %v1649_v23, %v1601_v29  ;;  %v6232_v23 = vld [vmem:[%s10976_s1 + $0x490] sm:$0xf0] }
  0xf9   :  { %v8826_v8 = vadd.f32 %v1698_v60, %v1650_v41  ;;  %v1553_v2 = vpop.f32.mrf.mxu2  ;;  %v6104_v41 = vld [vmem:[%s10976_s1 + $0x390] sm:$0xf0] }
  0xfa   :  { %v1554_v6 = vadd.f32 %v1553_v2, %v8552_v11  ;;  %v7412_v11 = vld [vmem:[%s10976_s1 + $0x384] sm:$0xf] }
  0xfb   :  { %v1654_v25 = vpop.f32.mrf.mxu0  ;;  %v6107_v12 = vor.u32 %v7412_v11, %v6104_v41  ;;  %v99_v11 = vld [vmem:[%s10975_s0 + $0x110] sm:$0xff] }
  0xfc   :  { %v1602_v56 = vpop.f32.mrf.mxu3  ;;  %v1703_v39 = vpop.f32.mrf.mxu1 }
  0xfd   :  { %v1603_v22 = vadd.f32 %v1602_v56, %v1554_v6  ;;  %1937 = vmatpush.bf16.msrb.mxu2 %v6107_v12 }
  0xfe   :  { %6437 = vmatmul.msk.bf16.gmra.mxu2 %vm1419_vm0, %v8829_v3  ;;  %1849 = vmatmul.bf16.gmra.mxu0 %v8124_v62 }
  0xff   :  { %v1652_v29 = vadd.f32 %v1651_v4, %v1603_v22  ;;  %1898 = vmatmul.bf16.gmra.mxu1 %v8360_v44  ;;  %v7444_v4 = vld [vmem:[%s10976_s1 + $0x484] sm:$0xf] }
 0x100   :  { %v6235_v54 = vor.u32 %v7444_v4, %v6232_v23 }
 0x101   :  { %1800 = vmatmul.bf16.gmra.mxu3 %v8111_v57  ;;  %v8848_v60 = vadd.f32 %v1700_v63, %v1652_v29  ;;  %v1556_v34 = vpop.f32.mrf.mxu2  ;;  %v106_v63 = vld [vmem:[%s10975_s0 + $0x148] sm:$0xff] }
 0x102   :  { %v1557_v2 = vadd.f32 %v1556_v34, %v8605_v21  ;;  %1986 = vmatpush.bf16.msrb.mxu3 %v6235_v54  ;;  %v8860_v12 = vpack.c.bf16 %v106_v63, %v99_v11 }
 0x103   :  { %v1656_v56 = vpop.f32.mrf.mxu0 }
 0x104   :  { %v1605_v6 = vpop.f32.mrf.mxu3  ;;  %v1705_v62 = vpop.f32.mrf.mxu1  ;;  %11135 = vst [vmem:[#allocation44_spill] sm:$0xff] %v8860_v12 }
 0x105   :  { %v1606_v22 = vadd.f32 %v1605_v6, %v1557_v2  ;;  %v6216_v6 = vld [vmem:[%s10976_s1 + $0x470] sm:$0xf0] }
 0x107   :  { %v1655_v44 = vadd.f32 %v1654_v25, %v1606_v22 }
 0x109   :  { %v8857_v29 = vadd.f32 %v1703_v39, %v1655_v44  ;;  %v1558_v41 = vpop.f32.mrf.mxu2  ;;  %v7408_v44 = vld [vmem:[%s10976_s1 + $0x364] sm:$0xf] }
 0x10a   :  { %v1559_v21 = vadd.f32 %v1558_v41, %v8654_v38  ;;  %v6088_v38 = vld [vmem:[%s10976_s1 + $0x370] sm:$0xf0]  ;;  %v7440_v39 = vld [vmem:[%s10976_s1 + $0x464] sm:$0xf] }
 0x10b   :  { %v1659_v23 = vpop.f32.mrf.mxu0  ;;  %v6091_v2 = vor.u32 %v7408_v44, %v6088_v38  ;;  %v6219_v11 = vor.u32 %v7440_v39, %v6216_v6  ;;  %v113_v44 = vld [vmem:[%s10975_s0 + $0x180] sm:$0xff] }
 0x10c   :  { %v1607_v4 = vpop.f32.mrf.mxu3  ;;  %v1708_v54 = vpop.f32.mrf.mxu1 }
 0x10d   :  { %v1608_v34 = vadd.f32 %v1607_v4, %v1559_v21  ;;  %1938 = vmatpush.bf16.msrb.mxu2 %v6091_v2  ;;  %1987 = vmatpush.bf16.msrb.mxu3 %v6219_v11 }
 0x10e   :  { %6438 = vmatmul.msk.bf16.gmra.mxu2 %vm1419_vm0, %v8860_v12  ;;  %1854 = vmatmul.bf16.gmra.mxu0 %v8232_v52 }
 0x10f   :  { %v1657_v25 = vadd.f32 %v1656_v56, %v1608_v34  ;;  %1903 = vmatmul.bf16.gmra.mxu1 %v8402_v7 }
 0x111   :  { %1805 = vmatmul.bf16.gmra.mxu3 %v8228_v50  ;;  %v8879_v56 = vadd.f32 %v1705_v62, %v1657_v25  ;;  %v1561_v22 = vpop.f32.mrf.mxu2  ;;  %v120_v62 = vld [vmem:[%s10975_s0 + $0x1b8] sm:$0xff] }
 0x112   :  { %v1562_v63 = vadd.f32 %v1561_v22, %v8707_v24  ;;  %v8891_v2 = vpack.c.bf16 %v120_v62, %v113_v44 }
 0x113   :  { %v1661_v21 = vpop.f32.mrf.mxu0 }
 0x114   :  { %v1610_v41 = vpop.f32.mrf.mxu3  ;;  %v1710_v34 = vpop.f32.mrf.mxu1  ;;  %11136 = vst [vmem:[#allocation45_spill] sm:$0xff] %v8891_v2 }
 0x115   :  { %v1611_v4 = vadd.f32 %v1610_v41, %v1562_v63  ;;  %v6200_v41 = vld [vmem:[%s10976_s1 + $0x450] sm:$0xf0] }
 0x117   :  { %v1660_v52 = vadd.f32 %v1659_v23, %v1611_v4 }
 0x119   :  { %v8888_v25 = vadd.f32 %v1708_v54, %v1660_v52  ;;  %v1563_v38 = vpop.f32.mrf.mxu2  ;;  %v7404_v52 = vld [vmem:[%s10976_s1 + $0x344] sm:$0xf] }
 0x11a   :  { %v1564_v24 = vadd.f32 %v1563_v38, %v8729_v33  ;;  %v6072_v33 = vld [vmem:[%s10976_s1 + $0x350] sm:$0xf0]  ;;  %v7436_v54 = vld [vmem:[%s10976_s1 + $0x444] sm:$0xf] }
 0x11b   :  { %v1664_v6 = vpop.f32.mrf.mxu0  ;;  %v6075_v63 = vor.u32 %v7404_v52, %v6072_v33  ;;  %v6203_v44 = vor.u32 %v7436_v54, %v6200_v41  ;;  %v127_v52 = vld [vmem:[%s10975_s0 + $0x1f0] sm:$0xff] }
 0x11c   :  { %v1612_v39 = vpop.f32.mrf.mxu3  ;;  %v1713_v11 = vpop.f32.mrf.mxu1 }
 0x11d   :  { %v1613_v22 = vadd.f32 %v1612_v39, %v1564_v24  ;;  %1939 = vmatpush.bf16.msrb.mxu2 %v6075_v63  ;;  %1988 = vmatpush.bf16.msrb.mxu3 %v6203_v44 }
 0x11e   :  { %6439 = vmatmul.msk.bf16.gmra.mxu2 %vm1419_vm0, %v8891_v2  ;;  %1859 = vmatmul.bf16.gmra.mxu0 %v8280_v16 }
 0x11f   :  { %v1662_v23 = vadd.f32 %v1661_v21, %v1613_v22  ;;  %1908 = vmatmul.bf16.gmra.mxu1 %v8444_v26 }
 0x121   :  { %1810 = vmatmul.bf16.gmra.mxu3 %v8276_v14  ;;  %v8910_v21 = vadd.f32 %v1710_v34, %v1662_v23  ;;  %v1566_v4 = vpop.f32.mrf.mxu2  ;;  %v134_v34 = vld [vmem:[%s10975_s0 + $0x228] sm:$0xff] }
 0x122   :  { %v1567_v62 = vadd.f32 %v1566_v4, %v8767_v36  ;;  %v8922_v63 = vpack.c.bf16 %v134_v34, %v127_v52  ;;  %v6184_v52 = vld [vmem:[%s10976_s1 + $0x430] sm:$0xf0] }
 0x123   :  { %v1666_v24 = vpop.f32.mrf.mxu0 }
 0x124   :  { %v1615_v38 = vpop.f32.mrf.mxu3  ;;  %v1715_v22 = vpop.f32.mrf.mxu1  ;;  %11137 = vst [vmem:[#allocation46_spill] sm:$0xff] %v8922_v63 }
 0x125   :  { %v1616_v39 = vadd.f32 %v1615_v38, %v1567_v62  ;;  %v6408_v62 = vld [vmem:[%s10976_s1 + $0x5f0] sm:$0xf0] }
 0x127   :  { %v1665_v16 = vadd.f32 %v1664_v6, %v1616_v39  ;;  %v7488_v6 = vld [vmem:[%s10976_s1 + $0x5e4] sm:$0xf] }
 0x129   :  { %v8919_v23 = vadd.f32 %v1713_v11, %v1665_v16  ;;  %v1568_v33 = vpop.f32.mrf.mxu2  ;;  %v6411_v16 = vor.u32 %v7488_v6, %v6408_v62  ;;  %v6056_v11 = vld [vmem:[%s10976_s1 + $0x330] sm:$0xf0] }
 0x12a   :  { %v1569_v36 = vadd.f32 %v1568_v33, %v8789_v49  ;;  %v7400_v49 = vld [vmem:[%s10976_s1 + $0x324] sm:$0xf] }
 0x12b   :  { %v1669_v41 = vpop.f32.mrf.mxu0  ;;  %v6059_v39 = vor.u32 %v7400_v49, %v6056_v11  ;;  %2032 = vmatpush.bf16.msrb.mxu0 %v6411_v16 }
 0x12c   :  { %v1617_v54 = vpop.f32.mrf.mxu3  ;;  %v1718_v44 = vpop.f32.mrf.mxu1 }
 0x12d   :  { %v1618_v4 = vadd.f32 %v1617_v54, %v1569_v36  ;;  %v7484_v54 = vld [vmem:[%s10976_s1 + $0x5c4] sm:$0xf]  ;;  %1940 = vmatpush.bf16.msrb.mxu2 %v6059_v39  ;;  %v148_v39 = vld [vmem:[%s10975_s0 + $0x298] sm:$0xff] }
 0x12e   :  { %6440 = vmatmul.msk.bf16.gmra.mxu2 %vm1419_vm0, %v8922_v63  ;;  %1864 = vmatmul.bf16.gmra.mxu0 %v7994_v5 }
 0x12f   :  { %v1667_v38 = vadd.f32 %v1666_v24, %v1618_v4  ;;  %1913 = vmatmul.bf16.gmra.mxu1 %v8494_v55  ;;  %v7432_v24 = vld [vmem:[%s10976_s1 + $0x424] sm:$0xf]  ;;  %v6392_v4 = vld [vmem:[%s10976_s1 + $0x5d0] sm:$0xf0] }
 0x130   :  { %v6187_v36 = vor.u32 %v7432_v24, %v6184_v52  ;;  %v6395_v16 = vor.u32 %v7484_v54, %v6392_v4  ;;  %v6376_v24 = vld [vmem:[%s10976_s1 + $0x5b0] sm:$0xf0]  ;;  %v7476_v54 = vld [vmem:[%s10976_s1 + $0x584] sm:$0xf] }
 0x131   :  { %1815 = vmatmul.bf16.gmra.mxu3 %v7981_v0  ;;  %v8947_v34 = vadd.f32 %v1715_v22, %v1667_v38  ;;  %v1571_v33 = vpop.f32.mrf.mxu2  ;;  %v7480_v38 = vld [vmem:[%s10976_s1 + $0x5a4] sm:$0xf] }
 0x132   :  { %v1572_v6 = vadd.f32 %v1571_v33, %v8540_v43  ;;  %1989 = vmatpush.bf16.msrb.mxu3 %v6187_v36  ;;  %2033 = vmatpush.bf16.msrb.mxu0 %v6395_v16  ;;  %v6379_v5 = vor.u32 %v7480_v38, %v6376_v24  ;;  %v141_v43 = vld [vmem:[%s10975_s0 + $0x260] sm:$0xff]  ;;  %v6344_v24 = vld [vmem:[%s10976_s1 + $0x570] sm:$0xf0] }
 0x133   :  { %v1671_v49 = vpop.f32.mrf.mxu0 }
 0x134   :  { %v1620_v62 = vpop.f32.mrf.mxu3  ;;  %v1720_v22 = vpop.f32.mrf.mxu1 }
 0x135   :  { %v1621_v11 = vadd.f32 %v1620_v62, %v1572_v6  ;;  %v8977_v62 = vpack.c.bf16 %v148_v39, %v141_v43  ;;  %v7396_v43 = vld [vmem:[%s10976_s1 + $0x304] sm:$0xf]  ;;  %v6040_v39 = vld [vmem:[%s10976_s1 + $0x310] sm:$0xf0] }
 0x136   :  { %2034 = vmatpush.bf16.msrb.mxu0 %v6379_v5 }
 0x137   :  { %v1670_v52 = vadd.f32 %v1669_v41, %v1621_v11  ;;  %v6360_v41 = vld [vmem:[%s10976_s1 + $0x590] sm:$0xf0]  ;;  %11138 = vst [vmem:[#allocation47_spill] sm:$0xff] %v8977_v62 }
 0x138   :  { %v6363_v16 = vor.u32 %v7476_v54, %v6360_v41  ;;  %v6168_v54 = vld [vmem:[%s10976_s1 + $0x410] sm:$0xf0] }
 0x139   :  { %v8968_v33 = vadd.f32 %v1718_v44, %v1670_v52  ;;  %v1573_v36 = vpop.f32.mrf.mxu2  ;;  %v7472_v44 = vld [vmem:[%s10976_s1 + $0x564] sm:$0xf] }
 0x13a   :  { %v1574_v4 = vadd.f32 %v1573_v36, %v8602_v19  ;;  %2035 = vmatpush.bf16.msrb.mxu0 %v6363_v16  ;;  %v6347_v19 = vor.u32 %v7472_v44, %v6344_v24  ;;  %v6043_v36 = vor.u32 %v7396_v43, %v6040_v39  ;;  %v7468_v16 = vld [vmem:[%s10976_s1 + $0x544] sm:$0xf] }
 0x13b   :  { %v1674_v11 = vpop.f32.mrf.mxu0 }
 0x13c   :  { %v1622_v6 = vpop.f32.mrf.mxu3  ;;  %v1723_v5 = vpop.f32.mrf.mxu1  ;;  %1941 = vmatpush.bf16.msrb.mxu2 %v6043_v36  ;;  %v162_v36 = vld [vmem:[%s10975_s0 + $0x308] sm:$0xff] }
 0x13d   :  { %v1623_v38 = vadd.f32 %v1622_v6, %v1574_v4 }
 0x13e   :  { %6441 = vmatmul.msk.bf16.gmra.mxu2 %vm1419_vm0, %v8977_v62  ;;  %1869 = vmatmul.bf16.gmra.mxu0 %v8126_v1 }
 0x13f   :  { %v1672_v52 = vadd.f32 %v1671_v49, %v1623_v38  ;;  %1918 = vmatmul.bf16.gmra.mxu1 %v8591_v42  ;;  %v7428_v49 = vld [vmem:[%s10976_s1 + $0x404] sm:$0xf]  ;;  %2036 = vmatpush.bf16.msrb.mxu0 %v6347_v19  ;;  %v6328_v38 = vld [vmem:[%s10976_s1 + $0x550] sm:$0xf0] }
 0x140   :  { %v6171_v6 = vor.u32 %v7428_v49, %v6168_v54  ;;  %v6331_v19 = vor.u32 %v7468_v16, %v6328_v38  ;;  %v6312_v49 = vld [vmem:[%s10976_s1 + $0x530] sm:$0xf0]  ;;  %v7460_v16 = vld [vmem:[%s10976_s1 + $0x504] sm:$0xf] }
 0x141   :  { %1820 = vmatmul.bf16.gmra.mxu3 %v8113_v58  ;;  %v9002_v41 = vadd.f32 %v1720_v22, %v1672_v52  ;;  %v1576_v4 = vpop.f32.mrf.mxu2  ;;  %v7464_v52 = vld [vmem:[%s10976_s1 + $0x524] sm:$0xf] }
 0x142   :  { %v1577_v44 = vadd.f32 %v1576_v4, %v8642_v18  ;;  %1990 = vmatpush.bf16.msrb.mxu3 %v6171_v6  ;;  %v6315_v1 = vor.u32 %v7464_v52, %v6312_v49  ;;  %v155_v18 = vld [vmem:[%s10975_s0 + $0x2d0] sm:$0xff]  ;;  %v7492_v38 = vld [vmem:[%s10976_s1 + $0x604] sm:$0xf] }
 0x143   :  { %v1676_v43 = vpop.f32.mrf.mxu0  ;;  %2037 = vmatpush.bf16.msrb.mxu0 %v6331_v19  ;;  %v9035_v19 = vpack.c.bf16 %v162_v36, %v155_v18  ;;  %v7331_v18 = vld [vmem:[%s10976_s1 + $0xf4] sm:$0xf0] }
 0x144   :  { %v1625_v24 = vpop.f32.mrf.mxu3  ;;  %v1725_v22 = vpop.f32.mrf.mxu1 }
 0x145   :  { %v1626_v39 = vadd.f32 %v1625_v24, %v1577_v44  ;;  %11139 = vst [vmem:[#allocation48_spill] sm:$0xff] %v9035_v19 }
 0x147   :  { %v1675_v54 = vadd.f32 %v1674_v11, %v1626_v39  ;;  %2038 = vmatpush.bf16.msrb.mxu0 %v6315_v1  ;;  %v6296_v11 = vld [vmem:[%s10976_s1 + $0x510] sm:$0xf0] }
 0x148   :  { %v6299_v1 = vor.u32 %v7460_v16, %v6296_v11 }
 0x149   :  { %v9023_v4 = vadd.f32 %v1723_v5, %v1675_v54  ;;  %v1578_v6 = vpop.f32.mrf.mxu2  ;;  %v6424_v5 = vld [vmem:[%s10976_s1 + $0x610] sm:$0xf0] }
 0x14a   :  { %v1579_v44 = vadd.f32 %v1578_v6, %v8704_v28  ;;  %v6427_v52 = vor.u32 %v7492_v38, %v6424_v5  ;;  %v5774_v28 = vld [vmem:[%s10976_s1 + $0xe8] sm:$0xf]  ;;  %v7363_v6 = vld [vmem:[%s10976_s1 + $0x1f4] sm:$0xf0] }
 0x14b   :  { %v1679_v39 = vpop.f32.mrf.mxu0  ;;  %2039 = vmatpush.bf16.msrb.mxu0 %v6299_v1  ;;  %v5775_v36 = vor.u32 %v7331_v18, %v5774_v28  ;;  %v169_v28 = vld [vmem:[%s10975_s0 + $0x340] sm:$0xff] }
 0x14c   :  { %v1627_v24 = vpop.f32.mrf.mxu3  ;;  %v1728_v54 = vpop.f32.mrf.mxu1  ;;  %2088 = vmatpush.bf16.msrb.mxu1 %v6427_v52 }
 0x14d   :  { %v1628_v49 = vadd.f32 %v1627_v24, %v1579_v44  ;;  %2130 = vmatpush.bf16.msra.mxu2 %v5775_v36 }
 0x14e   :  { %6442 = vmatmul.msk.bf16.gmra.mxu2 %vm1419_vm0, %v9035_v19  ;;  %1874 = vmatmul.bf16.gmra.mxu0 %v8234_v53 }
 0x14f   :  { %v1677_v42 = vadd.f32 %v1676_v43, %v1628_v49  ;;  %1923 = vmatmul.bf16.gmra.mxu1 %v8693_v13  ;;  %v5902_v43 = vld [vmem:[%s10976_s1 + $0x1e8] sm:$0xf] }
 0x150   :  { %v5903_v38 = vor.u32 %v7363_v6, %v5902_v43 }
 0x151   :  { %1825 = vmatmul.bf16.gmra.mxu3 %v8230_v51  ;;  %v9057_v16 = vadd.f32 %v1725_v22, %v1677_v42  ;;  %v1581_v11 = vpop.f32.mrf.mxu2  ;;  %v176_v42 = vld [vmem:[%s10975_s0 + $0x378] sm:$0xff] }
 0x152   :  { %v1582_v44 = vadd.f32 %v1581_v11, %v8726_v35  ;;  %2179 = vmatpush.bf16.msra.mxu3 %v5903_v38  ;;  %v9069_v36 = vpack.c.bf16 %v176_v42, %v169_v28 }
 0x153   :  { %v1681_v1 = vpop.f32.mrf.mxu0 }
 0x154   :  { %v1630_v24 = vpop.f32.mrf.mxu3  ;;  %v1730_v52 = vpop.f32.mrf.mxu1  ;;  %11140 = vst [vmem:[#allocation49_spill] sm:$0xff] %v9069_v36 }
 0x155   :  { %v1631_v5 = vadd.f32 %v1630_v24, %v1582_v44  ;;  %v5886_v44 = vld [vmem:[%s10976_s1 + $0x1c8] sm:$0xf] }
 0x157   :  { %v1680_v49 = vadd.f32 %v1679_v39, %v1631_v5 }
 0x159   :  { %v9066_v22 = vadd.f32 %v1728_v54, %v1680_v49  ;;  %v1583_v18 = vpop.f32.mrf.mxu2  ;;  %v7327_v54 = vld [vmem:[%s10976_s1 + $0xd4] sm:$0xf0] }
 0x15a   :  { %v1584_v35 = vadd.f32 %v1583_v18, %v8764_v20  ;;  %v5758_v20 = vld [vmem:[%s10976_s1 + $0xc8] sm:$0xf] }
 0x15b   :  { %v1684_v6 = vpop.f32.mrf.mxu0  ;;  %v5759_v24 = vor.u32 %v7327_v54, %v5758_v20 }
 0x15c   :  { %v1632_v43 = vpop.f32.mrf.mxu3  ;;  %v1733_v38 = vpop.f32.mrf.mxu1 }
 0x15d   :  { %v1633_v11 = vadd.f32 %v1632_v43, %v1584_v35  ;;  %2131 = vmatpush.bf16.msra.mxu2 %v5759_v24 }
 0x15e   :  { %6443 = vmatmul.msk.bf16.gmra.mxu2 %vm1419_vm0, %v9069_v36  ;;  %1879 = vmatmul.bf16.gmra.mxu0 %v8282_v17 }
 0x15f   :  { %v1682_v39 = vadd.f32 %v1681_v1, %v1633_v11  ;;  %1928 = vmatmul.bf16.gmra.mxu1 %v8756_v40  ;;  %v7359_v1 = vld [vmem:[%s10976_s1 + $0x1d4] sm:$0xf0] }
 0x160   :  { %v5887_v28 = vor.u32 %v7359_v1, %v5886_v44 }
 0x161   :  { %1830 = vmatmul.bf16.gmra.mxu3 %v8278_v15  ;;  %v9088_v5 = vadd.f32 %v1730_v52, %v1682_v39  ;;  %v1586_v49 = vpop.f32.mrf.mxu2 }
 0x162   :  { %v1587_v42 = vadd.f32 %v1586_v49, %v8786_v61  ;;  %2180 = vmatpush.bf16.msra.mxu3 %v5887_v28  ;;  %v9097_v61 = vperm.slane %v8465_v37, 1  ;;  %v7355_v37 = vld [vmem:[%s10976_s1 + $0x1b4] sm:$0xf0] }
 0x163   :  { %v1686_v35 = vpop.f32.mrf.mxu0 }
 0x164   :  { %v1635_v18 = vpop.f32.mrf.mxu3  ;;  %v1735_v11 = vpop.f32.mrf.mxu1 }
 0x165   :  { %v1636_v43 = vadd.f32 %v1635_v18, %v1587_v42 }
 0x167   :  { %v1685_v17 = vadd.f32 %v1684_v6, %v1636_v43 }
 0x169   :  { %v9091_v40 = vadd.f32 %v1733_v38, %v1685_v17  ;;  %v1588_v20 = vpop.f32.mrf.mxu2  ;;  %v5742_v17 = vld [vmem:[%s10976_s1 + $0xa8] sm:$0xf] }
 0x16a   :  { %v1589_v54 = vadd.f32 %v1588_v20, %v8800_v27  ;;  %v5870_v27 = vld [vmem:[%s10976_s1 + $0x1a8] sm:$0xf] }
 0x16b   :  { %v1845_v53 = vpop.f32.mrf.mxu0  ;;  %v5871_v24 = vor.u32 %v7355_v37, %v5870_v27 }
 0x16c   :  { %v1637_v15 = vpop.f32.mrf.mxu3  ;;  %v1894_v39 = vpop.f32.mrf.mxu1 }
 0x16d   :  { %v1638_v52 = vadd.f32 %v1637_v15, %v1589_v54  ;;  %v7323_v15 = vld [vmem:[%s10976_s1 + $0xb4] sm:$0xf0]  ;;  %2181 = vmatpush.bf16.msra.mxu3 %v5871_v24 }
 0x16e   :  { %1942 = vmatmul.bf16.vlgmr.msrb.gmra.mxu2 %v8322_v31  ;;  %2040 = vmatmul.bf16.vlgmr.msrb.gmra.mxu0 %v8324_v32  ;;  %v5743_v6 = vor.u32 %v7323_v15, %v5742_v17  ;;  %v7351_v24 = vld [vmem:[%s10976_s1 + $0x194] sm:$0xf0] }
 0x16f   :  { %v1687_v13 = vadd.f32 %v1686_v35, %v1638_v52  ;;  %6444 = vmatmul.msk.bf16.vlgmr.msrb.gmra.mxu1 %vm1419_vm0, %v8798_v48 }
 0x170   :  { %2132 = vmatpush.bf16.msra.mxu2 %v5743_v6 }
 0x171   :  { %1991 = vmatmul.bf16.vlgmr.msrb.gmra.mxu3 %v8320_v30  ;;  %v9114_v38 = vadd.f32 %v1735_v11, %v1687_v13  ;;  %v1747_v44 = vpop.f32.mrf.mxu2 }
 0x172   :  { %v1748_v1 = vadd.f32 %v1747_v44, %v8826_v8 }
 0x173   :  { %v1847_v42 = vpop.f32.mrf.mxu0 }
 0x174   :  { %v1796_v49 = vpop.f32.mrf.mxu3  ;;  %v1896_v18 = vpop.f32.mrf.mxu1  ;;  %v2816_v17 = vmax.f32 %v1748_v1, 0.0 }
 0x175   :  { %v1797_v28 = vadd.f32 %v1796_v49, %v9097_v61 }
 0x177   :  { %v1846_v35 = vadd.f32 %v1845_v53, %v1797_v28  ;;  %v5726_v53 = vld [vmem:[%s10976_s1 + $0x88] sm:$0xf] }
 0x179   :  { %v9118_v43 = vadd.f32 %v1894_v39, %v1846_v35  ;;  %v1749_v20 = vpop.f32.mrf.mxu2  ;;  %v5854_v39 = vld [vmem:[%s10976_s1 + $0x188] sm:$0xf] }
 0x17a   :  { %v1750_v54 = vadd.f32 %v1749_v20, %v8848_v60  ;;  %v7319_v60 = vld [vmem:[%s10976_s1 + $0x94] sm:$0xf0]  ;;  %v5855_v49 = vor.u32 %v7351_v24, %v5854_v39 }
 0x17b   :  { %v1850_v11 = vpop.f32.mrf.mxu0  ;;  %v5727_v44 = vor.u32 %v7319_v60, %v5726_v53 }
 0x17c   :  { %v1798_v52 = vpop.f32.mrf.mxu3  ;;  %v2820_v15 = vmax.f32 %v1750_v54, 0.0  ;;  %v1899_v8 = vpop.f32.mrf.mxu1  ;;  %2182 = vmatpush.bf16.msra.mxu3 %v5855_v49 }
 0x17d   :  { %v1799_v13 = vadd.f32 %v1798_v52, %v9097_v61  ;;  %2133 = vmatpush.bf16.msra.mxu2 %v5727_v44 }
 0x17e   :  { %v9122_v6 = vpack.c.bf16 %v2820_v15, %v2816_v17  ;;  %1947 = vmatmul.bf16.gmra.mxu2 %v8364_v46  ;;  %2045 = vmatmul.bf16.gmra.mxu0 %v8366_v47 }
 0x17f   :  { %v1848_v27 = vadd.f32 %v1847_v42, %v1799_v13  ;;  %6445 = vmatmul.msk.bf16.gmra.mxu1 %vm1419_vm0, %v8829_v3 }
 0x180   :  { %11141 = vst [vmem:[#allocation50_spill] sm:$0xff] %v9122_v6 }
 0x181   :  { %1996 = vmatmul.bf16.gmra.mxu3 %v8362_v45  ;;  %v9138_v37 = vadd.f32 %v1896_v18, %v1848_v27  ;;  %v1752_v1 = vpop.f32.mrf.mxu2 }
 0x182   :  { %v1753_v28 = vadd.f32 %v1752_v1, %v8857_v29  ;;  %v5838_v1 = vld [vmem:[%s10976_s1 + $0x168] sm:$0xf] }
 0x183   :  { %v1852_v20 = vpop.f32.mrf.mxu0 }
 0x184   :  { %v1801_v42 = vpop.f32.mrf.mxu3  ;;  %v1901_v54 = vpop.f32.mrf.mxu1  ;;  %v2824_v60 = vmax.f32 %v1753_v28, 0.0 }
 0x185   :  { %v1802_v35 = vadd.f32 %v1801_v42, %v9097_v61  ;;  %v7347_v42 = vld [vmem:[%s10976_s1 + $0x174] sm:$0xf0] }
 0x187   :  { %v1851_v52 = vadd.f32 %v1850_v11, %v1802_v35  ;;  %v11143_v11 = vld [vmem:[#allocation23_spill] sm:$0xff] }
 0x189   :  { %v9145_v13 = vadd.f32 %v1899_v8, %v1851_v52  ;;  %v1754_v18 = vpop.f32.mrf.mxu2  ;;  %v7315_v8 = vld [vmem:[%s10976_s1 + $0x74] sm:$0xf0] }
 0x18a   :  { %v1755_v17 = vadd.f32 %v1754_v18, %v8879_v56  ;;  %v5710_v56 = vld [vmem:[%s10976_s1 + $0x68] sm:$0xf] }
 0x18b   :  { %v1855_v53 = vpop.f32.mrf.mxu0  ;;  %v5711_v28 = vor.u32 %v7315_v8, %v5710_v56 }
 0x18c   :  { %v1803_v15 = vpop.f32.mrf.mxu3  ;;  %v2828_v39 = vmax.f32 %v1755_v17, 0.0  ;;  %v1904_v29 = vpop.f32.mrf.mxu1 }
 0x18d   :  { %v1804_v27 = vadd.f32 %v1803_v15, %v9097_v61  ;;  %2134 = vmatpush.bf16.msra.mxu2 %v5711_v28 }
 0x18e   :  { %v9149_v44 = vpack.c.bf16 %v2828_v39, %v2824_v60  ;;  %1952 = vmatmul.bf16.gmra.mxu2 %v8406_v9  ;;  %2050 = vmatmul.bf16.gmra.mxu0 %v8408_v10 }
 0x18f   :  { %v1853_v24 = vadd.f32 %v1852_v20, %v1804_v27  ;;  %6446 = vmatmul.msk.bf16.gmra.mxu1 %vm1419_vm0, %v8860_v12  ;;  %v5839_v20 = vor.u32 %v7347_v42, %v5838_v1 }
 0x190   :  { %11142 = vst [vmem:[#allocation51_spill] sm:$0xff] %v9149_v44 }
 0x191   :  { %2001 = vmatmul.bf16.gmra.mxu3 %v11143_v11  ;;  %v9165_v49 = vadd.f32 %v1901_v54, %v1853_v24  ;;  %v1757_v35 = vpop.f32.mrf.mxu2 }
 0x192   :  { %v1758_v52 = vadd.f32 %v1757_v35, %v8888_v25  ;;  %2183 = vmatpush.bf16.msra.mxu3 %v5839_v20  ;;  %v11146_v20 = vld [vmem:[#allocation27_spill] sm:$0xff] }
 0x193   :  { %v1857_v15 = vpop.f32.mrf.mxu0 }
 0x194   :  { %v1806_v18 = vpop.f32.mrf.mxu3  ;;  %v1906_v27 = vpop.f32.mrf.mxu1  ;;  %v2832_v1 = vmax.f32 %v1758_v52, 0.0  ;;  %v5822_v52 = vld [vmem:[%s10976_s1 + $0x148] sm:$0xf] }
 0x195   :  { %v1807_v17 = vadd.f32 %v1806_v18, %v9097_v61  ;;  %v11145_v18 = vld [vmem:[#allocation26_spill] sm:$0xff] }
 0x197   :  { %v1856_v60 = vadd.f32 %v1855_v53, %v1807_v17  ;;  %v11147_v53 = vld [vmem:[#allocation25_spill] sm:$0xff] }
 0x199   :  { %v9172_v39 = vadd.f32 %v1904_v29, %v1856_v60  ;;  %v1759_v54 = vpop.f32.mrf.mxu2  ;;  %v7311_v29 = vld [vmem:[%s10976_s1 + $0x54] sm:$0xf0] }
 0x19a   :  { %v1760_v24 = vadd.f32 %v1759_v54, %v8910_v21  ;;  %v5694_v21 = vld [vmem:[%s10976_s1 + $0x48] sm:$0xf]  ;;  %v7343_v60 = vld [vmem:[%s10976_s1 + $0x154] sm:$0xf0] }
 0x19b   :  { %v1860_v44 = vpop.f32.mrf.mxu0 }
 0x19c   :  { %v1808_v56 = vpop.f32.mrf.mxu3  ;;  %v2836_v42 = vmax.f32 %v1760_v24, 0.0  ;;  %v1909_v25 = vpop.f32.mrf.mxu1  ;;  %v5823_v24 = vor.u32 %v7343_v60, %v5822_v52 }
 0x19d   :  { %v1809_v8 = vadd.f32 %v1808_v56, %v9097_v61 }
 0x19e   :  { %v9176_v28 = vpack.c.bf16 %v2836_v42, %v2832_v1  ;;  %1957 = vmatmul.bf16.gmra.mxu2 %v11145_v18  ;;  %2055 = vmatmul.bf16.gmra.mxu0 %v11146_v20 }
 0x19f   :  { %v1858_v35 = vadd.f32 %v1857_v15, %v1809_v8  ;;  %6447 = vmatmul.msk.bf16.gmra.mxu1 %vm1419_vm0, %v8891_v2  ;;  %v5695_v15 = vor.u32 %v7311_v29, %v5694_v21  ;;  %2184 = vmatpush.bf16.msra.mxu3 %v5823_v24  ;;  %v11150_v24 = vld [vmem:[#allocation30_spill] sm:$0xff] }
 0x1a0   :  { %11144 = vst [vmem:[#allocation23_spill] sm:$0xff] %v9176_v28 }
 0x1a1   :  { %2006 = vmatmul.bf16.gmra.mxu3 %v11147_v53  ;;  %v9192_v17 = vadd.f32 %v1906_v27, %v1858_v35  ;;  %v1762_v54 = vpop.f32.mrf.mxu2  ;;  %2135 = vmatpush.bf16.msra.mxu2 %v5695_v15  ;;  %v6030_v15 = vld [vmem:[%s10976_s1 + $0x2e8] sm:$0xf] }
 0x1a2   :  { %v1763_v56 = vadd.f32 %v1762_v54, %v8919_v23  ;;  %v11157_v53 = vld [vmem:[#allocation37_spill] sm:$0xff] }
 0x1a3   :  { %v1862_v42 = vpop.f32.mrf.mxu0 }
 0x1a4   :  { %v1811_v8 = vpop.f32.mrf.mxu3  ;;  %v1911_v28 = vpop.f32.mrf.mxu1  ;;  %v2840_v52 = vmax.f32 %v1763_v56, 0.0 }
 0x1a5   :  { %v1812_v1 = vadd.f32 %v1811_v8, %v9097_v61  ;;  %v7427_v8 = vld [vmem:[%s10976_s1 + $0x3f4] sm:$0xf0] }
 0x1a7   :  { %v1861_v6 = vadd.f32 %v1860_v44, %v1812_v1  ;;  %v11151_v1 = vld [vmem:[#allocation28_spill] sm:$0xff] }
 0x1a9   :  { %v9199_v20 = vadd.f32 %v1909_v25, %v1861_v6  ;;  %v1764_v27 = vpop.f32.mrf.mxu2  ;;  %v7395_v6 = vld [vmem:[%s10976_s1 + $0x2f4] sm:$0xf0]  ;;  %v11149_v25 = vld [vmem:[#allocation29_spill] sm:$0xff] }
 0x1aa   :  { %v1765_v35 = vadd.f32 %v1764_v27, %v8947_v34  ;;  %v6158_v34 = vld [vmem:[%s10976_s1 + $0x3e8] sm:$0xf]  ;;  %v6031_v56 = vor.u32 %v7395_v6, %v6030_v15  ;;  %v7307_v27 = vld [vmem:[%s10976_s1 + $0x34] sm:$0xf0] }
 0x1ab   :  { %v1865_v2 = vpop.f32.mrf.mxu0 }
 0x1ac   :  { %v1813_v21 = vpop.f32.mrf.mxu3  ;;  %v2844_v60 = vmax.f32 %v1765_v35, 0.0  ;;  %v1914_v23 = vpop.f32.mrf.mxu1  ;;  %v6159_v35 = vor.u32 %v7427_v8, %v6158_v34  ;;  %2228 = vmatpush.bf16.msra.mxu0 %v6031_v56  ;;  %v7391_v34 = vld [vmem:[%s10976_s1 + $0x2d4] sm:$0xf0] }
 0x1ad   :  { %v1814_v29 = vadd.f32 %v1813_v21, %v9097_v61  ;;  %v5806_v21 = vld [vmem:[%s10976_s1 + $0x128] sm:$0xf] }
 0x1ae   :  { %v9212_v44 = vpack.c.bf16 %v2844_v60, %v2840_v52  ;;  %1962 = vmatmul.bf16.gmra.mxu2 %v11149_v25  ;;  %2060 = vmatmul.bf16.gmra.mxu0 %v11150_v24  ;;  %v7339_v60 = vld [vmem:[%s10976_s1 + $0x134] sm:$0xf0] }
 0x1af   :  { %v1863_v54 = vadd.f32 %v1862_v42, %v1814_v29  ;;  %6448 = vmatmul.msk.bf16.gmra.mxu1 %vm1419_vm0, %v8922_v63  ;;  %v5678_v42 = vld [vmem:[%s10976_s1 + $0x28] sm:$0xf]  ;;  %v5807_v6 = vor.u32 %v7339_v60, %v5806_v21 }
 0x1b0   :  { %11148 = vst [vmem:[#allocation26_spill] sm:$0xff] %v9212_v44  ;;  %v5679_v52 = vor.u32 %v7307_v27, %v5678_v42  ;;  %2277 = vmatpush.bf16.msra.mxu1 %v6159_v35  ;;  %v6014_v44 = vld [vmem:[%s10976_s1 + $0x2c8] sm:$0xf]  ;;  %v7423_v42 = vld [vmem:[%s10976_s1 + $0x3d4] sm:$0xf0] }
 0x1b1   :  { %2011 = vmatmul.bf16.gmra.mxu3 %v11151_v1  ;;  %v9231_v29 = vadd.f32 %v1911_v28, %v1863_v54  ;;  %v1767_v15 = vpop.f32.mrf.mxu2  ;;  %v6142_v28 = vld [vmem:[%s10976_s1 + $0x3c8] sm:$0xf]  ;;  %v6015_v8 = vor.u32 %v7391_v34, %v6014_v44  ;;  %v7387_v44 = vld [vmem:[%s10976_s1 + $0x2b4] sm:$0xf0] }
 0x1b2   :  { %v1768_v54 = vadd.f32 %v1767_v15, %v8968_v33  ;;  %2136 = vmatpush.bf16.msra.mxu2 %v5679_v52  ;;  %2185 = vmatpush.bf16.msra.mxu3 %v5807_v6  ;;  %v6143_v21 = vor.u32 %v7423_v42, %v6142_v28  ;;  %v5998_v33 = vld [vmem:[%s10976_s1 + $0x2a8] sm:$0xf]  ;;  %v7419_v6 = vld [vmem:[%s10976_s1 + $0x3b4] sm:$0xf0] }
 0x1b3   :  { %v1867_v35 = vpop.f32.mrf.mxu0  ;;  %2229 = vmatpush.bf16.msra.mxu0 %v6015_v8  ;;  %v6126_v52 = vld [vmem:[%s10976_s1 + $0x3a8] sm:$0xf]  ;;  %v5999_v15 = vor.u32 %v7387_v44, %v5998_v33  ;;  %v7383_v8 = vld [vmem:[%s10976_s1 + $0x294] sm:$0xf0] }
 0x1b4   :  { %v1816_v56 = vpop.f32.mrf.mxu3  ;;  %v1916_v60 = vpop.f32.mrf.mxu1  ;;  %2278 = vmatpush.bf16.msra.mxu1 %v6143_v21  ;;  %v6127_v34 = vor.u32 %v7419_v6, %v6126_v52  ;;  %v6110_v42 = vld [vmem:[%s10976_s1 + $0x388] sm:$0xf] }
 0x1b5   :  { %v1817_v27 = vadd.f32 %v1816_v56, %v9097_v61  ;;  %v5982_v56 = vld [vmem:[%s10976_s1 + $0x288] sm:$0xf] }
 0x1b7   :  { %v1866_v24 = vadd.f32 %v1865_v2, %v1817_v27  ;;  %2230 = vmatpush.bf16.msra.mxu0 %v5999_v15  ;;  %v2848_v15 = vmax.f32 %v1768_v54, 0.0  ;;  %v11153_v54 = vld [vmem:[#allocation33_spill] sm:$0xff] }
 0x1b8   :  { %2279 = vmatpush.bf16.msra.mxu1 %v6127_v34 }
 0x1b9   :  { %v9262_v2 = vadd.f32 %v1914_v23, %v1866_v24  ;;  %v1769_v28 = vpop.f32.mrf.mxu2  ;;  %v5983_v23 = vor.u32 %v7383_v8, %v5982_v56  ;;  %v7415_v24 = vld [vmem:[%s10976_s1 + $0x394] sm:$0xf0]  ;;  %v6094_v56 = vld [vmem:[%s10976_s1 + $0x368] sm:$0xf] }
 0x1ba   :  { %v1770_v27 = vadd.f32 %v1769_v28, %v9002_v41  ;;  %v6111_v52 = vor.u32 %v7415_v24, %v6110_v42  ;;  %v5966_v41 = vld [vmem:[%s10976_s1 + $0x268] sm:$0xf]  ;;  %v7379_v28 = vld [vmem:[%s10976_s1 + $0x274] sm:$0xf0]  ;;  %v11154_v42 = vld [vmem:[#allocation34_spill] sm:$0xff] }
 0x1bb   :  { %v1870_v44 = vpop.f32.mrf.mxu0  ;;  %2231 = vmatpush.bf16.msra.mxu0 %v5983_v23  ;;  %v5662_v23 = vld [vmem:[%s10976_s1 + $0x8] sm:$0xf]  ;;  %v7303_v24 = vld [vmem:[%s10976_s1 + $0x14] sm:$0xf0] }
 0x1bc   :  { %v1818_v21 = vpop.f32.mrf.mxu3  ;;  %v2852_v6 = vmax.f32 %v1770_v27, 0.0  ;;  %v1919_v34 = vpop.f32.mrf.mxu1  ;;  %2280 = vmatpush.bf16.msra.mxu1 %v6111_v52  ;;  %v7411_v27 = vld [vmem:[%s10976_s1 + $0x374] sm:$0xf0]  ;;  %v5790_v52 = vld [vmem:[%s10976_s1 + $0x108] sm:$0xf] }
 0x1bd   :  { %v1819_v33 = vadd.f32 %v1818_v21, %v9097_v61  ;;  %v11155_v21 = vld [vmem:[#allocation32_spill] sm:$0xff] }
 0x1be   :  { %v9287_v8 = vpack.c.bf16 %v2852_v6, %v2848_v15  ;;  %1967 = vmatmul.bf16.gmra.mxu2 %v11153_v54  ;;  %2065 = vmatmul.bf16.gmra.mxu0 %v11154_v42  ;;  %v5663_v6 = vor.u32 %v7303_v24, %v5662_v23  ;;  %v5950_v42 = vld [vmem:[%s10976_s1 + $0x248] sm:$0xf]  ;;  %v7407_v23 = vld [vmem:[%s10976_s1 + $0x354] sm:$0xf0] }
 0x1bf   :  { %v1868_v63 = vadd.f32 %v1867_v35, %v1819_v33  ;;  %v5967_v35 = vor.u32 %v7379_v28, %v5966_v41  ;;  %6449 = vmatmul.msk.bf16.gmra.mxu1 %vm1419_vm0, %v8977_v62  ;;  %v6095_v33 = vor.u32 %v7411_v27, %v6094_v56  ;;  %v7335_v41 = vld [vmem:[%s10976_s1 + $0x114] sm:$0xf0] }
 0x1c0   :  { %11152 = vst [vmem:[#allocation29_spill] sm:$0xff] %v9287_v8  ;;  %v5791_v8 = vor.u32 %v7335_v41, %v5790_v52  ;;  %v7375_v56 = vld [vmem:[%s10976_s1 + $0x254] sm:$0xf0]  ;;  %2137 = vmatpush.bf16.msra.mxu2 %v5663_v6  ;;  %v6062_v6 = vld [vmem:[%s10976_s1 + $0x328] sm:$0xf] }
 0x1c1   :  { %2016 = vmatmul.bf16.gmra.mxu3 %v11155_v21  ;;  %v9306_v15 = vadd.f32 %v1916_v60, %v1868_v63  ;;  %2232 = vmatpush.bf16.msra.mxu0 %v5967_v35  ;;  %v1772_v28 = vpop.f32.mrf.mxu2  ;;  %v6078_v63 = vld [vmem:[%s10976_s1 + $0x348] sm:$0xf]  ;;  %v5951_v27 = vor.u32 %v7375_v56, %v5950_v42  ;;  %v7371_v42 = vld [vmem:[%s10976_s1 + $0x234] sm:$0xf0] }
 0x1c2   :  { %2281 = vmatpush.bf16.msra.mxu1 %v6095_v33  ;;  %v1773_v60 = vadd.f32 %v1772_v28, %v9023_v4  ;;  %2186 = vmatpush.bf16.msra.mxu3 %v5791_v8  ;;  %v6079_v52 = vor.u32 %v7407_v23, %v6078_v63  ;;  %v5934_v4 = vld [vmem:[%s10976_s1 + $0x228] sm:$0xf]  ;;  %v7403_v8 = vld [vmem:[%s10976_s1 + $0x334] sm:$0xf0] }
 0x1c3   :  { %v1872_v33 = vpop.f32.mrf.mxu0  ;;  %v5935_v28 = vor.u32 %v7371_v42, %v5934_v4  ;;  %v6063_v56 = vor.u32 %v7403_v8, %v6062_v6  ;;  %v6046_v23 = vld [vmem:[%s10976_s1 + $0x308] sm:$0xf] }
 0x1c4   :  { %v1821_v35 = vpop.f32.mrf.mxu3  ;;  %v1921_v41 = vpop.f32.mrf.mxu1 }
 0x1c5   :  { %v1822_v24 = vadd.f32 %v1821_v35, %v9097_v61  ;;  %2233 = vmatpush.bf16.msra.mxu0 %v5951_v27  ;;  %v5918_v35 = vld [vmem:[%s10976_s1 + $0x208] sm:$0xf]  ;;  %v7367_v27 = vld [vmem:[%s10976_s1 + $0x214] sm:$0xf0] }
 0x1c6   :  { %2282 = vmatpush.bf16.msra.mxu1 %v6079_v52 }
 0x1c7   :  { %v1871_v62 = vadd.f32 %v1870_v44, %v1822_v24 }
 0x1c9   :  { %v9337_v44 = vadd.f32 %v1919_v34, %v1871_v62  ;;  %2234 = vmatpush.bf16.msra.mxu0 %v5935_v28  ;;  %v1774_v63 = vpop.f32.mrf.mxu2  ;;  %v5919_v62 = vor.u32 %v7367_v27, %v5918_v35  ;;  %v7399_v34 = vld [vmem:[%s10976_s1 + $0x314] sm:$0xf0]  ;;  %v2856_v28 = vmax.f32 %v1773_v60, 0.0  ;;  %v6286_v60 = vld [vmem:[%s10976_s1 + $0x4e8] sm:$0xf] }
 0x1ca   :  { %2283 = vmatpush.bf16.msra.mxu1 %v6063_v56  ;;  %v1775_v24 = vadd.f32 %v1774_v63, %v9057_v16  ;;  %v6047_v6 = vor.u32 %v7399_v34, %v6046_v23  ;;  %v11158_v16 = vld [vmem:[#allocation38_spill] sm:$0xff]  ;;  %v11159_v63 = vld [vmem:[#allocation36_spill] sm:$0xff]  ;;  %v6414_v35 = vld [vmem:[%s10976_s1 + $0x5e8] sm:$0xf] }
 0x1cb   :  { %v1875_v42 = vpop.f32.mrf.mxu0 }
 0x1cc   :  { %v1823_v52 = vpop.f32.mrf.mxu3  ;;  %v2860_v8 = vmax.f32 %v1775_v24, 0.0  ;;  %v1924_v56 = vpop.f32.mrf.mxu1  ;;  %v7491_v24 = vld [vmem:[%s10976_s1 + $0x5f4] sm:$0xf0] }
 0x1cd   :  { %v1824_v4 = vadd.f32 %v1823_v52, %v9097_v61  ;;  %2235 = vmatpush.bf16.msra.mxu0 %v5919_v62  ;;  %v6415_v62 = vor.u32 %v7491_v24, %v6414_v35 }
 0x1ce   :  { %2284 = vmatpush.bf16.msra.mxu1 %v6047_v6  ;;  %v9353_v1 = vpack.c.bf16 %v2860_v8, %v2856_v28  ;;  %1972 = vmatmul.bf16.gmra.mxu2 %v11157_v53 }
 0x1cf   :  { %v1873_v21 = vadd.f32 %v1872_v33, %v1824_v4  ;;  %2070 = vmatmul.bf16.gmra.mxu0 %v11158_v16  ;;  %6450 = vmatmul.msk.bf16.gmra.mxu1 %vm1419_vm0, %v9035_v19  ;;  %v7459_v33 = vld [vmem:[%s10976_s1 + $0x4f4] sm:$0xf0] }
 0x1d0   :  { %11156 = vst [vmem:[#allocation33_spill] sm:$0xff] %v9353_v1  ;;  %v6287_v23 = vor.u32 %v7459_v33, %v6286_v60  ;;  %2375 = vmatpush.bf16.msrb.mxu3 %v6415_v62  ;;  %v11161_v62 = vld [vmem:[#allocation41_spill] sm:$0xff] }
 0x1d1   :  { %2021 = vmatmul.bf16.gmra.mxu3 %v11159_v63  ;;  %v9369_v27 = vadd.f32 %v1921_v41, %v1873_v21  ;;  %v1777_v52 = vpop.f32.mrf.mxu2 }
 0x1d2   :  { %v1778_v34 = vadd.f32 %v1777_v52, %v9066_v22  ;;  %2326 = vmatpush.bf16.msrb.mxu2 %v6287_v23 }
 0x1d3   :  { %v1877_v28 = vpop.f32.mrf.mxu0 }
 0x1d4   :  { %v1826_v4 = vpop.f32.mrf.mxu3  ;;  %v1926_v8 = vpop.f32.mrf.mxu1  ;;  %v2864_v35 = vmax.f32 %v1778_v34, 0.0 }
 0x1d5   :  { %v1827_v6 = vadd.f32 %v1826_v4, %v9097_v61 }
 0x1d7   :  { %v1876_v1 = vadd.f32 %v1875_v42, %v1827_v6  ;;  %v11162_v42 = vld [vmem:[#allocation40_spill] sm:$0xff] }
 0x1d9   :  { %v9376_v16 = vadd.f32 %v1924_v56, %v1876_v1  ;;  %v1779_v21 = vpop.f32.mrf.mxu2 }
 0x1da   :  { %v1780_v41 = vadd.f32 %v1779_v21, %v9088_v5  ;;  %v6270_v21 = vld [vmem:[%s10976_s1 + $0x4c8] sm:$0xf] }
 0x1db   :  { %v1880_v19 = vpop.f32.mrf.mxu0 }
 0x1dc   :  { %v1828_v60 = vpop.f32.mrf.mxu3  ;;  %v2868_v24 = vmax.f32 %v1780_v41, 0.0  ;;  %v1929_v22 = vpop.f32.mrf.mxu1  ;;  %v7455_v41 = vld [vmem:[%s10976_s1 + $0x4d4] sm:$0xf0] }
 0x1dd   :  { %v1829_v33 = vadd.f32 %v1828_v60, %v9097_v61 }
 0x1de   :  { %v9380_v23 = vpack.c.bf16 %v2868_v24, %v2864_v35  ;;  %1977 = vmatmul.bf16.gmra.mxu2 %v8760_v59 }
 0x1df   :  { %v1878_v52 = vadd.f32 %v1877_v28, %v1829_v33  ;;  %2075 = vmatmul.bf16.gmra.mxu0 %v11161_v62  ;;  %6451 = vmatmul.msk.bf16.gmra.mxu1 %vm1419_vm0, %v9069_v36  ;;  %v6271_v33 = vor.u32 %v7455_v41, %v6270_v21 }
 0x1e0   :  { %11160 = vst [vmem:[#allocation37_spill] sm:$0xff] %v9380_v23 }
 0x1e1   :  { %2026 = vmatmul.bf16.gmra.mxu3 %v11162_v42  ;;  %v9387_v5 = vadd.f32 %v1926_v8, %v1878_v52  ;;  %v1782_v1 = vpop.f32.mrf.mxu2  ;;  %v6398_v8 = vld [vmem:[%s10976_s1 + $0x5c8] sm:$0xf]  ;;  %2327 = vmatpush.bf16.msrb.mxu2 %v6271_v33  ;;  %v11164_v42 = vld [vmem:[#allocation8_spill] sm:$0xff] }
 0x1e2   :  { %v1783_v56 = vadd.f32 %v1782_v1, %v9091_v40  ;;  %v7487_v40 = vld [vmem:[%s10976_s1 + $0x5d4] sm:$0xf0] }
 0x1e3   :  { %v1882_v6 = vpop.f32.mrf.mxu0  ;;  %v6399_v35 = vor.u32 %v7487_v40, %v6398_v8  ;;  %v11165_v8 = vld [vmem:[#allocation18_spill] sm:$0xff]  ;;  %v6382_v40 = vld [vmem:[%s10976_s1 + $0x5a8] sm:$0xf] }
 0x1e4   :  { %v1831_v34 = vpop.f32.mrf.mxu3  ;;  %v1931_v28 = vpop.f32.mrf.mxu1  ;;  %v2872_v21 = vmax.f32 %v1783_v56, 0.0  ;;  %v6254_v56 = vld [vmem:[%s10976_s1 + $0x4a8] sm:$0xf] }
 0x1e5   :  { %v1832_v4 = vadd.f32 %v1831_v34, %v9097_v61  ;;  %2376 = vmatpush.bf16.msrb.mxu3 %v6399_v35 }
 0x1e7   :  { %v1881_v60 = vadd.f32 %v1880_v19, %v1832_v4 }
 0x1e9   :  { %v9403_v24 = vadd.f32 %v1929_v22, %v1881_v60  ;;  %v1784_v52 = vpop.f32.mrf.mxu2  ;;  %v11166_v22 = vld [vmem:[#allocation9_spill] sm:$0xff] }
 0x1ea   :  { %v1785_v1 = vadd.f32 %v1784_v52, %v9114_v38 }
 0x1eb   :  { %v2041_v4 = vpop.f32.mrf.mxu0 }
 0x1ec   :  { %v1833_v34 = vpop.f32.mrf.mxu3  ;;  %v2876_v41 = vmax.f32 %v1785_v1, 0.0  ;;  %v2090_v23 = vpop.f32.mrf.mxu1 }
 0x1ed   :  { %v1834_v19 = vadd.f32 %v1833_v34, %v9097_v61 }
 0x1ee   :  { %v9407_v36 = vpack.c.bf16 %v2876_v41, %v2872_v21  ;;  %2138 = vmatmul.bf16.vlgmr.msra.gmra.mxu2 %v11164_v42 }
 0x1ef   :  { %v1883_v62 = vadd.f32 %v1882_v6, %v1834_v19  ;;  %2236 = vmatmul.bf16.vlgmr.msra.gmra.mxu0 %v11165_v8  ;;  %2285 = vmatmul.bf16.vlgmr.msra.gmra.mxu1 %v8322_v31  ;;  %v7451_v6 = vld [vmem:[%s10976_s1 + $0x4b4] sm:$0xf0] }
 0x1f0   :  { %11163 = vst [vmem:[#allocation36_spill] sm:$0xff] %v9407_v36  ;;  %v6255_v52 = vor.u32 %v7451_v6, %v6254_v56  ;;  %v11167_v56 = vld [vmem:[#allocation21_spill] sm:$0xff]  ;;  %v11168_v6 = vld [vmem:[#allocation11_spill] sm:$0xff] }
 0x1f1   :  { %2187 = vmatmul.bf16.vlgmr.msra.gmra.mxu3 %v11166_v22  ;;  %v9413_v60 = vadd.f32 %v1931_v28, %v1883_v62  ;;  %v1943_v38 = vpop.f32.mrf.mxu2  ;;  %v7483_v62 = vld [vmem:[%s10976_s1 + $0x5b4] sm:$0xf0] }
 0x1f2   :  { %v1944_v61 = vadd.f32 %v1943_v38, %v9118_v43  ;;  %v6383_v1 = vor.u32 %v7483_v62, %v6382_v40  ;;  %2328 = vmatpush.bf16.msrb.mxu2 %v6255_v52  ;;  %v6238_v52 = vld [vmem:[%s10976_s1 + $0x488] sm:$0xf] }
 0x1f3   :  { %v2043_v35 = vpop.f32.mrf.mxu0 }
 0x1f4   :  { %v1992_v33 = vpop.f32.mrf.mxu3  ;;  %v2092_v28 = vpop.f32.mrf.mxu1  ;;  %2377 = vmatpush.bf16.msrb.mxu3 %v6383_v1 }
 0x1f5   :  { %v1993_v43 = vadd.f32 %v1992_v33, %v1944_v61 }
 0x1f7   :  { %v2042_v34 = vadd.f32 %v2041_v4, %v1993_v43  ;;  %v7479_v43 = vld [vmem:[%s10976_s1 + $0x594] sm:$0xf0] }
 0x1f9   :  { %v2091_v19 = vadd.f32 %v2090_v23, %v2042_v34  ;;  %v1945_v21 = vpop.f32.mrf.mxu2 }
 0x1fa   :  { %v1946_v41 = vadd.f32 %v1945_v21, %v9138_v37 }
 0x1fb   :  { %v2046_v36 = vpop.f32.mrf.mxu0  ;;  %v2817_v33 = vmax.f32 %v2091_v19, 0.0 }
 0x1fc   :  { %v1994_v38 = vpop.f32.mrf.mxu3  ;;  %v2095_v31 = vpop.f32.mrf.mxu1 }
 0x1fd   :  { %v1995_v8 = vadd.f32 %v1994_v38, %v1946_v41 }
 0x1fe   :  { %2143 = vmatmul.bf16.gmra.mxu2 %v8111_v57 }
 0x1ff   :  { %v2044_v22 = vadd.f32 %v2043_v35, %v1995_v8  ;;  %2241 = vmatmul.bf16.gmra.mxu0 %v11167_v56  ;;  %2290 = vmatmul.bf16.gmra.mxu1 %v8364_v46  ;;  %v7447_v8 = vld [vmem:[%s10976_s1 + $0x494] sm:$0xf0] }
 0x200   :  { %v6239_v62 = vor.u32 %v7447_v8, %v6238_v52 }
 0x201   :  { %2192 = vmatmul.bf16.gmra.mxu3 %v11168_v6  ;;  %v2093_v61 = vadd.f32 %v2092_v28, %v2044_v22  ;;  %v1948_v4 = vpop.f32.mrf.mxu2  ;;  %v6366_v22 = vld [vmem:[%s10976_s1 + $0x588] sm:$0xf] }
 0x202   :  { %v1949_v40 = vadd.f32 %v1948_v4, %v9145_v13  ;;  %v6367_v34 = vor.u32 %v7479_v43, %v6366_v22  ;;  %2329 = vmatpush.bf16.msrb.mxu2 %v6239_v62  ;;  %v6222_v62 = vld [vmem:[%s10976_s1 + $0x468] sm:$0xf] }
 0x203   :  { %v2821_v23 = vmax.f32 %v2093_v61, 0.0  ;;  %v2048_v35 = vpop.f32.mrf.mxu0 }
 0x204   :  { %v1997_v37 = vpop.f32.mrf.mxu3  ;;  %v2097_v1 = vpop.f32.mrf.mxu1  ;;  %2378 = vmatpush.bf16.msrb.mxu3 %v6367_v34 }
 0x205   :  { %v9446_v13 = vpack.c.bf16 %v2821_v23, %v2817_v33  ;;  %v1998_v28 = vadd.f32 %v1997_v37, %v1949_v40  ;;  %v11170_v33 = vld [vmem:[#allocation13_spill] sm:$0xff] }
 0x207   :  { %11169 = vst [vmem:[#allocation8_spill] sm:$0xff] %v9446_v13  ;;  %v2047_v19 = vadd.f32 %v2046_v36, %v1998_v28  ;;  %v7475_v28 = vld [vmem:[%s10976_s1 + $0x574] sm:$0xf0] }
 0x209   :  { %v2096_v21 = vadd.f32 %v2095_v31, %v2047_v19  ;;  %v1950_v41 = vpop.f32.mrf.mxu2 }
 0x20a   :  { %v1951_v38 = vadd.f32 %v1950_v41, %v9165_v49 }
 0x20b   :  { %v2051_v4 = vpop.f32.mrf.mxu0  ;;  %v2825_v40 = vmax.f32 %v2096_v21, 0.0 }
 0x20c   :  { %v1999_v61 = vpop.f32.mrf.mxu3  ;;  %v2100_v8 = vpop.f32.mrf.mxu1 }
 0x20d   :  { %v2000_v52 = vadd.f32 %v1999_v61, %v1951_v38 }
 0x20e   :  { %2148 = vmatmul.bf16.gmra.mxu2 %v8228_v50 }
 0x20f   :  { %v2049_v56 = vadd.f32 %v2048_v35, %v2000_v52  ;;  %2246 = vmatmul.bf16.gmra.mxu0 %v8402_v7  ;;  %2295 = vmatmul.bf16.gmra.mxu1 %v8406_v9  ;;  %v7443_v35 = vld [vmem:[%s10976_s1 + $0x474] sm:$0xf0] }
 0x210   :  { %v6223_v43 = vor.u32 %v7443_v35, %v6222_v62 }
 0x211   :  { %2197 = vmatmul.bf16.gmra.mxu3 %v11170_v33  ;;  %v2098_v23 = vadd.f32 %v2097_v1, %v2049_v56  ;;  %v1953_v36 = vpop.f32.mrf.mxu2  ;;  %v6350_v56 = vld [vmem:[%s10976_s1 + $0x568] sm:$0xf] }
 0x212   :  { %v1954_v37 = vadd.f32 %v1953_v36, %v9172_v39  ;;  %v6351_v34 = vor.u32 %v7475_v28, %v6350_v56  ;;  %2330 = vmatpush.bf16.msrb.mxu2 %v6223_v43  ;;  %v6206_v43 = vld [vmem:[%s10976_s1 + $0x448] sm:$0xf] }
 0x213   :  { %v2829_v31 = vmax.f32 %v2098_v23, 0.0  ;;  %v2053_v22 = vpop.f32.mrf.mxu0 }
 0x214   :  { %v2002_v49 = vpop.f32.mrf.mxu3  ;;  %v2102_v1 = vpop.f32.mrf.mxu1  ;;  %2379 = vmatpush.bf16.msrb.mxu3 %v6351_v34 }
 0x215   :  { %v2003_v39 = vadd.f32 %v2002_v49, %v1954_v37  ;;  %v9466_v19 = vpack.c.bf16 %v2829_v31, %v2825_v40  ;;  %v11172_v37 = vld [vmem:[#allocation16_spill] sm:$0xff] }
 0x217   :  { %11171 = vst [vmem:[#allocation11_spill] sm:$0xff] %v9466_v19  ;;  %v2052_v21 = vadd.f32 %v2051_v4, %v2003_v39  ;;  %v6334_v39 = vld [vmem:[%s10976_s1 + $0x548] sm:$0xf]  ;;  %v11183_v19 = vld [vmem:[#allocation39_spill] sm:$0xff] }
 0x219   :  { %v2101_v41 = vadd.f32 %v2100_v8, %v2052_v21  ;;  %v1955_v38 = vpop.f32.mrf.mxu2 }
 0x21a   :  { %v1956_v61 = vadd.f32 %v1955_v38, %v9192_v17 }
 0x21b   :  { %v2056_v23 = vpop.f32.mrf.mxu0  ;;  %v2833_v31 = vmax.f32 %v2101_v41, 0.0 }
 0x21c   :  { %v2004_v52 = vpop.f32.mrf.mxu3  ;;  %v2105_v62 = vpop.f32.mrf.mxu1 }
 0x21d   :  { %v2005_v36 = vadd.f32 %v2004_v52, %v1956_v61 }
 0x21e   :  { %2153 = vmatmul.bf16.gmra.mxu2 %v8276_v14 }
 0x21f   :  { %v2054_v35 = vadd.f32 %v2053_v22, %v2005_v36  ;;  %2251 = vmatmul.bf16.gmra.mxu0 %v8444_v26  ;;  %2300 = vmatmul.bf16.gmra.mxu1 %v11145_v18  ;;  %v7439_v22 = vld [vmem:[%s10976_s1 + $0x454] sm:$0xf0] }
 0x220   :  { %v6207_v28 = vor.u32 %v7439_v22, %v6206_v43  ;;  %v7329_v22 = vld [vmem:[%s10976_s1 + $0xec] sm:$0xf] }
 0x221   :  { %2202 = vmatmul.bf16.gmra.mxu3 %v11172_v37  ;;  %v2103_v40 = vadd.f32 %v2102_v1, %v2054_v35  ;;  %v1958_v4 = vpop.f32.mrf.mxu2  ;;  %v7471_v1 = vld [vmem:[%s10976_s1 + $0x554] sm:$0xf0] }
 0x222   :  { %v1959_v49 = vadd.f32 %v1958_v4, %v9199_v20  ;;  %v6335_v21 = vor.u32 %v7471_v1, %v6334_v39  ;;  %2331 = vmatpush.bf16.msrb.mxu2 %v6207_v28 }
 0x223   :  { %v2837_v8 = vmax.f32 %v2103_v40, 0.0  ;;  %v2058_v56 = vpop.f32.mrf.mxu0 }
 0x224   :  { %v2007_v17 = vpop.f32.mrf.mxu3  ;;  %v2107_v34 = vpop.f32.mrf.mxu1  ;;  %2380 = vmatpush.bf16.msrb.mxu3 %v6335_v21  ;;  %v6190_v21 = vld [vmem:[%s10976_s1 + $0x428] sm:$0xf] }
 0x225   :  { %v2008_v20 = vadd.f32 %v2007_v17, %v1959_v49  ;;  %v9486_v41 = vpack.c.bf16 %v2837_v8, %v2833_v31  ;;  %v5776_v31 = vld [vmem:[%s10976_s1 + $0xf8] sm:$0xf0]  ;;  %v7325_v17 = vld [vmem:[%s10976_s1 + $0xcc] sm:$0xf] }
 0x227   :  { %11173 = vst [vmem:[#allocation13_spill] sm:$0xff] %v9486_v41  ;;  %v2057_v38 = vadd.f32 %v2056_v23, %v2008_v20  ;;  %v5779_v23 = vor.u32 %v7329_v22, %v5776_v31  ;;  %v11182_v41 = vld [vmem:[#allocation15_spill] sm:$0xff] }
 0x229   :  { %v2106_v61 = vadd.f32 %v2105_v62, %v2057_v38  ;;  %v1960_v52 = vpop.f32.mrf.mxu2  ;;  %v11174_v62 = vld [vmem:[#allocation10_spill] sm:$0xff]  ;;  %2473 = vmatpush.bf16.msrb.mxu1 %v5779_v23  ;;  %v5744_v23 = vld [vmem:[%s10976_s1 + $0xb8] sm:$0xf0] }
 0x22a   :  { %v1961_v36 = vadd.f32 %v1960_v52, %v9231_v29 }
 0x22b   :  { %v2061_v40 = vpop.f32.mrf.mxu0  ;;  %v2841_v28 = vmax.f32 %v2106_v61, 0.0 }
 0x22c   :  { %v2009_v35 = vpop.f32.mrf.mxu3  ;;  %v2110_v43 = vpop.f32.mrf.mxu1 }
 0x22d   :  { %v2010_v4 = vadd.f32 %v2009_v35, %v1961_v36  ;;  %v6318_v35 = vld [vmem:[%s10976_s1 + $0x528] sm:$0xf] }
 0x22e   :  { %2158 = vmatmul.bf16.gmra.mxu2 %v7981_v0 }
 0x22f   :  { %v2059_v8 = vadd.f32 %v2058_v56, %v2010_v4  ;;  %2256 = vmatmul.bf16.gmra.mxu0 %v8494_v55  ;;  %2305 = vmatmul.bf16.gmra.mxu1 %v11149_v25  ;;  %v5760_v56 = vld [vmem:[%s10976_s1 + $0xd8] sm:$0xf0] }
 0x230   :  { %v5763_v38 = vor.u32 %v7325_v17, %v5760_v56 }
 0x231   :  { %2207 = vmatmul.bf16.gmra.mxu3 %v11174_v62  ;;  %v2108_v29 = vadd.f32 %v2107_v34, %v2059_v8  ;;  %v1963_v49 = vpop.f32.mrf.mxu2  ;;  %v7435_v34 = vld [vmem:[%s10976_s1 + $0x434] sm:$0xf0]  ;;  %v7321_v8 = vld [vmem:[%s10976_s1 + $0xac] sm:$0xf] }
 0x232   :  { %v1964_v1 = vadd.f32 %v1963_v49, %v9262_v2  ;;  %v6191_v36 = vor.u32 %v7435_v34, %v6190_v21  ;;  %v7467_v2 = vld [vmem:[%s10976_s1 + $0x534] sm:$0xf0]  ;;  %2474 = vmatpush.bf16.msrb.mxu1 %v5763_v38  ;;  %v5747_v49 = vor.u32 %v7321_v8, %v5744_v23  ;;  %v7309_v23 = vld [vmem:[%s10976_s1 + $0x4c] sm:$0xf] }
 0x233   :  { %v2845_v39 = vmax.f32 %v2108_v29, 0.0  ;;  %v2063_v52 = vpop.f32.mrf.mxu0  ;;  %v6319_v22 = vor.u32 %v7467_v2, %v6318_v35  ;;  %v11176_v2 = vld [vmem:[#allocation31_spill] sm:$0xff] }
 0x234   :  { %v2012_v20 = vpop.f32.mrf.mxu3  ;;  %v2112_v4 = vpop.f32.mrf.mxu1  ;;  %2332 = vmatpush.bf16.msrb.mxu2 %v6191_v36  ;;  %v5712_v36 = vld [vmem:[%s10976_s1 + $0x78] sm:$0xf0] }
 0x235   :  { %v2013_v61 = vadd.f32 %v2012_v20, %v1964_v1  ;;  %v9518_v31 = vpack.c.bf16 %v2845_v39, %v2841_v28  ;;  %2381 = vmatpush.bf16.msrb.mxu3 %v6319_v22  ;;  %v7317_v28 = vld [vmem:[%s10976_s1 + $0x8c] sm:$0xf]  ;;  %v5728_v39 = vld [vmem:[%s10976_s1 + $0x98] sm:$0xf0] }
 0x236   :  { %2475 = vmatpush.bf16.msrb.mxu1 %v5747_v49  ;;  %v5731_v21 = vor.u32 %v7317_v28, %v5728_v39  ;;  %v6174_v39 = vld [vmem:[%s10976_s1 + $0x408] sm:$0xf] }
 0x237   :  { %11175 = vst [vmem:[#allocation16_spill] sm:$0xff] %v9518_v31  ;;  %v2062_v29 = vadd.f32 %v2061_v40, %v2013_v61  ;;  %v11177_v61 = vld [vmem:[#allocation12_spill] sm:$0xff] }
 0x239   :  { %v2111_v17 = vadd.f32 %v2110_v43, %v2062_v29  ;;  %v1965_v56 = vpop.f32.mrf.mxu2  ;;  %v7313_v43 = vld [vmem:[%s10976_s1 + $0x6c] sm:$0xf] }
 0x23a   :  { %v1966_v1 = vadd.f32 %v1965_v56, %v9306_v15  ;;  %2476 = vmatpush.bf16.msrb.mxu1 %v5731_v21  ;;  %v5715_v15 = vor.u32 %v7313_v43, %v5712_v36 }
 0x23b   :  { %v2066_v34 = vpop.f32.mrf.mxu0  ;;  %v2849_v29 = vmax.f32 %v2111_v17, 0.0 }
 0x23c   :  { %v2014_v20 = vpop.f32.mrf.mxu3  ;;  %v2115_v40 = vpop.f32.mrf.mxu1 }
 0x23d   :  { %v2015_v38 = vadd.f32 %v2014_v20, %v1966_v1 }
 0x23e   :  { %2163 = vmatmul.bf16.gmra.mxu2 %v8113_v58  ;;  %2477 = vmatpush.bf16.msrb.mxu1 %v5715_v15  ;;  %v7305_v15 = vld [vmem:[%s10976_s1 + $0x2c] sm:$0xf] }
 0x23f   :  { %v2064_v35 = vadd.f32 %v2063_v52, %v2015_v38  ;;  %2261 = vmatmul.bf16.gmra.mxu0 %v11176_v2  ;;  %2310 = vmatmul.bf16.gmra.mxu1 %v11153_v54  ;;  %v5696_v52 = vld [vmem:[%s10976_s1 + $0x58] sm:$0xf0]  ;;  %v6302_v38 = vld [vmem:[%s10976_s1 + $0x508] sm:$0xf] }
 0x240   :  { %v5699_v1 = vor.u32 %v7309_v23, %v5696_v52 }
 0x241   :  { %2212 = vmatmul.bf16.gmra.mxu3 %v11177_v61  ;;  %v2113_v22 = vadd.f32 %v2112_v4, %v2064_v35  ;;  %v1968_v8 = vpop.f32.mrf.mxu2  ;;  %v7431_v4 = vld [vmem:[%s10976_s1 + $0x414] sm:$0xf0] }
 0x242   :  { %v1969_v56 = vadd.f32 %v1968_v8, %v9337_v44  ;;  %v6175_v21 = vor.u32 %v7431_v4, %v6174_v39  ;;  %v7463_v44 = vld [vmem:[%s10976_s1 + $0x514] sm:$0xf0]  ;;  %2478 = vmatpush.bf16.msrb.mxu1 %v5699_v1 }
 0x243   :  { %v2853_v49 = vmax.f32 %v2113_v22, 0.0  ;;  %v2068_v20 = vpop.f32.mrf.mxu0  ;;  %v6303_v36 = vor.u32 %v7463_v44, %v6302_v38  ;;  %v5680_v22 = vld [vmem:[%s10976_s1 + $0x38] sm:$0xf0] }
 0x244   :  { %v2017_v28 = vpop.f32.mrf.mxu3  ;;  %v2117_v43 = vpop.f32.mrf.mxu1  ;;  %2333 = vmatpush.bf16.msrb.mxu2 %v6175_v21  ;;  %v5683_v23 = vor.u32 %v7305_v15, %v5680_v22  ;;  %v11180_v15 = vld [vmem:[#allocation14_spill] sm:$0xff] }
 0x245   :  { %v2018_v17 = vadd.f32 %v2017_v28, %v1969_v56  ;;  %v9562_v35 = vpack.c.bf16 %v2853_v49, %v2849_v29  ;;  %2382 = vmatpush.bf16.msrb.mxu3 %v6303_v36  ;;  %v6430_v29 = vld [vmem:[%s10976_s1 + $0x608] sm:$0xf]  ;;  %v7495_v49 = vld [vmem:[%s10976_s1 + $0x614] sm:$0xf0]  ;;  %v7301_v28 = vld [vmem:[%s10976_s1 + $0xc] sm:$0xf] }
 0x246   :  { %2479 = vmatpush.bf16.msrb.mxu1 %v5683_v23  ;;  %v6431_v4 = vor.u32 %v7495_v49, %v6430_v29  ;;  %v11179_v36 = vld [vmem:[#allocation35_spill] sm:$0xff]  ;;  %v7361_v49 = vld [vmem:[%s10976_s1 + $0x1ec] sm:$0xf] }
 0x247   :  { %11178 = vst [vmem:[#allocation10_spill] sm:$0xff] %v9562_v35  ;;  %v2067_v8 = vadd.f32 %v2066_v34, %v2018_v17 }
 0x248   :  { %2431 = vmatpush.bf16.msrb.mxu0 %v6431_v4 }
 0x249   :  { %v2116_v52 = vadd.f32 %v2115_v40, %v2067_v8  ;;  %v1970_v56 = vpop.f32.mrf.mxu2  ;;  %v5664_v40 = vld [vmem:[%s10976_s1 + $0x18] sm:$0xf0] }
 0x24a   :  { %v1971_v39 = vadd.f32 %v1970_v56, %v9369_v27  ;;  %v5667_v21 = vor.u32 %v7301_v28, %v5664_v40 }
 0x24b   :  { %v2857_v8 = vmax.f32 %v2116_v52, 0.0  ;;  %v6032_v52 = vld [vmem:[%s10976_s1 + $0x2f8] sm:$0xf0] }
 0x24c   :  { %v2019_v34 = vpop.f32.mrf.mxu3  ;;  %v2071_v1 = vpop.f32.mrf.mxu0  ;;  %2480 = vmatpush.bf16.msrb.mxu1 %v5667_v21 }
 0x24d   :  { %v2020_v38 = vadd.f32 %v2019_v34, %v1971_v39  ;;  %v2120_v44 = vpop.f32.mrf.mxu1 }
 0x24e   :  { %2168 = vmatmul.bf16.gmra.mxu2 %v8230_v51 }
 0x24f   :  { %v2069_v17 = vadd.f32 %v2068_v20, %v2020_v38  ;;  %2266 = vmatmul.bf16.gmra.mxu0 %v11179_v36  ;;  %2315 = vmatmul.bf16.gmra.mxu1 %v11157_v53  ;;  %v5904_v20 = vld [vmem:[%s10976_s1 + $0x1f8] sm:$0xf0] }
 0x250   :  { %v5907_v39 = vor.u32 %v7361_v49, %v5904_v20 }
 0x251   :  { %2217 = vmatmul.bf16.gmra.mxu3 %v11180_v15  ;;  %v2118_v27 = vadd.f32 %v2117_v43, %v2069_v17  ;;  %v1973_v22 = vpop.f32.mrf.mxu2  ;;  %v7393_v43 = vld [vmem:[%s10976_s1 + $0x2ec] sm:$0xf] }
 0x252   :  { %v1974_v56 = vadd.f32 %v1973_v22, %v9376_v16  ;;  %v6035_v4 = vor.u32 %v7393_v43, %v6032_v52  ;;  %2522 = vmatpush.bf16.msra.mxu2 %v5907_v39 }
 0x253   :  { %v2861_v23 = vmax.f32 %v2118_v27, 0.0 }
 0x254   :  { %v2022_v29 = vpop.f32.mrf.mxu3  ;;  %v2073_v28 = vpop.f32.mrf.mxu0  ;;  %2571 = vmatpush.bf16.msra.mxu3 %v6035_v4 }
 0x255   :  { %v2023_v16 = vadd.f32 %v2022_v29, %v1974_v56  ;;  %v2122_v34 = vpop.f32.mrf.mxu1  ;;  %v9600_v40 = vpack.c.bf16 %v2861_v23, %v2857_v8  ;;  %v11184_v56 = vld [vmem:[#allocation17_spill] sm:$0xff]  ;;  %v6016_v29 = vld [vmem:[%s10976_s1 + $0x2d8] sm:$0xf0] }
 0x257   :  { %11181 = vst [vmem:[#allocation31_spill] sm:$0xff] %v9600_v40  ;;  %v2072_v21 = vadd.f32 %v2071_v1, %v2023_v16  ;;  %v7357_v1 = vld [vmem:[%s10976_s1 + $0x1cc] sm:$0xf] }
 0x259   :  { %v2121_v38 = vadd.f32 %v2120_v44, %v2072_v21  ;;  %v1975_v17 = vpop.f32.mrf.mxu2  ;;  %v7389_v44 = vld [vmem:[%s10976_s1 + $0x2cc] sm:$0xf] }
 0x25a   :  { %v1976_v27 = vadd.f32 %v1975_v17, %v9387_v5  ;;  %v5888_v5 = vld [vmem:[%s10976_s1 + $0x1d8] sm:$0xf0]  ;;  %v6019_v39 = vor.u32 %v7389_v44, %v6016_v29 }
 0x25b   :  { %v5891_v23 = vor.u32 %v7357_v1, %v5888_v5  ;;  %v2865_v43 = vmax.f32 %v2121_v38, 0.0 }
 0x25c   :  { %v2024_v22 = vpop.f32.mrf.mxu3  ;;  %v2076_v49 = vpop.f32.mrf.mxu0  ;;  %2572 = vmatpush.bf16.msra.mxu3 %v6019_v39  ;;  %v6000_v39 = vld [vmem:[%s10976_s1 + $0x2b8] sm:$0xf0] }
 0x25d   :  { %v2025_v20 = vadd.f32 %v2024_v22, %v1976_v27  ;;  %v2125_v35 = vpop.f32.mrf.mxu1  ;;  %2523 = vmatpush.bf16.msra.mxu2 %v5891_v23 }
 0x25e   :  { %2173 = vmatmul.bf16.gmra.mxu2 %v11182_v41 }
 0x25f   :  { %v2074_v31 = vadd.f32 %v2073_v28, %v2025_v20  ;;  %2271 = vmatmul.bf16.gmra.mxu0 %v11183_v19  ;;  %2320 = vmatmul.bf16.gmra.mxu1 %v8760_v59 }
 0x261   :  { %2222 = vmatmul.bf16.gmra.mxu3 %v11184_v56  ;;  %v2123_v8 = vadd.f32 %v2122_v34, %v2074_v31  ;;  %v1978_v28 = vpop.f32.mrf.mxu2 }
 0x262   :  { %v1979_v16 = vadd.f32 %v1978_v28, %v9403_v24  ;;  %v7727_v24 = vld [vmem:[%s10977_s2] sm:$0xf] }
 0x263   :  { %v2869_v52 = vmax.f32 %v2123_v8, 0.0  ;;  %v9629_v23 = vperm.slane %v7727_v24, 2 }
 0x264   :  { %v2027_v4 = vpop.f32.mrf.mxu3  ;;  %v2078_v21 = vpop.f32.mrf.mxu0 }
 0x265   :  { %v2028_v17 = vadd.f32 %v2027_v4, %v1979_v16  ;;  %v2127_v27 = vpop.f32.mrf.mxu1  ;;  %v9620_v22 = vpack.c.bf16 %v2869_v52, %v2865_v43 }
 0x267   :  { %11185 = vst [vmem:[#allocation12_spill] sm:$0xff] %v9620_v22  ;;  %v2077_v31 = vadd.f32 %v2076_v49, %v2028_v17  ;;  %v7385_v49 = vld [vmem:[%s10976_s1 + $0x2ac] sm:$0xf] }
 0x269   :  { %v2126_v34 = vadd.f32 %v2125_v35, %v2077_v31  ;;  %v1980_v20 = vpop.f32.mrf.mxu2  ;;  %v5872_v35 = vld [vmem:[%s10976_s1 + $0x1b8] sm:$0xf0] }
 0x26a   :  { %v1981_v1 = vadd.f32 %v1980_v20, %v9413_v60  ;;  %v7353_v60 = vld [vmem:[%s10976_s1 + $0x1ac] sm:$0xf] }
 0x26b   :  { %v5875_v28 = vor.u32 %v7353_v60, %v5872_v35  ;;  %v2873_v52 = vmax.f32 %v2126_v34, 0.0 }
 0x26c   :  { %v2029_v5 = vpop.f32.mrf.mxu3  ;;  %v2237_v40 = vpop.f32.mrf.mxu0 }
 0x26d   :  { %v2030_v44 = vadd.f32 %v2029_v5, %v1981_v1  ;;  %v2286_v38 = vpop.f32.mrf.mxu1  ;;  %2524 = vmatpush.bf16.msra.mxu2 %v5875_v28 }
 0x26e   :  { %2334 = vmatmul.bf16.vlgmr.msrb.gmra.mxu2 %v8320_v30 }
 0x26f   :  { %v2079_v8 = vadd.f32 %v2078_v21, %v2030_v44  ;;  %6452 = vmatmul.msk.bf16.vlgmr.msrb.gmra.mxu0 %vm1419_vm0, %v8798_v48  ;;  %2481 = vmatmul.bf16.vlgmr.msrb.gmra.mxu1 %v11164_v42  ;;  %v6003_v42 = vor.u32 %v7385_v49, %v6000_v39  ;;  %v5984_v39 = vld [vmem:[%s10976_s1 + $0x298] sm:$0xf0]  ;;  %v11201_v48 = vld [vmem:[#allocation9_spill] sm:$0xff] }
 0x271   :  { %2383 = vmatmul.bf16.vlgmr.msrb.gmra.mxu3 %v8324_v32  ;;  %v2128_v29 = vadd.f32 %v2127_v27, %v2079_v8  ;;  %v2139_v43 = vpop.f32.mrf.mxu2  ;;  %v11202_v32 = vld [vmem:[#allocation19_spill] sm:$0xff] }
 0x272   :  { %v2140_v4 = vadd.f32 %v2139_v43, %v9629_v23  ;;  %2573 = vmatpush.bf16.msra.mxu3 %v6003_v42 }
 0x273   :  { %v2877_v16 = vmax.f32 %v2128_v29, 0.0  ;;  %v7381_v29 = vld [vmem:[%s10976_s1 + $0x28c] sm:$0xf] }
 0x274   :  { %v2188_v21 = vpop.f32.mrf.mxu3  ;;  %v2239_v17 = vpop.f32.mrf.mxu0  ;;  %v5987_v42 = vor.u32 %v7381_v29, %v5984_v39 }
 0x275   :  { %v2189_v31 = vadd.f32 %v2188_v21, %v2140_v4  ;;  %v2288_v20 = vpop.f32.mrf.mxu1  ;;  %v9646_v1 = vpack.c.bf16 %v2877_v16, %v2873_v52 }
 0x276   :  { %2574 = vmatpush.bf16.msra.mxu3 %v5987_v42 }
 0x277   :  { %11186 = vst [vmem:[#allocation35_spill] sm:$0xff] %v9646_v1  ;;  %v2238_v27 = vadd.f32 %v2237_v40, %v2189_v31  ;;  %v7349_v40 = vld [vmem:[%s10976_s1 + $0x18c] sm:$0xf] }
 0x279   :  { %v9648_v5 = vadd.f32 %v2286_v38, %v2238_v27  ;;  %v2141_v44 = vpop.f32.mrf.mxu2  ;;  %v5856_v38 = vld [vmem:[%s10976_s1 + $0x198] sm:$0xf0] }
 0x27a   :  { %v2142_v8 = vadd.f32 %v2141_v44, %v9629_v23  ;;  %v5859_v28 = vor.u32 %v7349_v40, %v5856_v38  ;;  %v7377_v38 = vld [vmem:[%s10976_s1 + $0x26c] sm:$0xf] }
 0x27c   :  { %v2190_v24 = vpop.f32.mrf.mxu3  ;;  %v2242_v60 = vpop.f32.mrf.mxu0  ;;  %2525 = vmatpush.bf16.msra.mxu2 %v5859_v28  ;;  %v5968_v28 = vld [vmem:[%s10976_s1 + $0x278] sm:$0xf0] }
 0x27d   :  { %v2191_v34 = vadd.f32 %v2190_v24, %v2142_v8  ;;  %v2291_v35 = vpop.f32.mrf.mxu1 }
 0x27e   :  { %2339 = vmatmul.bf16.gmra.mxu2 %v8362_v45 }
 0x27f   :  { %v2240_v49 = vadd.f32 %v2239_v17, %v2191_v34  ;;  %6453 = vmatmul.msk.bf16.gmra.mxu0 %vm1419_vm0, %v8829_v3  ;;  %2486 = vmatmul.bf16.gmra.mxu1 %v8111_v57 }
 0x281   :  { %2388 = vmatmul.bf16.gmra.mxu3 %v8366_v47  ;;  %v9668_v43 = vadd.f32 %v2288_v20, %v2240_v49  ;;  %v2144_v57 = vpop.f32.mrf.mxu2 }
 0x282   :  { %v2145_v52 = vadd.f32 %v2144_v57, %v9629_v23  ;;  %v5971_v57 = vor.u32 %v7377_v38, %v5968_v28  ;;  %v11187_v38 = vld [vmem:[#allocation25_spill] sm:$0xff] }
 0x283   :  { %v11188_v28 = vld [vmem:[#allocation45_spill] sm:$0xff] }
 0x284   :  { %v2193_v16 = vpop.f32.mrf.mxu3  ;;  %v2244_v4 = vpop.f32.mrf.mxu0  ;;  %2575 = vmatpush.bf16.msra.mxu3 %v5971_v57 }
 0x285   :  { %v2194_v21 = vadd.f32 %v2193_v16, %v2145_v52  ;;  %v2293_v17 = vpop.f32.mrf.mxu1 }
 0x287   :  { %v2243_v31 = vadd.f32 %v2242_v60, %v2194_v21  ;;  %v7345_v60 = vld [vmem:[%s10976_s1 + $0x16c] sm:$0xf] }
 0x289   :  { %v9671_v27 = vadd.f32 %v2291_v35, %v2243_v31  ;;  %v2146_v44 = vpop.f32.mrf.mxu2  ;;  %v5840_v35 = vld [vmem:[%s10976_s1 + $0x178] sm:$0xf0] }
 0x28a   :  { %v2147_v8 = vadd.f32 %v2146_v44, %v9629_v23  ;;  %v5843_v29 = vor.u32 %v7345_v60, %v5840_v35 }
 0x28c   :  { %v2195_v24 = vpop.f32.mrf.mxu3  ;;  %v2247_v34 = vpop.f32.mrf.mxu0  ;;  %2526 = vmatpush.bf16.msra.mxu2 %v5843_v29  ;;  %v11189_v29 = vld [vmem:[#allocation27_spill] sm:$0xff] }
 0x28d   :  { %v2196_v20 = vadd.f32 %v2195_v24, %v2147_v8  ;;  %v2296_v49 = vpop.f32.mrf.mxu1 }
 0x28e   :  { %2344 = vmatmul.bf16.gmra.mxu2 %v11143_v11 }
 0x28f   :  { %v2245_v40 = vadd.f32 %v2244_v4, %v2196_v20  ;;  %6454 = vmatmul.msk.bf16.gmra.mxu0 %vm1419_vm0, %v8860_v12  ;;  %2491 = vmatmul.bf16.gmra.mxu1 %v8228_v50  ;;  %v11197_v12 = vld [vmem:[#allocation38_spill] sm:$0xff] }
 0x291   :  { %2393 = vmatmul.bf16.gmra.mxu3 %v8408_v10  ;;  %v9691_v39 = vadd.f32 %v2293_v17, %v2245_v40  ;;  %v2149_v50 = vpop.f32.mrf.mxu2 }
 0x292   :  { %v2150_v42 = vadd.f32 %v2149_v50, %v9629_v23  ;;  %v7373_v50 = vld [vmem:[%s10976_s1 + $0x24c] sm:$0xf] }
 0x294   :  { %v2198_v52 = vpop.f32.mrf.mxu3  ;;  %v2249_v16 = vpop.f32.mrf.mxu0 }
 0x295   :  { %v2199_v4 = vadd.f32 %v2198_v52, %v2150_v42  ;;  %v2298_v21 = vpop.f32.mrf.mxu1  ;;  %v5952_v42 = vld [vmem:[%s10976_s1 + $0x258] sm:$0xf0] }
 0x297   :  { %v2248_v31 = vadd.f32 %v2247_v34, %v2199_v4  ;;  %v7341_v34 = vld [vmem:[%s10976_s1 + $0x14c] sm:$0xf] }
 0x299   :  { %v9694_v44 = vadd.f32 %v2296_v49, %v2248_v31  ;;  %v2151_v8 = vpop.f32.mrf.mxu2  ;;  %v5824_v49 = vld [vmem:[%s10976_s1 + $0x158] sm:$0xf0] }
 0x29a   :  { %v2152_v24 = vadd.f32 %v2151_v8, %v9629_v23  ;;  %v5827_v57 = vor.u32 %v7341_v34, %v5824_v49 }
 0x29c   :  { %v2200_v20 = vpop.f32.mrf.mxu3  ;;  %v2252_v60 = vpop.f32.mrf.mxu0  ;;  %2527 = vmatpush.bf16.msra.mxu2 %v5827_v57  ;;  %v6160_v57 = vld [vmem:[%s10976_s1 + $0x3f8] sm:$0xf0] }
 0x29d   :  { %v2201_v17 = vadd.f32 %v2200_v20, %v2152_v24  ;;  %v2301_v40 = vpop.f32.mrf.mxu1 }
 0x29e   :  { %2349 = vmatmul.bf16.gmra.mxu2 %v11187_v38 }
 0x29f   :  { %v2250_v35 = vadd.f32 %v2249_v16, %v2201_v17  ;;  %6455 = vmatmul.msk.bf16.gmra.mxu0 %vm1419_vm0, %v11188_v28  ;;  %2496 = vmatmul.bf16.gmra.mxu1 %v8276_v14  ;;  %v5955_v16 = vor.u32 %v7373_v50, %v5952_v42  ;;  %v7425_v50 = vld [vmem:[%s10976_s1 + $0x3ec] sm:$0xf]  ;;  %v11190_v42 = vld [vmem:[#allocation28_spill] sm:$0xff] }
 0x2a1   :  { %2398 = vmatmul.bf16.gmra.mxu3 %v11189_v29  ;;  %v9714_v52 = vadd.f32 %v2298_v21, %v2250_v35  ;;  %v2154_v14 = vpop.f32.mrf.mxu2  ;;  %v7401_v29 = vld [vmem:[%s10976_s1 + $0x32c] sm:$0xf] }
 0x2a2   :  { %v2155_v4 = vadd.f32 %v2154_v14, %v9629_v23  ;;  %2576 = vmatpush.bf16.msra.mxu3 %v5955_v16  ;;  %v11191_v14 = vld [vmem:[#allocation46_spill] sm:$0xff]  ;;  %v6288_v16 = vld [vmem:[%s10976_s1 + $0x4f8] sm:$0xf0] }
 0x2a4   :  { %v2203_v31 = vpop.f32.mrf.mxu3  ;;  %v2254_v8 = vpop.f32.mrf.mxu0 }
 0x2a5   :  { %v2204_v24 = vadd.f32 %v2203_v31, %v2155_v4  ;;  %v2303_v20 = vpop.f32.mrf.mxu1  ;;  %v11192_v4 = vld [vmem:[#allocation30_spill] sm:$0xff]  ;;  %v7337_v31 = vld [vmem:[%s10976_s1 + $0x12c] sm:$0xf] }
 0x2a7   :  { %v2253_v17 = vadd.f32 %v2252_v60, %v2204_v24  ;;  %v7457_v60 = vld [vmem:[%s10976_s1 + $0x4ec] sm:$0xf] }
 0x2a8   :  { %v6291_v24 = vor.u32 %v7457_v60, %v6288_v16  ;;  %v6144_v60 = vld [vmem:[%s10976_s1 + $0x3d8] sm:$0xf0] }
 0x2a9   :  { %v9717_v1 = vadd.f32 %v2301_v40, %v2253_v17  ;;  %v2156_v34 = vpop.f32.mrf.mxu2  ;;  %v7369_v17 = vld [vmem:[%s10976_s1 + $0x22c] sm:$0xf] }
 0x2aa   :  { %v2157_v49 = vadd.f32 %v2156_v34, %v9629_v23  ;;  %2669 = vmatpush.bf16.msra.mxu1 %v6291_v24 }
 0x2ac   :  { %v2205_v22 = vpop.f32.mrf.mxu3  ;;  %v2257_v28 = vpop.f32.mrf.mxu0 }
 0x2ad   :  { %v2206_v21 = vadd.f32 %v2205_v22, %v2157_v49  ;;  %v2306_v35 = vpop.f32.mrf.mxu1  ;;  %v6163_v22 = vor.u32 %v7425_v50, %v6160_v57  ;;  %v5936_v49 = vld [vmem:[%s10976_s1 + $0x238] sm:$0xf0]  ;;  %v7421_v57 = vld [vmem:[%s10976_s1 + $0x3cc] sm:$0xf] }
 0x2ae   :  { %2354 = vmatmul.bf16.gmra.mxu2 %v11190_v42  ;;  %v5939_v50 = vor.u32 %v7369_v17, %v5936_v49 }
 0x2af   :  { %v2255_v40 = vadd.f32 %v2254_v8, %v2206_v21  ;;  %6456 = vmatmul.msk.bf16.gmra.mxu0 %vm1419_vm0, %v11191_v14  ;;  %2501 = vmatmul.bf16.gmra.mxu1 %v7981_v0  ;;  %v5808_v8 = vld [vmem:[%s10976_s1 + $0x138] sm:$0xf0]  ;;  %v7417_v14 = vld [vmem:[%s10976_s1 + $0x3ac] sm:$0xf] }
 0x2b0   :  { %v5811_v34 = vor.u32 %v7337_v31, %v5808_v8  ;;  %2620 = vmatpush.bf16.msra.mxu0 %v6163_v22  ;;  %v7453_v22 = vld [vmem:[%s10976_s1 + $0x4cc] sm:$0xf]  ;;  %2577 = vmatpush.bf16.msra.mxu3 %v5939_v50  ;;  %v6256_v50 = vld [vmem:[%s10976_s1 + $0x4b8] sm:$0xf0] }
 0x2b1   :  { %2403 = vmatmul.bf16.gmra.mxu3 %v11192_v4  ;;  %v9749_v0 = vadd.f32 %v2303_v20, %v2255_v40  ;;  %v2159_v21 = vpop.f32.mrf.mxu2  ;;  %v6147_v20 = vor.u32 %v7421_v57, %v6144_v60  ;;  %v6272_v40 = vld [vmem:[%s10976_s1 + $0x4d8] sm:$0xf0]  ;;  %v7405_v4 = vld [vmem:[%s10976_s1 + $0x34c] sm:$0xf] }
 0x2b2   :  { %v2160_v16 = vadd.f32 %v2159_v21, %v9629_v23  ;;  %2528 = vmatpush.bf16.msra.mxu2 %v5811_v34  ;;  %v6275_v24 = vor.u32 %v7453_v22, %v6272_v40  ;;  %v6128_v34 = vld [vmem:[%s10976_s1 + $0x3b8] sm:$0xf0]  ;;  %v7449_v21 = vld [vmem:[%s10976_s1 + $0x4ac] sm:$0xf] }
 0x2b3   :  { %v6131_v60 = vor.u32 %v7417_v14, %v6128_v34  ;;  %v6259_v22 = vor.u32 %v7449_v21, %v6256_v50  ;;  %v6112_v40 = vld [vmem:[%s10976_s1 + $0x398] sm:$0xf0]  ;;  %v7409_v50 = vld [vmem:[%s10976_s1 + $0x36c] sm:$0xf] }
 0x2b4   :  { %v2208_v31 = vpop.f32.mrf.mxu3  ;;  %v2259_v8 = vpop.f32.mrf.mxu0  ;;  %2621 = vmatpush.bf16.msra.mxu0 %v6147_v20  ;;  %2670 = vmatpush.bf16.msra.mxu1 %v6275_v24  ;;  %v7413_v20 = vld [vmem:[%s10976_s1 + $0x38c] sm:$0xf] }
 0x2b5   :  { %v2209_v17 = vadd.f32 %v2208_v31, %v2160_v16  ;;  %v2308_v49 = vpop.f32.mrf.mxu1 }
 0x2b7   :  { %v2258_v57 = vadd.f32 %v2257_v28, %v2209_v17  ;;  %v7445_v28 = vld [vmem:[%s10976_s1 + $0x48c] sm:$0xf]  ;;  %v6115_v17 = vor.u32 %v7413_v20, %v6112_v40  ;;  %v11193_v40 = vld [vmem:[#allocation32_spill] sm:$0xff] }
 0x2b8   :  { %2622 = vmatpush.bf16.msra.mxu0 %v6131_v60  ;;  %2671 = vmatpush.bf16.msra.mxu1 %v6259_v22  ;;  %v6096_v22 = vld [vmem:[%s10976_s1 + $0x378] sm:$0xf0] }
 0x2b9   :  { %v9776_v16 = vadd.f32 %v2306_v35, %v2258_v57  ;;  %v2161_v31 = vpop.f32.mrf.mxu2  ;;  %v6240_v35 = vld [vmem:[%s10976_s1 + $0x498] sm:$0xf0] }
 0x2ba   :  { %v2162_v14 = vadd.f32 %v2161_v31, %v9629_v23  ;;  %v6243_v21 = vor.u32 %v7445_v28, %v6240_v35  ;;  %v7441_v31 = vld [vmem:[%s10976_s1 + $0x46c] sm:$0xf]  ;;  %v11194_v28 = vld [vmem:[#allocation47_spill] sm:$0xff] }
 0x2bb   :  { %v7333_v35 = vld [vmem:[%s10976_s1 + $0x10c] sm:$0xf] }
 0x2bc   :  { %v2210_v24 = vpop.f32.mrf.mxu3  ;;  %v2262_v34 = vpop.f32.mrf.mxu0  ;;  %2623 = vmatpush.bf16.msra.mxu0 %v6115_v17  ;;  %2672 = vmatpush.bf16.msra.mxu1 %v6243_v21  ;;  %v11195_v17 = vld [vmem:[#allocation34_spill] sm:$0xff] }
 0x2bd   :  { %v2211_v57 = vadd.f32 %v2210_v24, %v2162_v14  ;;  %v2311_v60 = vpop.f32.mrf.mxu1  ;;  %v6099_v14 = vor.u32 %v7409_v50, %v6096_v22  ;;  %v6224_v24 = vld [vmem:[%s10976_s1 + $0x478] sm:$0xf0] }
 0x2be   :  { %2359 = vmatmul.bf16.gmra.mxu2 %v11193_v40  ;;  %v6227_v21 = vor.u32 %v7441_v31, %v6224_v24  ;;  %v5920_v22 = vld [vmem:[%s10976_s1 + $0x218] sm:$0xf0] }
 0x2bf   :  { %v2260_v20 = vadd.f32 %v2259_v8, %v2211_v57  ;;  %6457 = vmatmul.msk.bf16.gmra.mxu0 %vm1419_vm0, %v11194_v28  ;;  %2506 = vmatmul.bf16.gmra.mxu1 %v8113_v58  ;;  %v5792_v8 = vld [vmem:[%s10976_s1 + $0x118] sm:$0xf0]  ;;  %v7365_v57 = vld [vmem:[%s10976_s1 + $0x20c] sm:$0xf] }
 0x2c0   :  { %v5795_v50 = vor.u32 %v7333_v35, %v5792_v8  ;;  %2624 = vmatpush.bf16.msra.mxu0 %v6099_v14  ;;  %2673 = vmatpush.bf16.msra.mxu1 %v6227_v21  ;;  %v6080_v31 = vld [vmem:[%s10976_s1 + $0x358] sm:$0xf0]  ;;  %v7437_v14 = vld [vmem:[%s10976_s1 + $0x44c] sm:$0xf] }
 0x2c1   :  { %2408 = vmatmul.bf16.gmra.mxu3 %v11195_v17  ;;  %v9820_v58 = vadd.f32 %v2308_v49, %v2260_v20  ;;  %v2164_v28 = vpop.f32.mrf.mxu2  ;;  %v5923_v17 = vor.u32 %v7365_v57, %v5920_v22  ;;  %v6083_v49 = vor.u32 %v7405_v4, %v6080_v31  ;;  %v6208_v20 = vld [vmem:[%s10976_s1 + $0x458] sm:$0xf0]  ;;  %v7433_v4 = vld [vmem:[%s10976_s1 + $0x42c] sm:$0xf] }
 0x2c2   :  { %v2165_v24 = vadd.f32 %v2164_v28, %v9629_v23  ;;  %2529 = vmatpush.bf16.msra.mxu2 %v5795_v50  ;;  %v6211_v21 = vor.u32 %v7437_v14, %v6208_v20  ;;  %v6064_v28 = vld [vmem:[%s10976_s1 + $0x338] sm:$0xf0] }
 0x2c3   :  { %2578 = vmatpush.bf16.msra.mxu3 %v5923_v17  ;;  %v6067_v31 = vor.u32 %v7401_v29, %v6064_v28  ;;  %v6192_v17 = vld [vmem:[%s10976_s1 + $0x438] sm:$0xf0]  ;;  %v7429_v29 = vld [vmem:[%s10976_s1 + $0x40c] sm:$0xf] }
 0x2c4   :  { %v2213_v35 = vpop.f32.mrf.mxu3  ;;  %v2264_v8 = vpop.f32.mrf.mxu0  ;;  %2625 = vmatpush.bf16.msra.mxu0 %v6083_v49  ;;  %2674 = vmatpush.bf16.msra.mxu1 %v6211_v21  ;;  %v6195_v14 = vor.u32 %v7433_v4, %v6192_v17  ;;  %v7397_v49 = vld [vmem:[%s10976_s1 + $0x30c] sm:$0xf]  ;;  %v6048_v20 = vld [vmem:[%s10976_s1 + $0x318] sm:$0xf0] }
 0x2c5   :  { %v2214_v57 = vadd.f32 %v2213_v35, %v2165_v24  ;;  %v2313_v22 = vpop.f32.mrf.mxu1 }
 0x2c7   :  { %v2263_v50 = vadd.f32 %v2262_v34, %v2214_v57  ;;  %v6051_v57 = vor.u32 %v7397_v49, %v6048_v20  ;;  %v6416_v49 = vld [vmem:[%s10976_s1 + $0x5f8] sm:$0xf0] }
 0x2c8   :  { %2626 = vmatpush.bf16.msra.mxu0 %v6067_v31  ;;  %2675 = vmatpush.bf16.msra.mxu1 %v6195_v14  ;;  %v11196_v14 = vld [vmem:[#allocation48_spill] sm:$0xff] }
 0x2c9   :  { %v9847_v24 = vadd.f32 %v2311_v60, %v2263_v50  ;;  %v2166_v35 = vpop.f32.mrf.mxu2  ;;  %v6176_v60 = vld [vmem:[%s10976_s1 + $0x418] sm:$0xf0] }
 0x2ca   :  { %v2167_v34 = vadd.f32 %v2166_v35, %v9629_v23  ;;  %v6179_v4 = vor.u32 %v7429_v29, %v6176_v60  ;;  %v7489_v35 = vld [vmem:[%s10976_s1 + $0x5ec] sm:$0xf]  ;;  %v6432_v29 = vld [vmem:[%s10976_s1 + $0x618] sm:$0xf0] }
 0x2cb   :  { %v6419_v20 = vor.u32 %v7489_v35, %v6416_v49 }
 0x2cc   :  { %v2215_v21 = vpop.f32.mrf.mxu3  ;;  %v2267_v28 = vpop.f32.mrf.mxu0  ;;  %2627 = vmatpush.bf16.msra.mxu0 %v6051_v57  ;;  %2676 = vmatpush.bf16.msra.mxu1 %v6179_v4 }
 0x2cd   :  { %v2216_v50 = vadd.f32 %v2215_v21, %v2167_v34  ;;  %v2316_v31 = vpop.f32.mrf.mxu1  ;;  %2718 = vmatpush.bf16.msrb.mxu2 %v6419_v20  ;;  %v11200_v20 = vld [vmem:[#allocation41_spill] sm:$0xff] }
 0x2ce   :  { %2364 = vmatmul.bf16.gmra.mxu2 %v11159_v63 }
 0x2cf   :  { %v2265_v17 = vadd.f32 %v2264_v8, %v2216_v50  ;;  %6458 = vmatmul.msk.bf16.gmra.mxu0 %vm1419_vm0, %v11196_v14  ;;  %2511 = vmatmul.bf16.gmra.mxu1 %v8230_v51  ;;  %v7493_v8 = vld [vmem:[%s10976_s1 + $0x60c] sm:$0xf] }
 0x2d0   :  { %v6435_v21 = vor.u32 %v7493_v8, %v6432_v29  ;;  %v11198_v8 = vld [vmem:[#allocation40_spill] sm:$0xff]  ;;  %v11199_v29 = vld [vmem:[#allocation49_spill] sm:$0xff] }
 0x2d1   :  { %2413 = vmatmul.bf16.gmra.mxu3 %v11197_v12  ;;  %v9879_v34 = vadd.f32 %v2313_v22, %v2265_v17  ;;  %v2169_v51 = vpop.f32.mrf.mxu2 }
 0x2d2   :  { %v2170_v57 = vadd.f32 %v2169_v51, %v9629_v23  ;;  %2774 = vmatpush.bf16.msrb.mxu3 %v6435_v21  ;;  %v6400_v21 = vld [vmem:[%s10976_s1 + $0x5d8] sm:$0xf0] }
 0x2d4   :  { %v2218_v60 = vpop.f32.mrf.mxu3  ;;  %v2269_v4 = vpop.f32.mrf.mxu0 }
 0x2d5   :  { %v2219_v50 = vadd.f32 %v2218_v60, %v2170_v57  ;;  %v2318_v14 = vpop.f32.mrf.mxu1 }
 0x2d7   :  { %v2268_v12 = vadd.f32 %v2267_v28, %v2219_v50 }
 0x2d9   :  { %v9882_v10 = vadd.f32 %v2316_v31, %v2268_v12  ;;  %v2171_v35 = vpop.f32.mrf.mxu2 }
 0x2da   :  { %v2172_v49 = vadd.f32 %v2171_v35, %v9629_v23 }
 0x2dc   :  { %v2220_v3 = vpop.f32.mrf.mxu3  ;;  %v2272_v47 = vpop.f32.mrf.mxu0 }
 0x2dd   :  { %v2221_v22 = vadd.f32 %v2220_v3, %v2172_v49  ;;  %v2321_v17 = vpop.f32.mrf.mxu1  ;;  %v7485_v3 = vld [vmem:[%s10976_s1 + $0x5cc] sm:$0xf] }
 0x2de   :  { %2369 = vmatmul.bf16.gmra.mxu2 %v11198_v8  ;;  %v6403_v60 = vor.u32 %v7485_v3, %v6400_v21  ;;  %v11203_v3 = vld [vmem:[#allocation18_spill] sm:$0xff] }
 0x2df   :  { %v2270_v13 = vadd.f32 %v2269_v4, %v2221_v22  ;;  %6459 = vmatmul.msk.bf16.gmra.mxu0 %vm1419_vm0, %v11199_v29  ;;  %2516 = vmatmul.bf16.gmra.mxu1 %v11182_v41 }
 0x2e0   :  { %2719 = vmatpush.bf16.msrb.mxu2 %v6403_v60 }
 0x2e1   :  { %2418 = vmatmul.bf16.gmra.mxu3 %v11200_v20  ;;  %v9890_v28 = vadd.f32 %v2318_v14, %v2270_v13  ;;  %v2174_v12 = vpop.f32.mrf.mxu2 }
 0x2e2   :  { %v2175_v31 = vadd.f32 %v2174_v12, %v9629_v23 }
 0x2e4   :  { %v2223_v51 = vpop.f32.mrf.mxu3  ;;  %v2274_v57 = vpop.f32.mrf.mxu0 }
 0x2e5   :  { %v2224_v4 = vadd.f32 %v2223_v51, %v2175_v31  ;;  %v2323_v50 = vpop.f32.mrf.mxu1  ;;  %v7481_v51 = vld [vmem:[%s10976_s1 + $0x5ac] sm:$0xf] }
 0x2e7   :  { %v2273_v41 = vadd.f32 %v2272_v47, %v2224_v4 }
 0x2e9   :  { %v9899_v13 = vadd.f32 %v2321_v17, %v2273_v41  ;;  %v2176_v14 = vpop.f32.mrf.mxu2 }
 0x2ea   :  { %v2177_v35 = vadd.f32 %v2176_v14, %v9629_v23 }
 0x2ec   :  { %v2225_v49 = vpop.f32.mrf.mxu3  ;;  %v2433_v22 = vpop.f32.mrf.mxu0 }
 0x2ed   :  { %v2226_v12 = vadd.f32 %v2225_v49, %v2177_v35  ;;  %v9902_v29 = vpop.f32.mrf.mxu1  ;;  %v11204_v49 = vld [vmem:[#allocation21_spill] sm:$0xff] }
 0x2ee   :  { %2530 = vmatmul.bf16.vlgmr.msra.gmra.mxu2 %v11201_v48  ;;  %v6384_v48 = vld [vmem:[%s10976_s1 + $0x5b8] sm:$0xf0] }
 0x2ef   :  { %v2275_v20 = vadd.f32 %v2274_v57, %v2226_v12  ;;  %2628 = vmatmul.bf16.vlgmr.msra.gmra.mxu0 %v11202_v32  ;;  %2677 = vmatmul.bf16.vlgmr.msra.gmra.mxu1 %v8320_v30  ;;  %v6387_v32 = vor.u32 %v7481_v51, %v6384_v48 }
 0x2f1   :  { %2579 = vmatmul.bf16.vlgmr.msra.gmra.mxu3 %v11203_v3  ;;  %v9908_v47 = vadd.f32 %v2323_v50, %v2275_v20  ;;  %v2335_v17 = vpop.f32.mrf.mxu2  ;;  %2720 = vmatpush.bf16.msrb.mxu2 %v6387_v32 }
 0x2f2   :  { %v2336_v31 = vadd.f32 %v2335_v17, %v9648_v5 }
 0x2f4   :  { %v2384_v23 = vpop.f32.mrf.mxu3  ;;  %v2435_v21 = vpop.f32.mrf.mxu0 }
 0x2f5   :  { %v2385_v57 = vadd.f32 %v2384_v23, %v2336_v31  ;;  %v9917_v60 = vpop.f32.mrf.mxu1  ;;  %v7477_v23 = vld [vmem:[%s10976_s1 + $0x58c] sm:$0xf] }
 0x2f7   :  { %v2434_v30 = vadd.f32 %v2433_v22, %v2385_v57 }
 0x2f9   :  { %v2337_v20 = vpop.f32.mrf.mxu2  ;;  %v2818_v12 = vmax.f32 %v2434_v30, 0.0 }
 0x2fa   :  { %v2338_v4 = vadd.f32 %v2337_v20, %v9668_v43 }
 0x2fc   :  { %v2386_v5 = vpop.f32.mrf.mxu3  ;;  %v2438_v50 = vpop.f32.mrf.mxu0 }
 0x2fd   :  { %v2387_v41 = vadd.f32 %v2386_v5, %v2338_v4  ;;  %v9920_v14 = vpop.f32.mrf.mxu1 }
 0x2fe   :  { %2535 = vmatmul.bf16.gmra.mxu2 %v11168_v6 }
 0x2ff   :  { %v2436_v35 = vadd.f32 %v2435_v21, %v2387_v41  ;;  %2633 = vmatmul.bf16.gmra.mxu0 %v8364_v46  ;;  %2682 = vmatmul.bf16.gmra.mxu1 %v8362_v45  ;;  %v6368_v46 = vld [vmem:[%s10976_s1 + $0x598] sm:$0xf0] }
 0x300   :  { %v6371_v51 = vor.u32 %v7477_v23, %v6368_v46 }
 0x301   :  { %2584 = vmatmul.bf16.gmra.mxu3 %v11204_v49  ;;  %v2822_v3 = vmax.f32 %v2436_v35, 0.0  ;;  %v2340_v22 = vpop.f32.mrf.mxu2 }
 0x302   :  { %v2341_v43 = vadd.f32 %v2340_v22, %v9671_v27  ;;  %2721 = vmatpush.bf16.msrb.mxu2 %v6371_v51 }
 0x303   :  { %v9926_v17 = vpack.c.bf16 %v2822_v3, %v2818_v12  ;;  %v7473_v3 = vld [vmem:[%s10976_s1 + $0x56c] sm:$0xf] }
 0x304   :  { %v2389_v31 = vpop.f32.mrf.mxu3  ;;  %v2440_v6 = vpop.f32.mrf.mxu0 }
 0x305   :  { %v2390_v48 = vadd.f32 %v2389_v31, %v2341_v43  ;;  %v9935_v45 = vpop.f32.mrf.mxu1 }
 0x307   :  { %v2439_v21 = vadd.f32 %v2438_v50, %v2390_v48 }
 0x309   :  { %v2342_v32 = vpop.f32.mrf.mxu2  ;;  %v2826_v41 = vmax.f32 %v2439_v21, 0.0 }
 0x30a   :  { %v2343_v57 = vadd.f32 %v2342_v32, %v9691_v39 }
 0x30c   :  { %v2391_v27 = vpop.f32.mrf.mxu3  ;;  %v2443_v30 = vpop.f32.mrf.mxu0 }
 0x30d   :  { %v2392_v20 = vadd.f32 %v2391_v27, %v2343_v57  ;;  %v9938_v4 = vpop.f32.mrf.mxu1 }
 0x30e   :  { %2540 = vmatmul.bf16.gmra.mxu2 %v11170_v33 }
 0x30f   :  { %v2441_v5 = vadd.f32 %v2440_v6, %v2392_v20  ;;  %2638 = vmatmul.bf16.gmra.mxu0 %v8406_v9  ;;  %2687 = vmatmul.bf16.gmra.mxu1 %v11143_v11  ;;  %v6352_v9 = vld [vmem:[%s10976_s1 + $0x578] sm:$0xf0]  ;;  %v7469_v20 = vld [vmem:[%s10976_s1 + $0x54c] sm:$0xf] }
 0x311   :  { %2589 = vmatmul.bf16.gmra.mxu3 %v8402_v7  ;;  %v2830_v35 = vmax.f32 %v2441_v5, 0.0  ;;  %v2345_v50 = vpop.f32.mrf.mxu2  ;;  %v6355_v7 = vor.u32 %v7473_v3, %v6352_v9  ;;  %v6582_v9 = vld [vmem:[#allocation2 + $0xe0] sm:$0xf] }
 0x312   :  { %v2346_v39 = vadd.f32 %v2345_v50, %v9694_v44 }
 0x313   :  { %v9944_v49 = vpack.c.bf16 %v2830_v35, %v2826_v41  ;;  %2722 = vmatpush.bf16.msrb.mxu2 %v6355_v7  ;;  %v6710_v7 = vld [vmem:[#allocation2 + $0x1e0] sm:$0xf] }
 0x314   :  { %v2394_v12 = vpop.f32.mrf.mxu3  ;;  %v2445_v33 = vpop.f32.mrf.mxu0 }
 0x315   :  { %v2395_v22 = vadd.f32 %v2394_v12, %v2346_v39  ;;  %v9953_v11 = vpop.f32.mrf.mxu1 }
 0x317   :  { %v2444_v43 = vadd.f32 %v2443_v30, %v2395_v22 }
 0x319   :  { %v2347_v31 = vpop.f32.mrf.mxu2  ;;  %v2834_v21 = vmax.f32 %v2444_v43, 0.0 }
 0x31a   :  { %v2348_v23 = vadd.f32 %v2347_v31, %v9714_v52  ;;  %v7558_v31 = vld [vmem:[#allocation2 + $0x1ec] sm:$0xf0] }
 0x31c   :  { %v2396_v44 = vpop.f32.mrf.mxu3  ;;  %v2448_v46 = vpop.f32.mrf.mxu0 }
 0x31d   :  { %v2397_v6 = vadd.f32 %v2396_v44, %v2348_v23  ;;  %v9956_v51 = vpop.f32.mrf.mxu1 }
 0x31e   :  { %2545 = vmatmul.bf16.gmra.mxu2 %v11172_v37 }
 0x31f   :  { %v2446_v48 = vadd.f32 %v2445_v33, %v2397_v6  ;;  %2643 = vmatmul.bf16.gmra.mxu0 %v11145_v18  ;;  %2692 = vmatmul.bf16.gmra.mxu1 %v11187_v38  ;;  %v6336_v18 = vld [vmem:[%s10976_s1 + $0x558] sm:$0xf0]  ;;  %v7526_v33 = vld [vmem:[#allocation2 + $0xec] sm:$0xf0]  ;;  %v6566_v6 = vld [vmem:[#allocation2 + $0xc0] sm:$0xf] }
 0x320   :  { %v6583_v43 = vor.u32 %v7526_v33, %v6582_v9  ;;  %v6534_v33 = vld [vmem:[#allocation2 + $0x80] sm:$0xf] }
 0x321   :  { %2594 = vmatmul.bf16.gmra.mxu3 %v8444_v26  ;;  %v2838_v32 = vmax.f32 %v2446_v48, 0.0  ;;  %v2350_v57 = vpop.f32.mrf.mxu2  ;;  %v6339_v26 = vor.u32 %v7469_v20, %v6336_v18  ;;  %v7522_v48 = vld [vmem:[#allocation2 + $0xcc] sm:$0xf0] }
 0x322   :  { %v2351_v52 = vadd.f32 %v2350_v57, %v9717_v1  ;;  %3690 = vmatpush.bf16.msrb.mxu0 %v6583_v43  ;;  %v6567_v57 = vor.u32 %v7522_v48, %v6566_v6 }
 0x323   :  { %v9962_v27 = vpack.c.bf16 %v2838_v32, %v2834_v21  ;;  %2723 = vmatpush.bf16.msrb.mxu2 %v6339_v26  ;;  %v6694_v21 = vld [vmem:[#allocation2 + $0x1c0] sm:$0xf] }
 0x324   :  { %v2399_v30 = vpop.f32.mrf.mxu3  ;;  %v2450_v37 = vpop.f32.mrf.mxu0 }
 0x325   :  { %v2400_v5 = vadd.f32 %v2399_v30, %v2351_v52  ;;  %v9971_v38 = vpop.f32.mrf.mxu1  ;;  %v7554_v52 = vld [vmem:[#allocation2 + $0x1cc] sm:$0xf0] }
 0x326   :  { %v6695_v18 = vor.u32 %v7554_v52, %v6694_v21  ;;  %3691 = vmatpush.bf16.msrb.mxu0 %v6567_v57  ;;  %v7510_v21 = vld [vmem:[#allocation2 + $0x6c] sm:$0xf0] }
 0x327   :  { %v2449_v41 = vadd.f32 %v2448_v46, %v2400_v5  ;;  %v7518_v5 = vld [vmem:[#allocation2 + $0xac] sm:$0xf0] }
 0x329   :  { %v2352_v35 = vpop.f32.mrf.mxu2  ;;  %v2842_v23 = vmax.f32 %v2449_v41, 0.0  ;;  %v6678_v41 = vld [vmem:[#allocation2 + $0x1a0] sm:$0xf] }
 0x32a   :  { %v2353_v50 = vadd.f32 %v2352_v35, %v9749_v0  ;;  %v6711_v0 = vor.u32 %v7558_v31, %v6710_v7  ;;  %v7514_v7 = vld [vmem:[#allocation2 + $0x8c] sm:$0xf0] }
 0x32c   :  { %v2401_v1 = vpop.f32.mrf.mxu3  ;;  %v2453_v39 = vpop.f32.mrf.mxu0  ;;  %3739 = vmatpush.bf16.msrb.mxu1 %v6711_v0  ;;  %v6535_v0 = vor.u32 %v7514_v7, %v6534_v33  ;;  %v7502_v33 = vld [vmem:[#allocation2 + $0x2c] sm:$0xf0]  ;;  %v6614_v7 = vld [vmem:[#allocation2 + $0x120] sm:$0xf] }
 0x32d   :  { %v2402_v12 = vadd.f32 %v2401_v1, %v2353_v50  ;;  %v9974_v3 = vpop.f32.mrf.mxu1  ;;  %v7550_v1 = vld [vmem:[#allocation2 + $0x1ac] sm:$0xf0] }
 0x32e   :  { %2550 = vmatmul.bf16.gmra.mxu2 %v11174_v62 }
 0x32f   :  { %v2451_v22 = vadd.f32 %v2450_v37, %v2402_v12  ;;  %2648 = vmatmul.bf16.gmra.mxu0 %v11149_v25  ;;  %2697 = vmatmul.bf16.gmra.mxu1 %v11190_v42  ;;  %v6320_v42 = vld [vmem:[%s10976_s1 + $0x538] sm:$0xf0]  ;;  %v6679_v12 = vor.u32 %v7550_v1, %v6678_v41  ;;  %v7538_v41 = vld [vmem:[#allocation2 + $0x14c] sm:$0xf0] }
 0x330   :  { %3740 = vmatpush.bf16.msrb.mxu1 %v6695_v18  ;;  %v6502_v18 = vld [vmem:[#allocation2 + $0x40] sm:$0xf] }
 0x331   :  { %2599 = vmatmul.bf16.gmra.mxu3 %v8494_v55  ;;  %v2846_v44 = vmax.f32 %v2451_v22, 0.0  ;;  %v2355_v46 = vpop.f32.mrf.mxu2  ;;  %v7465_v55 = vld [vmem:[%s10976_s1 + $0x52c] sm:$0xf]  ;;  %v6662_v22 = vld [vmem:[#allocation2 + $0x180] sm:$0xf] }
 0x332   :  { %v2356_v62 = vadd.f32 %v2355_v46, %v9776_v16  ;;  %v6323_v20 = vor.u32 %v7465_v55, %v6320_v42  ;;  %v6550_v16 = vld [vmem:[#allocation2 + $0xa0] sm:$0xf] }
 0x333   :  { %v9980_v32 = vpack.c.bf16 %v2846_v44, %v2842_v23  ;;  %v6551_v50 = vor.u32 %v7518_v5, %v6550_v16  ;;  %v7546_v23 = vld [vmem:[#allocation2 + $0x18c] sm:$0xf0]  ;;  %v6630_v16 = vld [vmem:[#allocation2 + $0x140] sm:$0xf] }
 0x334   :  { %v2404_v25 = vpop.f32.mrf.mxu3  ;;  %v2455_v30 = vpop.f32.mrf.mxu0  ;;  %2724 = vmatpush.bf16.msrb.mxu2 %v6323_v20  ;;  %3741 = vmatpush.bf16.msrb.mxu1 %v6679_v12  ;;  %v6663_v46 = vor.u32 %v7546_v23, %v6662_v22  ;;  %v6631_v1 = vor.u32 %v7538_v41, %v6630_v16 }
 0x335   :  { %v2405_v37 = vadd.f32 %v2404_v25, %v2356_v62  ;;  %v9989_v26 = vpop.f32.mrf.mxu1  ;;  %3692 = vmatpush.bf16.msrb.mxu0 %v6551_v50  ;;  %v6646_v62 = vld [vmem:[#allocation2 + $0x160] sm:$0xf] }
 0x337   :  { %v2454_v35 = vadd.f32 %v2453_v39, %v2405_v37  ;;  %v6518_v39 = vld [vmem:[#allocation2 + $0x60] sm:$0xf]  ;;  %v7506_v37 = vld [vmem:[#allocation2 + $0x4c] sm:$0xf0] }
 0x338   :  { %3742 = vmatpush.bf16.msrb.mxu1 %v6663_v46  ;;  %v6519_v55 = vor.u32 %v7510_v21, %v6518_v39  ;;  %v6503_v5 = vor.u32 %v7506_v37, %v6502_v18  ;;  %v6470_v46 = vld [vmem:[#allocation2] sm:$0xf] }
 0x339   :  { %v2357_v9 = vpop.f32.mrf.mxu2  ;;  %3693 = vmatpush.bf16.msrb.mxu0 %v6535_v0  ;;  %v2850_v57 = vmax.f32 %v2454_v35, 0.0  ;;  %v6598_v39 = vld [vmem:[#allocation2 + $0x100] sm:$0xf] }
 0x33a   :  { %v2358_v43 = vadd.f32 %v2357_v9, %v9820_v58  ;;  %v7542_v58 = vld [vmem:[#allocation2 + $0x16c] sm:$0xf0] }
 0x33b   :  { %v6647_v42 = vor.u32 %v7542_v58, %v6646_v62 }
 0x33c   :  { %v2406_v31 = vpop.f32.mrf.mxu3  ;;  %v2458_v44 = vpop.f32.mrf.mxu0 }
 0x33d   :  { %v2407_v6 = vadd.f32 %v2406_v31, %v2358_v43  ;;  %v9992_v48 = vpop.f32.mrf.mxu1  ;;  %3694 = vmatpush.bf16.msrb.mxu0 %v6519_v55  ;;  %3743 = vmatpush.bf16.msrb.mxu1 %v6647_v42  ;;  %v7534_v31 = vld [vmem:[#allocation2 + $0x12c] sm:$0xf0] }
 0x33e   :  { %2555 = vmatmul.bf16.gmra.mxu2 %v11177_v61  ;;  %v6615_v0 = vor.u32 %v7534_v31, %v6614_v7  ;;  %v7530_v55 = vld [vmem:[#allocation2 + $0x10c] sm:$0xf0] }
 0x33f   :  { %v2456_v25 = vadd.f32 %v2455_v30, %v2407_v6  ;;  %2653 = vmatmul.bf16.gmra.mxu0 %v11153_v54  ;;  %2702 = vmatmul.bf16.gmra.mxu1 %v11193_v40  ;;  %v6304_v40 = vld [vmem:[%s10976_s1 + $0x518] sm:$0xf0]  ;;  %v7498_v6 = vld [vmem:[#allocation2 + $0xc] sm:$0xf0]  ;;  %v6599_v42 = vor.u32 %v7530_v55, %v6598_v39 }
 0x341   :  { %2604 = vmatmul.bf16.gmra.mxu3 %v11176_v2  ;;  %v2854_v52 = vmax.f32 %v2456_v25, 0.0  ;;  %v2360_v20 = vpop.f32.mrf.mxu2  ;;  %v7461_v2 = vld [vmem:[%s10976_s1 + $0x50c] sm:$0xf]  ;;  %3695 = vmatpush.bf16.msrb.mxu0 %v6503_v5  ;;  %v6471_v25 = vor.u32 %v7498_v6, %v6470_v46  ;;  %v7728_v6 = vld [vmem:[%s10977_s2] sm:$0xf] }
 0x342   :  { %v2361_v61 = vadd.f32 %v2360_v20, %v9847_v24  ;;  %v6307_v50 = vor.u32 %v7461_v2, %v6304_v40  ;;  %3744 = vmatpush.bf16.msrb.mxu1 %v6631_v1  ;;  %v6486_v24 = vld [vmem:[#allocation2 + $0x20] sm:$0xf]  ;;  %v7590_v1 = vld [vmem:[#allocation2 + $0x2ec] sm:$0xf0]  ;;  %v10036_v39 = vperm.slane %v7728_v6, 3 }
 0x343   :  { %v9998_v30 = vpack.c.bf16 %v2854_v52, %v2850_v57  ;;  %v6487_v43 = vor.u32 %v7502_v33, %v6486_v24  ;;  %v6806_v6 = vld [vmem:[#allocation2 + $0x2a0] sm:$0xf] }
 0x344   :  { %v2409_v54 = vpop.f32.mrf.mxu3  ;;  %v2460_v35 = vpop.f32.mrf.mxu0  ;;  %2725 = vmatpush.bf16.msrb.mxu2 %v6307_v50 }
 0x345   :  { %11205 = vst [vmem:[#allocation14_spill] sm:$0xff] %v9998_v30  ;;  %v2410_v12 = vadd.f32 %v2409_v54, %v2361_v61  ;;  %v10007_v9 = vpop.f32.mrf.mxu1  ;;  %3696 = vmatpush.bf16.msrb.mxu0 %v6487_v43 }
 0x346   :  { %3745 = vmatpush.bf16.msrb.mxu1 %v6615_v0 }
 0x347   :  { %v2459_v22 = vadd.f32 %v2458_v44, %v2410_v12 }
 0x349   :  { %v2362_v23 = vpop.f32.mrf.mxu2  ;;  %3697 = vmatpush.bf16.msrb.mxu0 %v6471_v25 }
 0x34a   :  { %v2363_v21 = vadd.f32 %v2362_v23, %v9879_v34  ;;  %3746 = vmatpush.bf16.msrb.mxu1 %v6599_v42  ;;  %v2858_v34 = vmax.f32 %v2459_v22, 0.0  ;;  %v7622_v23 = vld [vmem:[#allocation2 + $0x3ec] sm:$0xf0] }
 0x34c   :  { %v2411_v62 = vpop.f32.mrf.mxu3  ;;  %v2463_v58 = vpop.f32.mrf.mxu0 }
 0x34d   :  { %v2412_v57 = vadd.f32 %v2411_v62, %v2363_v21  ;;  %v10010_v52 = vpop.f32.mrf.mxu1 }
 0x34e   :  { %2560 = vmatmul.bf16.gmra.mxu2 %v11180_v15 }
 0x34f   :  { %v2461_v44 = vadd.f32 %v2460_v35, %v2412_v57  ;;  %2658 = vmatmul.bf16.gmra.mxu0 %v11157_v53  ;;  %2707 = vmatmul.bf16.gmra.mxu1 %v11159_v63  ;;  %v11207_v57 = vld [vmem:[#allocation20_spill] sm:$0xff] }
 0x351   :  { %2609 = vmatmul.bf16.gmra.mxu3 %v11179_v36  ;;  %v2862_v20 = vmax.f32 %v2461_v44, 0.0  ;;  %v2365_v18 = vpop.f32.mrf.mxu2  ;;  %v11208_v44 = vld [vmem:[#allocation50_spill] sm:$0xff] }
 0x352   :  { %v2366_v16 = vadd.f32 %v2365_v18, %v9882_v10  ;;  %v6838_v10 = vld [vmem:[#allocation2 + $0x2e0] sm:$0xf] }
 0x353   :  { %v10016_v37 = vpack.c.bf16 %v2862_v20, %v2858_v34  ;;  %v6839_v33 = vor.u32 %v7590_v1, %v6838_v10  ;;  %v11209_v34 = vld [vmem:[#allocation42_spill] sm:$0xff]  ;;  %v11210_v20 = vld [vmem:[#allocation8_spill] sm:$0xff] }
 0x354   :  { %v2414_v61 = vpop.f32.mrf.mxu3  ;;  %v2465_v54 = vpop.f32.mrf.mxu0  ;;  %v6822_v18 = vld [vmem:[#allocation2 + $0x2c0] sm:$0xf]  ;;  %v7618_v10 = vld [vmem:[#allocation2 + $0x3cc] sm:$0xf0] }
 0x355   :  { %11206 = vst [vmem:[#allocation15_spill] sm:$0xff] %v10016_v37  ;;  %v2415_v2 = vadd.f32 %v2414_v61, %v2366_v16  ;;  %v10019_v40 = vpop.f32.mrf.mxu1  ;;  %3788 = vmatpush.bf16.msra.mxu2 %v6839_v33  ;;  %v7586_v16 = vld [vmem:[#allocation2 + $0x2cc] sm:$0xf0] }
 0x357   :  { %v2464_v5 = vadd.f32 %v2463_v58, %v2415_v2  ;;  %v2483_v58 = vadd.f32 %v9902_v29, %v10036_v39 }
 0x359   :  { %v2367_v15 = vpop.f32.mrf.mxu2  ;;  %v2866_v12 = vmax.f32 %v2464_v5, 0.0 }
 0x35a   :  { %v2368_v53 = vadd.f32 %v2367_v15, %v9890_v28 }
 0x35c   :  { %v2416_v41 = vpop.f32.mrf.mxu3  ;;  %v2468_v36 = vpop.f32.mrf.mxu0 }
 0x35d   :  { %v2417_v35 = vadd.f32 %v2416_v41, %v2368_v53  ;;  %v10022_v63 = vpop.f32.mrf.mxu1 }
 0x35e   :  { %2565 = vmatmul.bf16.gmra.mxu2 %v11184_v56 }
 0x35f   :  { %v2466_v50 = vadd.f32 %v2465_v54, %v2417_v35  ;;  %2663 = vmatmul.bf16.gmra.mxu0 %v8760_v59  ;;  %2712 = vmatmul.bf16.gmra.mxu1 %v11198_v8  ;;  %v6823_v54 = vor.u32 %v7586_v16, %v6822_v18  ;;  %v6934_v18 = vld [vmem:[#allocation2 + $0x3a0] sm:$0xf]  ;;  %v7614_v16 = vld [vmem:[#allocation2 + $0x3ac] sm:$0xf0] }
 0x361   :  { %2614 = vmatmul.bf16.gmra.mxu3 %v11183_v19  ;;  %v2870_v24 = vmax.f32 %v2466_v50, 0.0  ;;  %v2370_v28 = vpop.f32.mrf.mxu2  ;;  %v6966_v19 = vld [vmem:[#allocation2 + $0x3e0] sm:$0xf]  ;;  %3789 = vmatpush.bf16.msra.mxu2 %v6823_v54 }
 0x362   :  { %v2371_v22 = vadd.f32 %v2370_v28, %v9899_v13  ;;  %v6967_v8 = vor.u32 %v7622_v23, %v6966_v19  ;;  %v6950_v50 = vld [vmem:[#allocation2 + $0x3c0] sm:$0xf]  ;;  %v11211_v23 = vld [vmem:[#allocation22_spill] sm:$0xff] }
 0x363   :  { %v10028_v7 = vpack.c.bf16 %v2870_v24, %v2866_v12  ;;  %v6951_v1 = vor.u32 %v7618_v10, %v6950_v50  ;;  %v2485_v12 = vadd.f32 %v9917_v60, %v10036_v39  ;;  %v11214_v60 = vld [vmem:[#allocation11_spill] sm:$0xff]  ;;  %v11215_v10 = vld [vmem:[#allocation24_spill] sm:$0xff] }
 0x364   :  { %v2419_v43 = vpop.f32.mrf.mxu3  ;;  %v2470_v31 = vpop.f32.mrf.mxu0  ;;  %3837 = vmatpush.bf16.msra.mxu3 %v6967_v8  ;;  %v11212_v8 = vld [vmem:[#allocation51_spill] sm:$0xff] }
 0x365   :  { %v2420_v56 = vadd.f32 %v2419_v43, %v2371_v22  ;;  %v10031_v0 = vpop.f32.mrf.mxu1 }
 0x367   :  { %v2469_v59 = vadd.f32 %v2468_v36, %v2420_v56 }
 0x368   :  { %3838 = vmatpush.bf16.msra.mxu3 %v6951_v1  ;;  %v11216_v1 = vld [vmem:[#allocation23_spill] sm:$0xff] }
 0x369   :  { %v2372_v46 = vpop.f32.mrf.mxu2 }
 0x36a   :  { %v2373_v13 = vadd.f32 %v2372_v46, %v9908_v47  ;;  %v2874_v47 = vmax.f32 %v2469_v59, 0.0  ;;  %v2488_v59 = vadd.f32 %v9920_v14, %v10036_v39  ;;  %v11213_v46 = vld [vmem:[#allocation43_spill] sm:$0xff] }
 0x36c   :  { %v2421_v21 = vpop.f32.mrf.mxu3  ;;  %v2629_v62 = vpop.f32.mrf.mxu0 }
 0x36d   :  { %v2422_v25 = vadd.f32 %v2421_v21, %v2373_v13  ;;  %v2678_v55 = vpop.f32.mrf.mxu1  ;;  %v7582_v13 = vld [vmem:[#allocation2 + $0x2ac] sm:$0xf0] }
 0x36e   :  { %2726 = vmatmul.bf16.vlgmr.msrb.gmra.mxu2 %v11207_v57  ;;  %v6807_v21 = vor.u32 %v7582_v13, %v6806_v6  ;;  %v6918_v6 = vld [vmem:[#allocation2 + $0x380] sm:$0xf]  ;;  %v7610_v13 = vld [vmem:[#allocation2 + $0x38c] sm:$0xf0] }
 0x36f   :  { %v2471_v42 = vadd.f32 %v2470_v31, %v2422_v25  ;;  %3698 = vmatmul.bf16.vlgmr.msrb.gmra.mxu0 %v11208_v44  ;;  %3747 = vmatmul.bf16.vlgmr.msrb.gmra.mxu1 %v11210_v20 }
 0x370   :  { %3790 = vmatpush.bf16.msra.mxu2 %v6807_v21  ;;  %v6919_v21 = vor.u32 %v7610_v13, %v6918_v6 }
 0x371   :  { %6460 = vmatmul.msk.bf16.vlgmr.msrb.gmra.mxu3 %vm1419_vm0, %v11209_v34  ;;  %v2878_v61 = vmax.f32 %v2471_v42, 0.0  ;;  %v2531_v2 = vpop.f32.mrf.mxu2 }
 0x372   :  { %v2532_v15 = vadd.f32 %v2531_v2, %v2483_v58 }
 0x373   :  { %v10046_v5 = vpack.c.bf16 %v2878_v61, %v2874_v47  ;;  %v6935_v47 = vor.u32 %v7614_v16, %v6934_v18  ;;  %v2490_v61 = vadd.f32 %v9935_v45, %v10036_v39  ;;  %v11218_v45 = vld [vmem:[#allocation13_spill] sm:$0xff]  ;;  %v2498_v16 = vadd.f32 %v9956_v51, %v10036_v39 }
 0x374   :  { %v2580_v29 = vpop.f32.mrf.mxu3  ;;  %v2631_v53 = vpop.f32.mrf.mxu0 }
 0x375   :  { %v2581_v41 = vadd.f32 %v2580_v29, %v2532_v15  ;;  %v2680_v36 = vpop.f32.mrf.mxu1  ;;  %3839 = vmatpush.bf16.msra.mxu3 %v6935_v47 }
 0x377   :  { %v2630_v35 = vadd.f32 %v2629_v62, %v2581_v41 }
 0x379   :  { %v10050_v24 = vadd.f32 %v2678_v55, %v2630_v35  ;;  %v2533_v33 = vpop.f32.mrf.mxu2  ;;  %v2493_v35 = vadd.f32 %v9938_v4, %v10036_v39  ;;  %3840 = vmatpush.bf16.msra.mxu3 %v6919_v21 }
 0x37a   :  { %v2534_v28 = vadd.f32 %v2533_v33, %v2485_v12  ;;  %v11217_v12 = vld [vmem:[#allocation44_spill] sm:$0xff] }
 0x37b   :  { %v6790_v33 = vld [vmem:[#allocation2 + $0x280] sm:$0xf] }
 0x37c   :  { %v2582_v22 = vpop.f32.mrf.mxu3  ;;  %v2634_v43 = vpop.f32.mrf.mxu0 }
 0x37d   :  { %v2583_v31 = vadd.f32 %v2582_v22, %v2534_v28  ;;  %v2683_v56 = vpop.f32.mrf.mxu1  ;;  %v7578_v28 = vld [vmem:[#allocation2 + $0x28c] sm:$0xf0] }
 0x37e   :  { %2731 = vmatmul.bf16.gmra.mxu2 %v11211_v23  ;;  %v6791_v22 = vor.u32 %v7578_v28, %v6790_v33 }
 0x37f   :  { %v2632_v19 = vadd.f32 %v2631_v53, %v2583_v31  ;;  %3703 = vmatmul.bf16.gmra.mxu0 %v11212_v8  ;;  %3752 = vmatmul.bf16.gmra.mxu1 %v11214_v60 }
 0x380   :  { %3791 = vmatpush.bf16.msra.mxu2 %v6791_v22  ;;  %v6902_v22 = vld [vmem:[#allocation2 + $0x360] sm:$0xf] }
 0x381   :  { %6461 = vmatmul.msk.bf16.gmra.mxu3 %vm1419_vm0, %v11213_v46  ;;  %v10059_v62 = vadd.f32 %v2680_v36, %v2632_v19  ;;  %v2536_v25 = vpop.f32.mrf.mxu2 }
 0x382   :  { %v2537_v55 = vadd.f32 %v2536_v25, %v2488_v59  ;;  %v2495_v25 = vadd.f32 %v9953_v11, %v10036_v39  ;;  %v11222_v11 = vld [vmem:[#allocation16_spill] sm:$0xff] }
 0x384   :  { %v2585_v58 = vpop.f32.mrf.mxu3  ;;  %v2636_v14 = vpop.f32.mrf.mxu0 }
 0x385   :  { %v2586_v42 = vadd.f32 %v2585_v58, %v2537_v55  ;;  %v2685_v57 = vpop.f32.mrf.mxu1 }
 0x387   :  { %v2635_v34 = vadd.f32 %v2634_v43, %v2586_v42 }
 0x389   :  { %v10063_v54 = vadd.f32 %v2683_v56, %v2635_v34  ;;  %v2538_v2 = vpop.f32.mrf.mxu2 }
 0x38a   :  { %v2539_v15 = vadd.f32 %v2538_v2, %v2490_v61  ;;  %v11219_v61 = vld [vmem:[#allocation27_spill] sm:$0xff]  ;;  %v11220_v2 = vld [vmem:[#allocation26_spill] sm:$0xff] }
 0x38c   :  { %v2587_v29 = vpop.f32.mrf.mxu3  ;;  %v2639_v53 = vpop.f32.mrf.mxu0 }
 0x38d   :  { %v2588_v41 = vadd.f32 %v2587_v29, %v2539_v15  ;;  %v2688_v36 = vpop.f32.mrf.mxu1  ;;  %v11221_v15 = vld [vmem:[#allocation45_spill] sm:$0xff]  ;;  %v6774_v29 = vld [vmem:[#allocation2 + $0x260] sm:$0xf] }
 0x38e   :  { %2736 = vmatmul.bf16.gmra.mxu2 %v11215_v10 }
 0x38f   :  { %v2637_v50 = vadd.f32 %v2636_v14, %v2588_v41  ;;  %3708 = vmatmul.bf16.gmra.mxu0 %v11216_v1  ;;  %3757 = vmatmul.bf16.gmra.mxu1 %v11218_v45 }
 0x391   :  { %6462 = vmatmul.msk.bf16.gmra.mxu3 %vm1419_vm0, %v11217_v12  ;;  %v10072_v43 = vadd.f32 %v2685_v57, %v2637_v50  ;;  %v2541_v31 = vpop.f32.mrf.mxu2 }
 0x392   :  { %v2542_v56 = vadd.f32 %v2541_v31, %v2493_v35  ;;  %v7606_v31 = vld [vmem:[#allocation2 + $0x36c] sm:$0xf0] }
 0x394   :  { %v2590_v59 = vpop.f32.mrf.mxu3  ;;  %v2641_v4 = vpop.f32.mrf.mxu0 }
 0x395   :  { %v2591_v19 = vadd.f32 %v2590_v59, %v2542_v56  ;;  %v2690_v23 = vpop.f32.mrf.mxu1  ;;  %v6903_v56 = vor.u32 %v7606_v31, %v6902_v22  ;;  %v2500_v59 = vadd.f32 %v9971_v38, %v10036_v39  ;;  %v6696_v31 = vld [vmem:[#allocation2 + $0x1d0] sm:$0xf0] }
 0x397   :  { %v2640_v46 = vadd.f32 %v2639_v53, %v2591_v19  ;;  %v7574_v53 = vld [vmem:[#allocation2 + $0x26c] sm:$0xf0]  ;;  %3841 = vmatpush.bf16.msra.mxu3 %v6903_v56 }
 0x398   :  { %v6775_v41 = vor.u32 %v7574_v53, %v6774_v29  ;;  %v6758_v29 = vld [vmem:[#allocation2 + $0x240] sm:$0xf]  ;;  %v7570_v53 = vld [vmem:[#allocation2 + $0x24c] sm:$0xf0] }
 0x399   :  { %v10076_v55 = vadd.f32 %v2688_v36, %v2640_v46  ;;  %v2543_v58 = vpop.f32.mrf.mxu2 }
 0x39a   :  { %v2544_v14 = vadd.f32 %v2543_v58, %v2495_v25  ;;  %3792 = vmatpush.bf16.msra.mxu2 %v6775_v41  ;;  %v7524_v25 = vld [vmem:[#allocation2 + $0xe4] sm:$0xf]  ;;  %v6584_v58 = vld [vmem:[#allocation2 + $0xf0] sm:$0xf0]  ;;  %v6759_v41 = vor.u32 %v7570_v53, %v6758_v29 }
 0x39b   :  { %v6587_v38 = vor.u32 %v7524_v25, %v6584_v58  ;;  %v6886_v58 = vld [vmem:[#allocation2 + $0x340] sm:$0xf]  ;;  %v7512_v29 = vld [vmem:[#allocation2 + $0x84] sm:$0xf]  ;;  %v6536_v53 = vld [vmem:[#allocation2 + $0x90] sm:$0xf0] }
 0x39c   :  { %v2592_v42 = vpop.f32.mrf.mxu3  ;;  %v2644_v57 = vpop.f32.mrf.mxu0 }
 0x39d   :  { %v2593_v34 = vadd.f32 %v2592_v42, %v2544_v14  ;;  %v2693_v18 = vpop.f32.mrf.mxu1  ;;  %v7556_v14 = vld [vmem:[#allocation2 + $0x1e4] sm:$0xf]  ;;  %v2503_v42 = vadd.f32 %v9974_v3, %v10036_v39  ;;  %3886 = vmatpush.bf16.msra.mxu0 %v6587_v38 }
 0x39e   :  { %2741 = vmatmul.bf16.gmra.mxu2 %v11219_v61  ;;  %v11226_v61 = vld [vmem:[#allocation10_spill] sm:$0xff] }
 0x39f   :  { %v2642_v47 = vadd.f32 %v2641_v4, %v2593_v34  ;;  %3713 = vmatmul.bf16.gmra.mxu0 %v11220_v2  ;;  %3762 = vmatmul.bf16.gmra.mxu1 %v11222_v11  ;;  %v11223_v34 = vld [vmem:[#allocation30_spill] sm:$0xff] }
 0x3a0   :  { %3793 = vmatpush.bf16.msra.mxu2 %v6759_v41  ;;  %v7544_v41 = vld [vmem:[#allocation2 + $0x184] sm:$0xf] }
 0x3a1   :  { %6463 = vmatmul.msk.bf16.gmra.mxu3 %vm1419_vm0, %v11221_v15  ;;  %v10085_v36 = vadd.f32 %v2690_v23, %v2642_v47  ;;  %v2546_v35 = vpop.f32.mrf.mxu2  ;;  %v11225_v47 = vld [vmem:[#allocation46_spill] sm:$0xff] }
 0x3a2   :  { %v2547_v50 = vadd.f32 %v2546_v35, %v2498_v16  ;;  %v11224_v16 = vld [vmem:[#allocation29_spill] sm:$0xff] }
 0x3a4   :  { %v2595_v10 = vpop.f32.mrf.mxu3  ;;  %v2646_v51 = vpop.f32.mrf.mxu0 }
 0x3a5   :  { %v2596_v12 = vadd.f32 %v2595_v10, %v2547_v50  ;;  %v2695_v33 = vpop.f32.mrf.mxu1  ;;  %v7520_v50 = vld [vmem:[#allocation2 + $0xc4] sm:$0xf]  ;;  %v6568_v10 = vld [vmem:[#allocation2 + $0xd0] sm:$0xf0] }
 0x3a6   :  { %v6571_v22 = vor.u32 %v7520_v50, %v6568_v10  ;;  %v6539_v50 = vor.u32 %v7512_v29, %v6536_v53  ;;  %v6664_v10 = vld [vmem:[#allocation2 + $0x190] sm:$0xf0]  ;;  %v7536_v29 = vld [vmem:[#allocation2 + $0x144] sm:$0xf] }
 0x3a7   :  { %v2645_v28 = vadd.f32 %v2644_v57, %v2596_v12 }
 0x3a8   :  { %3887 = vmatpush.bf16.msra.mxu0 %v6571_v22 }
 0x3a9   :  { %v10089_v4 = vadd.f32 %v2693_v18, %v2645_v28  ;;  %v2548_v19 = vpop.f32.mrf.mxu2  ;;  %v6712_v18 = vld [vmem:[#allocation2 + $0x1f0] sm:$0xf0] }
 0x3aa   :  { %v2549_v23 = vadd.f32 %v2548_v19, %v2500_v59  ;;  %v6715_v15 = vor.u32 %v7556_v14, %v6712_v18  ;;  %v7602_v14 = vld [vmem:[#allocation2 + $0x34c] sm:$0xf0]  ;;  %v2505_v18 = vadd.f32 %v9989_v26, %v10036_v39  ;;  %v7508_v26 = vld [vmem:[#allocation2 + $0x64] sm:$0xf] }
 0x3ab   :  { %v6887_v38 = vor.u32 %v7602_v14, %v6886_v58  ;;  %v11229_v58 = vld [vmem:[#allocation47_spill] sm:$0xff] }
 0x3ac   :  { %v2597_v46 = vpop.f32.mrf.mxu3  ;;  %v2649_v6 = vpop.f32.mrf.mxu0  ;;  %3935 = vmatpush.bf16.msra.mxu1 %v6715_v15  ;;  %v11230_v14 = vld [vmem:[#allocation31_spill] sm:$0xff] }
 0x3ad   :  { %v2598_v13 = vadd.f32 %v2597_v46, %v2549_v23  ;;  %v2698_v21 = vpop.f32.mrf.mxu1  ;;  %v7516_v46 = vld [vmem:[#allocation2 + $0xa4] sm:$0xf]  ;;  %3842 = vmatpush.bf16.msra.mxu3 %v6887_v38  ;;  %v7566_v38 = vld [vmem:[#allocation2 + $0x22c] sm:$0xf0] }
 0x3ae   :  { %2746 = vmatmul.bf16.gmra.mxu2 %v11223_v34  ;;  %v6680_v34 = vld [vmem:[#allocation2 + $0x1b0] sm:$0xf0] }
 0x3af   :  { %v2647_v57 = vadd.f32 %v2646_v51, %v2598_v13  ;;  %3718 = vmatmul.bf16.gmra.mxu0 %v11224_v16  ;;  %3767 = vmatmul.bf16.gmra.mxu1 %v11226_v61  ;;  %v7552_v51 = vld [vmem:[#allocation2 + $0x1c4] sm:$0xf]  ;;  %v6552_v13 = vld [vmem:[#allocation2 + $0xb0] sm:$0xf0] }
 0x3b0   :  { %v6699_v59 = vor.u32 %v7552_v51, %v6696_v31  ;;  %v6520_v31 = vld [vmem:[#allocation2 + $0x70] sm:$0xf0] }
 0x3b1   :  { %6464 = vmatmul.msk.bf16.gmra.mxu3 %vm1419_vm0, %v11225_v47  ;;  %v10098_v35 = vadd.f32 %v2695_v33, %v2647_v57  ;;  %v2551_v3 = vpop.f32.mrf.mxu2  ;;  %v7548_v33 = vld [vmem:[#allocation2 + $0x1a4] sm:$0xf]  ;;  %v6555_v57 = vor.u32 %v7516_v46, %v6552_v13  ;;  %v11227_v46 = vld [vmem:[#allocation34_spill] sm:$0xff]  ;;  %v11228_v13 = vld [vmem:[#allocation33_spill] sm:$0xff] }
 0x3b2   :  { %v2552_v12 = vadd.f32 %v2551_v3, %v2503_v42  ;;  %3936 = vmatpush.bf16.msra.mxu1 %v6699_v59  ;;  %v6683_v42 = vor.u32 %v7548_v33, %v6680_v34  ;;  %v2508_v59 = vadd.f32 %v9992_v48, %v10036_v39  ;;  %v6523_v33 = vor.u32 %v7508_v26, %v6520_v31  ;;  %v6742_v34 = vld [vmem:[#allocation2 + $0x220] sm:$0xf]  ;;  %v7500_v26 = vld [vmem:[#allocation2 + $0x24] sm:$0xf]  ;;  %v6488_v31 = vld [vmem:[#allocation2 + $0x30] sm:$0xf0] }
 0x3b3   :  { %3888 = vmatpush.bf16.msra.mxu0 %v6555_v57 }
 0x3b4   :  { %v2600_v28 = vpop.f32.mrf.mxu3  ;;  %v2651_v56 = vpop.f32.mrf.mxu0 }
 0x3b5   :  { %v2601_v19 = vadd.f32 %v2600_v28, %v2552_v12  ;;  %v2700_v23 = vpop.f32.mrf.mxu1  ;;  %v6667_v12 = vor.u32 %v7544_v41, %v6664_v10 }
 0x3b6   :  { %3937 = vmatpush.bf16.msra.mxu1 %v6683_v42  ;;  %v6743_v42 = vor.u32 %v7566_v38, %v6742_v34 }
 0x3b7   :  { %v2650_v25 = vadd.f32 %v2649_v6, %v2601_v19  ;;  %3889 = vmatpush.bf16.msra.mxu0 %v6539_v50 }
 0x3b8   :  { %3794 = vmatpush.bf16.msra.mxu2 %v6743_v42  ;;  %v6726_v42 = vld [vmem:[#allocation2 + $0x200] sm:$0xf] }
 0x3b9   :  { %v10102_v47 = vadd.f32 %v2698_v21, %v2650_v25  ;;  %v2553_v15 = vpop.f32.mrf.mxu2  ;;  %v7540_v21 = vld [vmem:[#allocation2 + $0x164] sm:$0xf]  ;;  %v6648_v25 = vld [vmem:[#allocation2 + $0x170] sm:$0xf0] }
 0x3ba   :  { %v2554_v3 = vadd.f32 %v2553_v15, %v2505_v18  ;;  %3938 = vmatpush.bf16.msra.mxu1 %v6667_v12  ;;  %v6651_v57 = vor.u32 %v7540_v21, %v6648_v25  ;;  %v6504_v15 = vld [vmem:[#allocation2 + $0x50] sm:$0xf0] }
 0x3bb   :  { %3890 = vmatpush.bf16.msra.mxu0 %v6523_v33  ;;  %v6491_v33 = vor.u32 %v7500_v26, %v6488_v31  ;;  %v6616_v25 = vld [vmem:[#allocation2 + $0x130] sm:$0xf0] }
 0x3bc   :  { %v2602_v6 = vpop.f32.mrf.mxu3  ;;  %v2654_v51 = vpop.f32.mrf.mxu0 }
 0x3bd   :  { %v2603_v28 = vadd.f32 %v2602_v6, %v2554_v3  ;;  %v2703_v22 = vpop.f32.mrf.mxu1  ;;  %v6632_v6 = vld [vmem:[#allocation2 + $0x150] sm:$0xf0] }
 0x3be   :  { %2751 = vmatmul.bf16.gmra.mxu2 %v11227_v46  ;;  %3939 = vmatpush.bf16.msra.mxu1 %v6651_v57  ;;  %v6635_v10 = vor.u32 %v7536_v29, %v6632_v6  ;;  %v7598_v46 = vld [vmem:[#allocation2 + $0x32c] sm:$0xf0]  ;;  %v2510_v57 = vadd.f32 %v10007_v9, %v10036_v39 }
 0x3bf   :  { %v2652_v19 = vadd.f32 %v2651_v56, %v2603_v28  ;;  %3723 = vmatmul.bf16.gmra.mxu0 %v11228_v13  ;;  %3772 = vmatmul.bf16.gmra.mxu1 %v11230_v14  ;;  %v7504_v56 = vld [vmem:[#allocation2 + $0x44] sm:$0xf] }
 0x3c0   :  { %v6507_v3 = vor.u32 %v7504_v56, %v6504_v15  ;;  %v7496_v56 = vld [vmem:[#allocation2 + $0x4] sm:$0xf] }
 0x3c1   :  { %6465 = vmatmul.msk.bf16.gmra.mxu3 %vm1419_vm0, %v11229_v58  ;;  %v10111_v18 = vadd.f32 %v2700_v23, %v2652_v19  ;;  %v2556_v48 = vpop.f32.mrf.mxu2  ;;  %v7532_v23 = vld [vmem:[#allocation2 + $0x124] sm:$0xf]  ;;  %v6870_v19 = vld [vmem:[#allocation2 + $0x320] sm:$0xf] }
 0x3c2   :  { %v2557_v53 = vadd.f32 %v2556_v48, %v2508_v59  ;;  %3891 = vmatpush.bf16.msra.mxu0 %v6507_v3  ;;  %3940 = vmatpush.bf16.msra.mxu1 %v6635_v10  ;;  %v6871_v58 = vor.u32 %v7598_v46, %v6870_v19  ;;  %v6619_v59 = vor.u32 %v7532_v23, %v6616_v25  ;;  %v7562_v48 = vld [vmem:[#allocation2 + $0x20c] sm:$0xf0]  ;;  %v6600_v10 = vld [vmem:[#allocation2 + $0x110] sm:$0xf0]  ;;  %v11233_v19 = vld [vmem:[#allocation48_spill] sm:$0xff] }
 0x3c3   :  { %v6727_v29 = vor.u32 %v7562_v48, %v6726_v42  ;;  %v11231_v23 = vld [vmem:[#allocation38_spill] sm:$0xff]  ;;  %v11234_v46 = vld [vmem:[#allocation12_spill] sm:$0xff] }
 0x3c4   :  { %v2605_v41 = vpop.f32.mrf.mxu3  ;;  %v2656_v50 = vpop.f32.mrf.mxu0  ;;  %3843 = vmatpush.bf16.msra.mxu3 %v6871_v58  ;;  %v7594_v48 = vld [vmem:[#allocation2 + $0x30c] sm:$0xf0] }
 0x3c5   :  { %v2606_v12 = vadd.f32 %v2605_v41, %v2557_v53  ;;  %v2705_v28 = vpop.f32.mrf.mxu1  ;;  %v6472_v53 = vld [vmem:[#allocation2 + $0x10] sm:$0xf0]  ;;  %v7528_v41 = vld [vmem:[#allocation2 + $0x104] sm:$0xf]  ;;  %3795 = vmatpush.bf16.msra.mxu2 %v6727_v29 }
 0x3c6   :  { %3892 = vmatpush.bf16.msra.mxu0 %v6491_v33  ;;  %3941 = vmatpush.bf16.msra.mxu1 %v6619_v59  ;;  %v6475_v6 = vor.u32 %v7496_v56, %v6472_v53  ;;  %v6603_v9 = vor.u32 %v7528_v41, %v6600_v10 }
 0x3c7   :  { %v2655_v21 = vadd.f32 %v2654_v51, %v2606_v12 }
 0x3c9   :  { %v10115_v34 = vadd.f32 %v2703_v22, %v2655_v21  ;;  %v2558_v38 = vpop.f32.mrf.mxu2  ;;  %v2513_v22 = vadd.f32 %v10010_v52, %v10036_v39  ;;  %v11232_v21 = vld [vmem:[#allocation37_spill] sm:$0xff] }
 0x3ca   :  { %v2559_v15 = vadd.f32 %v2558_v38, %v2510_v57  ;;  %3893 = vmatpush.bf16.msra.mxu0 %v6475_v6  ;;  %3942 = vmatpush.bf16.msra.mxu1 %v6603_v9 }
 0x3cc   :  { %v2607_v51 = vpop.f32.mrf.mxu3  ;;  %v2659_v3 = vpop.f32.mrf.mxu0 }
 0x3cd   :  { %v2608_v12 = vadd.f32 %v2607_v51, %v2559_v15  ;;  %v2708_v26 = vpop.f32.mrf.mxu1  ;;  %v2515_v15 = vadd.f32 %v10019_v40, %v10036_v39  ;;  %v11238_v40 = vld [vmem:[#allocation35_spill] sm:$0xff] }
 0x3ce   :  { %2756 = vmatmul.bf16.gmra.mxu2 %v11231_v23  ;;  %v6840_v23 = vld [vmem:[#allocation2 + $0x2f0] sm:$0xf0] }
 0x3cf   :  { %v2657_v31 = vadd.f32 %v2656_v50, %v2608_v12  ;;  %3728 = vmatmul.bf16.gmra.mxu0 %v11232_v21  ;;  %3777 = vmatmul.bf16.gmra.mxu1 %v11234_v46  ;;  %v6854_v50 = vld [vmem:[#allocation2 + $0x300] sm:$0xf]  ;;  %v2518_v12 = vadd.f32 %v10022_v63, %v10036_v39 }
 0x3d0   :  { %v6855_v56 = vor.u32 %v7594_v48, %v6854_v50  ;;  %v10142_v50 = vld [vmem:[%s10979_s4] sm:$0xf] }
 0x3d1   :  { %6466 = vmatmul.msk.bf16.gmra.mxu3 %vm1419_vm0, %v11233_v19  ;;  %v10124_v33 = vadd.f32 %v2705_v28, %v2657_v31  ;;  %v2561_v25 = vpop.f32.mrf.mxu2  ;;  %v11237_v31 = vld [vmem:[#allocation49_spill] sm:$0xff] }
 0x3d2   :  { %v2562_v58 = vadd.f32 %v2561_v25, %v2513_v22  ;;  %3844 = vmatpush.bf16.msra.mxu3 %v6855_v56  ;;  %v11236_v22 = vld [vmem:[#allocation36_spill] sm:$0xff] }
 0x3d3   :  { %v7620_v56 = vld [vmem:[#allocation2 + $0x3e4] sm:$0xf] }
 0x3d4   :  { %v2610_v59 = vpop.f32.mrf.mxu3  ;;  %v2661_v57 = vpop.f32.mrf.mxu0 }
 0x3d5   :  { %v2611_v38 = vadd.f32 %v2610_v59, %v2562_v58  ;;  %v2710_v42 = vpop.f32.mrf.mxu1 }
 0x3d7   :  { %v2660_v52 = vadd.f32 %v2659_v3, %v2611_v38  ;;  %v11235_v3 = vld [vmem:[#allocation41_spill] sm:$0xff] }
 0x3d9   :  { %v10128_v51 = vadd.f32 %v2708_v26, %v2660_v52  ;;  %v2563_v29 = vpop.f32.mrf.mxu2  ;;  %v7588_v26 = vld [vmem:[#allocation2 + $0x2e4] sm:$0xf] }
 0x3da   :  { %v2564_v53 = vadd.f32 %v2563_v29, %v2515_v15  ;;  %v6843_v58 = vor.u32 %v7588_v26, %v6840_v23  ;;  %v6968_v15 = vld [vmem:[#allocation2 + $0x3f0] sm:$0xf0] }
 0x3db   :  { %v6971_v29 = vor.u32 %v7620_v56, %v6968_v15 }
 0x3dc   :  { %v2612_v28 = vpop.f32.mrf.mxu3  ;;  %v2664_v41 = vpop.f32.mrf.mxu0  ;;  %3984 = vmatpush.bf16.msrb.mxu2 %v6843_v58 }
 0x3dd   :  { %v2613_v6 = vadd.f32 %v2612_v28, %v2564_v53  ;;  %v2713_v10 = vpop.f32.mrf.mxu1  ;;  %v10147_v53 = vperm.slane %v10142_v50, 0  ;;  %4033 = vmatpush.bf16.msrb.mxu3 %v6971_v29  ;;  %v7616_v29 = vld [vmem:[#allocation2 + $0x3c4] sm:$0xf] }
 0x3de   :  { %2761 = vmatmul.bf16.gmra.mxu2 %v11235_v3 }
 0x3df   :  { %v2662_v9 = vadd.f32 %v2661_v57, %v2613_v6  ;;  %3733 = vmatmul.bf16.gmra.mxu0 %v11236_v22  ;;  %3782 = vmatmul.bf16.gmra.mxu1 %v11238_v40 }
 0x3e1   :  { %6467 = vmatmul.msk.bf16.gmra.mxu3 %vm1419_vm0, %v11237_v31  ;;  %v10137_v19 = vadd.f32 %v2710_v42, %v2662_v9  ;;  %v2566_v25 = vpop.f32.mrf.mxu2  ;;  %v2520_v42 = vadd.f32 %v10031_v0, %v10036_v39  ;;  %v7584_v0 = vld [vmem:[#allocation2 + $0x2c4] sm:$0xf]  ;;  %v6824_v39 = vld [vmem:[#allocation2 + $0x2d0] sm:$0xf0] }
 0x3e2   :  { %v2567_v59 = vadd.f32 %v2566_v25, %v2518_v12 }
 0x3e4   :  { %v2615_v38 = vpop.f32.mrf.mxu3  ;;  %v2666_v52 = vpop.f32.mrf.mxu0 }
 0x3e5   :  { %v2616_v63 = vadd.f32 %v2615_v38, %v2567_v59  ;;  %v2715_v57 = vpop.f32.mrf.mxu1  ;;  %v6827_v59 = vor.u32 %v7584_v0, %v6824_v39 }
 0x3e7   :  { %v2665_v48 = vadd.f32 %v2664_v41, %v2616_v63  ;;  %3985 = vmatpush.bf16.msrb.mxu2 %v6827_v59 }
 0x3e9   :  { %v10149_v28 = vadd.f32 %v2713_v10, %v2665_v48  ;;  %v2568_v6 = vpop.f32.mrf.mxu2 }
 0x3ea   :  { %v2569_v12 = vadd.f32 %v2568_v6, %v2520_v42  ;;  %v6952_v42 = vld [vmem:[#allocation2 + $0x3d0] sm:$0xf0] }
 0x3eb   :  { %v6955_v6 = vor.u32 %v7616_v29, %v6952_v42 }
 0x3ec   :  { %v2617_v9 = vpop.f32.mrf.mxu3  ;;  %v3699_v3 = vpop.f32.mrf.mxu0 }
 0x3ed   :  { %v2618_v31 = vadd.f32 %v2617_v9, %v2569_v12  ;;  %v3700_v26 = vadd.f32 %v3699_v3, %v10147_v53  ;;  %v3748_v41 = vpop.f32.mrf.mxu1  ;;  %4034 = vmatpush.bf16.msrb.mxu3 %v6955_v6 }
 0x3ee   :  { %3796 = vmatmul.bf16.vlgmr.msra.gmra.mxu2 %v9926_v17 }
 0x3ef   :  { %v2667_v23 = vadd.f32 %v2666_v52, %v2618_v31  ;;  %v10152_v25 = vadd.f32 %v3748_v41, %v3700_v26  ;;  %3894 = vmatmul.bf16.vlgmr.msra.gmra.mxu0 %v11208_v44  ;;  %3943 = vmatmul.bf16.vlgmr.msra.gmra.mxu1 %v11210_v20 }
 0x3f1   :  { %v10157_v10 = vadd.f32 %v2715_v57, %v2667_v23  ;;  %v2727_v58 = vpop.f32.mrf.mxu2 }
 0x3f2   :  { %v2728_v56 = vadd.f32 %v2727_v58, %v10050_v24  ;;  %v7580_v58 = vld [vmem:[#allocation2 + $0x2a4] sm:$0xf] }
 0x3f4   :  { %v2776_v38 = vpop.f32.mrf.mxu3  ;;  %v3701_v63 = vpop.f32.mrf.mxu0 }
 0x3f5   :  { %v3702_v48 = vadd.f32 %v3701_v63, %v10147_v53  ;;  %v3750_v52 = vpop.f32.mrf.mxu1  ;;  %v2777_v9 = vadd.f32 %v2776_v38, %v2728_v56 }
 0x3f7   :  { %v10161_v15 = vadd.f32 %v3750_v52, %v3702_v48  ;;  %v2819_v0 = vmax.f32 %v2777_v9, 0.0  ;;  %v6936_v9 = vld [vmem:[#allocation2 + $0x3b0] sm:$0xf0] }
 0x3f9   :  { %v2729_v12 = vpop.f32.mrf.mxu2 }
 0x3fa   :  { %v2730_v57 = vadd.f32 %v2729_v12, %v10059_v62  ;;  %v6808_v62 = vld [vmem:[#allocation2 + $0x2b0] sm:$0xf0]  ;;  %v7612_v12 = vld [vmem:[#allocation2 + $0x3a4] sm:$0xf] }
 0x3fb   :  { %v6811_v63 = vor.u32 %v7580_v58, %v6808_v62 }
 0x3fc   :  { %v2778_v3 = vpop.f32.mrf.mxu3  ;;  %v3704_v31 = vpop.f32.mrf.mxu0 }
 0x3fd   :  { %v2779_v26 = vadd.f32 %v2778_v3, %v2730_v57  ;;  %v3705_v41 = vadd.f32 %v3704_v31, %v10147_v53  ;;  %v3753_v23 = vpop.f32.mrf.mxu1  ;;  %3986 = vmatpush.bf16.msrb.mxu2 %v6811_v63  ;;  %v6939_v57 = vor.u32 %v7612_v12, %v6936_v9 }
 0x3fe   :  { %3801 = vmatmul.bf16.gmra.mxu2 %v9944_v49 }
 0x3ff   :  { %v2823_v39 = vmax.f32 %v2779_v26, 0.0  ;;  %v10165_v59 = vadd.f32 %v3753_v23, %v3705_v41  ;;  %3899 = vmatmul.bf16.gmra.mxu0 %v11212_v8  ;;  %3948 = vmatmul.bf16.gmra.mxu1 %v11214_v60 }
 0x400   :  { %4035 = vmatpush.bf16.msrb.mxu3 %v6939_v57 }
 0x401   :  { %v10170_v24 = vpack.c.bf16 %v2823_v39, %v2819_v0  ;;  %v2732_v38 = vpop.f32.mrf.mxu2 }
 0x402   :  { %v2733_v42 = vadd.f32 %v2732_v38, %v10063_v54  ;;  %v7576_v38 = vld [vmem:[#allocation2 + $0x284] sm:$0xf] }
 0x403   :  { %3845 = vmatmul.bf16.vlgmr.msra.gmra.mxu3 %v10170_v24 }
 0x404   :  { %v2781_v48 = vpop.f32.mrf.mxu3  ;;  %v3706_v52 = vpop.f32.mrf.mxu0 }
 0x405   :  { %v3707_v56 = vadd.f32 %v3706_v52, %v10147_v53  ;;  %v3755_v29 = vpop.f32.mrf.mxu1  ;;  %v2782_v31 = vadd.f32 %v2781_v48, %v2733_v42 }
 0x407   :  { %v10175_v6 = vadd.f32 %v3755_v29, %v3707_v56  ;;  %v2827_v62 = vmax.f32 %v2782_v31, 0.0  ;;  %v7608_v31 = vld [vmem:[#allocation2 + $0x384] sm:$0xf] }
 0x409   :  { %v2734_v3 = vpop.f32.mrf.mxu2 }
 0x40a   :  { %v2735_v26 = vadd.f32 %v2734_v3, %v10072_v43  ;;  %v6792_v43 = vld [vmem:[#allocation2 + $0x290] sm:$0xf0] }
 0x40b   :  { %v6795_v56 = vor.u32 %v7576_v38, %v6792_v43 }
 0x40c   :  { %v2783_v41 = vpop.f32.mrf.mxu3  ;;  %v3709_v23 = vpop.f32.mrf.mxu0 }
 0x40d   :  { %v2784_v0 = vadd.f32 %v2783_v41, %v2735_v26  ;;  %v3710_v39 = vadd.f32 %v3709_v23, %v10147_v53  ;;  %v3758_v58 = vpop.f32.mrf.mxu1  ;;  %3987 = vmatpush.bf16.msrb.mxu2 %v6795_v56  ;;  %v6920_v26 = vld [vmem:[#allocation2 + $0x390] sm:$0xf0] }
 0x40e   :  { %3806 = vmatmul.bf16.gmra.mxu2 %v9962_v27  ;;  %v6923_v41 = vor.u32 %v7608_v31, %v6920_v26 }
 0x40f   :  { %v2831_v63 = vmax.f32 %v2784_v0, 0.0  ;;  %v10179_v52 = vadd.f32 %v3758_v58, %v3710_v39  ;;  %3904 = vmatmul.bf16.gmra.mxu0 %v11216_v1  ;;  %3953 = vmatmul.bf16.gmra.mxu1 %v11218_v45 }
 0x410   :  { %4036 = vmatpush.bf16.msrb.mxu3 %v6923_v41 }
 0x411   :  { %v10184_v54 = vpack.c.bf16 %v2831_v63, %v2827_v62  ;;  %v2737_v48 = vpop.f32.mrf.mxu2 }
 0x412   :  { %v2738_v57 = vadd.f32 %v2737_v48, %v10076_v55  ;;  %v7572_v48 = vld [vmem:[#allocation2 + $0x264] sm:$0xf] }
 0x413   :  { %11239 = vst [vmem:[#allocation39_spill] sm:$0xff] %v10184_v54  ;;  %3850 = vmatmul.bf16.gmra.mxu3 %v10184_v54 }
 0x414   :  { %v2786_v29 = vpop.f32.mrf.mxu3  ;;  %v3711_v42 = vpop.f32.mrf.mxu0 }
 0x415   :  { %v3712_v12 = vadd.f32 %v3711_v42, %v10147_v53  ;;  %v3760_v9 = vpop.f32.mrf.mxu1  ;;  %v2787_v0 = vadd.f32 %v2786_v29, %v2738_v57 }
 0x417   :  { %v10189_v3 = vadd.f32 %v3760_v9, %v3712_v12  ;;  %v2835_v56 = vmax.f32 %v2787_v0, 0.0  ;;  %v7604_v0 = vld [vmem:[#allocation2 + $0x364] sm:$0xf] }
 0x419   :  { %v2739_v23 = vpop.f32.mrf.mxu2 }
 0x41a   :  { %v2740_v39 = vadd.f32 %v2739_v23, %v10085_v36  ;;  %v6776_v36 = vld [vmem:[#allocation2 + $0x270] sm:$0xf0] }
 0x41b   :  { %v6779_v12 = vor.u32 %v7572_v48, %v6776_v36 }
 0x41c   :  { %v2788_v58 = vpop.f32.mrf.mxu3  ;;  %v3714_v62 = vpop.f32.mrf.mxu0 }
 0x41d   :  { %v2789_v63 = vadd.f32 %v2788_v58, %v2740_v39  ;;  %v3715_v38 = vadd.f32 %v3714_v62, %v10147_v53  ;;  %v3763_v43 = vpop.f32.mrf.mxu1  ;;  %3988 = vmatpush.bf16.msrb.mxu2 %v6779_v12  ;;  %v6904_v39 = vld [vmem:[#allocation2 + $0x370] sm:$0xf0]  ;;  %v6590_v12 = vld [vmem:[#allocation2 + $0xe8] sm:$0xf] }
 0x41e   :  { %3811 = vmatmul.bf16.gmra.mxu2 %v9980_v32  ;;  %v6907_v58 = vor.u32 %v7604_v0, %v6904_v39  ;;  %v7568_v0 = vld [vmem:[#allocation2 + $0x244] sm:$0xf]  ;;  %v6760_v39 = vld [vmem:[#allocation2 + $0x250] sm:$0xf0] }
 0x41f   :  { %v2839_v42 = vmax.f32 %v2789_v63, 0.0  ;;  %v10193_v54 = vadd.f32 %v3763_v43, %v3715_v38  ;;  %3909 = vmatmul.bf16.gmra.mxu0 %v11220_v2  ;;  %3958 = vmatmul.bf16.gmra.mxu1 %v11222_v11 }
 0x420   :  { %4037 = vmatpush.bf16.msrb.mxu3 %v6907_v58 }
 0x421   :  { %v10198_v55 = vpack.c.bf16 %v2839_v42, %v2835_v56  ;;  %v2742_v29 = vpop.f32.mrf.mxu2 }
 0x422   :  { %v2743_v41 = vadd.f32 %v2742_v29, %v10089_v4 }
 0x423   :  { %11240 = vst [vmem:[#allocation17_spill] sm:$0xff] %v10198_v55  ;;  %3855 = vmatmul.bf16.gmra.mxu3 %v10198_v55  ;;  %v6718_v55 = vld [vmem:[#allocation2 + $0x1e8] sm:$0xf] }
 0x424   :  { %v2791_v9 = vpop.f32.mrf.mxu3  ;;  %v3716_v57 = vpop.f32.mrf.mxu0 }
 0x425   :  { %v3717_v31 = vadd.f32 %v3716_v57, %v10147_v53  ;;  %v3765_v26 = vpop.f32.mrf.mxu1  ;;  %v2792_v63 = vadd.f32 %v2791_v9, %v2743_v41  ;;  %v7527_v57 = vld [vmem:[#allocation2 + $0xf4] sm:$0xf0] }
 0x426   :  { %v6591_v9 = vor.u32 %v7527_v57, %v6590_v12 }
 0x427   :  { %v10203_v23 = vadd.f32 %v3765_v26, %v3717_v31  ;;  %v2843_v4 = vmax.f32 %v2792_v63, 0.0  ;;  %v7559_v26 = vld [vmem:[#allocation2 + $0x1f4] sm:$0xf0]  ;;  %v6574_v63 = vld [vmem:[#allocation2 + $0xc8] sm:$0xf] }
 0x428   :  { %4082 = vmatpush.bf16.msrb.mxu0 %v6591_v9  ;;  %v6686_v9 = vld [vmem:[#allocation2 + $0x1a8] sm:$0xf] }
 0x429   :  { %v2744_v62 = vpop.f32.mrf.mxu2 }
 0x42a   :  { %v2745_v38 = vadd.f32 %v2744_v62, %v10098_v35  ;;  %v6719_v35 = vor.u32 %v7559_v26, %v6718_v55  ;;  %v6763_v62 = vor.u32 %v7568_v0, %v6760_v39  ;;  %v7600_v0 = vld [vmem:[#allocation2 + $0x344] sm:$0xf]  ;;  %v6888_v39 = vld [vmem:[#allocation2 + $0x350] sm:$0xf0] }
 0x42c   :  { %v2793_v43 = vpop.f32.mrf.mxu3  ;;  %v3719_v56 = vpop.f32.mrf.mxu0  ;;  %4131 = vmatpush.bf16.msrb.mxu1 %v6719_v35  ;;  %3989 = vmatpush.bf16.msrb.mxu2 %v6763_v62 }
 0x42d   :  { %v2794_v42 = vadd.f32 %v2793_v43, %v2745_v38  ;;  %v3720_v48 = vadd.f32 %v3719_v56, %v10147_v53  ;;  %v3768_v36 = vpop.f32.mrf.mxu1  ;;  %v7523_v38 = vld [vmem:[#allocation2 + $0xd4] sm:$0xf0]  ;;  %v6702_v43 = vld [vmem:[#allocation2 + $0x1c8] sm:$0xf] }
 0x42e   :  { %3816 = vmatmul.bf16.gmra.mxu2 %v9998_v30 }
 0x42f   :  { %v2847_v29 = vmax.f32 %v2794_v42, 0.0  ;;  %v10207_v31 = vadd.f32 %v3768_v36, %v3720_v48  ;;  %3914 = vmatmul.bf16.gmra.mxu0 %v11224_v16  ;;  %3963 = vmatmul.bf16.gmra.mxu1 %v11226_v61  ;;  %v6575_v42 = vor.u32 %v7523_v38, %v6574_v63  ;;  %v7555_v48 = vld [vmem:[#allocation2 + $0x1d4] sm:$0xf0]  ;;  %v6891_v63 = vor.u32 %v7600_v0, %v6888_v39  ;;  %v6654_v39 = vld [vmem:[#allocation2 + $0x168] sm:$0xf] }
 0x430   :  { %v6703_v12 = vor.u32 %v7555_v48, %v6702_v43  ;;  %v7551_v38 = vld [vmem:[#allocation2 + $0x1b4] sm:$0xf0]  ;;  %v6542_v48 = vld [vmem:[#allocation2 + $0x88] sm:$0xf] }
 0x431   :  { %11241 = vst [vmem:[#allocation25_spill] sm:$0xff] %v10207_v31  ;;  %v10212_v41 = vpack.c.bf16 %v2847_v29, %v2843_v4  ;;  %v2747_v58 = vpop.f32.mrf.mxu2  ;;  %4083 = vmatpush.bf16.msrb.mxu0 %v6575_v42  ;;  %v6558_v4 = vld [vmem:[#allocation2 + $0xa8] sm:$0xf]  ;;  %v7519_v29 = vld [vmem:[#allocation2 + $0xb4] sm:$0xf0]  ;;  %v6687_v62 = vor.u32 %v7551_v38, %v6686_v9  ;;  %4038 = vmatpush.bf16.msrb.mxu3 %v6891_v63 }
 0x432   :  { %4132 = vmatpush.bf16.msrb.mxu1 %v6703_v12  ;;  %v2748_v26 = vadd.f32 %v2747_v58, %v10102_v47  ;;  %v6670_v42 = vld [vmem:[#allocation2 + $0x188] sm:$0xf]  ;;  %v7547_v58 = vld [vmem:[#allocation2 + $0x194] sm:$0xf0] }
 0x433   :  { %11242 = vst [vmem:[#allocation28_spill] sm:$0xff] %v10212_v41  ;;  %3860 = vmatmul.bf16.gmra.mxu3 %v10212_v41  ;;  %v6559_v41 = vor.u32 %v7519_v29, %v6558_v4  ;;  %v6526_v9 = vld [vmem:[#allocation2 + $0x68] sm:$0xf]  ;;  %v7511_v0 = vld [vmem:[#allocation2 + $0x74] sm:$0xf0] }
 0x434   :  { %v2796_v56 = vpop.f32.mrf.mxu3  ;;  %v3721_v36 = vpop.f32.mrf.mxu0 }
 0x435   :  { %v3722_v55 = vadd.f32 %v3721_v36, %v10147_v53  ;;  %v3770_v57 = vpop.f32.mrf.mxu1  ;;  %4084 = vmatpush.bf16.msrb.mxu0 %v6559_v41  ;;  %v7515_v36 = vld [vmem:[#allocation2 + $0x94] sm:$0xf0]  ;;  %v2797_v12 = vadd.f32 %v2796_v56, %v2748_v26  ;;  %v6671_v41 = vor.u32 %v7547_v58, %v6670_v42  ;;  %v7564_v26 = vld [vmem:[#allocation2 + $0x224] sm:$0xf] }
 0x436   :  { %4133 = vmatpush.bf16.msrb.mxu1 %v6687_v62  ;;  %v6543_v47 = vor.u32 %v7515_v36, %v6542_v48  ;;  %v7543_v56 = vld [vmem:[#allocation2 + $0x174] sm:$0xf0]  ;;  %v6744_v62 = vld [vmem:[#allocation2 + $0x230] sm:$0xf0]  ;;  %v6510_v36 = vld [vmem:[#allocation2 + $0x48] sm:$0xf] }
 0x437   :  { %v10217_v35 = vadd.f32 %v3770_v57, %v3722_v55  ;;  %v2851_v63 = vmax.f32 %v2797_v12, 0.0  ;;  %v6747_v48 = vor.u32 %v7564_v26, %v6744_v62  ;;  %v7507_v42 = vld [vmem:[#allocation2 + $0x54] sm:$0xf0]  ;;  %v6638_v12 = vld [vmem:[#allocation2 + $0x148] sm:$0xf] }
 0x438   :  { %v6511_v58 = vor.u32 %v7507_v42, %v6510_v36  ;;  %v7535_v36 = vld [vmem:[#allocation2 + $0x134] sm:$0xf0] }
 0x439   :  { %11243 = vst [vmem:[#allocation32_spill] sm:$0xff] %v10217_v35  ;;  %v2749_v43 = vpop.f32.mrf.mxu2  ;;  %4085 = vmatpush.bf16.msrb.mxu0 %v6543_v47  ;;  %3990 = vmatpush.bf16.msrb.mxu2 %v6747_v48 }
 0x43a   :  { %v2750_v31 = vadd.f32 %v2749_v43, %v10111_v18  ;;  %v6527_v18 = vor.u32 %v7511_v0, %v6526_v9  ;;  %4134 = vmatpush.bf16.msrb.mxu1 %v6671_v41  ;;  %v6494_v9 = vld [vmem:[#allocation2 + $0x28] sm:$0xf]  ;;  %v7503_v0 = vld [vmem:[#allocation2 + $0x34] sm:$0xf0] }
 0x43b   :  { %v6495_v26 = vor.u32 %v7503_v0, %v6494_v9 }
 0x43c   :  { %v2798_v61 = vpop.f32.mrf.mxu3  ;;  %v3724_v55 = vpop.f32.mrf.mxu0 }
 0x43d   :  { %v2799_v57 = vadd.f32 %v2798_v61, %v2750_v31  ;;  %v3725_v4 = vadd.f32 %v3724_v55, %v10147_v53  ;;  %v3773_v29 = vpop.f32.mrf.mxu1  ;;  %4086 = vmatpush.bf16.msrb.mxu0 %v6527_v18  ;;  %v6655_v31 = vor.u32 %v7543_v56, %v6654_v39  ;;  %v7539_v55 = vld [vmem:[#allocation2 + $0x154] sm:$0xf0]  ;;  %v6622_v39 = vld [vmem:[#allocation2 + $0x128] sm:$0xf]  ;;  %v7596_v18 = vld [vmem:[#allocation2 + $0x324] sm:$0xf] }
 0x43e   :  { %3821 = vmatmul.bf16.gmra.mxu2 %v10016_v37  ;;  %v6639_v41 = vor.u32 %v7539_v55, %v6638_v12  ;;  %v6872_v56 = vld [vmem:[#allocation2 + $0x330] sm:$0xf0]  ;;  %v6623_v48 = vor.u32 %v7535_v36, %v6622_v39  ;;  %v6478_v12 = vld [vmem:[#allocation2 + $0x8] sm:$0xf] }
 0x43f   :  { %v2855_v38 = vmax.f32 %v2799_v57, 0.0  ;;  %v10221_v35 = vadd.f32 %v3773_v29, %v3725_v4  ;;  %3919 = vmatmul.bf16.gmra.mxu0 %v11228_v13  ;;  %3968 = vmatmul.bf16.gmra.mxu1 %v11230_v14  ;;  %v6875_v62 = vor.u32 %v7596_v18, %v6872_v56 }
 0x440   :  { %4135 = vmatpush.bf16.msrb.mxu1 %v6655_v31  ;;  %v7560_v31 = vld [vmem:[#allocation2 + $0x204] sm:$0xf] }
 0x441   :  { %v10226_v61 = vpack.c.bf16 %v2855_v38, %v2851_v63  ;;  %v2752_v43 = vpop.f32.mrf.mxu2  ;;  %4087 = vmatpush.bf16.msrb.mxu0 %v6511_v58  ;;  %4039 = vmatpush.bf16.msrb.mxu3 %v6875_v62  ;;  %v6728_v58 = vld [vmem:[#allocation2 + $0x210] sm:$0xf0] }
 0x442   :  { %v2753_v63 = vadd.f32 %v2752_v43, %v10115_v34  ;;  %v6731_v34 = vor.u32 %v7560_v31, %v6728_v58  ;;  %v7499_v43 = vld [vmem:[#allocation2 + $0x14] sm:$0xf0]  ;;  %v6856_v62 = vld [vmem:[#allocation2 + $0x310] sm:$0xf0] }
 0x443   :  { %11244 = vst [vmem:[#allocation40_spill] sm:$0xff] %v10226_v61  ;;  %3865 = vmatmul.bf16.gmra.mxu3 %v10226_v61  ;;  %v6479_v9 = vor.u32 %v7499_v43, %v6478_v12 }
 0x444   :  { %v2801_v47 = vpop.f32.mrf.mxu3  ;;  %v3726_v57 = vpop.f32.mrf.mxu0  ;;  %4136 = vmatpush.bf16.msrb.mxu1 %v6639_v41  ;;  %3991 = vmatpush.bf16.msrb.mxu2 %v6731_v34 }
 0x445   :  { %v3727_v4 = vadd.f32 %v3726_v57, %v10147_v53  ;;  %v3775_v29 = vpop.f32.mrf.mxu1  ;;  %4088 = vmatpush.bf16.msrb.mxu0 %v6495_v26  ;;  %v2802_v55 = vadd.f32 %v2801_v47, %v2753_v63 }
 0x447   :  { %v10231_v38 = vadd.f32 %v3775_v29, %v3727_v4  ;;  %v6606_v4 = vld [vmem:[#allocation2 + $0x108] sm:$0xf]  ;;  %v7531_v29 = vld [vmem:[#allocation2 + $0x114] sm:$0xf0]  ;;  %v2859_v56 = vmax.f32 %v2802_v55, 0.0 }
 0x448   :  { %4137 = vmatpush.bf16.msrb.mxu1 %v6623_v48  ;;  %v6607_v39 = vor.u32 %v7531_v29, %v6606_v4 }
 0x449   :  { %11245 = vst [vmem:[#allocation9_spill] sm:$0xff] %v10231_v38  ;;  %v2754_v42 = vpop.f32.mrf.mxu2  ;;  %4089 = vmatpush.bf16.msrb.mxu0 %v6479_v9 }
 0x44a   :  { %v2755_v57 = vadd.f32 %v2754_v42, %v10124_v33 }
 0x44c   :  { %v2803_v61 = vpop.f32.mrf.mxu3  ;;  %v3729_v38 = vpop.f32.mrf.mxu0  ;;  %4138 = vmatpush.bf16.msrb.mxu1 %v6607_v39 }
 0x44d   :  { %v2804_v0 = vadd.f32 %v2803_v61, %v2755_v57  ;;  %v3730_v41 = vadd.f32 %v3729_v38, %v10147_v53  ;;  %v3778_v18 = vpop.f32.mrf.mxu1  ;;  %v7592_v38 = vld [vmem:[#allocation2 + $0x304] sm:$0xf] }
 0x44e   :  { %3826 = vmatmul.bf16.gmra.mxu2 %v10028_v7  ;;  %v6859_v48 = vor.u32 %v7592_v38, %v6856_v62  ;;  %v6974_v38 = vld [vmem:[#allocation2 + $0x3e8] sm:$0xf]  ;;  %v7623_v62 = vld [vmem:[#allocation2 + $0x3f4] sm:$0xf0] }
 0x44f   :  { %v2863_v26 = vmax.f32 %v2804_v0, 0.0  ;;  %v10235_v47 = vadd.f32 %v3778_v18, %v3730_v41  ;;  %3924 = vmatmul.bf16.gmra.mxu0 %v11232_v21  ;;  %3973 = vmatmul.bf16.gmra.mxu1 %v11234_v46 }
 0x450   :  { %4040 = vmatpush.bf16.msrb.mxu3 %v6859_v48  ;;  %v6975_v48 = vor.u32 %v7623_v62, %v6974_v38 }
 0x451   :  { %v10240_v33 = vpack.c.bf16 %v2863_v26, %v2859_v56  ;;  %v2757_v61 = vpop.f32.mrf.mxu2  ;;  %v7591_v56 = vld [vmem:[#allocation2 + $0x2f4] sm:$0xf0] }
 0x452   :  { %v2758_v58 = vadd.f32 %v2757_v61, %v10128_v51  ;;  %v6846_v51 = vld [vmem:[#allocation2 + $0x2e8] sm:$0xf] }
 0x453   :  { %3870 = vmatmul.bf16.gmra.mxu3 %v10240_v33 }
 0x454   :  { %v2806_v63 = vpop.f32.mrf.mxu3  ;;  %v3731_v36 = vpop.f32.mrf.mxu0  ;;  %4229 = vmatpush.bf16.msra.mxu3 %v6975_v48 }
 0x455   :  { %v3732_v42 = vadd.f32 %v3731_v36, %v10147_v53  ;;  %v3780_v31 = vpop.f32.mrf.mxu1  ;;  %v2807_v57 = vadd.f32 %v2806_v63, %v2758_v58 }
 0x457   :  { %v10245_v12 = vadd.f32 %v3780_v31, %v3732_v42  ;;  %v2867_v41 = vmax.f32 %v2807_v57, 0.0  ;;  %v10262_v57 = vperm.slane %v10142_v50, 1 }
 0x459   :  { %v2759_v55 = vpop.f32.mrf.mxu2 }
 0x45a   :  { %v2760_v34 = vadd.f32 %v2759_v55, %v10137_v19  ;;  %v6847_v19 = vor.u32 %v7591_v56, %v6846_v51 }
 0x45c   :  { %v2808_v43 = vpop.f32.mrf.mxu3  ;;  %v3734_v4 = vpop.f32.mrf.mxu0  ;;  %4180 = vmatpush.bf16.msra.mxu2 %v6847_v19  ;;  %v6830_v19 = vld [vmem:[#allocation2 + $0x2c8] sm:$0xf] }
 0x45d   :  { %v2809_v29 = vadd.f32 %v2808_v43, %v2760_v34  ;;  %v3735_v9 = vadd.f32 %v3734_v4, %v10147_v53  ;;  %v3783_v0 = vpop.f32.mrf.mxu1 }
 0x45e   :  { %3831 = vmatmul.bf16.gmra.mxu2 %v10046_v5 }
 0x45f   :  { %v2871_v18 = vmax.f32 %v2809_v29, 0.0  ;;  %v10249_v39 = vadd.f32 %v3783_v0, %v3735_v9  ;;  %3929 = vmatmul.bf16.gmra.mxu0 %v11236_v22  ;;  %3978 = vmatmul.bf16.gmra.mxu1 %v11238_v40 }
 0x461   :  { %v10254_v26 = vpack.c.bf16 %v2871_v18, %v2867_v41  ;;  %v2762_v61 = vpop.f32.mrf.mxu2 }
 0x462   :  { %v2763_v58 = vadd.f32 %v2762_v61, %v10149_v28  ;;  %v7587_v61 = vld [vmem:[#allocation2 + $0x2d4] sm:$0xf0] }
 0x463   :  { %3875 = vmatmul.bf16.gmra.mxu3 %v10254_v26  ;;  %v6831_v62 = vor.u32 %v7587_v61, %v6830_v19 }
 0x464   :  { %v2811_v63 = vpop.f32.mrf.mxu3  ;;  %v3736_v36 = vpop.f32.mrf.mxu0 }
 0x465   :  { %v3737_v42 = vadd.f32 %v3736_v36, %v10147_v53  ;;  %v3785_v31 = vpop.f32.mrf.mxu1  ;;  %v2812_v43 = vadd.f32 %v2811_v63, %v2763_v58  ;;  %v6958_v63 = vld [vmem:[#allocation2 + $0x3c8] sm:$0xf]  ;;  %v7619_v36 = vld [vmem:[#allocation2 + $0x3d4] sm:$0xf0]  ;;  %4181 = vmatpush.bf16.msra.mxu2 %v6831_v62 }
 0x467   :  { %v10259_v55 = vadd.f32 %v3785_v31, %v3737_v42  ;;  %v2875_v53 = vmax.f32 %v2812_v43, 0.0  ;;  %v6959_v31 = vor.u32 %v7619_v36, %v6958_v63 }
 0x469   :  { %v2764_v34 = vpop.f32.mrf.mxu2  ;;  %4230 = vmatpush.bf16.msra.mxu3 %v6959_v31 }
 0x46a   :  { %v2765_v4 = vadd.f32 %v2764_v34, %v10157_v10 }
 0x46c   :  { %v2813_v29 = vpop.f32.mrf.mxu3  ;;  %v3895_v9 = vpop.f32.mrf.mxu0 }
 0x46d   :  { %v2814_v0 = vadd.f32 %v2813_v29, %v2765_v4  ;;  %v3896_v41 = vadd.f32 %v3895_v9, %v10262_v57  ;;  %v3944_v18 = vpop.f32.mrf.mxu1 }
 0x46e   :  { %3992 = vmatmul.bf16.vlgmr.msrb.gmra.mxu2 %v9926_v17 }
 0x46f   :  { %v2879_v51 = vmax.f32 %v2814_v0, 0.0  ;;  %v10266_v56 = vadd.f32 %v3944_v18, %v3896_v41  ;;  %4090 = vmatmul.bf16.vlgmr.msrb.gmra.mxu0 %v11208_v44  ;;  %4139 = vmatmul.bf16.vlgmr.msrb.gmra.mxu1 %v11210_v20  ;;  %v6814_v0 = vld [vmem:[#allocation2 + $0x2a8] sm:$0xf]  ;;  %v7583_v41 = vld [vmem:[#allocation2 + $0x2b4] sm:$0xf0] }
 0x471   :  { %v10271_v50 = vpack.c.bf16 %v2879_v51, %v2875_v53  ;;  %v3797_v28 = vpop.f32.mrf.mxu2  ;;  %v6815_v53 = vor.u32 %v7583_v41, %v6814_v0 }
 0x472   :  { %v3798_v10 = vadd.f32 %v3797_v28, %v10152_v25  ;;  %v7615_v28 = vld [vmem:[#allocation2 + $0x3b4] sm:$0xf0] }
 0x473   :  { %3880 = vmatmul.bf16.gmra.mxu3 %v10271_v50  ;;  %4182 = vmatpush.bf16.msra.mxu2 %v6815_v53  ;;  %v7579_v53 = vld [vmem:[#allocation2 + $0x294] sm:$0xf0] }
 0x474   :  { %v3897_v38 = vpop.f32.mrf.mxu0 }
 0x475   :  { %v3898_v48 = vadd.f32 %v3897_v38, %v10262_v57  ;;  %v3946_v42 = vpop.f32.mrf.mxu1 }
 0x477   :  { %v10276_v58 = vadd.f32 %v3946_v42, %v3898_v48 }
 0x479   :  { %v3799_v34 = vpop.f32.mrf.mxu2 }
 0x47a   :  { %v3800_v43 = vadd.f32 %v3799_v34, %v10161_v15  ;;  %v6942_v15 = vld [vmem:[#allocation2 + $0x3a8] sm:$0xf] }
 0x47b   :  { %v6943_v61 = vor.u32 %v7615_v28, %v6942_v15 }
 0x47c   :  { %v3900_v25 = vpop.f32.mrf.mxu0 }
 0x47d   :  { %v3901_v4 = vadd.f32 %v3900_v25, %v10262_v57  ;;  %v3949_v29 = vpop.f32.mrf.mxu1  ;;  %4231 = vmatpush.bf16.msra.mxu3 %v6943_v61  ;;  %v11247_v61 = vld [vmem:[#allocation39_spill] sm:$0xff] }
 0x47e   :  { %3997 = vmatmul.bf16.gmra.mxu2 %v9944_v49 }
 0x47f   :  { %v10280_v9 = vadd.f32 %v3949_v29, %v3901_v4  ;;  %4095 = vmatmul.bf16.gmra.mxu0 %v11212_v8  ;;  %4144 = vmatmul.bf16.gmra.mxu1 %v11214_v60 }
 0x481   :  { %v3802_v18 = vpop.f32.mrf.mxu2 }
 0x482   :  { %v3803_v51 = vadd.f32 %v3802_v18, %v10165_v59 }
 0x483   :  { %4041 = vmatmul.bf16.vlgmr.msrb.gmra.mxu3 %v10170_v24 }
 0x484   :  { %v3902_v19 = vpop.f32.mrf.mxu0 }
 0x485   :  { %v3903_v63 = vadd.f32 %v3902_v19, %v10262_v57  ;;  %v3951_v38 = vpop.f32.mrf.mxu1 }
 0x486   :  { %v3846_v62 = vpop.f32.mrf.mxu3 }
 0x487   :  { %v10288_v36 = vadd.f32 %v3951_v38, %v3903_v63  ;;  %v3847_v48 = vadd.f32 %v3846_v62, %v3798_v10  ;;  %v6798_v10 = vld [vmem:[#allocation2 + $0x288] sm:$0xf] }
 0x488   :  { %v6926_v63 = vld [vmem:[#allocation2 + $0x388] sm:$0xf] }
 0x489   :  { %v3804_v42 = vpop.f32.mrf.mxu2  ;;  %v4474_v41 = vmax.f32 %v3847_v48, 0.0 }
 0x48a   :  { %v3805_v31 = vadd.f32 %v3804_v42, %v10175_v6  ;;  %v6799_v6 = vor.u32 %v7579_v53, %v6798_v10 }
 0x48c   :  { %v3905_v34 = vpop.f32.mrf.mxu0  ;;  %4183 = vmatpush.bf16.msra.mxu2 %v6799_v6 }
 0x48d   :  { %v3906_v59 = vadd.f32 %v3905_v34, %v10262_v57  ;;  %v3954_v25 = vpop.f32.mrf.mxu1 }
 0x48e   :  { %v3848_v4 = vpop.f32.mrf.mxu3  ;;  %4002 = vmatmul.bf16.gmra.mxu2 %v9962_v27 }
 0x48f   :  { %v10292_v29 = vadd.f32 %v3954_v25, %v3906_v59  ;;  %v3849_v0 = vadd.f32 %v3848_v4, %v3800_v43  ;;  %4100 = vmatmul.bf16.gmra.mxu0 %v11216_v1  ;;  %4149 = vmatmul.bf16.gmra.mxu1 %v11218_v45  ;;  %v7611_v43 = vld [vmem:[#allocation2 + $0x394] sm:$0xf0] }
 0x490   :  { %v6927_v62 = vor.u32 %v7611_v43, %v6926_v63  ;;  %v7575_v43 = vld [vmem:[#allocation2 + $0x274] sm:$0xf0] }
 0x491   :  { %v4478_v18 = vmax.f32 %v3849_v0, 0.0  ;;  %v3807_v15 = vpop.f32.mrf.mxu2 }
 0x492   :  { %v3808_v19 = vadd.f32 %v3807_v15, %v10179_v52  ;;  %4232 = vmatpush.bf16.msra.mxu3 %v6927_v62 }
 0x493   :  { %v10297_v28 = vpack.c.bf16 %v4478_v18, %v4474_v41  ;;  %4046 = vmatmul.bf16.gmra.mxu3 %v11247_v61 }
 0x494   :  { %v3907_v38 = vpop.f32.mrf.mxu0 }
 0x495   :  { %11246 = vst [vmem:[#allocation19_spill] sm:$0xff] %v10297_v28  ;;  %v3908_v42 = vadd.f32 %v3907_v38, %v10262_v57  ;;  %v3956_v34 = vpop.f32.mrf.mxu1 }
 0x496   :  { %v3851_v48 = vpop.f32.mrf.mxu3 }
 0x497   :  { %v10302_v59 = vadd.f32 %v3956_v34, %v3908_v42  ;;  %v3852_v25 = vadd.f32 %v3851_v48, %v3803_v51  ;;  %v6782_v51 = vld [vmem:[#allocation2 + $0x268] sm:$0xf]  ;;  %v7607_v48 = vld [vmem:[#allocation2 + $0x374] sm:$0xf0] }
 0x498   :  { %v11248_v42 = vld [vmem:[#allocation17_spill] sm:$0xff] }
 0x499   :  { %v3809_v4 = vpop.f32.mrf.mxu2  ;;  %v4482_v6 = vmax.f32 %v3852_v25, 0.0  ;;  %v6910_v34 = vld [vmem:[#allocation2 + $0x368] sm:$0xf] }
 0x49a   :  { %v3810_v0 = vadd.f32 %v3809_v4, %v10189_v3  ;;  %v6783_v3 = vor.u32 %v7575_v43, %v6782_v51 }
 0x49c   :  { %v3910_v41 = vpop.f32.mrf.mxu0  ;;  %4184 = vmatpush.bf16.msra.mxu2 %v6783_v3  ;;  %v6592_v3 = vld [vmem:[#allocation2 + $0xf8] sm:$0xf0] }
 0x49d   :  { %v3911_v52 = vadd.f32 %v3910_v41, %v10262_v57  ;;  %v3959_v18 = vpop.f32.mrf.mxu1  ;;  %v6911_v41 = vor.u32 %v7607_v48, %v6910_v34  ;;  %v7557_v34 = vld [vmem:[#allocation2 + $0x1ec] sm:$0xf] }
 0x49e   :  { %v3853_v10 = vpop.f32.mrf.mxu3  ;;  %4007 = vmatmul.bf16.gmra.mxu2 %v9980_v32 }
 0x49f   :  { %v10306_v53 = vadd.f32 %v3959_v18, %v3911_v52  ;;  %v3854_v15 = vadd.f32 %v3853_v10, %v3805_v31  ;;  %4105 = vmatmul.bf16.gmra.mxu0 %v11220_v2  ;;  %4154 = vmatmul.bf16.gmra.mxu1 %v11222_v11 }
 0x4a0   :  { %4233 = vmatpush.bf16.msra.mxu3 %v6911_v41  ;;  %v6720_v41 = vld [vmem:[#allocation2 + $0x1f8] sm:$0xf0] }
 0x4a1   :  { %v4486_v63 = vmax.f32 %v3854_v15, 0.0  ;;  %v3812_v38 = vpop.f32.mrf.mxu2 }
 0x4a2   :  { %v10312_v62 = vadd.f32 %v3812_v38, %v10193_v54 }
 0x4a3   :  { %4051 = vmatmul.bf16.gmra.mxu3 %v11248_v42  ;;  %v10315_v31 = vpack.c.bf16 %v4486_v63, %v4482_v6 }
 0x4a4   :  { %v3912_v4 = vpop.f32.mrf.mxu0 }
 0x4a5   :  { %11249 = vst [vmem:[#allocation18_spill] sm:$0xff] %v10315_v31  ;;  %v3913_v52 = vadd.f32 %v3912_v4, %v10262_v57  ;;  %v3961_v25 = vpop.f32.mrf.mxu1  ;;  %v7525_v31 = vld [vmem:[#allocation2 + $0xec] sm:$0xf] }
 0x4a6   :  { %v3856_v18 = vpop.f32.mrf.mxu3 }
 0x4a7   :  { %v10318_v10 = vadd.f32 %v3961_v25, %v3913_v52  ;;  %v3857_v15 = vadd.f32 %v3856_v18, %v3808_v19  ;;  %v6595_v19 = vor.u32 %v7525_v31, %v6592_v3  ;;  %v11252_v52 = vld [vmem:[#allocation10_spill] sm:$0xff]  ;;  %v6894_v31 = vld [vmem:[#allocation2 + $0x348] sm:$0xf]  ;;  %v7603_v3 = vld [vmem:[#allocation2 + $0x354] sm:$0xf0] }
 0x4a9   :  { %11250 = vst [vmem:[#allocation21_spill] sm:$0xff] %v10318_v10  ;;  %v3814_v51 = vpop.f32.mrf.mxu2  ;;  %v4490_v25 = vmax.f32 %v3857_v15, 0.0  ;;  %4278 = vmatpush.bf16.msra.mxu0 %v6595_v19  ;;  %v6895_v19 = vor.u32 %v7603_v3, %v6894_v31  ;;  %v6544_v31 = vld [vmem:[#allocation2 + $0x98] sm:$0xf0]  ;;  %v7545_v3 = vld [vmem:[#allocation2 + $0x18c] sm:$0xf] }
 0x4aa   :  { %v10321_v54 = vadd.f32 %v3814_v51, %v10203_v23  ;;  %v6723_v23 = vor.u32 %v7557_v34, %v6720_v41  ;;  %v6766_v51 = vld [vmem:[#allocation2 + $0x248] sm:$0xf]  ;;  %v6704_v34 = vld [vmem:[#allocation2 + $0x1d8] sm:$0xf0] }
 0x4ab   :  { %4234 = vmatpush.bf16.msra.mxu3 %v6895_v19  ;;  %v6672_v19 = vld [vmem:[#allocation2 + $0x198] sm:$0xf0] }
 0x4ac   :  { %v3915_v43 = vpop.f32.mrf.mxu0  ;;  %4327 = vmatpush.bf16.msra.mxu1 %v6723_v23 }
 0x4ad   :  { %v3916_v38 = vadd.f32 %v3915_v43, %v10262_v57  ;;  %v3964_v6 = vpop.f32.mrf.mxu1  ;;  %v7571_v43 = vld [vmem:[#allocation2 + $0x254] sm:$0xf0] }
 0x4ae   :  { %v3858_v63 = vpop.f32.mrf.mxu3  ;;  %4012 = vmatmul.bf16.gmra.mxu2 %v9998_v30  ;;  %v6767_v10 = vor.u32 %v7571_v43, %v6766_v51 }
 0x4af   :  { %v10324_v48 = vadd.f32 %v3964_v6, %v3916_v38  ;;  %v3859_v4 = vadd.f32 %v3858_v63, %v3810_v0  ;;  %4110 = vmatmul.bf16.gmra.mxu0 %v11224_v16  ;;  %4159 = vmatmul.bf16.gmra.mxu1 %v11252_v52  ;;  %v7521_v38 = vld [vmem:[#allocation2 + $0xcc] sm:$0xf]  ;;  %v6576_v6 = vld [vmem:[#allocation2 + $0xd8] sm:$0xf0]  ;;  %v11254_v16 = vld [vmem:[#allocation28_spill] sm:$0xff] }
 0x4b0   :  { %v7553_v0 = vld [vmem:[#allocation2 + $0x1cc] sm:$0xf]  ;;  %v6579_v52 = vor.u32 %v7521_v38, %v6576_v6  ;;  %4185 = vmatpush.bf16.msra.mxu2 %v6767_v10 }
 0x4b1   :  { %11251 = vst [vmem:[#allocation20_spill] sm:$0xff] %v10324_v48  ;;  %v4494_v18 = vmax.f32 %v3859_v4, 0.0  ;;  %v3817_v28 = vpop.f32.mrf.mxu2  ;;  %v11253_v63 = vld [vmem:[#allocation25_spill] sm:$0xff]  ;;  %v6707_v41 = vor.u32 %v7553_v0, %v6704_v34 }
 0x4b2   :  { %v10330_v48 = vadd.f32 %v3817_v28, %v11253_v63  ;;  %4279 = vmatpush.bf16.msra.mxu0 %v6579_v52  ;;  %v7517_v28 = vld [vmem:[#allocation2 + $0xac] sm:$0xf]  ;;  %v6560_v63 = vld [vmem:[#allocation2 + $0xb8] sm:$0xf0]  ;;  %v11256_v52 = vld [vmem:[#allocation32_spill] sm:$0xff] }
 0x4b3   :  { %4056 = vmatmul.bf16.gmra.mxu3 %v11254_v16  ;;  %v10333_v15 = vpack.c.bf16 %v4494_v18, %v4490_v25  ;;  %4328 = vmatpush.bf16.msra.mxu1 %v6707_v41  ;;  %v7549_v16 = vld [vmem:[#allocation2 + $0x1ac] sm:$0xf]  ;;  %v6563_v25 = vor.u32 %v7517_v28, %v6560_v63  ;;  %v6688_v18 = vld [vmem:[#allocation2 + $0x1b8] sm:$0xf0] }
 0x4b4   :  { %v3917_v4 = vpop.f32.mrf.mxu0  ;;  %v6691_v6 = vor.u32 %v7549_v16, %v6688_v18  ;;  %v7513_v0 = vld [vmem:[#allocation2 + $0x8c] sm:$0xf] }
 0x4b5   :  { %11255 = vst [vmem:[#allocation50_spill] sm:$0xff] %v10333_v15  ;;  %v3918_v23 = vadd.f32 %v3917_v4, %v10262_v57  ;;  %v3966_v51 = vpop.f32.mrf.mxu1  ;;  %v6547_v4 = vor.u32 %v7513_v0, %v6544_v31  ;;  %v6675_v15 = vor.u32 %v7545_v3, %v6672_v19  ;;  %v7509_v16 = vld [vmem:[#allocation2 + $0x6c] sm:$0xf]  ;;  %v7567_v3 = vld [vmem:[#allocation2 + $0x234] sm:$0xf0] }
 0x4b6   :  { %v3861_v43 = vpop.f32.mrf.mxu3  ;;  %4280 = vmatpush.bf16.msra.mxu0 %v6563_v25  ;;  %v7541_v28 = vld [vmem:[#allocation2 + $0x16c] sm:$0xf] }
 0x4b7   :  { %v10336_v30 = vadd.f32 %v3966_v51, %v3918_v23  ;;  %v3862_v38 = vadd.f32 %v3861_v43, %v10312_v62  ;;  %4329 = vmatpush.bf16.msra.mxu1 %v6691_v6  ;;  %v6528_v43 = vld [vmem:[#allocation2 + $0x78] sm:$0xf0]  ;;  %v7505_v19 = vld [vmem:[#allocation2 + $0x4c] sm:$0xf] }
 0x4b8   :  { %v6531_v18 = vor.u32 %v7509_v16, %v6528_v43  ;;  %v6656_v6 = vld [vmem:[#allocation2 + $0x178] sm:$0xf0]  ;;  %v7599_v16 = vld [vmem:[#allocation2 + $0x334] sm:$0xf0] }
 0x4b9   :  { %v3819_v10 = vpop.f32.mrf.mxu2  ;;  %v4498_v0 = vmax.f32 %v3862_v38, 0.0 }
 0x4ba   :  { %v10340_v34 = vadd.f32 %v3819_v10, %v11256_v52  ;;  %4281 = vmatpush.bf16.msra.mxu0 %v6547_v4  ;;  %v6659_v10 = vor.u32 %v7541_v28, %v6656_v6  ;;  %v6640_v28 = vld [vmem:[#allocation2 + $0x158] sm:$0xf0] }
 0x4bb   :  { %4330 = vmatpush.bf16.msra.mxu1 %v6675_v15  ;;  %v6750_v15 = vld [vmem:[#allocation2 + $0x228] sm:$0xf] }
 0x4bc   :  { %v3920_v41 = vpop.f32.mrf.mxu0  ;;  %v6751_v4 = vor.u32 %v7567_v3, %v6750_v15 }
 0x4bd   :  { %v3921_v23 = vadd.f32 %v3920_v41, %v10262_v57  ;;  %v3969_v51 = vpop.f32.mrf.mxu1  ;;  %v6512_v41 = vld [vmem:[#allocation2 + $0x58] sm:$0xf0] }
 0x4be   :  { %v3863_v62 = vpop.f32.mrf.mxu3  ;;  %4017 = vmatmul.bf16.gmra.mxu2 %v10016_v37  ;;  %4282 = vmatpush.bf16.msra.mxu0 %v6531_v18  ;;  %v6515_v43 = vor.u32 %v7505_v19, %v6512_v41 }
 0x4bf   :  { %v10343_v63 = vadd.f32 %v3969_v51, %v3921_v23  ;;  %v3864_v25 = vadd.f32 %v3863_v62, %v10321_v54  ;;  %4115 = vmatmul.bf16.gmra.mxu0 %v11228_v13  ;;  %4164 = vmatmul.bf16.gmra.mxu1 %v11230_v14  ;;  %v7537_v54 = vld [vmem:[#allocation2 + $0x14c] sm:$0xf]  ;;  %v11258_v51 = vld [vmem:[#allocation40_spill] sm:$0xff]  ;;  %v6878_v62 = vld [vmem:[#allocation2 + $0x328] sm:$0xf] }
 0x4c0   :  { %4331 = vmatpush.bf16.msra.mxu1 %v6659_v10  ;;  %4186 = vmatpush.bf16.msra.mxu2 %v6751_v4  ;;  %v6879_v18 = vor.u32 %v7599_v16, %v6878_v62  ;;  %v6643_v6 = vor.u32 %v7537_v54, %v6640_v28  ;;  %v6734_v54 = vld [vmem:[#allocation2 + $0x208] sm:$0xf]  ;;  %v7563_v62 = vld [vmem:[#allocation2 + $0x214] sm:$0xf0]  ;;  %v7497_v16 = vld [vmem:[#allocation2 + $0xc] sm:$0xf] }
 0x4c1   :  { %11257 = vst [vmem:[#allocation42_spill] sm:$0xff] %v10343_v63  ;;  %v4502_v31 = vmax.f32 %v3864_v25, 0.0  ;;  %v3822_v52 = vpop.f32.mrf.mxu2 }
 0x4c2   :  { %v10350_v23 = vadd.f32 %v3822_v52, %v10221_v35  ;;  %4283 = vmatpush.bf16.msra.mxu0 %v6515_v43  ;;  %4235 = vmatpush.bf16.msra.mxu3 %v6879_v18  ;;  %v7501_v35 = vld [vmem:[#allocation2 + $0x2c] sm:$0xf]  ;;  %v6496_v52 = vld [vmem:[#allocation2 + $0x38] sm:$0xf0] }
 0x4c3   :  { %4061 = vmatmul.bf16.gmra.mxu3 %v11258_v51  ;;  %v10353_v38 = vpack.c.bf16 %v4502_v31, %v4498_v0  ;;  %v7533_v51 = vld [vmem:[#allocation2 + $0x12c] sm:$0xf]  ;;  %v6499_v0 = vor.u32 %v7501_v35, %v6496_v52  ;;  %v6624_v31 = vld [vmem:[#allocation2 + $0x138] sm:$0xf0] }
 0x4c4   :  { %v3922_v25 = vpop.f32.mrf.mxu0  ;;  %4332 = vmatpush.bf16.msra.mxu1 %v6643_v6  ;;  %v6627_v41 = vor.u32 %v7533_v51, %v6624_v31  ;;  %v11260_v43 = vld [vmem:[#allocation9_spill] sm:$0xff]  ;;  %v6480_v18 = vld [vmem:[#allocation2 + $0x18] sm:$0xf0] }
 0x4c5   :  { %11259 = vst [vmem:[#allocation8_spill] sm:$0xff] %v10353_v38  ;;  %v3923_v10 = vadd.f32 %v3922_v25, %v10262_v57  ;;  %v3971_v15 = vpop.f32.mrf.mxu1  ;;  %v6735_v25 = vor.u32 %v7563_v62, %v6734_v54  ;;  %v7529_v6 = vld [vmem:[#allocation2 + $0x10c] sm:$0xf]  ;;  %v6483_v14 = vor.u32 %v7497_v16, %v6480_v18 }
 0x4c6   :  { %v3866_v3 = vpop.f32.mrf.mxu3  ;;  %4284 = vmatpush.bf16.msra.mxu0 %v6499_v0 }
 0x4c7   :  { %v10356_v63 = vadd.f32 %v3971_v15, %v3923_v10  ;;  %v3867_v19 = vadd.f32 %v3866_v3, %v10330_v48  ;;  %v6608_v10 = vld [vmem:[#allocation2 + $0x118] sm:$0xf0]  ;;  %4187 = vmatpush.bf16.msra.mxu2 %v6735_v25 }
 0x4c8   :  { %4333 = vmatpush.bf16.msra.mxu1 %v6627_v41  ;;  %v6611_v3 = vor.u32 %v7529_v6, %v6608_v10 }
 0x4c9   :  { %v3824_v4 = vpop.f32.mrf.mxu2  ;;  %v4506_v0 = vmax.f32 %v3867_v19, 0.0 }
 0x4ca   :  { %v3825_v28 = vadd.f32 %v3824_v4, %v11260_v43  ;;  %4285 = vmatpush.bf16.msra.mxu0 %v6483_v14  ;;  %v6862_v4 = vld [vmem:[#allocation2 + $0x308] sm:$0xf]  ;;  %v7595_v14 = vld [vmem:[#allocation2 + $0x314] sm:$0xf0] }
 0x4cc   :  { %v3925_v38 = vpop.f32.mrf.mxu0  ;;  %4334 = vmatpush.bf16.msra.mxu1 %v6611_v3 }
 0x4cd   :  { %v3926_v15 = vadd.f32 %v3925_v38, %v10262_v57  ;;  %v3974_v48 = vpop.f32.mrf.mxu1 }
 0x4ce   :  { %v3868_v51 = vpop.f32.mrf.mxu3  ;;  %4022 = vmatmul.bf16.gmra.mxu2 %v10028_v7 }
 0x4cf   :  { %v10361_v35 = vadd.f32 %v3974_v48, %v3926_v15  ;;  %v3869_v52 = vadd.f32 %v3868_v51, %v10340_v34  ;;  %4120 = vmatmul.bf16.gmra.mxu0 %v11232_v21  ;;  %4169 = vmatmul.bf16.gmra.mxu1 %v11234_v46  ;;  %v6863_v34 = vor.u32 %v7595_v14, %v6862_v4 }
 0x4d1   :  { %v4510_v31 = vmax.f32 %v3869_v52, 0.0  ;;  %v3827_v41 = vpop.f32.mrf.mxu2  ;;  %4236 = vmatpush.bf16.msra.mxu3 %v6863_v34  ;;  %v6976_v34 = vld [vmem:[#allocation2 + $0x3f8] sm:$0xf0] }
 0x4d2   :  { %v3828_v38 = vadd.f32 %v3827_v41, %v10235_v47  ;;  %v6848_v41 = vld [vmem:[#allocation2 + $0x2f8] sm:$0xf0] }
 0x4d3   :  { %4066 = vmatmul.bf16.gmra.mxu3 %v10240_v33  ;;  %v10369_v54 = vpack.c.bf16 %v4510_v31, %v4506_v0 }
 0x4d4   :  { %v3927_v62 = vpop.f32.mrf.mxu0 }
 0x4d5   :  { %v3928_v16 = vadd.f32 %v3927_v62, %v10262_v57  ;;  %v3976_v43 = vpop.f32.mrf.mxu1  ;;  %v7621_v62 = vld [vmem:[#allocation2 + $0x3ec] sm:$0xf] }
 0x4d6   :  { %v3871_v25 = vpop.f32.mrf.mxu3 }
 0x4d7   :  { %v10372_v18 = vadd.f32 %v3976_v43, %v3928_v16  ;;  %v3872_v19 = vadd.f32 %v3871_v25, %v10350_v23  ;;  %v7589_v23 = vld [vmem:[#allocation2 + $0x2ec] sm:$0xf]  ;;  %v6979_v43 = vor.u32 %v7621_v62, %v6976_v34 }
 0x4d9   :  { %v3829_v6 = vpop.f32.mrf.mxu2  ;;  %v4514_v0 = vmax.f32 %v3872_v19, 0.0  ;;  %4425 = vmatpush.bf16.msrb.mxu3 %v6979_v43  ;;  %v7617_v43 = vld [vmem:[#allocation2 + $0x3cc] sm:$0xf] }
 0x4da   :  { %v3830_v47 = vadd.f32 %v3829_v6, %v10245_v12  ;;  %v6851_v12 = vor.u32 %v7589_v23, %v6848_v41 }
 0x4dc   :  { %v3930_v10 = vpop.f32.mrf.mxu0  ;;  %4376 = vmatpush.bf16.msrb.mxu2 %v6851_v12 }
 0x4dd   :  { %v3931_v15 = vadd.f32 %v3930_v10, %v10262_v57  ;;  %v3979_v48 = vpop.f32.mrf.mxu1 }
 0x4de   :  { %v3873_v3 = vpop.f32.mrf.mxu3  ;;  %4027 = vmatmul.bf16.gmra.mxu2 %v10046_v5 }
 0x4df   :  { %v10377_v51 = vadd.f32 %v3979_v48, %v3931_v15  ;;  %v3874_v52 = vadd.f32 %v3873_v3, %v3825_v28  ;;  %4125 = vmatmul.bf16.gmra.mxu0 %v11236_v22  ;;  %4174 = vmatmul.bf16.gmra.mxu1 %v11238_v40 }
 0x4e1   :  { %v4518_v31 = vmax.f32 %v3874_v52, 0.0  ;;  %v3832_v4 = vpop.f32.mrf.mxu2 }
 0x4e2   :  { %v3833_v14 = vadd.f32 %v3832_v4, %v10249_v39  ;;  %v10392_v39 = vld [vmem:[%s10979_s4] sm:$0xf] }
 0x4e3   :  { %4071 = vmatmul.bf16.gmra.mxu3 %v10254_v26  ;;  %v10384_v16 = vpack.c.bf16 %v4518_v31, %v4514_v0  ;;  %v10395_v48 = vperm.slane %v10392_v39, 2 }
 0x4e4   :  { %v3932_v28 = vpop.f32.mrf.mxu0 }
 0x4e5   :  { %11261 = vst [vmem:[#allocation22_spill] sm:$0xff] %v10384_v16  ;;  %v3933_v25 = vadd.f32 %v3932_v28, %v10262_v57  ;;  %v3981_v6 = vpop.f32.mrf.mxu1  ;;  %v6832_v28 = vld [vmem:[#allocation2 + $0x2d8] sm:$0xf0] }
 0x4e6   :  { %v3876_v19 = vpop.f32.mrf.mxu3 }
 0x4e7   :  { %v10387_v10 = vadd.f32 %v3981_v6, %v3933_v25  ;;  %v3877_v15 = vadd.f32 %v3876_v19, %v3828_v38  ;;  %v6960_v19 = vld [vmem:[#allocation2 + $0x3d8] sm:$0xf0] }
 0x4e9   :  { %v3834_v3 = vpop.f32.mrf.mxu2  ;;  %v4522_v38 = vmax.f32 %v3877_v15, 0.0 }
 0x4ea   :  { %v3835_v52 = vadd.f32 %v3834_v3, %v10259_v55  ;;  %v7585_v55 = vld [vmem:[#allocation2 + $0x2cc] sm:$0xf] }
 0x4ec   :  { %v4091_v0 = vpop.f32.mrf.mxu0 }
 0x4ed   :  { %v4092_v57 = vadd.f32 %v4091_v0, %v10395_v48  ;;  %v4140_v31 = vpop.f32.mrf.mxu1  ;;  %v6963_v0 = vor.u32 %v7617_v43, %v6960_v19  ;;  %v7581_v43 = vld [vmem:[#allocation2 + $0x2ac] sm:$0xf] }
 0x4ee   :  { %v3878_v23 = vpop.f32.mrf.mxu3  ;;  %4188 = vmatmul.bf16.vlgmr.msra.gmra.mxu2 %v9926_v17 }
 0x4ef   :  { %v10399_v41 = vadd.f32 %v4140_v31, %v4092_v57  ;;  %v3879_v4 = vadd.f32 %v3878_v23, %v3830_v47  ;;  %4286 = vmatmul.bf16.vlgmr.msra.gmra.mxu0 %v11208_v44  ;;  %4335 = vmatmul.bf16.vlgmr.msra.gmra.mxu1 %v11210_v20  ;;  %v6835_v47 = vor.u32 %v7585_v55, %v6832_v28 }
 0x4f0   :  { %4426 = vmatpush.bf16.msrb.mxu3 %v6963_v0 }
 0x4f1   :  { %v4526_v12 = vmax.f32 %v3879_v4, 0.0  ;;  %v3993_v62 = vpop.f32.mrf.mxu2  ;;  %4377 = vmatpush.bf16.msrb.mxu2 %v6835_v47 }
 0x4f2   :  { %v3994_v34 = vadd.f32 %v3993_v62, %v10266_v56 }
 0x4f3   :  { %4076 = vmatmul.bf16.gmra.mxu3 %v10271_v50  ;;  %v10406_v25 = vpack.c.bf16 %v4526_v12, %v4522_v38 }
 0x4f4   :  { %v4093_v6 = vpop.f32.mrf.mxu0 }
 0x4f5   :  { %11262 = vst [vmem:[#allocation51_spill] sm:$0xff] %v10406_v25  ;;  %v4094_v3 = vadd.f32 %v4093_v6, %v10395_v48  ;;  %v4142_v44 = vpop.f32.mrf.mxu1  ;;  %v6816_v6 = vld [vmem:[#allocation2 + $0x2b8] sm:$0xf0]  ;;  %v7086_v25 = vld [vmem:[#allocation4 + $0xd0] sm:$0xf] }
 0x4f6   :  { %v3881_v20 = vpop.f32.mrf.mxu3 }
 0x4f7   :  { %v10409_v15 = vadd.f32 %v4142_v44, %v4094_v3  ;;  %v3882_v57 = vadd.f32 %v3881_v20, %v3833_v14  ;;  %v7613_v3 = vld [vmem:[#allocation2 + $0x3ac] sm:$0xf]  ;;  %v6944_v44 = vld [vmem:[#allocation2 + $0x3b8] sm:$0xf0] }
 0x4f8   :  { %v6947_v20 = vor.u32 %v7613_v3, %v6944_v44 }
 0x4f9   :  { %v3995_v56 = vpop.f32.mrf.mxu2  ;;  %v4530_v28 = vmax.f32 %v3882_v57, 0.0 }
 0x4fa   :  { %v3996_v31 = vadd.f32 %v3995_v56, %v10276_v58  ;;  %v6819_v58 = vor.u32 %v7581_v43, %v6816_v6  ;;  %4427 = vmatpush.bf16.msrb.mxu3 %v6947_v20  ;;  %v7609_v20 = vld [vmem:[#allocation2 + $0x38c] sm:$0xf] }
 0x4fc   :  { %v4096_v23 = vpop.f32.mrf.mxu0  ;;  %4378 = vmatpush.bf16.msrb.mxu2 %v6819_v58  ;;  %v6800_v58 = vld [vmem:[#allocation2 + $0x298] sm:$0xf0] }
 0x4fd   :  { %v4097_v4 = vadd.f32 %v4096_v23, %v10395_v48  ;;  %v4145_v38 = vpop.f32.mrf.mxu1 }
 0x4fe   :  { %v3883_v12 = vpop.f32.mrf.mxu3  ;;  %4193 = vmatmul.bf16.gmra.mxu2 %v9944_v49 }
 0x4ff   :  { %v10413_v62 = vadd.f32 %v4145_v38, %v4097_v4  ;;  %v3884_v55 = vadd.f32 %v3883_v12, %v3835_v52  ;;  %4291 = vmatmul.bf16.gmra.mxu0 %v11212_v8  ;;  %4340 = vmatmul.bf16.gmra.mxu1 %v11214_v60 }
 0x501   :  { %v4534_v14 = vmax.f32 %v3884_v55, 0.0  ;;  %v3998_v47 = vpop.f32.mrf.mxu2 }
 0x502   :  { %v3999_v19 = vadd.f32 %v3998_v47, %v10280_v9 }
 0x503   :  { %4237 = vmatmul.bf16.vlgmr.msra.gmra.mxu3 %v10170_v24  ;;  %v10420_v0 = vpack.c.bf16 %v4534_v14, %v4530_v28 }
 0x504   :  { %v4098_v52 = vpop.f32.mrf.mxu0 }
 0x505   :  { %11263 = vst [vmem:[#allocation43_spill] sm:$0xff] %v10420_v0  ;;  %v4099_v8 = vadd.f32 %v4098_v52, %v10395_v48  ;;  %v4147_v60 = vpop.f32.mrf.mxu1 }
 0x506   :  { %v4042_v57 = vpop.f32.mrf.mxu3 }
 0x507   :  { %v10423_v56 = vadd.f32 %v4147_v60, %v4099_v8  ;;  %v4043_v23 = vadd.f32 %v4042_v57, %v3994_v34  ;;  %v7577_v34 = vld [vmem:[#allocation2 + $0x28c] sm:$0xf] }
 0x509   :  { %v4000_v4 = vpop.f32.mrf.mxu2  ;;  %v4475_v6 = vmax.f32 %v4043_v23, 0.0 }
 0x50a   :  { %v4001_v9 = vadd.f32 %v4000_v4, %v10288_v36  ;;  %v6803_v36 = vor.u32 %v7577_v34, %v6800_v58 }
 0x50c   :  { %v4101_v38 = vpop.f32.mrf.mxu0  ;;  %4379 = vmatpush.bf16.msrb.mxu2 %v6803_v36 }
 0x50d   :  { %v4102_v12 = vadd.f32 %v4101_v38, %v10395_v48  ;;  %v4150_v55 = vpop.f32.mrf.mxu1 }
 0x50e   :  { %v4044_v28 = vpop.f32.mrf.mxu3  ;;  %4198 = vmatmul.bf16.gmra.mxu2 %v9962_v27 }
 0x50f   :  { %v10427_v14 = vadd.f32 %v4150_v55, %v4102_v12  ;;  %v4045_v43 = vadd.f32 %v4044_v28, %v3996_v31  ;;  %4296 = vmatmul.bf16.gmra.mxu0 %v11216_v1  ;;  %4345 = vmatmul.bf16.gmra.mxu1 %v11218_v45  ;;  %v6928_v31 = vld [vmem:[#allocation2 + $0x398] sm:$0xf0] }
 0x510   :  { %v6931_v60 = vor.u32 %v7609_v20, %v6928_v31  ;;  %v7605_v31 = vld [vmem:[#allocation2 + $0x36c] sm:$0xf] }
 0x511   :  { %v4479_v47 = vmax.f32 %v4045_v43, 0.0  ;;  %v4003_v3 = vpop.f32.mrf.mxu2 }
 0x512   :  { %v4004_v52 = vadd.f32 %v4003_v3, %v10292_v29  ;;  %4428 = vmatpush.bf16.msrb.mxu3 %v6931_v60  ;;  %v6784_v3 = vld [vmem:[#allocation2 + $0x278] sm:$0xf0] }
 0x513   :  { %v10432_v44 = vpack.c.bf16 %v4479_v47, %v4475_v6  ;;  %4242 = vmatmul.bf16.gmra.mxu3 %v11247_v61 }
 0x514   :  { %v4103_v8 = vpop.f32.mrf.mxu0 }
 0x515   :  { %v4104_v1 = vadd.f32 %v4103_v8, %v10395_v48  ;;  %v4152_v45 = vpop.f32.mrf.mxu1  ;;  %v6912_v8 = vld [vmem:[#allocation2 + $0x378] sm:$0xf0] }
 0x516   :  { %v4047_v57 = vpop.f32.mrf.mxu3 }
 0x517   :  { %v10437_v23 = vadd.f32 %v4152_v45, %v4104_v1  ;;  %v4048_v4 = vadd.f32 %v4047_v57, %v3999_v19  ;;  %v7573_v19 = vld [vmem:[#allocation2 + $0x26c] sm:$0xf] }
 0x519   :  { %v4005_v38 = vpop.f32.mrf.mxu2  ;;  %v4483_v34 = vmax.f32 %v4048_v4, 0.0 }
 0x51a   :  { %v4006_v12 = vadd.f32 %v4005_v38, %v10302_v59  ;;  %v6787_v59 = vor.u32 %v7573_v19, %v6784_v3  ;;  %v7102_v19 = vld [vmem:[#allocation4 + $0xf0] sm:$0xf] }
 0x51c   :  { %v4106_v55 = vpop.f32.mrf.mxu0  ;;  %4380 = vmatpush.bf16.msrb.mxu2 %v6787_v59  ;;  %v11265_v59 = vld [vmem:[#allocation14_spill] sm:$0xff] }
 0x51d   :  { %v4107_v29 = vadd.f32 %v4106_v55, %v10395_v48  ;;  %v4155_v28 = vpop.f32.mrf.mxu1 }
 0x51e   :  { %v4049_v43 = vpop.f32.mrf.mxu3  ;;  %4203 = vmatmul.bf16.gmra.mxu2 %v9980_v32 }
 0x51f   :  { %v10441_v6 = vadd.f32 %v4155_v28, %v4107_v29  ;;  %v4050_v47 = vadd.f32 %v4049_v43, %v4001_v9  ;;  %4301 = vmatmul.bf16.gmra.mxu0 %v11220_v2  ;;  %4350 = vmatmul.bf16.gmra.mxu1 %v11222_v11  ;;  %v6915_v2 = vor.u32 %v7605_v31, %v6912_v8  ;;  %v11266_v31 = vld [vmem:[#allocation29_spill] sm:$0xff]  ;;  %v7655_v8 = vld [vmem:[#allocation4 + $0xf4] sm:$0xf0] }
 0x521   :  { %v4487_v58 = vmax.f32 %v4050_v47, 0.0  ;;  %v4008_v36 = vpop.f32.mrf.mxu2  ;;  %4429 = vmatpush.bf16.msrb.mxu3 %v6915_v2  ;;  %v7103_v2 = vor.u32 %v7655_v8, %v7102_v19  ;;  %v7653_v19 = vld [vmem:[#allocation4 + $0xe4] sm:$0xf0] }
 0x522   :  { %v10447_v20 = vadd.f32 %v4008_v36, %v10306_v53  ;;  %v11264_v53 = vld [vmem:[#allocation21_spill] sm:$0xff] }
 0x523   :  { %4247 = vmatmul.bf16.gmra.mxu3 %v11248_v42  ;;  %v10450_v9 = vpack.c.bf16 %v4487_v58, %v4483_v34  ;;  %v7038_v34 = vld [vmem:[#allocation4 + $0x70] sm:$0xf]  ;;  %v7639_v58 = vld [vmem:[#allocation4 + $0x74] sm:$0xf0]  ;;  %5009 = vmatpush.bf16.msrb.mxu1 %v7103_v2 }
 0x524   :  { %v4108_v60 = vpop.f32.mrf.mxu0 }
 0x525   :  { %v4109_v11 = vadd.f32 %v4108_v60, %v10395_v48  ;;  %v4157_v1 = vpop.f32.mrf.mxu1  ;;  %v11267_v60 = vld [vmem:[#allocation10_spill] sm:$0xff] }
 0x526   :  { %v4052_v45 = vpop.f32.mrf.mxu3 }
 0x527   :  { %v10453_v57 = vadd.f32 %v4157_v1, %v4109_v11  ;;  %v4053_v4 = vadd.f32 %v4052_v45, %v4004_v52  ;;  %v7039_v52 = vor.u32 %v7639_v58, %v7038_v34  ;;  %v7569_v45 = vld [vmem:[#allocation2 + $0x24c] sm:$0xf]  ;;  %v6896_v58 = vld [vmem:[#allocation2 + $0x358] sm:$0xf0] }
 0x528   :  { %v7601_v34 = vld [vmem:[#allocation2 + $0x34c] sm:$0xf] }
 0x529   :  { %v4010_v38 = vpop.f32.mrf.mxu2  ;;  %v4491_v11 = vmax.f32 %v4053_v4, 0.0  ;;  %4960 = vmatpush.bf16.msrb.mxu0 %v7039_v52  ;;  %v6899_v52 = vor.u32 %v7601_v34, %v6896_v58  ;;  %v7633_v34 = vld [vmem:[#allocation4 + $0x44] sm:$0xf0]  ;;  %v7078_v58 = vld [vmem:[#allocation4 + $0xc0] sm:$0xf] }
 0x52a   :  { %v10456_v55 = vadd.f32 %v4010_v38, %v11264_v53  ;;  %v6768_v38 = vld [vmem:[#allocation2 + $0x258] sm:$0xf0] }
 0x52b   :  { %4430 = vmatpush.bf16.msrb.mxu3 %v6899_v52 }
 0x52c   :  { %v4111_v29 = vpop.f32.mrf.mxu0 }
 0x52d   :  { %v4112_v28 = vadd.f32 %v4111_v29, %v10395_v48  ;;  %v4160_v43 = vpop.f32.mrf.mxu1  ;;  %v6771_v29 = vor.u32 %v7569_v45, %v6768_v38 }
 0x52e   :  { %v4054_v47 = vpop.f32.mrf.mxu3  ;;  %4208 = vmatmul.bf16.gmra.mxu2 %v11265_v59 }
 0x52f   :  { %v10459_v3 = vadd.f32 %v4160_v43, %v4112_v28  ;;  %v4055_v36 = vadd.f32 %v4054_v47, %v4006_v12  ;;  %4306 = vmatmul.bf16.gmra.mxu0 %v11266_v31  ;;  %4355 = vmatmul.bf16.gmra.mxu1 %v11267_v60  ;;  %v7030_v28 = vld [vmem:[#allocation4 + $0x60] sm:$0xf]  ;;  %v7637_v43 = vld [vmem:[#allocation4 + $0x64] sm:$0xf0] }
 0x530   :  { %v7094_v12 = vld [vmem:[#allocation4 + $0xe0] sm:$0xf]  ;;  %v7031_v60 = vor.u32 %v7637_v43, %v7030_v28  ;;  %4381 = vmatpush.bf16.msrb.mxu2 %v6771_v29 }
 0x531   :  { %v4495_v1 = vmax.f32 %v4055_v36, 0.0  ;;  %v4013_v53 = vpop.f32.mrf.mxu2  ;;  %v11268_v47 = vld [vmem:[#allocation20_spill] sm:$0xff]  ;;  %v7095_v8 = vor.u32 %v7653_v19, %v7094_v12 }
 0x532   :  { %v10465_v0 = vadd.f32 %v4013_v53, %v11268_v47  ;;  %v11269_v31 = vld [vmem:[#allocation28_spill] sm:$0xff]  ;;  %4961 = vmatpush.bf16.msrb.mxu0 %v7031_v60  ;;  %v7022_v53 = vld [vmem:[#allocation4 + $0x50] sm:$0xf]  ;;  %v7635_v47 = vld [vmem:[#allocation4 + $0x54] sm:$0xf0] }
 0x533   :  { %4252 = vmatmul.bf16.gmra.mxu3 %v11269_v31  ;;  %v10468_v4 = vpack.c.bf16 %v4495_v1, %v4491_v11  ;;  %5010 = vmatpush.bf16.msrb.mxu1 %v7095_v8  ;;  %v7023_v11 = vor.u32 %v7635_v47, %v7022_v53  ;;  %v7651_v1 = vld [vmem:[#allocation4 + $0xd4] sm:$0xf0]  ;;  %v7014_v12 = vld [vmem:[#allocation4 + $0x40] sm:$0xf]  ;;  %v7070_v53 = vld [vmem:[#allocation4 + $0xb0] sm:$0xf] }
 0x534   :  { %v4113_v36 = vpop.f32.mrf.mxu0  ;;  %v7087_v43 = vor.u32 %v7651_v1, %v7086_v25  ;;  %v7015_v19 = vor.u32 %v7633_v34, %v7014_v12  ;;  %v7006_v25 = vld [vmem:[#allocation4 + $0x30] sm:$0xf]  ;;  %v7647_v1 = vld [vmem:[#allocation4 + $0xb4] sm:$0xf0] }
 0x535   :  { %v4114_v2 = vadd.f32 %v4113_v36, %v10395_v48  ;;  %v4162_v45 = vpop.f32.mrf.mxu1  ;;  %v7649_v36 = vld [vmem:[#allocation4 + $0xc4] sm:$0xf0] }
 0x536   :  { %v4057_v38 = vpop.f32.mrf.mxu3  ;;  %4962 = vmatpush.bf16.msrb.mxu0 %v7023_v11  ;;  %v7079_v8 = vor.u32 %v7649_v36, %v7078_v58  ;;  %v7565_v58 = vld [vmem:[#allocation2 + $0x22c] sm:$0xf] }
 0x537   :  { %v10471_v16 = vadd.f32 %v4162_v45, %v4114_v2  ;;  %v4058_v28 = vadd.f32 %v4057_v38, %v10447_v20  ;;  %5011 = vmatpush.bf16.msrb.mxu1 %v7087_v43  ;;  %v7631_v38 = vld [vmem:[#allocation4 + $0x34] sm:$0xf0] }
 0x538   :  { %v11271_v43 = vld [vmem:[#allocation31_spill] sm:$0xff] }
 0x539   :  { %v4015_v29 = vpop.f32.mrf.mxu2  ;;  %v4499_v12 = vmax.f32 %v4058_v28, 0.0 }
 0x53a   :  { %v10475_v60 = vadd.f32 %v4015_v29, %v10336_v30  ;;  %4963 = vmatpush.bf16.msrb.mxu0 %v7015_v19  ;;  %v7007_v30 = vor.u32 %v7631_v38, %v7006_v25  ;;  %v7071_v29 = vor.u32 %v7647_v1, %v7070_v53  ;;  %v6752_v19 = vld [vmem:[#allocation2 + $0x238] sm:$0xf0]  ;;  %v7597_v25 = vld [vmem:[#allocation2 + $0x32c] sm:$0xf]  ;;  %v7645_v53 = vld [vmem:[#allocation4 + $0xa4] sm:$0xf0] }
 0x53b   :  { %5012 = vmatpush.bf16.msrb.mxu1 %v7079_v8  ;;  %v6998_v8 = vld [vmem:[#allocation4 + $0x20] sm:$0xf]  ;;  %v6880_v38 = vld [vmem:[#allocation2 + $0x338] sm:$0xf0] }
 0x53c   :  { %v4116_v52 = vpop.f32.mrf.mxu0 }
 0x53d   :  { %v4117_v2 = vadd.f32 %v4116_v52, %v10395_v48  ;;  %v4165_v45 = vpop.f32.mrf.mxu1  ;;  %v6755_v52 = vor.u32 %v7565_v58, %v6752_v19 }
 0x53e   :  { %v4059_v20 = vpop.f32.mrf.mxu3  ;;  %4213 = vmatmul.bf16.gmra.mxu2 %v10016_v37  ;;  %4964 = vmatpush.bf16.msrb.mxu0 %v7007_v30  ;;  %v6883_v30 = vor.u32 %v7597_v25, %v6880_v38  ;;  %v6736_v25 = vld [vmem:[#allocation2 + $0x218] sm:$0xf0]  ;;  %v6982_v38 = vld [vmem:[#allocation4] sm:$0xf] }
 0x53f   :  { %v10478_v47 = vadd.f32 %v4165_v45, %v4117_v2  ;;  %v4060_v11 = vadd.f32 %v4059_v20, %v10456_v55  ;;  %4311 = vmatmul.bf16.gmra.mxu0 %v11228_v13  ;;  %4360 = vmatmul.bf16.gmra.mxu1 %v11271_v43  ;;  %v7629_v2 = vld [vmem:[#allocation4 + $0x24] sm:$0xf0]  ;;  %v7062_v55 = vld [vmem:[#allocation4 + $0xa0] sm:$0xf]  ;;  %v11272_v45 = vld [vmem:[#allocation42_spill] sm:$0xff] }
 0x540   :  { %5013 = vmatpush.bf16.msrb.mxu1 %v7071_v29  ;;  %v11273_v13 = vld [vmem:[#allocation40_spill] sm:$0xff]  ;;  %v6999_v43 = vor.u32 %v7629_v2, %v6998_v8  ;;  %4382 = vmatpush.bf16.msrb.mxu2 %v6755_v52  ;;  %v7063_v1 = vor.u32 %v7645_v53, %v7062_v55  ;;  %v7561_v55 = vld [vmem:[#allocation2 + $0x20c] sm:$0xf] }
 0x541   :  { %11270 = vst [vmem:[#allocation11_spill] sm:$0xff] %v10478_v47  ;;  %v4503_v34 = vmax.f32 %v4060_v11, 0.0  ;;  %v4018_v36 = vpop.f32.mrf.mxu2  ;;  %4431 = vmatpush.bf16.msrb.mxu3 %v6883_v30  ;;  %v6739_v53 = vor.u32 %v7561_v55, %v6736_v25  ;;  %v7046_v30 = vld [vmem:[#allocation4 + $0x80] sm:$0xf] }
 0x542   :  { %v10485_v20 = vadd.f32 %v4018_v36, %v11272_v45  ;;  %4965 = vmatpush.bf16.msrb.mxu0 %v6999_v43  ;;  %v6990_v36 = vld [vmem:[#allocation4 + $0x10] sm:$0xf]  ;;  %v7627_v45 = vld [vmem:[#allocation4 + $0x14] sm:$0xf0] }
 0x543   :  { %4257 = vmatmul.bf16.gmra.mxu3 %v11273_v13  ;;  %v10488_v28 = vpack.c.bf16 %v4503_v34, %v4499_v12  ;;  %v7054_v13 = vld [vmem:[#allocation4 + $0x90] sm:$0xf]  ;;  %v6991_v12 = vor.u32 %v7627_v45, %v6990_v36  ;;  %v7643_v34 = vld [vmem:[#allocation4 + $0x94] sm:$0xf0] }
 0x544   :  { %v4118_v11 = vpop.f32.mrf.mxu0  ;;  %5014 = vmatpush.bf16.msrb.mxu1 %v7063_v1  ;;  %v7055_v2 = vor.u32 %v7643_v34, %v7054_v13  ;;  %4383 = vmatpush.bf16.msrb.mxu2 %v6739_v53 }
 0x545   :  { %v4119_v29 = vadd.f32 %v4118_v11, %v10395_v48  ;;  %v4167_v58 = vpop.f32.mrf.mxu1  ;;  %v7625_v11 = vld [vmem:[#allocation4 + $0x4] sm:$0xf0] }
 0x546   :  { %v4062_v19 = vpop.f32.mrf.mxu3  ;;  %4966 = vmatpush.bf16.msrb.mxu0 %v6991_v12  ;;  %v6983_v37 = vor.u32 %v7625_v11, %v6982_v38 }
 0x547   :  { %v10491_v47 = vadd.f32 %v4167_v58, %v4119_v29  ;;  %v4063_v8 = vadd.f32 %v4062_v19, %v10465_v0  ;;  %v7641_v29 = vld [vmem:[#allocation4 + $0x84] sm:$0xf0] }
 0x548   :  { %5015 = vmatpush.bf16.msrb.mxu1 %v7055_v2  ;;  %v7047_v19 = vor.u32 %v7641_v29, %v7046_v30 }
 0x549   :  { %v4020_v52 = vpop.f32.mrf.mxu2 }
 0x54a   :  { %v4021_v43 = vadd.f32 %v4020_v52, %v10356_v63  ;;  %4967 = vmatpush.bf16.msrb.mxu0 %v6983_v37  ;;  %v4507_v63 = vmax.f32 %v4063_v8, 0.0  ;;  %v7593_v52 = vld [vmem:[#allocation2 + $0x30c] sm:$0xf]  ;;  %v6864_v37 = vld [vmem:[#allocation2 + $0x318] sm:$0xf0] }
 0x54c   :  { %v4121_v1 = vpop.f32.mrf.mxu0  ;;  %5016 = vmatpush.bf16.msrb.mxu1 %v7047_v19 }
 0x54d   :  { %v4122_v58 = vadd.f32 %v4121_v1, %v10395_v48  ;;  %v4170_v0 = vpop.f32.mrf.mxu1 }
 0x54e   :  { %v4064_v13 = vpop.f32.mrf.mxu3  ;;  %4218 = vmatmul.bf16.gmra.mxu2 %v10028_v7 }
 0x54f   :  { %v10496_v36 = vadd.f32 %v4170_v0, %v4122_v58  ;;  %v4065_v45 = vadd.f32 %v4064_v13, %v10475_v60  ;;  %4316 = vmatmul.bf16.gmra.mxu0 %v11232_v21  ;;  %4365 = vmatmul.bf16.gmra.mxu1 %v11234_v46  ;;  %v6867_v60 = vor.u32 %v7593_v52, %v6864_v37 }
 0x551   :  { %v4511_v12 = vmax.f32 %v4065_v45, 0.0  ;;  %v4023_v34 = vpop.f32.mrf.mxu2  ;;  %4432 = vmatpush.bf16.msrb.mxu3 %v6867_v60 }
 0x552   :  { %v4024_v2 = vadd.f32 %v4023_v34, %v10361_v35 }
 0x553   :  { %4262 = vmatmul.bf16.gmra.mxu3 %v10240_v33  ;;  %v10504_v55 = vpack.c.bf16 %v4511_v12, %v4507_v63 }
 0x554   :  { %v4123_v25 = vpop.f32.mrf.mxu0 }
 0x555   :  { %v4124_v38 = vadd.f32 %v4123_v25, %v10395_v48  ;;  %v4172_v53 = vpop.f32.mrf.mxu1 }
 0x556   :  { %v4067_v21 = vpop.f32.mrf.mxu3 }
 0x557   :  { %v10507_v46 = vadd.f32 %v4172_v53, %v4124_v38  ;;  %v4068_v8 = vadd.f32 %v4067_v21, %v10485_v20 }
 0x559   :  { %v4025_v11 = vpop.f32.mrf.mxu2  ;;  %v4515_v13 = vmax.f32 %v4068_v8, 0.0 }
 0x55a   :  { %v4026_v35 = vadd.f32 %v4025_v11, %v10372_v18 }
 0x55c   :  { %v4126_v30 = vpop.f32.mrf.mxu0 }
 0x55d   :  { %v4127_v1 = vadd.f32 %v4126_v30, %v10395_v48  ;;  %v4175_v29 = vpop.f32.mrf.mxu1 }
 0x55e   :  { %v4069_v58 = vpop.f32.mrf.mxu3  ;;  %4223 = vmatmul.bf16.gmra.mxu2 %v10046_v5 }
 0x55f   :  { %v10512_v0 = vadd.f32 %v4175_v29, %v4127_v1  ;;  %v4070_v19 = vadd.f32 %v4069_v58, %v4021_v43  ;;  %4321 = vmatmul.bf16.gmra.mxu0 %v11236_v22  ;;  %4370 = vmatmul.bf16.gmra.mxu1 %v11238_v40  ;;  %v10525_v22 = vperm.slane %v10392_v39, 3  ;;  %v7671_v29 = vld [vmem:[#allocation4 + $0x174] sm:$0xf0] }
 0x561   :  { %v4519_v45 = vmax.f32 %v4070_v19, 0.0  ;;  %v4028_v20 = vpop.f32.mrf.mxu2 }
 0x562   :  { %v4029_v63 = vadd.f32 %v4028_v20, %v10377_v51 }
 0x563   :  { %4267 = vmatmul.bf16.gmra.mxu3 %v10254_v26  ;;  %v10519_v18 = vpack.c.bf16 %v4519_v45, %v4515_v13 }
 0x564   :  { %v4128_v12 = vpop.f32.mrf.mxu0 }
 0x565   :  { %v4129_v34 = vadd.f32 %v4128_v12, %v10395_v48  ;;  %v4177_v52 = vpop.f32.mrf.mxu1  ;;  %v11274_v48 = vld [vmem:[#allocation19_spill] sm:$0xff] }
 0x566   :  { %v4072_v43 = vpop.f32.mrf.mxu3 }
 0x567   :  { %v10522_v37 = vadd.f32 %v4177_v52, %v4129_v34  ;;  %v4073_v25 = vadd.f32 %v4072_v43, %v4024_v2  ;;  %v7230_v34 = vld [vmem:[#allocation4 + $0x1f0] sm:$0xf]  ;;  %v7687_v52 = vld [vmem:[#allocation4 + $0x1f4] sm:$0xf0] }
 0x568   :  { %v7231_v43 = vor.u32 %v7687_v52, %v7230_v34  ;;  %v7222_v34 = vld [vmem:[#allocation4 + $0x1e0] sm:$0xf]  ;;  %v7685_v52 = vld [vmem:[#allocation4 + $0x1e4] sm:$0xf0] }
 0x569   :  { %v4030_v40 = vpop.f32.mrf.mxu2  ;;  %v4523_v2 = vmax.f32 %v4073_v25, 0.0 }
 0x56a   :  { %v4031_v60 = vadd.f32 %v4030_v40, %v10387_v10  ;;  %v7166_v10 = vld [vmem:[#allocation4 + $0x170] sm:$0xf]  ;;  %5107 = vmatpush.bf16.msra.mxu3 %v7231_v43  ;;  %v7223_v43 = vor.u32 %v7685_v52, %v7222_v34  ;;  %v7683_v52 = vld [vmem:[#allocation4 + $0x1d4] sm:$0xf0] }
 0x56b   :  { %v7167_v13 = vor.u32 %v7671_v29, %v7166_v10  ;;  %v7669_v29 = vld [vmem:[#allocation4 + $0x164] sm:$0xf0]  ;;  %v7214_v34 = vld [vmem:[#allocation4 + $0x1d0] sm:$0xf] }
 0x56c   :  { %v4287_v38 = vpop.f32.mrf.mxu0 }
 0x56d   :  { %v4288_v51 = vadd.f32 %v4287_v38, %v10525_v22  ;;  %v4336_v53 = vpop.f32.mrf.mxu1  ;;  %5058 = vmatpush.bf16.msra.mxu2 %v7167_v13 }
 0x56e   :  { %v4074_v21 = vpop.f32.mrf.mxu3  ;;  %4384 = vmatmul.bf16.vlgmr.msrb.gmra.mxu2 %v9926_v17  ;;  %5108 = vmatpush.bf16.msra.mxu3 %v7223_v43  ;;  %v7215_v43 = vor.u32 %v7683_v52, %v7214_v34  ;;  %v7206_v34 = vld [vmem:[#allocation4 + $0x1c0] sm:$0xf]  ;;  %v7681_v52 = vld [vmem:[#allocation4 + $0x1c4] sm:$0xf0] }
 0x56f   :  { %v10529_v8 = vadd.f32 %v4336_v53, %v4288_v51  ;;  %v4075_v11 = vadd.f32 %v4074_v21, %v4026_v35  ;;  %4968 = vmatmul.bf16.vlgmr.msrb.gmra.mxu0 %v11274_v48  ;;  %5017 = vmatmul.bf16.vlgmr.msrb.gmra.mxu1 %v10432_v44 }
 0x571   :  { %v4527_v39 = vmax.f32 %v4075_v11, 0.0  ;;  %v4189_v30 = vpop.f32.mrf.mxu2 }
 0x572   :  { %v4190_v1 = vadd.f32 %v4189_v30, %v10399_v41  ;;  %5109 = vmatpush.bf16.msra.mxu3 %v7215_v43  ;;  %v7207_v43 = vor.u32 %v7681_v52, %v7206_v34 }
 0x573   :  { %4272 = vmatmul.bf16.gmra.mxu3 %v10271_v50  ;;  %v10536_v58 = vpack.c.bf16 %v4527_v39, %v4523_v2  ;;  %v11275_v2 = vld [vmem:[#allocation18_spill] sm:$0xff] }
 0x574   :  { %v4289_v19 = vpop.f32.mrf.mxu0 }
 0x575   :  { %v4290_v35 = vadd.f32 %v4289_v19, %v10525_v22  ;;  %v4338_v17 = vpop.f32.mrf.mxu1 }
 0x576   :  { %v4077_v45 = vpop.f32.mrf.mxu3  ;;  %5110 = vmatpush.bf16.msra.mxu3 %v7207_v43  ;;  %v7096_v43 = vld [vmem:[#allocation4 + $0xe8] sm:$0xf0] }
 0x577   :  { %v10539_v20 = vadd.f32 %v4338_v17, %v4290_v35  ;;  %v4078_v12 = vadd.f32 %v4077_v45, %v4029_v63 }
 0x579   :  { %v4191_v41 = vpop.f32.mrf.mxu2  ;;  %v4531_v63 = vmax.f32 %v4078_v12, 0.0 }
 0x57a   :  { %v4192_v25 = vadd.f32 %v4191_v41, %v10409_v15  ;;  %v7158_v15 = vld [vmem:[#allocation4 + $0x160] sm:$0xf] }
 0x57b   :  { %v7159_v35 = vor.u32 %v7669_v29, %v7158_v15  ;;  %v7150_v29 = vld [vmem:[#allocation4 + $0x150] sm:$0xf] }
 0x57c   :  { %v4292_v40 = vpop.f32.mrf.mxu0 }
 0x57d   :  { %v4293_v38 = vadd.f32 %v4292_v40, %v10525_v22  ;;  %v4341_v51 = vpop.f32.mrf.mxu1  ;;  %5059 = vmatpush.bf16.msra.mxu2 %v7159_v35 }
 0x57e   :  { %v4079_v53 = vpop.f32.mrf.mxu3  ;;  %4389 = vmatmul.bf16.gmra.mxu2 %v9944_v49 }
 0x57f   :  { %v10543_v21 = vadd.f32 %v4341_v51, %v4293_v38  ;;  %v4080_v11 = vadd.f32 %v4079_v53, %v4031_v60  ;;  %4973 = vmatmul.bf16.gmra.mxu0 %v11275_v2  ;;  %5022 = vmatmul.bf16.gmra.mxu1 %v10450_v9 }
 0x581   :  { %v4535_v39 = vmax.f32 %v4080_v11, 0.0  ;;  %v4194_v30 = vpop.f32.mrf.mxu2 }
 0x582   :  { %v4195_v10 = vadd.f32 %v4194_v30, %v10413_v62 }
 0x583   :  { %4433 = vmatmul.bf16.vlgmr.msrb.gmra.mxu3 %v10170_v24  ;;  %v10550_v19 = vpack.c.bf16 %v4535_v39, %v4531_v63  ;;  %v11276_v63 = vld [vmem:[#allocation50_spill] sm:$0xff] }
 0x584   :  { %v4294_v13 = vpop.f32.mrf.mxu0 }
 0x585   :  { %v4295_v60 = vadd.f32 %v4294_v13, %v10525_v22  ;;  %v4343_v49 = vpop.f32.mrf.mxu1  ;;  %v7667_v13 = vld [vmem:[#allocation4 + $0x154] sm:$0xf0] }
 0x586   :  { %v4238_v17 = vpop.f32.mrf.mxu3 }
 0x587   :  { %v10553_v45 = vadd.f32 %v4343_v49, %v4295_v60  ;;  %v4239_v12 = vadd.f32 %v4238_v17, %v4190_v1  ;;  %v7151_v60 = vor.u32 %v7667_v13, %v7150_v29  ;;  %v7665_v13 = vld [vmem:[#allocation4 + $0x144] sm:$0xf0] }
 0x589   :  { %v4196_v62 = vpop.f32.mrf.mxu2  ;;  %v4476_v1 = vmax.f32 %v4239_v12, 0.0  ;;  %5060 = vmatpush.bf16.msra.mxu2 %v7151_v60 }
 0x58a   :  { %v4197_v24 = vadd.f32 %v4196_v62, %v10423_v56 }
 0x58c   :  { %v4297_v41 = vpop.f32.mrf.mxu0 }
 0x58d   :  { %v4298_v40 = vadd.f32 %v4297_v41, %v10525_v22  ;;  %v4346_v38 = vpop.f32.mrf.mxu1 }
 0x58e   :  { %v4240_v51 = vpop.f32.mrf.mxu3  ;;  %4394 = vmatmul.bf16.gmra.mxu2 %v9962_v27 }
 0x58f   :  { %v10557_v53 = vadd.f32 %v4346_v38, %v4298_v40  ;;  %v4241_v11 = vadd.f32 %v4240_v51, %v4192_v25  ;;  %4978 = vmatmul.bf16.gmra.mxu0 %v11276_v63  ;;  %5027 = vmatmul.bf16.gmra.mxu1 %v10468_v4 }
 0x591   :  { %v4480_v39 = vmax.f32 %v4241_v11, 0.0  ;;  %v4199_v30 = vpop.f32.mrf.mxu2 }
 0x592   :  { %v4200_v56 = vadd.f32 %v4199_v30, %v10427_v14 }
 0x593   :  { %v10562_v15 = vpack.c.bf16 %v4480_v39, %v4476_v1  ;;  %4438 = vmatmul.bf16.gmra.mxu3 %v11247_v61  ;;  %v11277_v1 = vld [vmem:[#allocation8_spill] sm:$0xff] }
 0x594   :  { %v4299_v35 = vpop.f32.mrf.mxu0 }
 0x595   :  { %v4300_v25 = vadd.f32 %v4299_v35, %v10525_v22  ;;  %v4348_v27 = vpop.f32.mrf.mxu1 }
 0x596   :  { %v4243_v49 = vpop.f32.mrf.mxu3 }
 0x597   :  { %v10567_v17 = vadd.f32 %v4348_v27, %v4300_v25  ;;  %v4244_v12 = vadd.f32 %v4243_v49, %v4195_v10 }
 0x599   :  { %v4201_v62 = vpop.f32.mrf.mxu2  ;;  %v4484_v10 = vmax.f32 %v4244_v12, 0.0 }
 0x59a   :  { %v4202_v14 = vadd.f32 %v4201_v62, %v10437_v23  ;;  %v7142_v23 = vld [vmem:[#allocation4 + $0x140] sm:$0xf] }
 0x59b   :  { %v7143_v25 = vor.u32 %v7665_v13, %v7142_v23  ;;  %v7104_v23 = vld [vmem:[#allocation4 + $0xf8] sm:$0xf0] }
 0x59c   :  { %v4302_v61 = vpop.f32.mrf.mxu0 }
 0x59d   :  { %v4303_v41 = vadd.f32 %v4302_v61, %v10525_v22  ;;  %v4351_v40 = vpop.f32.mrf.mxu1  ;;  %5061 = vmatpush.bf16.msra.mxu2 %v7143_v25 }
 0x59e   :  { %v4245_v38 = vpop.f32.mrf.mxu3  ;;  %4399 = vmatmul.bf16.gmra.mxu2 %v9980_v32 }
 0x59f   :  { %v10571_v51 = vadd.f32 %v4351_v40, %v4303_v41  ;;  %v4246_v11 = vadd.f32 %v4245_v38, %v4197_v24  ;;  %4983 = vmatmul.bf16.gmra.mxu0 %v11277_v1  ;;  %5032 = vmatmul.bf16.gmra.mxu1 %v10488_v28  ;;  %v7638_v38 = vld [vmem:[#allocation4 + $0x74] sm:$0xf] }
 0x5a1   :  { %v4488_v39 = vmax.f32 %v4246_v11, 0.0  ;;  %v4204_v30 = vpop.f32.mrf.mxu2  ;;  %v7040_v11 = vld [vmem:[#allocation4 + $0x78] sm:$0xf0] }
 0x5a2   :  { %v4205_v29 = vadd.f32 %v4204_v30, %v10441_v6 }
 0x5a3   :  { %4443 = vmatmul.bf16.gmra.mxu3 %v11248_v42  ;;  %v10578_v35 = vpack.c.bf16 %v4488_v39, %v4484_v10  ;;  %v7654_v10 = vld [vmem:[#allocation4 + $0xf4] sm:$0xf] }
 0x5a4   :  { %v4304_v60 = vpop.f32.mrf.mxu0 }
 0x5a5   :  { %v4305_v24 = vadd.f32 %v4304_v60, %v10525_v22  ;;  %v4353_v32 = vpop.f32.mrf.mxu1 }
 0x5a6   :  { %v4248_v27 = vpop.f32.mrf.mxu3 }
 0x5a7   :  { %v10581_v49 = vadd.f32 %v4353_v32, %v4305_v24  ;;  %v4249_v12 = vadd.f32 %v4248_v27, %v4200_v56  ;;  %v7043_v56 = vor.u32 %v7638_v38, %v7040_v11  ;;  %v7636_v24 = vld [vmem:[#allocation4 + $0x64] sm:$0xf]  ;;  %v7032_v32 = vld [vmem:[#allocation4 + $0x68] sm:$0xf0]  ;;  %v7024_v11 = vld [vmem:[#allocation4 + $0x58] sm:$0xf0] }
 0x5a8   :  { %v7652_v27 = vld [vmem:[#allocation4 + $0xe4] sm:$0xf]  ;;  %v7035_v52 = vor.u32 %v7636_v24, %v7032_v32 }
 0x5a9   :  { %v4206_v6 = vpop.f32.mrf.mxu2  ;;  %v4492_v13 = vmax.f32 %v4249_v12, 0.0  ;;  %5156 = vmatpush.bf16.msra.mxu0 %v7043_v56  ;;  %v7198_v56 = vld [vmem:[#allocation4 + $0x1b0] sm:$0xf]  ;;  %v7632_v32 = vld [vmem:[#allocation4 + $0x44] sm:$0xf] }
 0x5aa   :  { %v10584_v42 = vadd.f32 %v4206_v6, %v10453_v57  ;;  %v7107_v57 = vor.u32 %v7654_v10, %v7104_v23  ;;  %v7650_v10 = vld [vmem:[#allocation4 + $0xd4] sm:$0xf]  ;;  %v7679_v23 = vld [vmem:[#allocation4 + $0x1b4] sm:$0xf0] }
 0x5ac   :  { %v4307_v62 = vpop.f32.mrf.mxu0  ;;  %5205 = vmatpush.bf16.msra.mxu1 %v7107_v57 }
 0x5ad   :  { %v4308_v61 = vadd.f32 %v4307_v62, %v10525_v22  ;;  %v4356_v41 = vpop.f32.mrf.mxu1  ;;  %5157 = vmatpush.bf16.msra.mxu0 %v7035_v52 }
 0x5ae   :  { %v4250_v40 = vpop.f32.mrf.mxu3  ;;  %4404 = vmatmul.bf16.gmra.mxu2 %v11265_v59  ;;  %v7134_v59 = vld [vmem:[#allocation4 + $0x130] sm:$0xf] }
 0x5af   :  { %v10587_v39 = vadd.f32 %v4356_v41, %v4308_v61  ;;  %v4251_v30 = vadd.f32 %v4250_v40, %v4202_v14  ;;  %4988 = vmatmul.bf16.gmra.mxu0 %v10369_v54  ;;  %5037 = vmatmul.bf16.gmra.mxu1 %v10504_v55  ;;  %v7663_v14 = vld [vmem:[#allocation4 + $0x134] sm:$0xf0]  ;;  %v7099_v61 = vor.u32 %v7652_v27, %v7096_v43  ;;  %v7016_v27 = vld [vmem:[#allocation4 + $0x48] sm:$0xf0] }
 0x5b0   :  { %v7135_v12 = vor.u32 %v7663_v14, %v7134_v59  ;;  %v7648_v59 = vld [vmem:[#allocation4 + $0xc4] sm:$0xf]  ;;  %v7019_v52 = vor.u32 %v7632_v32, %v7016_v27  ;;  %v7080_v43 = vld [vmem:[#allocation4 + $0xc8] sm:$0xf0]  ;;  %v7126_v32 = vld [vmem:[#allocation4 + $0x120] sm:$0xf] }
 0x5b1   :  { %v4496_v60 = vmax.f32 %v4251_v30, 0.0  ;;  %v4209_v25 = vpop.f32.mrf.mxu2  ;;  %5206 = vmatpush.bf16.msra.mxu1 %v7099_v61  ;;  %v7661_v27 = vld [vmem:[#allocation4 + $0x124] sm:$0xf0] }
 0x5b2   :  { %v10593_v34 = vadd.f32 %v4209_v25, %v10459_v3  ;;  %5062 = vmatpush.bf16.msra.mxu2 %v7135_v12  ;;  %v7634_v3 = vld [vmem:[#allocation4 + $0x54] sm:$0xf] }
 0x5b3   :  { %4448 = vmatmul.bf16.gmra.mxu3 %v11269_v31  ;;  %v10596_v6 = vpack.c.bf16 %v4496_v60, %v4492_v13  ;;  %v7027_v57 = vor.u32 %v7634_v3, %v7024_v11  ;;  %v7088_v13 = vld [vmem:[#allocation4 + $0xd8] sm:$0xf0]  ;;  %v7199_v60 = vor.u32 %v7679_v23, %v7198_v56  ;;  %v7646_v3 = vld [vmem:[#allocation4 + $0xb4] sm:$0xf] }
 0x5b4   :  { %v4309_v62 = vpop.f32.mrf.mxu0  ;;  %v7091_v25 = vor.u32 %v7650_v10, %v7088_v13  ;;  %v11278_v56 = vld [vmem:[#allocation15_spill] sm:$0xff] }
 0x5b5   :  { %v4310_v41 = vadd.f32 %v4309_v62, %v10525_v22  ;;  %v4358_v40 = vpop.f32.mrf.mxu1  ;;  %5158 = vmatpush.bf16.msra.mxu0 %v7027_v57  ;;  %5111 = vmatpush.bf16.msra.mxu3 %v7199_v60  ;;  %v7072_v57 = vld [vmem:[#allocation4 + $0xb8] sm:$0xf0] }
 0x5b6   :  { %v4253_v38 = vpop.f32.mrf.mxu3  ;;  %5207 = vmatpush.bf16.msra.mxu1 %v7091_v25  ;;  %v7075_v13 = vor.u32 %v7646_v3, %v7072_v57  ;;  %v7659_v57 = vld [vmem:[#allocation4 + $0x114] sm:$0xf0] }
 0x5b7   :  { %v10599_v31 = vadd.f32 %v4358_v40, %v4310_v41  ;;  %v4254_v30 = vadd.f32 %v4253_v38, %v4205_v29  ;;  %v7083_v29 = vor.u32 %v7648_v59, %v7080_v43  ;;  %v7630_v40 = vld [vmem:[#allocation4 + $0x34] sm:$0xf]  ;;  %v7008_v38 = vld [vmem:[#allocation4 + $0x38] sm:$0xf0]  ;;  %v7628_v59 = vld [vmem:[#allocation4 + $0x24] sm:$0xf] }
 0x5b8   :  { %v7011_v23 = vor.u32 %v7630_v40, %v7008_v38 }
 0x5b9   :  { %v4211_v24 = vpop.f32.mrf.mxu2  ;;  %5159 = vmatpush.bf16.msra.mxu0 %v7019_v52  ;;  %v4500_v60 = vmax.f32 %v4254_v30, 0.0  ;;  %v11280_v52 = vld [vmem:[#allocation11_spill] sm:$0xff] }
 0x5ba   :  { %v10602_v14 = vadd.f32 %v4211_v24, %v10471_v16  ;;  %5208 = vmatpush.bf16.msra.mxu1 %v7083_v29  ;;  %v11279_v16 = vld [vmem:[#allocation22_spill] sm:$0xff]  ;;  %v7000_v29 = vld [vmem:[#allocation4 + $0x28] sm:$0xf0] }
 0x5bb   :  { %v7003_v30 = vor.u32 %v7628_v59, %v7000_v29  ;;  %v7642_v29 = vld [vmem:[#allocation4 + $0x94] sm:$0xf] }
 0x5bc   :  { %v4312_v62 = vpop.f32.mrf.mxu0 }
 0x5bd   :  { %v4313_v12 = vadd.f32 %v4312_v62, %v10525_v22  ;;  %v4361_v61 = vpop.f32.mrf.mxu1  ;;  %5160 = vmatpush.bf16.msra.mxu0 %v7011_v23  ;;  %v7127_v62 = vor.u32 %v7661_v27, %v7126_v32  ;;  %v7118_v23 = vld [vmem:[#allocation4 + $0x110] sm:$0xf]  ;;  %v7190_v27 = vld [vmem:[#allocation4 + $0x1a0] sm:$0xf] }
 0x5be   :  { %v4255_v41 = vpop.f32.mrf.mxu3  ;;  %4409 = vmatmul.bf16.gmra.mxu2 %v11278_v56  ;;  %5209 = vmatpush.bf16.msra.mxu1 %v7075_v13  ;;  %v7626_v13 = vld [vmem:[#allocation4 + $0x14] sm:$0xf] }
 0x5bf   :  { %v10605_v11 = vadd.f32 %v4361_v61, %v4313_v12  ;;  %v4256_v10 = vadd.f32 %v4255_v41, %v10584_v42  ;;  %4993 = vmatmul.bf16.gmra.mxu0 %v11279_v16  ;;  %5042 = vmatmul.bf16.gmra.mxu1 %v10519_v18  ;;  %v11281_v42 = vld [vmem:[#allocation40_spill] sm:$0xff]  ;;  %v7064_v61 = vld [vmem:[#allocation4 + $0xa8] sm:$0xf0] }
 0x5c0   :  { %v7644_v12 = vld [vmem:[#allocation4 + $0xa4] sm:$0xf]  ;;  %5063 = vmatpush.bf16.msra.mxu2 %v7127_v62 }
 0x5c1   :  { %v4504_v25 = vmax.f32 %v4256_v10, 0.0  ;;  %v4214_v24 = vpop.f32.mrf.mxu2  ;;  %v7067_v38 = vor.u32 %v7644_v12, %v7064_v61  ;;  %5161 = vmatpush.bf16.msra.mxu0 %v7003_v30  ;;  %v7056_v12 = vld [vmem:[#allocation4 + $0x98] sm:$0xf0]  ;;  %v7657_v30 = vld [vmem:[#allocation4 + $0x104] sm:$0xf0] }
 0x5c2   :  { %v10612_v43 = vadd.f32 %v4214_v24, %v11280_v52  ;;  %v6992_v52 = vld [vmem:[#allocation4 + $0x18] sm:$0xf0]  ;;  %v7059_v62 = vor.u32 %v7642_v29, %v7056_v12 }
 0x5c3   :  { %4453 = vmatmul.bf16.gmra.mxu3 %v11281_v42  ;;  %v10615_v41 = vpack.c.bf16 %v4504_v25, %v4500_v60  ;;  %5210 = vmatpush.bf16.msra.mxu1 %v7067_v38  ;;  %v7677_v60 = vld [vmem:[#allocation4 + $0x1a4] sm:$0xf0]  ;;  %v7119_v25 = vor.u32 %v7659_v57, %v7118_v23  ;;  %v6995_v42 = vor.u32 %v7626_v13, %v6992_v52  ;;  %v7624_v38 = vld [vmem:[#allocation4 + $0x4] sm:$0xf] }
 0x5c4   :  { %v4314_v40 = vpop.f32.mrf.mxu0  ;;  %v7191_v59 = vor.u32 %v7677_v60, %v7190_v27  ;;  %v7048_v27 = vld [vmem:[#allocation4 + $0x88] sm:$0xf0] }
 0x5c5   :  { %v4315_v3 = vadd.f32 %v4314_v40, %v10525_v22  ;;  %v4363_v10 = vpop.f32.mrf.mxu1  ;;  %5064 = vmatpush.bf16.msra.mxu2 %v7119_v25  ;;  %5162 = vmatpush.bf16.msra.mxu0 %v6995_v42  ;;  %v7110_v40 = vld [vmem:[#allocation4 + $0x100] sm:$0xf] }
 0x5c6   :  { %v4258_v56 = vpop.f32.mrf.mxu3  ;;  %5112 = vmatpush.bf16.msra.mxu3 %v7191_v59 }
 0x5c7   :  { %v10618_v24 = vadd.f32 %v4363_v10, %v4315_v3  ;;  %v4259_v32 = vadd.f32 %v4258_v56, %v10593_v34  ;;  %5211 = vmatpush.bf16.msra.mxu1 %v7059_v62  ;;  %v7111_v34 = vor.u32 %v7657_v30, %v7110_v40  ;;  %v6984_v10 = vld [vmem:[#allocation4 + $0x8] sm:$0xf0]  ;;  %v7640_v56 = vld [vmem:[#allocation4 + $0x84] sm:$0xf] }
 0x5c8   :  { %v6987_v57 = vor.u32 %v7624_v38, %v6984_v10  ;;  %v7051_v25 = vor.u32 %v7640_v56, %v7048_v27  ;;  %v7182_v56 = vld [vmem:[#allocation4 + $0x190] sm:$0xf] }
 0x5c9   :  { %v4216_v61 = vpop.f32.mrf.mxu2  ;;  %5065 = vmatpush.bf16.msra.mxu2 %v7111_v34  ;;  %v4508_v29 = vmax.f32 %v4259_v32, 0.0  ;;  %v7675_v32 = vld [vmem:[#allocation4 + $0x194] sm:$0xf0] }
 0x5ca   :  { %v4217_v3 = vadd.f32 %v4216_v61, %v10491_v47  ;;  %5163 = vmatpush.bf16.msra.mxu0 %v6987_v57  ;;  %v11282_v47 = vld [vmem:[#allocation51_spill] sm:$0xff] }
 0x5cb   :  { %5212 = vmatpush.bf16.msra.mxu1 %v7051_v25 }
 0x5cc   :  { %v4317_v23 = vpop.f32.mrf.mxu0 }
 0x5cd   :  { %v4318_v13 = vadd.f32 %v4317_v23, %v10525_v22  ;;  %v4366_v60 = vpop.f32.mrf.mxu1  ;;  %v7183_v23 = vor.u32 %v7675_v32, %v7182_v56  ;;  %v7174_v56 = vld [vmem:[#allocation4 + $0x180] sm:$0xf]  ;;  %v7673_v32 = vld [vmem:[#allocation4 + $0x184] sm:$0xf0] }
 0x5ce   :  { %v4260_v52 = vpop.f32.mrf.mxu3  ;;  %4414 = vmatmul.bf16.gmra.mxu2 %v10028_v7 }
 0x5cf   :  { %v10623_v59 = vadd.f32 %v4366_v60, %v4318_v13  ;;  %v4261_v42 = vadd.f32 %v4260_v52, %v10602_v14  ;;  %4998 = vmatmul.bf16.gmra.mxu0 %v11282_v47  ;;  %5047 = vmatmul.bf16.gmra.mxu1 %v10536_v58 }
 0x5d0   :  { %5113 = vmatpush.bf16.msra.mxu3 %v7183_v23 }
 0x5d1   :  { %v4512_v12 = vmax.f32 %v4261_v42, 0.0  ;;  %v4219_v62 = vpop.f32.mrf.mxu2  ;;  %v11283_v42 = vld [vmem:[#allocation43_spill] sm:$0xff] }
 0x5d2   :  { %v4220_v61 = vadd.f32 %v4219_v62, %v10496_v36 }
 0x5d3   :  { %4458 = vmatmul.bf16.gmra.mxu3 %v10240_v33  ;;  %v10631_v40 = vpack.c.bf16 %v4512_v12, %v4508_v29 }
 0x5d4   :  { %v4319_v30 = vpop.f32.mrf.mxu0 }
 0x5d5   :  { %v4320_v38 = vadd.f32 %v4319_v30, %v10525_v22  ;;  %v4368_v14 = vpop.f32.mrf.mxu1 }
 0x5d6   :  { %v4263_v34 = vpop.f32.mrf.mxu3 }
 0x5d7   :  { %v10634_v7 = vadd.f32 %v4368_v14, %v4320_v38  ;;  %v4264_v10 = vadd.f32 %v4263_v34, %v10612_v43 }
 0x5d9   :  { %v4221_v57 = vpop.f32.mrf.mxu2  ;;  %v4516_v43 = vmax.f32 %v4264_v10, 0.0 }
 0x5da   :  { %v4222_v36 = vadd.f32 %v4221_v57, %v10507_v46 }
 0x5dc   :  { %v4322_v27 = vpop.f32.mrf.mxu0 }
 0x5dd   :  { %v4323_v33 = vadd.f32 %v4322_v27, %v10525_v22  ;;  %v4371_v13 = vpop.f32.mrf.mxu1 }
 0x5de   :  { %v4265_v60 = vpop.f32.mrf.mxu3  ;;  %4419 = vmatmul.bf16.gmra.mxu2 %v10046_v5  ;;  %v10652_v5 = vld [vmem:[%s10981_s6] sm:$0x3] }
 0x5df   :  { %v10639_v25 = vadd.f32 %v4371_v13, %v4323_v33  ;;  %v4266_v52 = vadd.f32 %v4265_v60, %v4217_v3  ;;  %5003 = vmatmul.bf16.gmra.mxu0 %v11283_v42  ;;  %5052 = vmatmul.bf16.gmra.mxu1 %v10550_v19 }
 0x5e1   :  { %v4520_v29 = vmax.f32 %v4266_v52, 0.0  ;;  %v4224_v12 = vpop.f32.mrf.mxu2 }
 0x5e2   :  { %v4225_v62 = vadd.f32 %v4224_v12, %v10512_v0  ;;  %v7175_v0 = vor.u32 %v7673_v32, %v7174_v56  ;;  %v7168_v12 = vld [vmem:[#allocation4 + $0x178] sm:$0xf0] }
 0x5e3   :  { %4463 = vmatmul.bf16.gmra.mxu3 %v10254_v26  ;;  %v10646_v46 = vpack.c.bf16 %v4520_v29, %v4516_v43  ;;  %v10657_v26 = vperm.slane %v10652_v5, 0 }
 0x5e4   :  { %v4324_v30 = vpop.f32.mrf.mxu0  ;;  %5114 = vmatpush.bf16.msra.mxu3 %v7175_v0 }
 0x5e5   :  { %v4325_v38 = vadd.f32 %v4324_v30, %v10525_v22  ;;  %v4373_v14 = vpop.f32.mrf.mxu1 }
 0x5e6   :  { %v4268_v3 = vpop.f32.mrf.mxu3 }
 0x5e7   :  { %v10654_v34 = vadd.f32 %v4373_v14, %v4325_v38  ;;  %v4269_v10 = vadd.f32 %v4268_v3, %v4220_v61 }
 0x5e9   :  { %v4226_v23 = vpop.f32.mrf.mxu2  ;;  %v4524_v61 = vmax.f32 %v4269_v10, 0.0  ;;  %v7232_v10 = vld [vmem:[#allocation4 + $0x1f8] sm:$0xf0] }
 0x5ea   :  { %v4227_v22 = vadd.f32 %v4226_v23, %v10522_v37  ;;  %v7670_v37 = vld [vmem:[#allocation4 + $0x174] sm:$0xf] }
 0x5eb   :  { %v7171_v14 = vor.u32 %v7670_v37, %v7168_v12  ;;  %v7668_v37 = vld [vmem:[#allocation4 + $0x164] sm:$0xf]  ;;  %v7160_v12 = vld [vmem:[#allocation4 + $0x168] sm:$0xf0] }
 0x5ec   :  { %v4969_v57 = vpop.f32.mrf.mxu0 }
 0x5ed   :  { %v4970_v27 = vadd.f32 %v4969_v57, %v10657_v26  ;;  %v5018_v33 = vpop.f32.mrf.mxu1  ;;  %5254 = vmatpush.bf16.msrb.mxu2 %v7171_v14 }
 0x5ee   :  { %v4270_v13 = vpop.f32.mrf.mxu3  ;;  %5066 = vmatmul.bf16.vlgmr.msra.gmra.mxu2 %v10562_v15 }
 0x5ef   :  { %v10661_v60 = vadd.f32 %v5018_v33, %v4970_v27  ;;  %v4271_v52 = vadd.f32 %v4270_v13, %v4222_v36  ;;  %5164 = vmatmul.bf16.vlgmr.msra.gmra.mxu0 %v11274_v48  ;;  %5213 = vmatmul.bf16.vlgmr.msra.gmra.mxu1 %v10432_v44  ;;  %v7686_v44 = vld [vmem:[#allocation4 + $0x1f4] sm:$0xf] }
 0x5f0   :  { %v7235_v0 = vor.u32 %v7686_v44, %v7232_v10  ;;  %v7684_v10 = vld [vmem:[#allocation4 + $0x1e4] sm:$0xf] }
 0x5f1   :  { %v4528_v43 = vmax.f32 %v4271_v52, 0.0  ;;  %v4385_v29 = vpop.f32.mrf.mxu2 }
 0x5f2   :  { %5303 = vmatpush.bf16.msrb.mxu3 %v7235_v0 }
 0x5f3   :  { %4468 = vmatmul.bf16.gmra.mxu3 %v10271_v50  ;;  %v10667_v30 = vpack.c.bf16 %v4528_v43, %v4524_v61 }
 0x5f4   :  { %v4971_v38 = vpop.f32.mrf.mxu0 }
 0x5f5   :  { %v4972_v3 = vadd.f32 %v4971_v38, %v10657_v26  ;;  %v5020_v36 = vpop.f32.mrf.mxu1 }
 0x5f6   :  { %v4273_v56 = vpop.f32.mrf.mxu3 }
 0x5f7   :  { %v10670_v32 = vadd.f32 %v5020_v36, %v4972_v3  ;;  %v4274_v48 = vadd.f32 %v4273_v56, %v4225_v62  ;;  %v7163_v3 = vor.u32 %v7668_v37, %v7160_v12 }
 0x5f9   :  { %v4387_v23 = vpop.f32.mrf.mxu2  ;;  %v4532_v62 = vmax.f32 %v4274_v48, 0.0  ;;  %5255 = vmatpush.bf16.msrb.mxu2 %v7163_v3  ;;  %v4386_v48 = vadd.f32 %v4385_v29, %v10529_v8 }
 0x5fc   :  { %v4974_v50 = vpop.f32.mrf.mxu0 }
 0x5fd   :  { %v4975_v57 = vadd.f32 %v4974_v50, %v10657_v26  ;;  %v5023_v27 = vpop.f32.mrf.mxu1 }
 0x5fe   :  { %v4275_v33 = vpop.f32.mrf.mxu3  ;;  %5071 = vmatmul.bf16.gmra.mxu2 %v10578_v35 }
 0x5ff   :  { %v10673_v13 = vadd.f32 %v5023_v27, %v4975_v57  ;;  %v4276_v52 = vadd.f32 %v4275_v33, %v4227_v22  ;;  %5169 = vmatmul.bf16.gmra.mxu0 %v11275_v2  ;;  %5218 = vmatmul.bf16.gmra.mxu1 %v10450_v9  ;;  %v7224_v2 = vld [vmem:[#allocation4 + $0x1e8] sm:$0xf0]  ;;  %v4388_v57 = vadd.f32 %v4387_v23, %v10539_v20  ;;  %v7666_v20 = vld [vmem:[#allocation4 + $0x154] sm:$0xf]  ;;  %v7152_v23 = vld [vmem:[#allocation4 + $0x158] sm:$0xf0] }
 0x600   :  { %v7227_v0 = vor.u32 %v7684_v10, %v7224_v2 }
 0x601   :  { %v4536_v61 = vmax.f32 %v4276_v52, 0.0  ;;  %v4390_v43 = vpop.f32.mrf.mxu2 }
 0x602   :  { %5304 = vmatpush.bf16.msrb.mxu3 %v7227_v0 }
 0x603   :  { %v10678_v38 = vpack.c.bf16 %v4536_v61, %v4532_v62 }
 0x604   :  { %v4976_v14 = vpop.f32.mrf.mxu0 }
 0x605   :  { %v4977_v36 = vadd.f32 %v4976_v14, %v10657_v26  ;;  %v5025_v56 = vpop.f32.mrf.mxu1 }
 0x606   :  { %v4434_v44 = vpop.f32.mrf.mxu3 }
 0x607   :  { %v10681_v22 = vadd.f32 %v5025_v56, %v4977_v36  ;;  %v4435_v27 = vadd.f32 %v4434_v44, %v4386_v48  ;;  %v7155_v36 = vor.u32 %v7666_v20, %v7152_v23 }
 0x609   :  { %v4392_v9 = vpop.f32.mrf.mxu2  ;;  %v4477_v12 = vmax.f32 %v4435_v27, 0.0  ;;  %5256 = vmatpush.bf16.msrb.mxu2 %v7155_v36 }
 0x60a   :  { %v4393_v27 = vadd.f32 %v4392_v9, %v10553_v45  ;;  %v7664_v45 = vld [vmem:[#allocation4 + $0x144] sm:$0xf]  ;;  %v7144_v9 = vld [vmem:[#allocation4 + $0x148] sm:$0xf0] }
 0x60b   :  { %v7147_v36 = vor.u32 %v7664_v45, %v7144_v9  ;;  %v7136_v45 = vld [vmem:[#allocation4 + $0x138] sm:$0xf0] }
 0x60c   :  { %v4979_v50 = vpop.f32.mrf.mxu0 }
 0x60d   :  { %v4980_v33 = vadd.f32 %v4979_v50, %v10657_v26  ;;  %v5028_v52 = vpop.f32.mrf.mxu1  ;;  %v4391_v50 = vadd.f32 %v4390_v43, %v10543_v21  ;;  %5257 = vmatpush.bf16.msrb.mxu2 %v7147_v36 }
 0x60e   :  { %v4436_v62 = vpop.f32.mrf.mxu3  ;;  %5076 = vmatmul.bf16.gmra.mxu2 %v10596_v6 }
 0x60f   :  { %v10686_v61 = vadd.f32 %v5028_v52, %v4980_v33  ;;  %v4437_v37 = vadd.f32 %v4436_v62, %v4388_v57  ;;  %5174 = vmatmul.bf16.gmra.mxu0 %v11276_v63  ;;  %5223 = vmatmul.bf16.gmra.mxu1 %v10468_v4  ;;  %v7682_v63 = vld [vmem:[#allocation4 + $0x1d4] sm:$0xf]  ;;  %v7216_v4 = vld [vmem:[#allocation4 + $0x1d8] sm:$0xf0] }
 0x610   :  { %v7219_v0 = vor.u32 %v7682_v63, %v7216_v4 }
 0x611   :  { %v4481_v14 = vmax.f32 %v4437_v37, 0.0  ;;  %v4395_v8 = vpop.f32.mrf.mxu2 }
 0x612   :  { %5305 = vmatpush.bf16.msrb.mxu3 %v7219_v0 }
 0x613   :  { %v10691_v29 = vpack.c.bf16 %v4481_v14, %v4477_v12 }
 0x614   :  { %v4981_v3 = vpop.f32.mrf.mxu0 }
 0x615   :  { %v4982_v56 = vadd.f32 %v4981_v3, %v10657_v26  ;;  %v5030_v44 = vpop.f32.mrf.mxu1  ;;  %5115 = vmatmul.bf16.vlgmr.msra.gmra.mxu3 %v10691_v29 }
 0x616   :  { %v4439_v10 = vpop.f32.mrf.mxu3 }
 0x617   :  { %v10695_v2 = vadd.f32 %v5030_v44, %v4982_v56  ;;  %v4440_v33 = vadd.f32 %v4439_v10, %v4391_v50  ;;  %v4396_v50 = vadd.f32 %v4395_v8, %v10557_v53  ;;  %v7200_v8 = vld [vmem:[#allocation4 + $0x1b8] sm:$0xf0] }
 0x619   :  { %v4397_v48 = vpop.f32.mrf.mxu2  ;;  %v4485_v20 = vmax.f32 %v4440_v33, 0.0 }
 0x61c   :  { %v4984_v57 = vpop.f32.mrf.mxu0 }
 0x61d   :  { %v4985_v52 = vadd.f32 %v4984_v57, %v10657_v26  ;;  %v5033_v62 = vpop.f32.mrf.mxu1  ;;  %v4398_v57 = vadd.f32 %v4397_v48, %v10567_v17  ;;  %v7678_v17 = vld [vmem:[#allocation4 + $0x1b4] sm:$0xf] }
 0x61e   :  { %v4441_v37 = vpop.f32.mrf.mxu3  ;;  %5081 = vmatmul.bf16.gmra.mxu2 %v10615_v41  ;;  %v7203_v48 = vor.u32 %v7678_v17, %v7200_v8 }
 0x61f   :  { %v10700_v12 = vadd.f32 %v5033_v62, %v4985_v52  ;;  %v4442_v14 = vadd.f32 %v4441_v37, %v4393_v27  ;;  %5179 = vmatmul.bf16.gmra.mxu0 %v11277_v1  ;;  %5228 = vmatmul.bf16.gmra.mxu1 %v10488_v28  ;;  %v7680_v1 = vld [vmem:[#allocation4 + $0x1c4] sm:$0xf]  ;;  %v7208_v28 = vld [vmem:[#allocation4 + $0x1c8] sm:$0xf0] }
 0x620   :  { %v7211_v4 = vor.u32 %v7680_v1, %v7208_v28 }
 0x621   :  { %v4489_v23 = vmax.f32 %v4442_v14, 0.0  ;;  %v4400_v21 = vpop.f32.mrf.mxu2 }
 0x622   :  { %5306 = vmatpush.bf16.msrb.mxu3 %v7211_v4  ;;  %v7660_v4 = vld [vmem:[#allocation4 + $0x124] sm:$0xf] }
 0x623   :  { %v10705_v43 = vpack.c.bf16 %v4489_v23, %v4485_v20  ;;  %v7662_v23 = vld [vmem:[#allocation4 + $0x134] sm:$0xf] }
 0x624   :  { %v4986_v3 = vpop.f32.mrf.mxu0  ;;  %v7139_v9 = vor.u32 %v7662_v23, %v7136_v45 }
 0x625   :  { %v4987_v56 = vadd.f32 %v4986_v3, %v10657_v26  ;;  %5120 = vmatmul.bf16.gmra.mxu3 %v10705_v43  ;;  %v5035_v44 = vpop.f32.mrf.mxu1 }
 0x626   :  { %v4444_v10 = vpop.f32.mrf.mxu3  ;;  %5258 = vmatpush.bf16.msrb.mxu2 %v7139_v9  ;;  %5307 = vmatpush.bf16.msrb.mxu3 %v7203_v48 }
 0x627   :  { %v10709_v63 = vadd.f32 %v5035_v44, %v4987_v56  ;;  %v4445_v27 = vadd.f32 %v4444_v10, %v4396_v50  ;;  %v7128_v50 = vld [vmem:[#allocation4 + $0x128] sm:$0xf0] }
 0x629   :  { %v4402_v0 = vpop.f32.mrf.mxu2  ;;  %v4493_v62 = vmax.f32 %v4445_v27, 0.0  ;;  %v7131_v27 = vor.u32 %v7660_v4, %v7128_v50 }
 0x62b   :  { %5259 = vmatpush.bf16.msrb.mxu2 %v7131_v27 }
 0x62e   :  { %v4446_v33 = vpop.f32.mrf.mxu3  ;;  %5086 = vmatmul.bf16.gmra.mxu2 %v10631_v40 }
 0x62f   :  { %v4447_v52 = vadd.f32 %v4446_v33, %v4398_v57  ;;  %5184 = vmatmul.bf16.gmra.mxu0 %v10369_v54  ;;  %5233 = vmatmul.bf16.gmra.mxu1 %v10504_v55  ;;  %v4401_v54 = vadd.f32 %v4400_v21, %v10571_v51  ;;  %v4403_v55 = vadd.f32 %v4402_v0, %v10581_v49  ;;  %v7658_v49 = vld [vmem:[#allocation4 + $0x114] sm:$0xf]  ;;  %v7120_v21 = vld [vmem:[#allocation4 + $0x118] sm:$0xf0]  ;;  %v7676_v0 = vld [vmem:[#allocation4 + $0x1a4] sm:$0xf] }
 0x630   :  { %v7192_v33 = vld [vmem:[#allocation4 + $0x1a8] sm:$0xf0] }
 0x631   :  { %v4497_v37 = vmax.f32 %v4447_v52, 0.0  ;;  %v4405_v14 = vpop.f32.mrf.mxu2  ;;  %v7123_v52 = vor.u32 %v7658_v49, %v7120_v21 }
 0x632   :  { %v4406_v23 = vadd.f32 %v4405_v14, %v10587_v39  ;;  %v7674_v14 = vld [vmem:[#allocation4 + $0x194] sm:$0xf] }
 0x633   :  { %v10716_v20 = vpack.c.bf16 %v4497_v37, %v4493_v62  ;;  %5260 = vmatpush.bf16.msrb.mxu2 %v7123_v52  ;;  %v7656_v62 = vld [vmem:[#allocation4 + $0x104] sm:$0xf]  ;;  %v7112_v37 = vld [vmem:[#allocation4 + $0x108] sm:$0xf0] }
 0x634   :  { %v7115_v45 = vor.u32 %v7656_v62, %v7112_v37  ;;  %v7693_v62 = vld [vmem:[%s10982_s7 + $0x28] sm:$0xff] }
 0x635   :  { %5125 = vmatmul.bf16.gmra.mxu3 %v10716_v20 }
 0x636   :  { %v4449_v53 = vpop.f32.mrf.mxu3 }
 0x637   :  { %v4450_v36 = vadd.f32 %v4449_v53, %v4401_v54  ;;  %5261 = vmatpush.bf16.msrb.mxu2 %v7115_v45 }
 0x639   :  { %v4407_v3 = vpop.f32.mrf.mxu2  ;;  %v4501_v10 = vmax.f32 %v4450_v36, 0.0 }
 0x63a   :  { %v4408_v9 = vadd.f32 %v4407_v3, %v10599_v31  ;;  %v7184_v31 = vld [vmem:[#allocation4 + $0x198] sm:$0xf0] }
 0x63b   :  { %v7187_v3 = vor.u32 %v7674_v14, %v7184_v31  ;;  %v7689_v14 = vld [vmem:[%s10982_s7 + $0x8] sm:$0xff]  ;;  %v10773_v31 = vpop.f32.mrf.mxu0 }
 0x63e   :  { %v4451_v56 = vpop.f32.mrf.mxu3  ;;  %5091 = vmatmul.bf16.gmra.mxu2 %v10646_v46 }
 0x63f   :  { %v4452_v44 = vadd.f32 %v4451_v56, %v4403_v55  ;;  %5189 = vmatmul.bf16.gmra.mxu0 %v11279_v16  ;;  %5238 = vmatmul.bf16.gmra.mxu1 %v10519_v18  ;;  %v7195_v16 = vor.u32 %v7676_v0, %v7192_v33 }
 0x641   :  { %v4505_v1 = vmax.f32 %v4452_v44, 0.0  ;;  %v4410_v28 = vpop.f32.mrf.mxu2  ;;  %5308 = vmatpush.bf16.msrb.mxu3 %v7195_v16 }
 0x642   :  { %v4411_v44 = vadd.f32 %v4410_v28, %v10605_v11  ;;  %v7672_v11 = vld [vmem:[#allocation4 + $0x184] sm:$0xf]  ;;  %v7176_v28 = vld [vmem:[#allocation4 + $0x188] sm:$0xf0] }
 0x643   :  { %v10724_v57 = vpack.c.bf16 %v4505_v1, %v4501_v10  ;;  %v7179_v21 = vor.u32 %v7672_v11, %v7176_v28 }
 0x645   :  { %5130 = vmatmul.bf16.gmra.mxu3 %v10724_v57 }
 0x646   :  { %v4454_v51 = vpop.f32.mrf.mxu3  ;;  %5309 = vmatpush.bf16.msrb.mxu3 %v7187_v3 }
 0x647   :  { %v4455_v53 = vadd.f32 %v4454_v51, %v4406_v23 }
 0x649   :  { %v4412_v18 = vpop.f32.mrf.mxu2  ;;  %v4509_v48 = vmax.f32 %v4455_v53, 0.0 }
 0x64a   :  { %v4413_v10 = vadd.f32 %v4412_v18, %v10618_v24  ;;  %v7695_v24 = vld [vmem:[%s10982_s7 + $0x38] sm:$0xff]  ;;  %5310 = vmatpush.bf16.msrb.mxu3 %v7179_v21 }
 0x64b   :  { %5532 = vmatpush.bf16.msrb.mxu0 %v7695_v24 }
 0x64e   :  { %v4456_v17 = vpop.f32.mrf.mxu3  ;;  %5096 = vmatmul.bf16.gmra.mxu2 %v10667_v30 }
 0x64f   :  { %v4457_v8 = vadd.f32 %v4456_v17, %v4408_v9  ;;  %5194 = vmatmul.bf16.gmra.mxu0 %v11282_v47  ;;  %5243 = vmatmul.bf16.gmra.mxu1 %v10536_v58 }
 0x651   :  { %v4513_v54 = vmax.f32 %v4457_v8, 0.0  ;;  %v4415_v55 = vpop.f32.mrf.mxu2  ;;  %v7690_v8 = vld [vmem:[%s10982_s7 + $0x10] sm:$0xff] }
 0x653   :  { %v10732_v36 = vpack.c.bf16 %v4513_v54, %v4509_v48 }
 0x655   :  { %5135 = vmatmul.bf16.gmra.mxu3 %v10732_v36 }
 0x656   :  { %v4459_v39 = vpop.f32.mrf.mxu3 }
 0x657   :  { %v4460_v47 = vadd.f32 %v4459_v39, %v4411_v44 }
 0x659   :  { %v4417_v56 = vpop.f32.mrf.mxu2  ;;  %v4517_v4 = vmax.f32 %v4460_v47, 0.0  ;;  %v10784_v47 = vpop.f32.mrf.mxu0 }
 0x65a   :  { %v4418_v33 = vadd.f32 %v4417_v56, %v10634_v7  ;;  %v7692_v7 = vld [vmem:[%s10982_s7 + $0x20] sm:$0xff] }
 0x65e   :  { %v4461_v1 = vpop.f32.mrf.mxu3  ;;  %5101 = vmatmul.bf16.gmra.mxu2 %v10678_v38 }
 0x65f   :  { %v4462_v58 = vadd.f32 %v4461_v1, %v4413_v10  ;;  %5199 = vmatmul.bf16.gmra.mxu0 %v11283_v42  ;;  %5248 = vmatmul.bf16.gmra.mxu1 %v10550_v19  ;;  %v4416_v19 = vadd.f32 %v4415_v55, %v10623_v59  ;;  %v7694_v42 = vld [vmem:[%s10982_s7 + $0x30] sm:$0xff] }
 0x660   :  { %5533 = vmatpush.bf16.msrb.mxu0 %v7694_v42  ;;  %v10798_v42 = vpop.f32.mrf.mxu1 }
 0x661   :  { %v4521_v50 = vmax.f32 %v4462_v58, 0.0  ;;  %v4420_v27 = vpop.f32.mrf.mxu2  ;;  %v10787_v58 = vpop.f32.mrf.mxu0 }
 0x662   :  { %v4421_v17 = vadd.f32 %v4420_v27, %v10639_v25 }
 0x663   :  { %v10740_v51 = vpack.c.bf16 %v4521_v50, %v4517_v4  ;;  %v7702_v4 = vld [vmem:[%s10982_s7 + $0x70] sm:$0xff] }
 0x664   :  { %5534 = vmatpush.bf16.msrb.mxu0 %v7693_v62 }
 0x665   :  { %5140 = vmatmul.bf16.gmra.mxu3 %v10740_v51 }
 0x666   :  { %v4464_v49 = vpop.f32.mrf.mxu3 }
 0x667   :  { %v4465_v52 = vadd.f32 %v4464_v49, %v4416_v19 }
 0x668   :  { %5535 = vmatpush.bf16.msrb.mxu0 %v7692_v7 }
 0x669   :  { %v4422_v0 = vpop.f32.mrf.mxu2  ;;  %v4525_v37 = vmax.f32 %v4465_v52, 0.0  ;;  %v10794_v11 = vpop.f32.mrf.mxu0 }
 0x66a   :  { %v4423_v48 = vadd.f32 %v4422_v0, %v10654_v34  ;;  %v7688_v34 = vld [vmem:[%s10982_s7] sm:$0xff] }
 0x66e   :  { %v4466_v16 = vpop.f32.mrf.mxu3  ;;  %5262 = vmatmul.bf16.vlgmr.msrb.gmra.mxu2 %v10562_v15  ;;  %v7691_v15 = vld [vmem:[%s10982_s7 + $0x18] sm:$0xff] }
 0x66f   :  { %v4467_v18 = vadd.f32 %v4466_v16, %v4418_v33  ;;  %5536 = vmatpush.bf16.msrb.mxu0 %v7691_v15 }
 0x671   :  { %v4529_v23 = vmax.f32 %v4467_v18, 0.0  ;;  %v5067_v59 = vpop.f32.mrf.mxu2  ;;  %v5040_v18 = vpop.f32.mrf.mxu1 }
 0x672   :  { %v5068_v49 = vadd.f32 %v5067_v59, %v10661_v60  ;;  %v7701_v60 = vld [vmem:[%s10982_s7 + $0x68] sm:$0xff] }
 0x673   :  { %v10755_v45 = vpack.c.bf16 %v4529_v23, %v4525_v37  ;;  %5537 = vmatpush.bf16.msrb.mxu0 %v7690_v8 }
 0x675   :  { %5145 = vmatmul.bf16.gmra.mxu3 %v10755_v45 }
 0x676   :  { %v4469_v9 = vpop.f32.mrf.mxu3 }
 0x677   :  { %v4470_v54 = vadd.f32 %v4469_v9, %v4421_v17  ;;  %5538 = vmatpush.bf16.msrb.mxu0 %v7689_v14 }
 0x679   :  { %v5069_v53 = vpop.f32.mrf.mxu2  ;;  %v4533_v3 = vmax.f32 %v4470_v54, 0.0 }
 0x67a   :  { %v5070_v28 = vadd.f32 %v5069_v53, %v10670_v32  ;;  %v10804_v32 = vpop.f32.mrf.mxu0 }
 0x67b   :  { %5539 = vmatpush.bf16.msrb.mxu0 %v7688_v34 }
 0x67e   :  { %v4471_v55 = vpop.f32.mrf.mxu3  ;;  %5267 = vmatmul.bf16.gmra.mxu2 %v10578_v35  ;;  %v7703_v35 = vld [vmem:[%s10982_s7 + $0x78] sm:$0xff] }
 0x67f   :  { %v4472_v39 = vadd.f32 %v4471_v55, %v4423_v48  ;;  %5581 = vmatpush.bf16.msrb.mxu1 %v7703_v35 }
 0x681   :  { %v4537_v25 = vmax.f32 %v4472_v39, 0.0  ;;  %v5072_v56 = vpop.f32.mrf.mxu2 }
 0x682   :  { %v5073_v16 = vadd.f32 %v5072_v56, %v10673_v13  ;;  %v10809_v7 = vpop.f32.mrf.mxu0  ;;  %v7700_v13 = vld [vmem:[%s10982_s7 + $0x60] sm:$0xff] }
 0x683   :  { %v10775_v44 = vpack.c.bf16 %v4537_v25, %v4533_v3  ;;  %5582 = vmatpush.bf16.msrb.mxu1 %v7702_v4 }
 0x685   :  { %5150 = vmatmul.bf16.gmra.mxu3 %v10775_v44 }
 0x687   :  { %5583 = vmatpush.bf16.msrb.mxu1 %v7701_v60 }
 0x689   :  { %v5074_v10 = vpop.f32.mrf.mxu2 }
 0x68a   :  { %v5075_v62 = vadd.f32 %v5074_v10, %v10681_v22  ;;  %v10815_v22 = vpop.f32.mrf.mxu1  ;;  %v10817_v8 = vpop.f32.mrf.mxu0 }
 0x68b   :  { %5584 = vmatpush.bf16.msrb.mxu1 %v7700_v13 }
 0x68e   :  { %5272 = vmatmul.bf16.gmra.mxu2 %v10596_v6 }
 0x691   :  { %v5077_v1 = vpop.f32.mrf.mxu2 }
 0x692   :  { %v5078_v48 = vadd.f32 %v5077_v1, %v10686_v61  ;;  %v5045_v3 = vpop.f32.mrf.mxu1  ;;  %v10823_v35 = vpop.f32.mrf.mxu0  ;;  %v7699_v61 = vld [vmem:[%s10982_s7 + $0x58] sm:$0xff] }
 0x693   :  { %5585 = vmatpush.bf16.msrb.mxu1 %v7699_v61  ;;  %v5002_v61 = vadd.f32 %v10809_v7, %v10657_v26  ;;  %v5005_v7 = vadd.f32 %v10817_v8, %v10657_v26 }
 0x695   :  { %5311 = vmatmul.bf16.vlgmr.msrb.gmra.mxu3 %v10691_v29 }
 0x698   :  { %v5116_v50 = vpop.f32.mrf.mxu3 }
 0x699   :  { %v5079_v27 = vpop.f32.mrf.mxu2  ;;  %v5117_v24 = vadd.f32 %v5116_v50, %v5068_v49 }
 0x69a   :  { %v5080_v54 = vadd.f32 %v5079_v27, %v10695_v2  ;;  %v10833_v27 = vpop.f32.mrf.mxu0 }
 0x69b   :  { %v5352_v29 = vmax.f32 %v5117_v24, 0.0 }
 0x69e   :  { %5277 = vmatmul.bf16.gmra.mxu2 %v10615_v41 }
 0x6a0   :  { %v5118_v6 = vpop.f32.mrf.mxu3 }
 0x6a1   :  { %v5119_v21 = vadd.f32 %v5118_v6, %v5070_v28  ;;  %v5082_v0 = vpop.f32.mrf.mxu2 }
 0x6a2   :  { %v5083_v1 = vadd.f32 %v5082_v0, %v10700_v12  ;;  %v7698_v12 = vld [vmem:[%s10982_s7 + $0x50] sm:$0xff]  ;;  %v10844_v60 = vpop.f32.mrf.mxu0 }
 0x6a3   :  { %v5354_v19 = vmax.f32 %v5119_v21, 0.0  ;;  %5586 = vmatpush.bf16.msrb.mxu1 %v7698_v12 }
 0x6a5   :  { %v5384_v33 = vpack.c.bf16 %v5354_v19, %v5352_v29  ;;  %5316 = vmatmul.bf16.gmra.mxu3 %v10705_v43  ;;  %v4990_v29 = vadd.f32 %v10773_v31, %v10657_v26 }
 0x6a7   :  { %5540 = vmatmul.bf16.vlgmr.msrb.gmra.mxu0 %v5384_v33  ;;  %v5039_v33 = vadd.f32 %v10798_v42, %v4990_v29  ;;  %v4995_v42 = vadd.f32 %v10787_v58, %v10657_v26 }
 0x6a8   :  { %v5121_v52 = vpop.f32.mrf.mxu3 }
 0x6a9   :  { %v5084_v41 = vpop.f32.mrf.mxu2  ;;  %v5122_v37 = vadd.f32 %v5121_v52, %v5073_v16 }
 0x6aa   :  { %v5085_v4 = vadd.f32 %v5084_v41, %v10709_v63  ;;  %v4992_v63 = vadd.f32 %v10784_v47, %v10657_v26 }
 0x6ab   :  { %v5356_v9 = vmax.f32 %v5122_v37, 0.0 }
 0x6ae   :  { %5282 = vmatmul.bf16.gmra.mxu2 %v10631_v40 }
 0x6b0   :  { %v5123_v23 = vpop.f32.mrf.mxu3 }
 0x6b1   :  { %v5124_v43 = vadd.f32 %v5123_v23, %v5075_v62  ;;  %v5087_v59 = vpop.f32.mrf.mxu2 }
 0x6b2   :  { %v5088_v52 = vadd.f32 %v5087_v59, %v5039_v33  ;;  %v4997_v59 = vadd.f32 %v10794_v11, %v10657_v26 }
 0x6b3   :  { %v5358_v15 = vmax.f32 %v5124_v43, 0.0 }
 0x6b5   :  { %5321 = vmatmul.bf16.gmra.mxu3 %v10716_v20  ;;  %v5386_v53 = vpack.c.bf16 %v5358_v15, %v5356_v9  ;;  %v10847_v15 = vpop.f32.mrf.mxu0 }
 0x6b7   :  { %5545 = vmatmul.bf16.gmra.mxu0 %v5386_v53  ;;  %v5044_v53 = vadd.f32 %v10815_v22, %v4995_v42  ;;  %v5000_v22 = vadd.f32 %v10804_v32, %v10657_v26 }
 0x6b8   :  { %v5126_v17 = vpop.f32.mrf.mxu3 }
 0x6b9   :  { %v5089_v40 = vpop.f32.mrf.mxu2  ;;  %v5127_v55 = vadd.f32 %v5126_v17, %v5078_v48 }
 0x6bb   :  { %v5360_v25 = vmax.f32 %v5127_v55, 0.0 }
 0x6be   :  { %5287 = vmatmul.bf16.gmra.mxu2 %v10646_v46  ;;  %v10828_v46 = vpop.f32.mrf.mxu1 }
 0x6c0   :  { %v5128_v20 = vpop.f32.mrf.mxu3 }
 0x6c1   :  { %v5129_v39 = vadd.f32 %v5128_v20, %v5080_v54  ;;  %v5092_v14 = vpop.f32.mrf.mxu2 }
 0x6c2   :  { %v5093_v48 = vadd.f32 %v5092_v14, %v5044_v53  ;;  %v7696_v14 = vld [vmem:[%s10982_s7 + $0x40] sm:$0xff] }
 0x6c3   :  { %v5362_v56 = vmax.f32 %v5129_v39, 0.0 }
 0x6c5   :  { %5326 = vmatmul.bf16.gmra.mxu3 %v10724_v57  ;;  %v5388_v34 = vpack.c.bf16 %v5362_v56, %v5360_v25 }
 0x6c6   :  { %v5050_v19 = vpop.f32.mrf.mxu1 }
 0x6c7   :  { %5550 = vmatmul.bf16.gmra.mxu0 %v5388_v34 }
 0x6c8   :  { %v5131_v2 = vpop.f32.mrf.mxu3 }
 0x6c9   :  { %v5094_v10 = vpop.f32.mrf.mxu2  ;;  %v5132_v50 = vadd.f32 %v5131_v2, %v5083_v1  ;;  %v5051_v1 = vadd.f32 %v5050_v19, %v5002_v61 }
 0x6cb   :  { %v5364_v24 = vmax.f32 %v5132_v50, 0.0 }
 0x6ce   :  { %5292 = vmatmul.bf16.gmra.mxu2 %v10667_v30  ;;  %v5053_v62 = vpop.f32.mrf.mxu1 }
 0x6d0   :  { %v5133_v57 = vpop.f32.mrf.mxu3 }
 0x6d1   :  { %v5134_v49 = vadd.f32 %v5133_v57, %v5085_v4  ;;  %v5097_v28 = vpop.f32.mrf.mxu2 }
 0x6d3   :  { %v5366_v6 = vmax.f32 %v5134_v49, 0.0 }
 0x6d5   :  { %5331 = vmatmul.bf16.gmra.mxu3 %v10732_v36  ;;  %v5390_v21 = vpack.c.bf16 %v5366_v6, %v5364_v24  ;;  %v5041_v36 = vadd.f32 %v5040_v18, %v4992_v63  ;;  %v7697_v18 = vld [vmem:[%s10982_s7 + $0x48] sm:$0xff]  ;;  %v5054_v63 = vadd.f32 %v5053_v62, %v5005_v7 }
 0x6d6   :  { %5587 = vmatpush.bf16.msrb.mxu1 %v7697_v18  ;;  %v5055_v13 = vpop.f32.mrf.mxu1 }
 0x6d7   :  { %5555 = vmatmul.bf16.gmra.mxu0 %v5390_v21  ;;  %v5090_v41 = vadd.f32 %v5089_v40, %v5041_v36  ;;  %v5046_v40 = vadd.f32 %v5045_v3, %v4997_v59 }
 0x6d8   :  { %v5136_v30 = vpop.f32.mrf.mxu3 }
 0x6d9   :  { %v5099_v0 = vpop.f32.mrf.mxu2  ;;  %v5137_v31 = vadd.f32 %v5136_v30, %v5088_v52  ;;  %v5095_v54 = vadd.f32 %v5094_v10, %v5046_v40  ;;  %v5049_v10 = vadd.f32 %v10828_v46, %v5000_v22 }
 0x6da   :  { %5588 = vmatpush.bf16.msrb.mxu1 %v7696_v14  ;;  %v5100_v50 = vadd.f32 %v5099_v0, %v5051_v1 }
 0x6db   :  { %v5368_v43 = vmax.f32 %v5137_v31, 0.0 }
 0x6de   :  { %5297 = vmatmul.bf16.gmra.mxu2 %v10678_v38  ;;  %v5214_v56 = vpop.f32.mrf.mxu1 }
 0x6e0   :  { %v5138_v16 = vpop.f32.mrf.mxu3 }
 0x6e1   :  { %v5139_v37 = vadd.f32 %v5138_v16, %v5090_v41  ;;  %v5102_v23 = vpop.f32.mrf.mxu2 }
 0x6e2   :  { %v5103_v36 = vadd.f32 %v5102_v23, %v5054_v63 }
 0x6e3   :  { %v5370_v9 = vmax.f32 %v5139_v37, 0.0 }
 0x6e5   :  { %v5392_v47 = vpack.c.bf16 %v5370_v9, %v5368_v43  ;;  %5336 = vmatmul.bf16.gmra.mxu3 %v10740_v51  ;;  %v10858_v51 = vpop.f32.mrf.mxu0 }
 0x6e6   :  { %v5216_v4 = vpop.f32.mrf.mxu1 }
 0x6e7   :  { %5560 = vmatmul.bf16.gmra.mxu0 %v5392_v47 }
 0x6e8   :  { %v5141_v38 = vpop.f32.mrf.mxu3 }
 0x6e9   :  { %v5104_v17 = vpop.f32.mrf.mxu2  ;;  %v5142_v58 = vadd.f32 %v5141_v38, %v5093_v48 }
 0x6eb   :  { %v5372_v39 = vmax.f32 %v5142_v58, 0.0 }
 0x6ed   :  { %v10868_v2 = vpop.f32.mrf.mxu0 }
 0x6ee   :  { %v5219_v19 = vpop.f32.mrf.mxu1 }
 0x6f0   :  { %v5143_v55 = vpop.f32.mrf.mxu3 }
 0x6f1   :  { %v5144_v20 = vadd.f32 %v5143_v55, %v5095_v54  ;;  %v5263_v11 = vpop.f32.mrf.mxu2 }
 0x6f3   :  { %v5374_v25 = vmax.f32 %v5144_v20, 0.0 }
 0x6f5   :  { %v5394_v34 = vpack.c.bf16 %v5374_v25, %v5372_v39  ;;  %5341 = vmatmul.bf16.gmra.mxu3 %v10755_v45  ;;  %v5098_v45 = vadd.f32 %v5097_v28, %v5049_v10  ;;  %v10871_v6 = vpop.f32.mrf.mxu0  ;;  %v5007_v28 = vadd.f32 %v10823_v35, %v10657_v26 }
 0x6f6   :  { %v5221_v8 = vpop.f32.mrf.mxu1 }
 0x6f7   :  { %5565 = vmatmul.bf16.gmra.mxu0 %v5394_v34  ;;  %v5056_v0 = vadd.f32 %v5055_v13, %v5007_v28 }
 0x6f8   :  { %v5146_v3 = vpop.f32.mrf.mxu3 }
 0x6f9   :  { %v5147_v57 = vadd.f32 %v5146_v3, %v5098_v45  ;;  %v5265_v32 = vpop.f32.mrf.mxu2  ;;  %v5105_v52 = vadd.f32 %v5104_v17, %v5056_v0 }
 0x6fb   :  { %v5376_v21 = vmax.f32 %v5147_v57, 0.0 }
 0x6fd   :  { %v10878_v33 = vpop.f32.mrf.mxu0 }
 0x6fe   :  { %v5224_v38 = vpop.f32.mrf.mxu1 }
 0x700   :  { %v5148_v49 = vpop.f32.mrf.mxu3 }
 0x701   :  { %v5149_v24 = vadd.f32 %v5148_v49, %v5100_v50  ;;  %v5268_v30 = vpop.f32.mrf.mxu2 }
 0x703   :  { %v5378_v29 = vmax.f32 %v5149_v24, 0.0 }
 0x705   :  { %v5396_v12 = vpack.c.bf16 %v5378_v29, %v5376_v21  ;;  %5346 = vmatmul.bf16.gmra.mxu3 %v10775_v44  ;;  %v10881_v44 = vperm.slane %v10652_v5, 1  ;;  %v5182_v35 = vpop.f32.mrf.mxu0 }
 0x706   :  { %v5226_v55 = vpop.f32.mrf.mxu1 }
 0x707   :  { %5570 = vmatmul.bf16.gmra.mxu0 %v5396_v12  ;;  %v5166_v26 = vadd.f32 %v10833_v27, %v10881_v44  ;;  %v5168_v23 = vadd.f32 %v10844_v60, %v10881_v44  ;;  %v5171_v27 = vadd.f32 %v10847_v15, %v10881_v44  ;;  %v5173_v60 = vadd.f32 %v10858_v51, %v10881_v44 }
 0x708   :  { %v5151_v46 = vpop.f32.mrf.mxu3  ;;  %v5176_v50 = vadd.f32 %v10868_v2, %v10881_v44  ;;  %v5178_v51 = vadd.f32 %v10871_v6, %v10881_v44 }
 0x709   :  { %v5152_v41 = vadd.f32 %v5151_v46, %v5103_v36  ;;  %v5270_v9 = vpop.f32.mrf.mxu2  ;;  %v5215_v42 = vadd.f32 %v5214_v56, %v5166_v26  ;;  %v5217_v18 = vadd.f32 %v5216_v4, %v5168_v23  ;;  %v5220_v25 = vadd.f32 %v5219_v19, %v5171_v27 }
 0x70a   :  { %v5222_v56 = vadd.f32 %v5221_v8, %v5173_v60  ;;  %v5227_v21 = vadd.f32 %v5226_v55, %v5178_v51 }
 0x70b   :  { %v5380_v37 = vmax.f32 %v5152_v41, 0.0  ;;  %v5264_v59 = vadd.f32 %v5263_v11, %v5215_v42  ;;  %v5266_v53 = vadd.f32 %v5265_v32, %v5217_v18  ;;  %v5269_v34 = vadd.f32 %v5268_v30, %v5220_v25 }
 0x70c   :  { %v5271_v11 = vadd.f32 %v5270_v9, %v5222_v56  ;;  %v5225_v32 = vadd.f32 %v5224_v38, %v5176_v50 }
 0x70d   :  { %v5185_v4 = vpop.f32.mrf.mxu0 }
 0x70e   :  { %v5229_v3 = vpop.f32.mrf.mxu1 }
 0x710   :  { %v5153_v31 = vpop.f32.mrf.mxu3 }
 0x711   :  { %v5154_v16 = vadd.f32 %v5153_v31, %v5105_v52  ;;  %v5273_v5 = vpop.f32.mrf.mxu2  ;;  %v5181_v52 = vadd.f32 %v10878_v33, %v10881_v44  ;;  %v5183_v31 = vadd.f32 %v5182_v35, %v10881_v44  ;;  %v5186_v33 = vadd.f32 %v5185_v4, %v10881_v44 }
 0x712   :  { %v5274_v29 = vadd.f32 %v5273_v5, %v5225_v32 }
 0x713   :  { %v5382_v43 = vmax.f32 %v5154_v16, 0.0  ;;  %v5230_v16 = vadd.f32 %v5229_v3, %v5181_v52 }
 0x715   :  { %v5398_v47 = vpack.c.bf16 %v5382_v43, %v5380_v37  ;;  %v5187_v12 = vpop.f32.mrf.mxu0 }
 0x716   :  { %v5231_v49 = vpop.f32.mrf.mxu1 }
 0x717   :  { %5575 = vmatmul.bf16.gmra.mxu0 %v5398_v47  ;;  %v5232_v8 = vadd.f32 %v5231_v49, %v5183_v31 }
 0x718   :  { %v5312_v62 = vpop.f32.mrf.mxu3 }
 0x719   :  { %v5313_v13 = vadd.f32 %v5312_v62, %v5264_v59  ;;  %v5275_v20 = vpop.f32.mrf.mxu2 }
 0x71a   :  { %v5276_v7 = vadd.f32 %v5275_v20, %v5227_v21 }
 0x71b   :  { %v5353_v48 = vmax.f32 %v5313_v13, 0.0 }
 0x71d   :  { %v5190_v6 = vpop.f32.mrf.mxu0 }
 0x71e   :  { %v5234_v0 = vpop.f32.mrf.mxu1 }
 0x720   :  { %v5314_v17 = vpop.f32.mrf.mxu3 }
 0x721   :  { %v5315_v40 = vadd.f32 %v5314_v17, %v5266_v53  ;;  %v5278_v10 = vpop.f32.mrf.mxu2  ;;  %v5188_v53 = vadd.f32 %v5187_v12, %v10881_v44  ;;  %v5235_v17 = vadd.f32 %v5234_v0, %v5186_v33 }
 0x722   :  { %v5279_v37 = vadd.f32 %v5278_v10, %v5230_v16 }
 0x723   :  { %v5355_v54 = vmax.f32 %v5315_v40, 0.0 }
 0x725   :  { %v5385_v58 = vpack.c.bf16 %v5355_v54, %v5353_v48  ;;  %v5192_v42 = vpop.f32.mrf.mxu0 }
 0x726   :  { %v5236_v43 = vpop.f32.mrf.mxu1  ;;  %v5193_v3 = vadd.f32 %v5192_v42, %v10881_v44 }
 0x727   :  { %5589 = vmatmul.bf16.vlgmr.msrb.gmra.mxu1 %v5385_v58  ;;  %v5237_v48 = vadd.f32 %v5236_v43, %v5188_v53 }
 0x728   :  { %v5317_v39 = vpop.f32.mrf.mxu3 }
 0x729   :  { %v5318_v22 = vadd.f32 %v5317_v39, %v5269_v34  ;;  %v5280_v24 = vpop.f32.mrf.mxu2 }
 0x72a   :  { %v5281_v9 = vadd.f32 %v5280_v24, %v5232_v8 }
 0x72b   :  { %v5357_v1 = vmax.f32 %v5318_v22, 0.0  ;;  %v5191_v22 = vadd.f32 %v5190_v6, %v10881_v44 }
 0x72d   :  { %v5195_v40 = vpop.f32.mrf.mxu0 }
 0x72e   :  { %v5239_v35 = vpop.f32.mrf.mxu1 }
 0x730   :  { %v5319_v14 = vpop.f32.mrf.mxu3 }
 0x731   :  { %v5320_v61 = vadd.f32 %v5319_v14, %v5271_v11  ;;  %v5283_v2 = vpop.f32.mrf.mxu2 }
 0x732   :  { %v5284_v54 = vadd.f32 %v5283_v2, %v5235_v17 }
 0x733   :  { %v5359_v45 = vmax.f32 %v5320_v61, 0.0  ;;  %v5240_v61 = vadd.f32 %v5239_v35, %v5191_v22 }
 0x735   :  { %v5387_v15 = vpack.c.bf16 %v5359_v45, %v5357_v1  ;;  %v5197_v11 = vpop.f32.mrf.mxu0 }
 0x736   :  { %v5241_v39 = vpop.f32.mrf.mxu1 }
 0x737   :  { %5594 = vmatmul.bf16.gmra.mxu1 %v5387_v15  ;;  %v5242_v10 = vadd.f32 %v5241_v39, %v5193_v3 }
 0x738   :  { %v5322_v57 = vpop.f32.mrf.mxu3 }
 0x739   :  { %v5323_v46 = vadd.f32 %v5322_v57, %v5274_v29  ;;  %v5285_v26 = vpop.f32.mrf.mxu2  ;;  %v5196_v29 = vadd.f32 %v5195_v40, %v10881_v44 }
 0x73a   :  { %v5286_v58 = vadd.f32 %v5285_v26, %v5237_v48 }
 0x73b   :  { %v5361_v30 = vmax.f32 %v5323_v46, 0.0 }
 0x73d   :  { %v5200_v57 = vpop.f32.mrf.mxu0 }
 0x73e   :  { %v5244_v1 = vpop.f32.mrf.mxu1 }
 0x740   :  { %v5324_v28 = vpop.f32.mrf.mxu3 }
 0x741   :  { %v5325_v19 = vadd.f32 %v5324_v28, %v5276_v7  ;;  %v5288_v13 = vpop.f32.mrf.mxu2  ;;  %v5198_v28 = vadd.f32 %v5197_v11, %v10881_v44 }
 0x742   :  { %v5289_v45 = vadd.f32 %v5288_v13, %v5240_v61 }
 0x743   :  { %v5363_v63 = vmax.f32 %v5325_v19, 0.0 }
 0x745   :  { %v5389_v36 = vpack.c.bf16 %v5363_v63, %v5361_v30  ;;  %v5202_v19 = vpop.f32.mrf.mxu0  ;;  %v5245_v30 = vadd.f32 %v5244_v1, %v5196_v29 }
 0x746   :  { %v5246_v12 = vpop.f32.mrf.mxu1  ;;  %v5203_v26 = vadd.f32 %v5202_v19, %v10881_v44 }
 0x747   :  { %5599 = vmatmul.bf16.gmra.mxu1 %v5389_v36  ;;  %v5247_v63 = vadd.f32 %v5246_v12, %v5198_v28 }
 0x748   :  { %v5327_v41 = vpop.f32.mrf.mxu3 }
 0x749   :  { %v5328_v47 = vadd.f32 %v5327_v41, %v5279_v37  ;;  %v5290_v56 = vpop.f32.mrf.mxu2 }
 0x74a   :  { %v5291_v15 = vadd.f32 %v5290_v56, %v5242_v10 }
 0x74b   :  { %v5365_v18 = vmax.f32 %v5328_v47, 0.0 }
 0x74d   :  { %v5541_v31 = vpop.f32.mrf.mxu0 }
 0x74e   :  { %v5249_v6 = vpop.f32.mrf.mxu1 }
 0x750   :  { %v5329_v62 = vpop.f32.mrf.mxu3 }
 0x751   :  { %v5330_v23 = vadd.f32 %v5329_v62, %v5281_v9  ;;  %v5293_v4 = vpop.f32.mrf.mxu2  ;;  %v5201_v9 = vadd.f32 %v5200_v57, %v10881_v44 }
 0x752   :  { %v5294_v0 = vadd.f32 %v5293_v4, %v5245_v30 }
 0x753   :  { %v5367_v38 = vmax.f32 %v5330_v23, 0.0  ;;  %v5250_v62 = vadd.f32 %v5249_v6, %v5201_v9 }
 0x755   :  { %v5391_v59 = vpack.c.bf16 %v5367_v38, %v5365_v18  ;;  %v5543_v42 = vpop.f32.mrf.mxu0 }
 0x756   :  { %v5251_v23 = vpop.f32.mrf.mxu1 }
 0x757   :  { %5604 = vmatmul.bf16.gmra.mxu1 %v5391_v59  ;;  %v5252_v38 = vadd.f32 %v5251_v23, %v5203_v26 }
 0x758   :  { %v5332_v5 = vpop.f32.mrf.mxu3 }
 0x759   :  { %v5333_v27 = vadd.f32 %v5332_v5, %v5284_v54  ;;  %v5295_v7 = vpop.f32.mrf.mxu2  ;;  %v10909_v54 = vld [vmem:[%s10983_s8] ss:$0 sm:$0xff] }
 0x75a   :  { %v5296_v36 = vadd.f32 %v5295_v7, %v5247_v63  ;;  %v5544_v39 = vadd.f32 %v10909_v54, %v5543_v42 }
 0x75b   :  { %v5369_v60 = vmax.f32 %v5333_v27, 0.0 }
 0x75d   :  { %v5546_v48 = vpop.f32.mrf.mxu0 }
 0x75e   :  { %v5547_v56 = vadd.f32 %v10909_v54, %v5546_v48 }
 0x760   :  { %v5334_v55 = vpop.f32.mrf.mxu3 }
 0x761   :  { %v5335_v20 = vadd.f32 %v5334_v55, %v5286_v58  ;;  %v5298_v16 = vpop.f32.mrf.mxu2  ;;  %v5542_v58 = vadd.f32 %v10909_v54, %v5541_v31 }
 0x762   :  { %v5299_v59 = vadd.f32 %v5298_v16, %v5250_v62 }
 0x763   :  { %v5371_v25 = vmax.f32 %v5335_v20, 0.0 }
 0x765   :  { %v5393_v34 = vpack.c.bf16 %v5371_v25, %v5369_v60  ;;  %v5548_v44 = vpop.f32.mrf.mxu0 }
 0x767   :  { %5609 = vmatmul.bf16.gmra.mxu1 %v5393_v34 }
 0x768   :  { %v5337_v14 = vpop.f32.mrf.mxu3 }
 0x769   :  { %v5338_v50 = vadd.f32 %v5337_v14, %v5289_v45  ;;  %v5300_v18 = vpop.f32.mrf.mxu2  ;;  %v5549_v14 = vadd.f32 %v10909_v54, %v5548_v44 }
 0x76a   :  { %v5301_v33 = vadd.f32 %v5300_v18, %v5252_v38 }
 0x76b   :  { %v5373_v49 = vmax.f32 %v5338_v50, 0.0 }
 0x76d   :  { %v5551_v20 = vpop.f32.mrf.mxu0 }
 0x76e   :  { %v5552_v1 = vadd.f32 %v10909_v54, %v5551_v20 }
 0x770   :  { %v5339_v51 = vpop.f32.mrf.mxu3 }
 0x771   :  { %v5340_v32 = vadd.f32 %v5339_v51, %v5291_v15 }
 0x773   :  { %v5375_v24 = vmax.f32 %v5340_v32, 0.0 }
 0x775   :  { %v5395_v21 = vpack.c.bf16 %v5375_v24, %v5373_v49  ;;  %v5553_v34 = vpop.f32.mrf.mxu0 }
 0x776   :  { %v5554_v50 = vadd.f32 %v10909_v54, %v5553_v34 }
 0x777   :  { %5614 = vmatmul.bf16.gmra.mxu1 %v5395_v21 }
 0x778   :  { %v5342_v46 = vpop.f32.mrf.mxu3 }
 0x779   :  { %v5343_v2 = vadd.f32 %v5342_v46, %v5294_v0 }
 0x77b   :  { %v5377_v8 = vmax.f32 %v5343_v2, 0.0 }
 0x77d   :  { %v5556_v10 = vpop.f32.mrf.mxu0 }
 0x77e   :  { %v5557_v49 = vadd.f32 %v10909_v54, %v5556_v10 }
 0x780   :  { %v5344_v52 = vpop.f32.mrf.mxu3 }
 0x781   :  { %v5345_v41 = vadd.f32 %v5344_v52, %v5296_v36 }
 0x783   :  { %v5379_v37 = vmax.f32 %v5345_v41, 0.0 }
 0x785   :  { %v5397_v43 = vpack.c.bf16 %v5379_v37, %v5377_v8  ;;  %v5558_v15 = vpop.f32.mrf.mxu0 }
 0x786   :  { %v5559_v29 = vadd.f32 %v10909_v54, %v5558_v15 }
 0x787   :  { %5619 = vmatmul.bf16.gmra.mxu1 %v5397_v43 }
 0x788   :  { %v5347_v47 = vpop.f32.mrf.mxu3 }
 0x789   :  { %v5348_v5 = vadd.f32 %v5347_v47, %v5299_v59 }
 0x78b   :  { %v5381_v13 = vmax.f32 %v5348_v5, 0.0 }
 0x78d   :  { %v5561_v32 = vpop.f32.mrf.mxu0 }
 0x78e   :  { %v5562_v28 = vadd.f32 %v10909_v54, %v5561_v32 }
 0x790   :  { %v5349_v53 = vpop.f32.mrf.mxu3 }
 0x791   :  { %v5350_v35 = vadd.f32 %v5349_v53, %v5301_v33 }
 0x793   :  { %v5383_v17 = vmax.f32 %v5350_v35, 0.0 }
 0x795   :  { %v5399_v40 = vpack.c.bf16 %v5383_v17, %v5381_v13  ;;  %v5563_v12 = vpop.f32.mrf.mxu0 }
 0x796   :  { %v5564_v0 = vadd.f32 %v10909_v54, %v5563_v12 }
 0x797   :  { %5624 = vmatmul.bf16.gmra.mxu1 %v5399_v40 }
 0x79d   :  { %v5566_v63 = vpop.f32.mrf.mxu0 }
 0x79e   :  { %v5567_v6 = vadd.f32 %v10909_v54, %v5566_v63 }
 0x7a4   :  { %v5590_v27 = vpop.f32.mrf.mxu1 }
 0x7a5   :  { %v5591_v55 = vadd.f32 %v5590_v27, %v5542_v58  ;;  %v5568_v52 = vpop.f32.mrf.mxu0 }
 0x7a6   :  { %v5569_v8 = vadd.f32 %v10909_v54, %v5568_v52 }
 0x7a7   :  { %5630 = vst [vmem:[%s10984_s9] sm:$0xff] %v5591_v55 }
 0x7ac   :  { %v5592_v60 = vpop.f32.mrf.mxu1 }
 0x7ad   :  { %v5593_v25 = vadd.f32 %v5592_v60, %v5544_v39  ;;  %v5571_v16 = vpop.f32.mrf.mxu0 }
 0x7ae   :  { %v5572_v9 = vadd.f32 %v10909_v54, %v5571_v16 }
 0x7af   :  { %5631 = vst [vmem:[%s10984_s9 + $0x8] sm:$0xff] %v5593_v25 }
 0x7b4   :  { %v5595_v11 = vpop.f32.mrf.mxu1 }
 0x7b5   :  { %v5596_v22 = vadd.f32 %v5595_v11, %v5547_v56  ;;  %v5573_v47 = vpop.f32.mrf.mxu0 }
 0x7b6   :  { %v5574_v23 = vadd.f32 %v10909_v54, %v5573_v47 }
 0x7b7   :  { %5632 = vst [vmem:[%s10984_s9 + $0x10] sm:$0xff] %v5596_v22 }
 0x7bc   :  { %v5597_v3 = vpop.f32.mrf.mxu1 }
 0x7bd   :  { %v5598_v61 = vadd.f32 %v5597_v3, %v5549_v14  ;;  %v5576_v38 = vpop.f32.mrf.mxu0 }
 0x7be   :  { %v5577_v59 = vadd.f32 %v10909_v54, %v5576_v38 }
 0x7bf   :  { %5633 = vst [vmem:[%s10984_s9 + $0x18] sm:$0xff] %v5598_v61 }
 0x7c4   :  { %v5600_v45 = vpop.f32.mrf.mxu1 }
 0x7c5   :  { %v5601_v4 = vadd.f32 %v5600_v45, %v5552_v1  ;;  %v5578_v53 = vpop.f32.mrf.mxu0 }
 0x7c6   :  { %v5579_v35 = vadd.f32 %v10909_v54, %v5578_v53 }
 0x7c7   :  { %5634 = vst [vmem:[%s10984_s9 + $0x20] sm:$0xff] %v5601_v4 }
 0x7cc   :  { %v5602_v57 = vpop.f32.mrf.mxu1 }
 0x7cd   :  { %v5603_v51 = vadd.f32 %v5602_v57, %v5554_v50 }
 0x7cf   :  { %5635 = vst [vmem:[%s10984_s9 + $0x28] sm:$0xff] %v5603_v51 }
 0x7d4   :  { %v5605_v24 = vpop.f32.mrf.mxu1 }
 0x7d5   :  { %v5606_v21 = vadd.f32 %v5605_v24, %v5557_v49 }
 0x7d7   :  { %5636 = vst [vmem:[%s10984_s9 + $0x30] sm:$0xff] %v5606_v21 }
 0x7dc   :  { %v5607_v7 = vpop.f32.mrf.mxu1 }
 0x7dd   :  { %v5608_v46 = vadd.f32 %v5607_v7, %v5559_v29 }
 0x7df   :  { %5637 = vst [vmem:[%s10984_s9 + $0x38] sm:$0xff] %v5608_v46 }
 0x7e4   :  { %v5610_v19 = vpop.f32.mrf.mxu1 }
 0x7e5   :  { %v5611_v30 = vadd.f32 %v5610_v19, %v5562_v28 }
 0x7e7   :  { %5638 = vst [vmem:[%s10984_s9 + $0x40] sm:$0xff] %v5611_v30 }
 0x7ec   :  { %v5612_v36 = vpop.f32.mrf.mxu1 }
 0x7ed   :  { %v5613_v2 = vadd.f32 %v5612_v36, %v5564_v0 }
 0x7ef   :  { %5639 = vst [vmem:[%s10984_s9 + $0x48] sm:$0xff] %v5613_v2 }
 0x7f4   :  { %v5615_v41 = vpop.f32.mrf.mxu1 }
 0x7f5   :  { %v5616_v31 = vadd.f32 %v5615_v41, %v5567_v6 }
 0x7f7   :  { %5640 = vst [vmem:[%s10984_s9 + $0x50] sm:$0xff] %v5616_v31 }
 0x7fc   :  { %v5617_v37 = vpop.f32.mrf.mxu1 }
 0x7fd   :  { %v5618_v43 = vadd.f32 %v5617_v37, %v5569_v8 }
 0x7ff   :  { %5641 = vst [vmem:[%s10984_s9 + $0x58] sm:$0xff] %v5618_v43 }
 0x804   :  { %v5620_v26 = vpop.f32.mrf.mxu1 }
 0x805   :  { %v5621_v62 = vadd.f32 %v5620_v26, %v5572_v9 }
 0x807   :  { %5642 = vst [vmem:[%s10984_s9 + $0x60] sm:$0xff] %v5621_v62 }
 0x80c   :  { %v5622_v42 = vpop.f32.mrf.mxu1 }
 0x80d   :  { %v5623_v18 = vadd.f32 %v5622_v42, %v5574_v23 }
 0x80f   :  { %5643 = vst [vmem:[%s10984_s9 + $0x68] sm:$0xff] %v5623_v18 }
 0x814   :  { %v5625_v33 = vpop.f32.mrf.mxu1 }
 0x815   :  { %v5626_v5 = vadd.f32 %v5625_v33, %v5577_v59 }
 0x817   :  { %5644 = vst [vmem:[%s10984_s9 + $0x70] sm:$0xff] %v5626_v5 }
 0x81c   :  { %v5627_v13 = vpop.f32.mrf.mxu1 }
 0x81d   :  { %v5628_v17 = vadd.f32 %v5627_v13, %v5579_v35 }
 0x81f   :  { %5645 = vst [vmem:[%s10984_s9 + $0x78] sm:$0xff] %v5628_v17 }
 0x820   :  { %5650 = vsyncpa [#allocation3], 1 }
 0x821   :  { %5651 = vsyncpa [#allocation5], 1 }

</bundles_post_ra>
